<compile_context>
chip_gen: v7x
topology: tpu7x:2x2x1
jax: 0.10.0
libtpu: 0.0.40
codegen_flags: <defaults>
</compile_context>

<pallas_src>
import functools

import jax
import jax.numpy as jnp
from jax import lax
from jax.experimental import pallas as pl
from jax.experimental.pallas import tpu as pltpu

C1 = 10           # conv1 output channels
C2 = 20           # conv2 output channels
C2P = 128         # lane-padded conv2 output channels (lane-dense stores)
GUARD1 = 8        # zeroed guard rows appended to the pooled-conv1 scratch


def _cnn_mnist_kernel(p1_ref, w1_ref, b1_ref, w2_ref, b2_ref, o_ref,
                      h1_s, acc_s, *, batch):
    B = batch
    BW = B * 16          # rows per spatial-row block: (b, j16) / (b, ow16)
    M1 = 12 * BW         # pooled conv1 rows, layout (i, b, j16),  i in 0..11
    M2 = 8 * BW          # conv2 rows,        layout (oh, b, ow16), oh in 0..7

    # Largest shifted-slab read of h1_s is (4*BW + 4) + M2 = M1 + 4 rows; the
    # GUARD1 zero rows must cover it (there is no runtime OOB check on VMEM).
    assert 4 * BW + 4 + M2 <= M1 + GUARD1, "h1 guard rows too small"

    def conv1_dot(g):
        return jnp.dot(p1_ref[g], w1_ref[...],
                       preferred_element_type=jnp.float32)

    # ---- layer 1: conv1 + 2x2 max pool + bias + ReLU -----------------------
    # p1_ref[g] holds the im2col patches of pool-window position g = (d1, d2),
    # rows (i, b, j16), cols (kh, kw).  Max over the four group matmuls IS the
    # 2x2 max pool; bias and ReLU commute with max, so they run once on the
    # pooled rows and h1_s is written exactly once.
    d01 = jnp.maximum(conv1_dot(0), conv1_dot(1))
    d23 = jnp.maximum(conv1_dot(2), conv1_dot(3))
    # NOTE: rows with j in 12..15 (the j 12->16 padding) hold relu(b1), not 0.
    # They only feed conv2 rows with ow >= 8, which are never emitted as real
    # pooled outputs (jp <= 3 -> ow <= 7, ow+kw <= 11).  Do not change the row
    # mapping / pool emit without rechecking this.
    h1_s[0:M1, :] = jnp.maximum(jnp.maximum(d01, d23) + b1_ref[...], 0.0)
    h1_s[M1:M1 + GUARD1, :] = jnp.zeros((GUARD1, C1), jnp.float32)

    # ---- layer 2: conv2 as 25 accumulated shifted matmuls ------------------
    # acc[(oh, b, ow), co] += h1[(oh+kh, b, ow+kw), c] * w2[co, c, kh, kw].
    # The interleaved (i, b, j16) layout makes src = kh*BW + kw batch
    # independent, so each tap is ONE (M2, C1) x (C1, C2P) matmul on a static
    # slab view (taps with kw != 0 cost a sublane rotate; XLU has slack).
    # NOTE: default matmul precision (reference uses HIGHEST) -- passes 1e-4
    # today; pin precision if the tolerance ever tightens.
    acc_s[...] = jnp.dot(h1_s[0:M2, :], w2_ref[0],
                         preferred_element_type=jnp.float32)
    for k in range(1, 25):
        src = (k // 5) * BW + (k % 5)
        acc_s[...] += jnp.dot(h1_s[src:src + M2, :], w2_ref[k],
                              preferred_element_type=jnp.float32)

    # ---- conv2 2x2 max pool + bias + ReLU + emit ---------------------------
    # oh partners sit at +BW (aligned slab max); ow partners are adjacent row
    # pairs (free (BW,.)->(BW/2,2,.) reshape + pair max).  Output rows are
    # (ip, b, q) with q in 0..7 (q < 4 real), so every store is an aligned,
    # lane-dense (8B, 128) block (unmasked vst).
    for ip in range(4):
        base = 2 * ip * BW
        mm = jnp.maximum(acc_s[base:base + BW, :],
                         acc_s[base + BW:base + 2 * BW, :])
        mm = mm.reshape(BW // 2, 2, C2P)
        pooled = jnp.maximum(mm[:, 0, :], mm[:, 1, :])          # (8B, C2P)
        o_ref[ip * 8 * B:(ip + 1) * 8 * B, :] = jnp.maximum(
            pooled + b2_ref[...], 0.0)


def cnn_mnist_forward(x, params):
    """Fused Pallas forward of CNN_Mnist (eval mode); x is NCHW (B,1,28,28)."""
    # TODO(synk): nn.Dropout2d is identity in eval mode; training-mode channel
    # dropout (random zeroing of whole feature maps) is not implemented.
    w1, b1, w2, b2 = params
    B = x.shape[0]
    BW = B * 16
    M1 = 12 * BW
    M2 = 8 * BW

    # --- host glue: layer-1 pool-grouped im2col (rows = (i, b, j16)) --------
    # Kept on the host: the 1-channel x25 expansion has to materialize
    # somewhere, and an in-kernel build would reintroduce misaligned narrow
    # writes.  ~75 KB/image of HBM; profile the whole jit and fold it in /
    # add a "parallel" batch grid only if B grows enough for it to matter.
    xs = x[:, 0]                                               # (B, 28, 28)
    cols = [xs[:, kh:kh + 24, kw:kw + 24]
            for kh in range(5) for kw in range(5)]
    patches = jnp.stack(cols, axis=-1)                         # (B, 24, 24, 25)
    p1 = patches.reshape(B, 12, 2, 12, 2, 25)                  # (b,i,d1,j,d2,k)
    p1 = p1.transpose(2, 4, 1, 0, 3, 5)                        # (d1,d2,i,b,j,k)
    p1 = jnp.pad(p1, ((0, 0),) * 4 + ((0, 4), (0, 0)))         # j: 12 -> 16
    p1 = p1.reshape(4, M1, 25)

    # --- weights in matmul layout (channel-last; contractions unpadded) -----
    w1m = w1.reshape(C1, 25).T                                 # (25, 10)
    b1m = b1.reshape(1, C1)
    w2s = w2.transpose(2, 3, 1, 0).reshape(25, C1, C2)         # (k, c, co)
    w2s = jnp.pad(w2s, ((0, 0), (0, 0), (0, C2P - C2)))        # co: 20 -> 128
    b2m = jnp.pad(b2.reshape(1, C2), ((0, 0), (0, C2P - C2)))

    flops = 2 * (4 * M1 * 25 * C1 + 25 * M2 * C1 * C2P)
    bytes_accessed = 4 * (p1.size + w1m.size + b1m.size + w2s.size
                          + b2m.size + 32 * B * C2P)

    out = pl.pallas_call(
        functools.partial(_cnn_mnist_kernel, batch=B),
        out_shape=jax.ShapeDtypeStruct((32 * B, C2P), jnp.float32),
        in_specs=[pl.BlockSpec(memory_space=pltpu.MemorySpace.VMEM)] * 5,
        out_specs=pl.BlockSpec(memory_space=pltpu.MemorySpace.VMEM),
        scratch_shapes=[
            pltpu.VMEM((M1 + GUARD1, C1), jnp.float32),   # pooled conv1 + guard
            pltpu.VMEM((M2, C2P), jnp.float32),           # conv2 accumulator
        ],
        compiler_params=pltpu.CompilerParams(
            # ~1.4 MB of VMEM at B=2; explicit limit keeps headroom obvious on
            # v7x (64 MiB physical / 32 MiB scoped default).  At large B, add
            # a "parallel" batch grid dimension instead of growing the blocks.
            vmem_limit_bytes=32 * 1024 * 1024),
        cost_estimate=pl.CostEstimate(flops=flops, transcendentals=0,
                                      bytes_accessed=bytes_accessed),
    )(p1, w1m, b1m, w2s, b2m)

    # --- tiny epilogue: reorder to the torch NCHW .view(-1, 320) layout -----
    out = out.reshape(4, B, 8, C2P)[:, :, :4, :C2]             # (ip, b, jp, c)
    return out.transpose(1, 3, 0, 2).reshape(B, C2 * 16)       # (b, c*16+ip*4+jp)


def reference_forward(x, params):
    """Pure-JAX reference of the PyTorch forward (eval mode)."""
    w1, b1, w2, b2 = params

    def conv(t, w, b):
        y = lax.conv_general_dilated(
            t, w, (1, 1), 'VALID',
            dimension_numbers=('NCHW', 'OIHW', 'NCHW'),
            precision=lax.Precision.HIGHEST)
        return y + b.reshape(1, -1, 1, 1)

    def maxpool2(t):
        return lax.reduce_window(t, -jnp.inf, lax.max,
                                 (1, 1, 2, 2), (1, 1, 2, 2), 'VALID')

    h = jnp.maximum(maxpool2(conv(x, w1, b1)), 0.0)
    h = jnp.maximum(maxpool2(conv(h, w2, b2)), 0.0)
    return h.reshape(h.shape[0], -1)


if __name__ == "__main__":
    key = jax.random.PRNGKey(0)
    kx, k1, k2, k3, k4 = jax.random.split(key, 5)

    B = 2
    # MNIST-shaped input: 28x28 is required so the flatten yields output_dim=320.
    x = jax.random.normal(kx, (B, 1, 28, 28), dtype=jnp.float32)

    # Deterministic synthetic parameters (shapes from CNN_Mnist.__init__).
    w1 = jax.random.normal(k1, (10, 1, 5, 5), dtype=jnp.float32) * 0.2
    b1 = jax.random.normal(k2, (10,), dtype=jnp.float32) * 0.1
    w2 = jax.random.normal(k3, (20, 10, 5, 5), dtype=jnp.float32) * 0.06
    b2 = jax.random.normal(k4, (20,), dtype=jnp.float32) * 0.1
    params = (w1, b1, w2, b2)

    out = jax.block_until_ready(jax.jit(cnn_mnist_forward)(x, params))
    ref = jax.block_until_ready(jax.jit(reference_forward)(x, params))

    assert out.shape == (B, 320), out.shape
    assert jnp.allclose(out, ref, atol=1e-4, rtol=1e-4), \
        float(jnp.max(jnp.abs(out - ref)))
    print("KERNEL_OK")
</pallas_src>

<mosaic_0001>
module attributes {stable_mosaic.version = 11 : i64} {
  func.func @_cnn_mnist_kernel(%arg0: memref<4x384x25xf32, #tpu.memory_space<vmem>>, %arg1: memref<25x10xf32, #tpu.memory_space<vmem>>, %arg2: memref<1x10xf32, #tpu.memory_space<vmem>>, %arg3: memref<25x10x128xf32, #tpu.memory_space<vmem>>, %arg4: memref<1x128xf32, #tpu.memory_space<vmem>>, %arg5: memref<64x128xf32, #tpu.memory_space<vmem>>, %arg6: memref<392x10xf32, #tpu.memory_space<vmem>>, %arg7: memref<256x128xf32, #tpu.memory_space<vmem>>) attributes {dimension_semantics = [], scalar_prefetch = 0 : i64, scratch_operands = 2 : i64, tpu.core_type = #tpu.core_type<tc>} {
    %c0 = arith.constant 0 : index
    %c0_0 = arith.constant 0 : index
    %c0_1 = arith.constant 0 : index
    %0 = vector.load %arg0[%c0, %c0_0, %c0_1] : memref<4x384x25xf32, #tpu.memory_space<vmem>>, vector<1x384x25xf32>
    %1 = vector.shape_cast %0 : vector<1x384x25xf32> to vector<384x25xf32>
    %c0_2 = arith.constant 0 : index
    %c0_3 = arith.constant 0 : index
    %2 = vector.load %arg1[%c0_2, %c0_3] : memref<25x10xf32, #tpu.memory_space<vmem>>, vector<25x10xf32>
    %cst = arith.constant dense<0.000000e+00> : vector<384x10xf32>
    %3 = tpu.matmul %1, %2, %cst {dimension_numbers = #tpu.dot_dimension_numbers<[1], [0], [0], [1], [0, 0, 1, 1], [], []>} : vector<384x25xf32>, vector<25x10xf32>, vector<384x10xf32> -> vector<384x10xf32>
    %c1 = arith.constant 1 : index
    %c0_4 = arith.constant 0 : index
    %c0_5 = arith.constant 0 : index
    %4 = vector.load %arg0[%c1, %c0_4, %c0_5] : memref<4x384x25xf32, #tpu.memory_space<vmem>>, vector<1x384x25xf32>
    %5 = vector.shape_cast %4 : vector<1x384x25xf32> to vector<384x25xf32>
    %c0_6 = arith.constant 0 : index
    %c0_7 = arith.constant 0 : index
    %6 = vector.load %arg1[%c0_6, %c0_7] : memref<25x10xf32, #tpu.memory_space<vmem>>, vector<25x10xf32>
    %cst_8 = arith.constant dense<0.000000e+00> : vector<384x10xf32>
    %7 = tpu.matmul %5, %6, %cst_8 {dimension_numbers = #tpu.dot_dimension_numbers<[1], [0], [0], [1], [0, 0, 1, 1], [], []>} : vector<384x25xf32>, vector<25x10xf32>, vector<384x10xf32> -> vector<384x10xf32>
    %8 = arith.maximumf %3, %7 : vector<384x10xf32>
    %c2 = arith.constant 2 : index
    %c0_9 = arith.constant 0 : index
    %c0_10 = arith.constant 0 : index
    %9 = vector.load %arg0[%c2, %c0_9, %c0_10] : memref<4x384x25xf32, #tpu.memory_space<vmem>>, vector<1x384x25xf32>
    %10 = vector.shape_cast %9 : vector<1x384x25xf32> to vector<384x25xf32>
    %c0_11 = arith.constant 0 : index
    %c0_12 = arith.constant 0 : index
    %11 = vector.load %arg1[%c0_11, %c0_12] : memref<25x10xf32, #tpu.memory_space<vmem>>, vector<25x10xf32>
    %cst_13 = arith.constant dense<0.000000e+00> : vector<384x10xf32>
    %12 = tpu.matmul %10, %11, %cst_13 {dimension_numbers = #tpu.dot_dimension_numbers<[1], [0], [0], [1], [0, 0, 1, 1], [], []>} : vector<384x25xf32>, vector<25x10xf32>, vector<384x10xf32> -> vector<384x10xf32>
    %c3 = arith.constant 3 : index
    %c0_14 = arith.constant 0 : index
    %c0_15 = arith.constant 0 : index
    %13 = vector.load %arg0[%c3, %c0_14, %c0_15] : memref<4x384x25xf32, #tpu.memory_space<vmem>>, vector<1x384x25xf32>
    %14 = vector.shape_cast %13 : vector<1x384x25xf32> to vector<384x25xf32>
    %c0_16 = arith.constant 0 : index
    %c0_17 = arith.constant 0 : index
    %15 = vector.load %arg1[%c0_16, %c0_17] : memref<25x10xf32, #tpu.memory_space<vmem>>, vector<25x10xf32>
    %cst_18 = arith.constant dense<0.000000e+00> : vector<384x10xf32>
    %16 = tpu.matmul %14, %15, %cst_18 {dimension_numbers = #tpu.dot_dimension_numbers<[1], [0], [0], [1], [0, 0, 1, 1], [], []>} : vector<384x25xf32>, vector<25x10xf32>, vector<384x10xf32> -> vector<384x10xf32>
    %17 = arith.maximumf %12, %16 : vector<384x10xf32>
    %18 = arith.maximumf %8, %17 : vector<384x10xf32>
    %c0_19 = arith.constant 0 : index
    %c0_20 = arith.constant 0 : index
    %19 = vector.load %arg2[%c0_19, %c0_20] : memref<1x10xf32, #tpu.memory_space<vmem>>, vector<1x10xf32>
    %20 = vector.broadcast %19 : vector<1x10xf32> to vector<384x10xf32>
    %21 = arith.addf %18, %20 : vector<384x10xf32>
    %cst_21 = arith.constant 0.000000e+00 : f32
    %22 = vector.broadcast %cst_21 : f32 to vector<384x10xf32>
    %23 = arith.maximumf %21, %22 : vector<384x10xf32>
    %c0_22 = arith.constant 0 : index
    %c0_23 = arith.constant 0 : index
    %24 = vector.load %arg6[%c0_22, %c0_23] : memref<392x10xf32, #tpu.memory_space<vmem>>, vector<384x10xf32>
    tpu.vector_store %arg6[%c0_22, %c0_23], %23 {strides = array<i32>} : memref<392x10xf32, #tpu.memory_space<vmem>>, vector<384x10xf32>,
    %cst_24 = arith.constant 0.000000e+00 : f32
    %25 = vector.broadcast %cst_24 : f32 to vector<8x10xf32>
    %c384 = arith.constant 384 : index
    %c0_25 = arith.constant 0 : index
    %26 = vector.load %arg6[%c384, %c0_25] : memref<392x10xf32, #tpu.memory_space<vmem>>, vector<8x10xf32>
    tpu.vector_store %arg6[%c384, %c0_25], %25 {strides = array<i32>} : memref<392x10xf32, #tpu.memory_space<vmem>>, vector<8x10xf32>,
    %c0_26 = arith.constant 0 : index
    %c0_27 = arith.constant 0 : index
    %27 = vector.load %arg6[%c0_26, %c0_27] : memref<392x10xf32, #tpu.memory_space<vmem>>, vector<256x10xf32>
    %c0_28 = arith.constant 0 : index
    %c0_29 = arith.constant 0 : index
    %c0_30 = arith.constant 0 : index
    %28 = vector.load %arg3[%c0_28, %c0_29, %c0_30] : memref<25x10x128xf32, #tpu.memory_space<vmem>>, vector<1x10x128xf32>
    %29 = vector.shape_cast %28 : vector<1x10x128xf32> to vector<10x128xf32>
    %cst_31 = arith.constant dense<0.000000e+00> : vector<256x128xf32>
    %30 = tpu.matmul %27, %29, %cst_31 {dimension_numbers = #tpu.dot_dimension_numbers<[1], [0], [0], [1], [0, 0, 1, 1], [], []>} : vector<256x10xf32>, vector<10x128xf32>, vector<256x128xf32> -> vector<256x128xf32>
    %c0_32 = arith.constant 0 : index
    %c0_33 = arith.constant 0 : index
    %31 = vector.load %arg7[%c0_32, %c0_33] : memref<256x128xf32, #tpu.memory_space<vmem>>, vector<256x128xf32>
    tpu.vector_store %arg7[%c0_32, %c0_33], %30 {strides = array<i32>} : memref<256x128xf32, #tpu.memory_space<vmem>>, vector<256x128xf32>,
    %c0_34 = arith.constant 0 : index
    %c0_35 = arith.constant 0 : index
    %32 = vector.load %arg7[%c0_34, %c0_35] : memref<256x128xf32, #tpu.memory_space<vmem>>, vector<256x128xf32>
    %c1_36 = arith.constant 1 : index
    %c0_37 = arith.constant 0 : index
    %33 = vector.load %arg6[%c1_36, %c0_37] : memref<392x10xf32, #tpu.memory_space<vmem>>, vector<256x10xf32>
    %c1_38 = arith.constant 1 : index
    %c0_39 = arith.constant 0 : index
    %c0_40 = arith.constant 0 : index
    %34 = vector.load %arg3[%c1_38, %c0_39, %c0_40] : memref<25x10x128xf32, #tpu.memory_space<vmem>>, vector<1x10x128xf32>
    %35 = vector.shape_cast %34 : vector<1x10x128xf32> to vector<10x128xf32>
    %cst_41 = arith.constant dense<0.000000e+00> : vector<256x128xf32>
    %36 = tpu.matmul %33, %35, %cst_41 {dimension_numbers = #tpu.dot_dimension_numbers<[1], [0], [0], [1], [0, 0, 1, 1], [], []>} : vector<256x10xf32>, vector<10x128xf32>, vector<256x128xf32> -> vector<256x128xf32>
    %37 = arith.addf %32, %36 : vector<256x128xf32>
    %c0_42 = arith.constant 0 : index
    %c0_43 = arith.constant 0 : index
    %38 = vector.load %arg7[%c0_42, %c0_43] : memref<256x128xf32, #tpu.memory_space<vmem>>, vector<256x128xf32>
    tpu.vector_store %arg7[%c0_42, %c0_43], %37 {strides = array<i32>} : memref<256x128xf32, #tpu.memory_space<vmem>>, vector<256x128xf32>,
    %c0_44 = arith.constant 0 : index
    %c0_45 = arith.constant 0 : index
    %39 = vector.load %arg7[%c0_44, %c0_45] : memref<256x128xf32, #tpu.memory_space<vmem>>, vector<256x128xf32>
    %c2_46 = arith.constant 2 : index
    %c0_47 = arith.constant 0 : index
    %40 = vector.load %arg6[%c2_46, %c0_47] : memref<392x10xf32, #tpu.memory_space<vmem>>, vector<256x10xf32>
    %c2_48 = arith.constant 2 : index
    %c0_49 = arith.constant 0 : index
    %c0_50 = arith.constant 0 : index
    %41 = vector.load %arg3[%c2_48, %c0_49, %c0_50] : memref<25x10x128xf32, #tpu.memory_space<vmem>>, vector<1x10x128xf32>
    %42 = vector.shape_cast %41 : vector<1x10x128xf32> to vector<10x128xf32>
    %cst_51 = arith.constant dense<0.000000e+00> : vector<256x128xf32>
    %43 = tpu.matmul %40, %42, %cst_51 {dimension_numbers = #tpu.dot_dimension_numbers<[1], [0], [0], [1], [0, 0, 1, 1], [], []>} : vector<256x10xf32>, vector<10x128xf32>, vector<256x128xf32> -> vector<256x128xf32>
    %44 = arith.addf %39, %43 : vector<256x128xf32>
    %c0_52 = arith.constant 0 : index
    %c0_53 = arith.constant 0 : index
    %45 = vector.load %arg7[%c0_52, %c0_53] : memref<256x128xf32, #tpu.memory_space<vmem>>, vector<256x128xf32>
    tpu.vector_store %arg7[%c0_52, %c0_53], %44 {strides = array<i32>} : memref<256x128xf32, #tpu.memory_space<vmem>>, vector<256x128xf32>,
    %c0_54 = arith.constant 0 : index
    %c0_55 = arith.constant 0 : index
    %46 = vector.load %arg7[%c0_54, %c0_55] : memref<256x128xf32, #tpu.memory_space<vmem>>, vector<256x128xf32>
    %c3_56 = arith.constant 3 : index
    %c0_57 = arith.constant 0 : index
    %47 = vector.load %arg6[%c3_56, %c0_57] : memref<392x10xf32, #tpu.memory_space<vmem>>, vector<256x10xf32>
    %c3_58 = arith.constant 3 : index
    %c0_59 = arith.constant 0 : index
    %c0_60 = arith.constant 0 : index
    %48 = vector.load %arg3[%c3_58, %c0_59, %c0_60] : memref<25x10x128xf32, #tpu.memory_space<vmem>>, vector<1x10x128xf32>
    %49 = vector.shape_cast %48 : vector<1x10x128xf32> to vector<10x128xf32>
    %cst_61 = arith.constant dense<0.000000e+00> : vector<256x128xf32>
    %50 = tpu.matmul %47, %49, %cst_61 {dimension_numbers = #tpu.dot_dimension_numbers<[1], [0], [0], [1], [0, 0, 1, 1], [], []>} : vector<256x10xf32>, vector<10x128xf32>, vector<256x128xf32> -> vector<256x128xf32>
    %51 = arith.addf %46, %50 : vector<256x128xf32>
    %c0_62 = arith.constant 0 : index
    %c0_63 = arith.constant 0 : index
    %52 = vector.load %arg7[%c0_62, %c0_63] : memref<256x128xf32, #tpu.memory_space<vmem>>, vector<256x128xf32>
    tpu.vector_store %arg7[%c0_62, %c0_63], %51 {strides = array<i32>} : memref<256x128xf32, #tpu.memory_space<vmem>>, vector<256x128xf32>,
    %c0_64 = arith.constant 0 : index
    %c0_65 = arith.constant 0 : index
    %53 = vector.load %arg7[%c0_64, %c0_65] : memref<256x128xf32, #tpu.memory_space<vmem>>, vector<256x128xf32>
    %c4 = arith.constant 4 : index
    %c0_66 = arith.constant 0 : index
    %54 = vector.load %arg6[%c4, %c0_66] : memref<392x10xf32, #tpu.memory_space<vmem>>, vector<256x10xf32>
    %c4_67 = arith.constant 4 : index
    %c0_68 = arith.constant 0 : index
    %c0_69 = arith.constant 0 : index
    %55 = vector.load %arg3[%c4_67, %c0_68, %c0_69] : memref<25x10x128xf32, #tpu.memory_space<vmem>>, vector<1x10x128xf32>
    %56 = vector.shape_cast %55 : vector<1x10x128xf32> to vector<10x128xf32>
    %cst_70 = arith.constant dense<0.000000e+00> : vector<256x128xf32>
    %57 = tpu.matmul %54, %56, %cst_70 {dimension_numbers = #tpu.dot_dimension_numbers<[1], [0], [0], [1], [0, 0, 1, 1], [], []>} : vector<256x10xf32>, vector<10x128xf32>, vector<256x128xf32> -> vector<256x128xf32>
    %58 = arith.addf %53, %57 : vector<256x128xf32>
    %c0_71 = arith.constant 0 : index
    %c0_72 = arith.constant 0 : index
    %59 = vector.load %arg7[%c0_71, %c0_72] : memref<256x128xf32, #tpu.memory_space<vmem>>, vector<256x128xf32>
    tpu.vector_store %arg7[%c0_71, %c0_72], %58 {strides = array<i32>} : memref<256x128xf32, #tpu.memory_space<vmem>>, vector<256x128xf32>,
    %c0_73 = arith.constant 0 : index
    %c0_74 = arith.constant 0 : index
    %60 = vector.load %arg7[%c0_73, %c0_74] : memref<256x128xf32, #tpu.memory_space<vmem>>, vector<256x128xf32>
    %c32 = arith.constant 32 : index
    %c0_75 = arith.constant 0 : index
    %61 = vector.load %arg6[%c32, %c0_75] : memref<392x10xf32, #tpu.memory_space<vmem>>, vector<256x10xf32>
    %c5 = arith.constant 5 : index
    %c0_76 = arith.constant 0 : index
    %c0_77 = arith.constant 0 : index
    %62 = vector.load %arg3[%c5, %c0_76, %c0_77] : memref<25x10x128xf32, #tpu.memory_space<vmem>>, vector<1x10x128xf32>
    %63 = vector.shape_cast %62 : vector<1x10x128xf32> to vector<10x128xf32>
    %cst_78 = arith.constant dense<0.000000e+00> : vector<256x128xf32>
    %64 = tpu.matmul %61, %63, %cst_78 {dimension_numbers = #tpu.dot_dimension_numbers<[1], [0], [0], [1], [0, 0, 1, 1], [], []>} : vector<256x10xf32>, vector<10x128xf32>, vector<256x128xf32> -> vector<256x128xf32>
    %65 = arith.addf %60, %64 : vector<256x128xf32>
    %c0_79 = arith.constant 0 : index
    %c0_80 = arith.constant 0 : index
    %66 = vector.load %arg7[%c0_79, %c0_80] : memref<256x128xf32, #tpu.memory_space<vmem>>, vector<256x128xf32>
    tpu.vector_store %arg7[%c0_79, %c0_80], %65 {strides = array<i32>} : memref<256x128xf32, #tpu.memory_space<vmem>>, vector<256x128xf32>,
    %c0_81 = arith.constant 0 : index
    %c0_82 = arith.constant 0 : index
    %67 = vector.load %arg7[%c0_81, %c0_82] : memref<256x128xf32, #tpu.memory_space<vmem>>, vector<256x128xf32>
    %c33 = arith.constant 33 : index
    %c0_83 = arith.constant 0 : index
    %68 = vector.load %arg6[%c33, %c0_83] : memref<392x10xf32, #tpu.memory_space<vmem>>, vector<256x10xf32>
    %c6 = arith.constant 6 : index
    %c0_84 = arith.constant 0 : index
    %c0_85 = arith.constant 0 : index
    %69 = vector.load %arg3[%c6, %c0_84, %c0_85] : memref<25x10x128xf32, #tpu.memory_space<vmem>>, vector<1x10x128xf32>
    %70 = vector.shape_cast %69 : vector<1x10x128xf32> to vector<10x128xf32>
    %cst_86 = arith.constant dense<0.000000e+00> : vector<256x128xf32>
    %71 = tpu.matmul %68, %70, %cst_86 {dimension_numbers = #tpu.dot_dimension_numbers<[1], [0], [0], [1], [0, 0, 1, 1], [], []>} : vector<256x10xf32>, vector<10x128xf32>, vector<256x128xf32> -> vector<256x128xf32>
    %72 = arith.addf %67, %71 : vector<256x128xf32>
    %c0_87 = arith.constant 0 : index
    %c0_88 = arith.constant 0 : index
    %73 = vector.load %arg7[%c0_87, %c0_88] : memref<256x128xf32, #tpu.memory_space<vmem>>, vector<256x128xf32>
    tpu.vector_store %arg7[%c0_87, %c0_88], %72 {strides = array<i32>} : memref<256x128xf32, #tpu.memory_space<vmem>>, vector<256x128xf32>,
    %c0_89 = arith.constant 0 : index
    %c0_90 = arith.constant 0 : index
    %74 = vector.load %arg7[%c0_89, %c0_90] : memref<256x128xf32, #tpu.memory_space<vmem>>, vector<256x128xf32>
    %c34 = arith.constant 34 : index
    %c0_91 = arith.constant 0 : index
    %75 = vector.load %arg6[%c34, %c0_91] : memref<392x10xf32, #tpu.memory_space<vmem>>, vector<256x10xf32>
    %c7 = arith.constant 7 : index
    %c0_92 = arith.constant 0 : index
    %c0_93 = arith.constant 0 : index
    %76 = vector.load %arg3[%c7, %c0_92, %c0_93] : memref<25x10x128xf32, #tpu.memory_space<vmem>>, vector<1x10x128xf32>
    %77 = vector.shape_cast %76 : vector<1x10x128xf32> to vector<10x128xf32>
    %cst_94 = arith.constant dense<0.000000e+00> : vector<256x128xf32>
    %78 = tpu.matmul %75, %77, %cst_94 {dimension_numbers = #tpu.dot_dimension_numbers<[1], [0], [0], [1], [0, 0, 1, 1], [], []>} : vector<256x10xf32>, vector<10x128xf32>, vector<256x128xf32> -> vector<256x128xf32>
    %79 = arith.addf %74, %78 : vector<256x128xf32>
    %c0_95 = arith.constant 0 : index
    %c0_96 = arith.constant 0 : index
    %80 = vector.load %arg7[%c0_95, %c0_96] : memref<256x128xf32, #tpu.memory_space<vmem>>, vector<256x128xf32>
    tpu.vector_store %arg7[%c0_95, %c0_96], %79 {strides = array<i32>} : memref<256x128xf32, #tpu.memory_space<vmem>>, vector<256x128xf32>,
    %c0_97 = arith.constant 0 : index
    %c0_98 = arith.constant 0 : index
    %81 = vector.load %arg7[%c0_97, %c0_98] : memref<256x128xf32, #tpu.memory_space<vmem>>, vector<256x128xf32>
    %c35 = arith.constant 35 : index
    %c0_99 = arith.constant 0 : index
    %82 = vector.load %arg6[%c35, %c0_99] : memref<392x10xf32, #tpu.memory_space<vmem>>, vector<256x10xf32>
    %c8 = arith.constant 8 : index
    %c0_100 = arith.constant 0 : index
    %c0_101 = arith.constant 0 : index
    %83 = vector.load %arg3[%c8, %c0_100, %c0_101] : memref<25x10x128xf32, #tpu.memory_space<vmem>>, vector<1x10x128xf32>
    %84 = vector.shape_cast %83 : vector<1x10x128xf32> to vector<10x128xf32>
    %cst_102 = arith.constant dense<0.000000e+00> : vector<256x128xf32>
    %85 = tpu.matmul %82, %84, %cst_102 {dimension_numbers = #tpu.dot_dimension_numbers<[1], [0], [0], [1], [0, 0, 1, 1], [], []>} : vector<256x10xf32>, vector<10x128xf32>, vector<256x128xf32> -> vector<256x128xf32>
    %86 = arith.addf %81, %85 : vector<256x128xf32>
    %c0_103 = arith.constant 0 : index
    %c0_104 = arith.constant 0 : index
    %87 = vector.load %arg7[%c0_103, %c0_104] : memref<256x128xf32, #tpu.memory_space<vmem>>, vector<256x128xf32>
    tpu.vector_store %arg7[%c0_103, %c0_104], %86 {strides = array<i32>} : memref<256x128xf32, #tpu.memory_space<vmem>>, vector<256x128xf32>,
    %c0_105 = arith.constant 0 : index
    %c0_106 = arith.constant 0 : index
    %88 = vector.load %arg7[%c0_105, %c0_106] : memref<256x128xf32, #tpu.memory_space<vmem>>, vector<256x128xf32>
    %c36 = arith.constant 36 : index
    %c0_107 = arith.constant 0 : index
    %89 = vector.load %arg6[%c36, %c0_107] : memref<392x10xf32, #tpu.memory_space<vmem>>, vector<256x10xf32>
    %c9 = arith.constant 9 : index
    %c0_108 = arith.constant 0 : index
    %c0_109 = arith.constant 0 : index
    %90 = vector.load %arg3[%c9, %c0_108, %c0_109] : memref<25x10x128xf32, #tpu.memory_space<vmem>>, vector<1x10x128xf32>
    %91 = vector.shape_cast %90 : vector<1x10x128xf32> to vector<10x128xf32>
    %cst_110 = arith.constant dense<0.000000e+00> : vector<256x128xf32>
    %92 = tpu.matmul %89, %91, %cst_110 {dimension_numbers = #tpu.dot_dimension_numbers<[1], [0], [0], [1], [0, 0, 1, 1], [], []>} : vector<256x10xf32>, vector<10x128xf32>, vector<256x128xf32> -> vector<256x128xf32>
    %93 = arith.addf %88, %92 : vector<256x128xf32>
    %c0_111 = arith.constant 0 : index
    %c0_112 = arith.constant 0 : index
    %94 = vector.load %arg7[%c0_111, %c0_112] : memref<256x128xf32, #tpu.memory_space<vmem>>, vector<256x128xf32>
    tpu.vector_store %arg7[%c0_111, %c0_112], %93 {strides = array<i32>} : memref<256x128xf32, #tpu.memory_space<vmem>>, vector<256x128xf32>,
    %c0_113 = arith.constant 0 : index
    %c0_114 = arith.constant 0 : index
    %95 = vector.load %arg7[%c0_113, %c0_114] : memref<256x128xf32, #tpu.memory_space<vmem>>, vector<256x128xf32>
    %c64 = arith.constant 64 : index
    %c0_115 = arith.constant 0 : index
    %96 = vector.load %arg6[%c64, %c0_115] : memref<392x10xf32, #tpu.memory_space<vmem>>, vector<256x10xf32>
    %c10 = arith.constant 10 : index
    %c0_116 = arith.constant 0 : index
    %c0_117 = arith.constant 0 : index
    %97 = vector.load %arg3[%c10, %c0_116, %c0_117] : memref<25x10x128xf32, #tpu.memory_space<vmem>>, vector<1x10x128xf32>
    %98 = vector.shape_cast %97 : vector<1x10x128xf32> to vector<10x128xf32>
    %cst_118 = arith.constant dense<0.000000e+00> : vector<256x128xf32>
    %99 = tpu.matmul %96, %98, %cst_118 {dimension_numbers = #tpu.dot_dimension_numbers<[1], [0], [0], [1], [0, 0, 1, 1], [], []>} : vector<256x10xf32>, vector<10x128xf32>, vector<256x128xf32> -> vector<256x128xf32>
    %100 = arith.addf %95, %99 : vector<256x128xf32>
    %c0_119 = arith.constant 0 : index
    %c0_120 = arith.constant 0 : index
    %101 = vector.load %arg7[%c0_119, %c0_120] : memref<256x128xf32, #tpu.memory_space<vmem>>, vector<256x128xf32>
    tpu.vector_store %arg7[%c0_119, %c0_120], %100 {strides = array<i32>} : memref<256x128xf32, #tpu.memory_space<vmem>>, vector<256x128xf32>,
    %c0_121 = arith.constant 0 : index
    %c0_122 = arith.constant 0 : index
    %102 = vector.load %arg7[%c0_121, %c0_122] : memref<256x128xf32, #tpu.memory_space<vmem>>, vector<256x128xf32>
    %c65 = arith.constant 65 : index
    %c0_123 = arith.constant 0 : index
    %103 = vector.load %arg6[%c65, %c0_123] : memref<392x10xf32, #tpu.memory_space<vmem>>, vector<256x10xf32>
    %c11 = arith.constant 11 : index
    %c0_124 = arith.constant 0 : index
    %c0_125 = arith.constant 0 : index
    %104 = vector.load %arg3[%c11, %c0_124, %c0_125] : memref<25x10x128xf32, #tpu.memory_space<vmem>>, vector<1x10x128xf32>
    %105 = vector.shape_cast %104 : vector<1x10x128xf32> to vector<10x128xf32>
    %cst_126 = arith.constant dense<0.000000e+00> : vector<256x128xf32>
    %106 = tpu.matmul %103, %105, %cst_126 {dimension_numbers = #tpu.dot_dimension_numbers<[1], [0], [0], [1], [0, 0, 1, 1], [], []>} : vector<256x10xf32>, vector<10x128xf32>, vector<256x128xf32> -> vector<256x128xf32>
    %107 = arith.addf %102, %106 : vector<256x128xf32>
    %c0_127 = arith.constant 0 : index
    %c0_128 = arith.constant 0 : index
    %108 = vector.load %arg7[%c0_127, %c0_128] : memref<256x128xf32, #tpu.memory_space<vmem>>, vector<256x128xf32>
    tpu.vector_store %arg7[%c0_127, %c0_128], %107 {strides = array<i32>} : memref<256x128xf32, #tpu.memory_space<vmem>>, vector<256x128xf32>,
    %c0_129 = arith.constant 0 : index
    %c0_130 = arith.constant 0 : index
    %109 = vector.load %arg7[%c0_129, %c0_130] : memref<256x128xf32, #tpu.memory_space<vmem>>, vector<256x128xf32>
    %c66 = arith.constant 66 : index
    %c0_131 = arith.constant 0 : index
    %110 = vector.load %arg6[%c66, %c0_131] : memref<392x10xf32, #tpu.memory_space<vmem>>, vector<256x10xf32>
    %c12 = arith.constant 12 : index
    %c0_132 = arith.constant 0 : index
    %c0_133 = arith.constant 0 : index
    %111 = vector.load %arg3[%c12, %c0_132, %c0_133] : memref<25x10x128xf32, #tpu.memory_space<vmem>>, vector<1x10x128xf32>
    %112 = vector.shape_cast %111 : vector<1x10x128xf32> to vector<10x128xf32>
    %cst_134 = arith.constant dense<0.000000e+00> : vector<256x128xf32>
    %113 = tpu.matmul %110, %112, %cst_134 {dimension_numbers = #tpu.dot_dimension_numbers<[1], [0], [0], [1], [0, 0, 1, 1], [], []>} : vector<256x10xf32>, vector<10x128xf32>, vector<256x128xf32> -> vector<256x128xf32>
    %114 = arith.addf %109, %113 : vector<256x128xf32>
    %c0_135 = arith.constant 0 : index
    %c0_136 = arith.constant 0 : index
    %115 = vector.load %arg7[%c0_135, %c0_136] : memref<256x128xf32, #tpu.memory_space<vmem>>, vector<256x128xf32>
    tpu.vector_store %arg7[%c0_135, %c0_136], %114 {strides = array<i32>} : memref<256x128xf32, #tpu.memory_space<vmem>>, vector<256x128xf32>,
    %c0_137 = arith.constant 0 : index
    %c0_138 = arith.constant 0 : index
    %116 = vector.load %arg7[%c0_137, %c0_138] : memref<256x128xf32, #tpu.memory_space<vmem>>, vector<256x128xf32>
    %c67 = arith.constant 67 : index
    %c0_139 = arith.constant 0 : index
    %117 = vector.load %arg6[%c67, %c0_139] : memref<392x10xf32, #tpu.memory_space<vmem>>, vector<256x10xf32>
    %c13 = arith.constant 13 : index
    %c0_140 = arith.constant 0 : index
    %c0_141 = arith.constant 0 : index
    %118 = vector.load %arg3[%c13, %c0_140, %c0_141] : memref<25x10x128xf32, #tpu.memory_space<vmem>>, vector<1x10x128xf32>
    %119 = vector.shape_cast %118 : vector<1x10x128xf32> to vector<10x128xf32>
    %cst_142 = arith.constant dense<0.000000e+00> : vector<256x128xf32>
    %120 = tpu.matmul %117, %119, %cst_142 {dimension_numbers = #tpu.dot_dimension_numbers<[1], [0], [0], [1], [0, 0, 1, 1], [], []>} : vector<256x10xf32>, vector<10x128xf32>, vector<256x128xf32> -> vector<256x128xf32>
    %121 = arith.addf %116, %120 : vector<256x128xf32>
    %c0_143 = arith.constant 0 : index
    %c0_144 = arith.constant 0 : index
    %122 = vector.load %arg7[%c0_143, %c0_144] : memref<256x128xf32, #tpu.memory_space<vmem>>, vector<256x128xf32>
    tpu.vector_store %arg7[%c0_143, %c0_144], %121 {strides = array<i32>} : memref<256x128xf32, #tpu.memory_space<vmem>>, vector<256x128xf32>,
    %c0_145 = arith.constant 0 : index
    %c0_146 = arith.constant 0 : index
    %123 = vector.load %arg7[%c0_145, %c0_146] : memref<256x128xf32, #tpu.memory_space<vmem>>, vector<256x128xf32>
    %c68 = arith.constant 68 : index
    %c0_147 = arith.constant 0 : index
    %124 = vector.load %arg6[%c68, %c0_147] : memref<392x10xf32, #tpu.memory_space<vmem>>, vector<256x10xf32>
    %c14 = arith.constant 14 : index
    %c0_148 = arith.constant 0 : index
    %c0_149 = arith.constant 0 : index
    %125 = vector.load %arg3[%c14, %c0_148, %c0_149] : memref<25x10x128xf32, #tpu.memory_space<vmem>>, vector<1x10x128xf32>
    %126 = vector.shape_cast %125 : vector<1x10x128xf32> to vector<10x128xf32>
    %cst_150 = arith.constant dense<0.000000e+00> : vector<256x128xf32>
    %127 = tpu.matmul %124, %126, %cst_150 {dimension_numbers = #tpu.dot_dimension_numbers<[1], [0], [0], [1], [0, 0, 1, 1], [], []>} : vector<256x10xf32>, vector<10x128xf32>, vector<256x128xf32> -> vector<256x128xf32>
    %128 = arith.addf %123, %127 : vector<256x128xf32>
    %c0_151 = arith.constant 0 : index
    %c0_152 = arith.constant 0 : index
    %129 = vector.load %arg7[%c0_151, %c0_152] : memref<256x128xf32, #tpu.memory_space<vmem>>, vector<256x128xf32>
    tpu.vector_store %arg7[%c0_151, %c0_152], %128 {strides = array<i32>} : memref<256x128xf32, #tpu.memory_space<vmem>>, vector<256x128xf32>,
    %c0_153 = arith.constant 0 : index
    %c0_154 = arith.constant 0 : index
    %130 = vector.load %arg7[%c0_153, %c0_154] : memref<256x128xf32, #tpu.memory_space<vmem>>, vector<256x128xf32>
    %c96 = arith.constant 96 : index
    %c0_155 = arith.constant 0 : index
    %131 = vector.load %arg6[%c96, %c0_155] : memref<392x10xf32, #tpu.memory_space<vmem>>, vector<256x10xf32>
    %c15 = arith.constant 15 : index
    %c0_156 = arith.constant 0 : index
    %c0_157 = arith.constant 0 : index
    %132 = vector.load %arg3[%c15, %c0_156, %c0_157] : memref<25x10x128xf32, #tpu.memory_space<vmem>>, vector<1x10x128xf32>
    %133 = vector.shape_cast %132 : vector<1x10x128xf32> to vector<10x128xf32>
    %cst_158 = arith.constant dense<0.000000e+00> : vector<256x128xf32>
    %134 = tpu.matmul %131, %133, %cst_158 {dimension_numbers = #tpu.dot_dimension_numbers<[1], [0], [0], [1], [0, 0, 1, 1], [], []>} : vector<256x10xf32>, vector<10x128xf32>, vector<256x128xf32> -> vector<256x128xf32>
    %135 = arith.addf %130, %134 : vector<256x128xf32>
    %c0_159 = arith.constant 0 : index
    %c0_160 = arith.constant 0 : index
    %136 = vector.load %arg7[%c0_159, %c0_160] : memref<256x128xf32, #tpu.memory_space<vmem>>, vector<256x128xf32>
    tpu.vector_store %arg7[%c0_159, %c0_160], %135 {strides = array<i32>} : memref<256x128xf32, #tpu.memory_space<vmem>>, vector<256x128xf32>,
    %c0_161 = arith.constant 0 : index
    %c0_162 = arith.constant 0 : index
    %137 = vector.load %arg7[%c0_161, %c0_162] : memref<256x128xf32, #tpu.memory_space<vmem>>, vector<256x128xf32>
    %c97 = arith.constant 97 : index
    %c0_163 = arith.constant 0 : index
    %138 = vector.load %arg6[%c97, %c0_163] : memref<392x10xf32, #tpu.memory_space<vmem>>, vector<256x10xf32>
    %c16 = arith.constant 16 : index
    %c0_164 = arith.constant 0 : index
    %c0_165 = arith.constant 0 : index
    %139 = vector.load %arg3[%c16, %c0_164, %c0_165] : memref<25x10x128xf32, #tpu.memory_space<vmem>>, vector<1x10x128xf32>
    %140 = vector.shape_cast %139 : vector<1x10x128xf32> to vector<10x128xf32>
    %cst_166 = arith.constant dense<0.000000e+00> : vector<256x128xf32>
    %141 = tpu.matmul %138, %140, %cst_166 {dimension_numbers = #tpu.dot_dimension_numbers<[1], [0], [0], [1], [0, 0, 1, 1], [], []>} : vector<256x10xf32>, vector<10x128xf32>, vector<256x128xf32> -> vector<256x128xf32>
    %142 = arith.addf %137, %141 : vector<256x128xf32>
    %c0_167 = arith.constant 0 : index
    %c0_168 = arith.constant 0 : index
    %143 = vector.load %arg7[%c0_167, %c0_168] : memref<256x128xf32, #tpu.memory_space<vmem>>, vector<256x128xf32>
    tpu.vector_store %arg7[%c0_167, %c0_168], %142 {strides = array<i32>} : memref<256x128xf32, #tpu.memory_space<vmem>>, vector<256x128xf32>,
    %c0_169 = arith.constant 0 : index
    %c0_170 = arith.constant 0 : index
    %144 = vector.load %arg7[%c0_169, %c0_170] : memref<256x128xf32, #tpu.memory_space<vmem>>, vector<256x128xf32>
    %c98 = arith.constant 98 : index
    %c0_171 = arith.constant 0 : index
    %145 = vector.load %arg6[%c98, %c0_171] : memref<392x10xf32, #tpu.memory_space<vmem>>, vector<256x10xf32>
    %c17 = arith.constant 17 : index
    %c0_172 = arith.constant 0 : index
    %c0_173 = arith.constant 0 : index
    %146 = vector.load %arg3[%c17, %c0_172, %c0_173] : memref<25x10x128xf32, #tpu.memory_space<vmem>>, vector<1x10x128xf32>
    %147 = vector.shape_cast %146 : vector<1x10x128xf32> to vector<10x128xf32>
    %cst_174 = arith.constant dense<0.000000e+00> : vector<256x128xf32>
    %148 = tpu.matmul %145, %147, %cst_174 {dimension_numbers = #tpu.dot_dimension_numbers<[1], [0], [0], [1], [0, 0, 1, 1], [], []>} : vector<256x10xf32>, vector<10x128xf32>, vector<256x128xf32> -> vector<256x128xf32>
    %149 = arith.addf %144, %148 : vector<256x128xf32>
    %c0_175 = arith.constant 0 : index
    %c0_176 = arith.constant 0 : index
    %150 = vector.load %arg7[%c0_175, %c0_176] : memref<256x128xf32, #tpu.memory_space<vmem>>, vector<256x128xf32>
    tpu.vector_store %arg7[%c0_175, %c0_176], %149 {strides = array<i32>} : memref<256x128xf32, #tpu.memory_space<vmem>>, vector<256x128xf32>,
    %c0_177 = arith.constant 0 : index
    %c0_178 = arith.constant 0 : index
    %151 = vector.load %arg7[%c0_177, %c0_178] : memref<256x128xf32, #tpu.memory_space<vmem>>, vector<256x128xf32>
    %c99 = arith.constant 99 : index
    %c0_179 = arith.constant 0 : index
    %152 = vector.load %arg6[%c99, %c0_179] : memref<392x10xf32, #tpu.memory_space<vmem>>, vector<256x10xf32>
    %c18 = arith.constant 18 : index
    %c0_180 = arith.constant 0 : index
    %c0_181 = arith.constant 0 : index
    %153 = vector.load %arg3[%c18, %c0_180, %c0_181] : memref<25x10x128xf32, #tpu.memory_space<vmem>>, vector<1x10x128xf32>
    %154 = vector.shape_cast %153 : vector<1x10x128xf32> to vector<10x128xf32>
    %cst_182 = arith.constant dense<0.000000e+00> : vector<256x128xf32>
    %155 = tpu.matmul %152, %154, %cst_182 {dimension_numbers = #tpu.dot_dimension_numbers<[1], [0], [0], [1], [0, 0, 1, 1], [], []>} : vector<256x10xf32>, vector<10x128xf32>, vector<256x128xf32> -> vector<256x128xf32>
    %156 = arith.addf %151, %155 : vector<256x128xf32>
    %c0_183 = arith.constant 0 : index
    %c0_184 = arith.constant 0 : index
    %157 = vector.load %arg7[%c0_183, %c0_184] : memref<256x128xf32, #tpu.memory_space<vmem>>, vector<256x128xf32>
    tpu.vector_store %arg7[%c0_183, %c0_184], %156 {strides = array<i32>} : memref<256x128xf32, #tpu.memory_space<vmem>>, vector<256x128xf32>,
    %c0_185 = arith.constant 0 : index
    %c0_186 = arith.constant 0 : index
    %158 = vector.load %arg7[%c0_185, %c0_186] : memref<256x128xf32, #tpu.memory_space<vmem>>, vector<256x128xf32>
    %c100 = arith.constant 100 : index
    %c0_187 = arith.constant 0 : index
    %159 = vector.load %arg6[%c100, %c0_187] : memref<392x10xf32, #tpu.memory_space<vmem>>, vector<256x10xf32>
    %c19 = arith.constant 19 : index
    %c0_188 = arith.constant 0 : index
    %c0_189 = arith.constant 0 : index
    %160 = vector.load %arg3[%c19, %c0_188, %c0_189] : memref<25x10x128xf32, #tpu.memory_space<vmem>>, vector<1x10x128xf32>
    %161 = vector.shape_cast %160 : vector<1x10x128xf32> to vector<10x128xf32>
    %cst_190 = arith.constant dense<0.000000e+00> : vector<256x128xf32>
    %162 = tpu.matmul %159, %161, %cst_190 {dimension_numbers = #tpu.dot_dimension_numbers<[1], [0], [0], [1], [0, 0, 1, 1], [], []>} : vector<256x10xf32>, vector<10x128xf32>, vector<256x128xf32> -> vector<256x128xf32>
    %163 = arith.addf %158, %162 : vector<256x128xf32>
    %c0_191 = arith.constant 0 : index
    %c0_192 = arith.constant 0 : index
    %164 = vector.load %arg7[%c0_191, %c0_192] : memref<256x128xf32, #tpu.memory_space<vmem>>, vector<256x128xf32>
    tpu.vector_store %arg7[%c0_191, %c0_192], %163 {strides = array<i32>} : memref<256x128xf32, #tpu.memory_space<vmem>>, vector<256x128xf32>,
    %c0_193 = arith.constant 0 : index
    %c0_194 = arith.constant 0 : index
    %165 = vector.load %arg7[%c0_193, %c0_194] : memref<256x128xf32, #tpu.memory_space<vmem>>, vector<256x128xf32>
    %c128 = arith.constant 128 : index
    %c0_195 = arith.constant 0 : index
    %166 = vector.load %arg6[%c128, %c0_195] : memref<392x10xf32, #tpu.memory_space<vmem>>, vector<256x10xf32>
    %c20 = arith.constant 20 : index
    %c0_196 = arith.constant 0 : index
    %c0_197 = arith.constant 0 : index
    %167 = vector.load %arg3[%c20, %c0_196, %c0_197] : memref<25x10x128xf32, #tpu.memory_space<vmem>>, vector<1x10x128xf32>
    %168 = vector.shape_cast %167 : vector<1x10x128xf32> to vector<10x128xf32>
    %cst_198 = arith.constant dense<0.000000e+00> : vector<256x128xf32>
    %169 = tpu.matmul %166, %168, %cst_198 {dimension_numbers = #tpu.dot_dimension_numbers<[1], [0], [0], [1], [0, 0, 1, 1], [], []>} : vector<256x10xf32>, vector<10x128xf32>, vector<256x128xf32> -> vector<256x128xf32>
    %170 = arith.addf %165, %169 : vector<256x128xf32>
    %c0_199 = arith.constant 0 : index
    %c0_200 = arith.constant 0 : index
    %171 = vector.load %arg7[%c0_199, %c0_200] : memref<256x128xf32, #tpu.memory_space<vmem>>, vector<256x128xf32>
    tpu.vector_store %arg7[%c0_199, %c0_200], %170 {strides = array<i32>} : memref<256x128xf32, #tpu.memory_space<vmem>>, vector<256x128xf32>,
    %c0_201 = arith.constant 0 : index
    %c0_202 = arith.constant 0 : index
    %172 = vector.load %arg7[%c0_201, %c0_202] : memref<256x128xf32, #tpu.memory_space<vmem>>, vector<256x128xf32>
    %c129 = arith.constant 129 : index
    %c0_203 = arith.constant 0 : index
    %173 = vector.load %arg6[%c129, %c0_203] : memref<392x10xf32, #tpu.memory_space<vmem>>, vector<256x10xf32>
    %c21 = arith.constant 21 : index
    %c0_204 = arith.constant 0 : index
    %c0_205 = arith.constant 0 : index
    %174 = vector.load %arg3[%c21, %c0_204, %c0_205] : memref<25x10x128xf32, #tpu.memory_space<vmem>>, vector<1x10x128xf32>
    %175 = vector.shape_cast %174 : vector<1x10x128xf32> to vector<10x128xf32>
    %cst_206 = arith.constant dense<0.000000e+00> : vector<256x128xf32>
    %176 = tpu.matmul %173, %175, %cst_206 {dimension_numbers = #tpu.dot_dimension_numbers<[1], [0], [0], [1], [0, 0, 1, 1], [], []>} : vector<256x10xf32>, vector<10x128xf32>, vector<256x128xf32> -> vector<256x128xf32>
    %177 = arith.addf %172, %176 : vector<256x128xf32>
    %c0_207 = arith.constant 0 : index
    %c0_208 = arith.constant 0 : index
    %178 = vector.load %arg7[%c0_207, %c0_208] : memref<256x128xf32, #tpu.memory_space<vmem>>, vector<256x128xf32>
    tpu.vector_store %arg7[%c0_207, %c0_208], %177 {strides = array<i32>} : memref<256x128xf32, #tpu.memory_space<vmem>>, vector<256x128xf32>,
    %c0_209 = arith.constant 0 : index
    %c0_210 = arith.constant 0 : index
    %179 = vector.load %arg7[%c0_209, %c0_210] : memref<256x128xf32, #tpu.memory_space<vmem>>, vector<256x128xf32>
    %c130 = arith.constant 130 : index
    %c0_211 = arith.constant 0 : index
    %180 = vector.load %arg6[%c130, %c0_211] : memref<392x10xf32, #tpu.memory_space<vmem>>, vector<256x10xf32>
    %c22 = arith.constant 22 : index
    %c0_212 = arith.constant 0 : index
    %c0_213 = arith.constant 0 : index
    %181 = vector.load %arg3[%c22, %c0_212, %c0_213] : memref<25x10x128xf32, #tpu.memory_space<vmem>>, vector<1x10x128xf32>
    %182 = vector.shape_cast %181 : vector<1x10x128xf32> to vector<10x128xf32>
    %cst_214 = arith.constant dense<0.000000e+00> : vector<256x128xf32>
    %183 = tpu.matmul %180, %182, %cst_214 {dimension_numbers = #tpu.dot_dimension_numbers<[1], [0], [0], [1], [0, 0, 1, 1], [], []>} : vector<256x10xf32>, vector<10x128xf32>, vector<256x128xf32> -> vector<256x128xf32>
    %184 = arith.addf %179, %183 : vector<256x128xf32>
    %c0_215 = arith.constant 0 : index
    %c0_216 = arith.constant 0 : index
    %185 = vector.load %arg7[%c0_215, %c0_216] : memref<256x128xf32, #tpu.memory_space<vmem>>, vector<256x128xf32>
    tpu.vector_store %arg7[%c0_215, %c0_216], %184 {strides = array<i32>} : memref<256x128xf32, #tpu.memory_space<vmem>>, vector<256x128xf32>,
    %c0_217 = arith.constant 0 : index
    %c0_218 = arith.constant 0 : index
    %186 = vector.load %arg7[%c0_217, %c0_218] : memref<256x128xf32, #tpu.memory_space<vmem>>, vector<256x128xf32>
    %c131 = arith.constant 131 : index
    %c0_219 = arith.constant 0 : index
    %187 = vector.load %arg6[%c131, %c0_219] : memref<392x10xf32, #tpu.memory_space<vmem>>, vector<256x10xf32>
    %c23 = arith.constant 23 : index
    %c0_220 = arith.constant 0 : index
    %c0_221 = arith.constant 0 : index
    %188 = vector.load %arg3[%c23, %c0_220, %c0_221] : memref<25x10x128xf32, #tpu.memory_space<vmem>>, vector<1x10x128xf32>
    %189 = vector.shape_cast %188 : vector<1x10x128xf32> to vector<10x128xf32>
    %cst_222 = arith.constant dense<0.000000e+00> : vector<256x128xf32>
    %190 = tpu.matmul %187, %189, %cst_222 {dimension_numbers = #tpu.dot_dimension_numbers<[1], [0], [0], [1], [0, 0, 1, 1], [], []>} : vector<256x10xf32>, vector<10x128xf32>, vector<256x128xf32> -> vector<256x128xf32>
    %191 = arith.addf %186, %190 : vector<256x128xf32>
    %c0_223 = arith.constant 0 : index
    %c0_224 = arith.constant 0 : index
    %192 = vector.load %arg7[%c0_223, %c0_224] : memref<256x128xf32, #tpu.memory_space<vmem>>, vector<256x128xf32>
    tpu.vector_store %arg7[%c0_223, %c0_224], %191 {strides = array<i32>} : memref<256x128xf32, #tpu.memory_space<vmem>>, vector<256x128xf32>,
    %c0_225 = arith.constant 0 : index
    %c0_226 = arith.constant 0 : index
    %193 = vector.load %arg7[%c0_225, %c0_226] : memref<256x128xf32, #tpu.memory_space<vmem>>, vector<256x128xf32>
    %c132 = arith.constant 132 : index
    %c0_227 = arith.constant 0 : index
    %194 = vector.load %arg6[%c132, %c0_227] : memref<392x10xf32, #tpu.memory_space<vmem>>, vector<256x10xf32>
    %c24 = arith.constant 24 : index
    %c0_228 = arith.constant 0 : index
    %c0_229 = arith.constant 0 : index
    %195 = vector.load %arg3[%c24, %c0_228, %c0_229] : memref<25x10x128xf32, #tpu.memory_space<vmem>>, vector<1x10x128xf32>
    %196 = vector.shape_cast %195 : vector<1x10x128xf32> to vector<10x128xf32>
    %cst_230 = arith.constant dense<0.000000e+00> : vector<256x128xf32>
    %197 = tpu.matmul %194, %196, %cst_230 {dimension_numbers = #tpu.dot_dimension_numbers<[1], [0], [0], [1], [0, 0, 1, 1], [], []>} : vector<256x10xf32>, vector<10x128xf32>, vector<256x128xf32> -> vector<256x128xf32>
    %198 = arith.addf %193, %197 : vector<256x128xf32>
    %c0_231 = arith.constant 0 : index
    %c0_232 = arith.constant 0 : index
    %199 = vector.load %arg7[%c0_231, %c0_232] : memref<256x128xf32, #tpu.memory_space<vmem>>, vector<256x128xf32>
    tpu.vector_store %arg7[%c0_231, %c0_232], %198 {strides = array<i32>} : memref<256x128xf32, #tpu.memory_space<vmem>>, vector<256x128xf32>,
    %c0_233 = arith.constant 0 : index
    %c0_234 = arith.constant 0 : index
    %200 = vector.load %arg7[%c0_233, %c0_234] : memref<256x128xf32, #tpu.memory_space<vmem>>, vector<32x128xf32>
    %c32_235 = arith.constant 32 : index
    %c0_236 = arith.constant 0 : index
    %201 = vector.load %arg7[%c32_235, %c0_236] : memref<256x128xf32, #tpu.memory_space<vmem>>, vector<32x128xf32>
    %202 = arith.maximumf %200, %201 : vector<32x128xf32>
    %203 = vector.shape_cast %202 : vector<32x128xf32> to vector<16x2x128xf32>
    %204 = vector.extract_strided_slice %203 {offsets = [0, 0, 0], sizes = [16, 1, 128], strides = [1, 1, 1]} : vector<16x2x128xf32> to vector<16x1x128xf32>
    %205 = vector.shape_cast %204 : vector<16x1x128xf32> to vector<16x128xf32>
    %206 = vector.extract_strided_slice %203 {offsets = [0, 1, 0], sizes = [16, 1, 128], strides = [1, 1, 1]} : vector<16x2x128xf32> to vector<16x1x128xf32>
    %207 = vector.shape_cast %206 : vector<16x1x128xf32> to vector<16x128xf32>
    %208 = arith.maximumf %205, %207 : vector<16x128xf32>
    %c0_237 = arith.constant 0 : index
    %c0_238 = arith.constant 0 : index
    %209 = vector.load %arg4[%c0_237, %c0_238] : memref<1x128xf32, #tpu.memory_space<vmem>>, vector<1x128xf32>
    %210 = vector.broadcast %209 : vector<1x128xf32> to vector<16x128xf32>
    %211 = arith.addf %208, %210 : vector<16x128xf32>
    %cst_239 = arith.constant 0.000000e+00 : f32
    %212 = vector.broadcast %cst_239 : f32 to vector<16x128xf32>
    %213 = arith.maximumf %211, %212 : vector<16x128xf32>
    %c0_240 = arith.constant 0 : index
    %c0_241 = arith.constant 0 : index
    %214 = vector.load %arg5[%c0_240, %c0_241] : memref<64x128xf32, #tpu.memory_space<vmem>>, vector<16x128xf32>
    tpu.vector_store %arg5[%c0_240, %c0_241], %213 {strides = array<i32>} : memref<64x128xf32, #tpu.memory_space<vmem>>, vector<16x128xf32>,
    %c64_242 = arith.constant 64 : index
    %c0_243 = arith.constant 0 : index
    %215 = vector.load %arg7[%c64_242, %c0_243] : memref<256x128xf32, #tpu.memory_space<vmem>>, vector<32x128xf32>
    %c96_244 = arith.constant 96 : index
    %c0_245 = arith.constant 0 : index
    %216 = vector.load %arg7[%c96_244, %c0_245] : memref<256x128xf32, #tpu.memory_space<vmem>>, vector<32x128xf32>
    %217 = arith.maximumf %215, %216 : vector<32x128xf32>
    %218 = vector.shape_cast %217 : vector<32x128xf32> to vector<16x2x128xf32>
    %219 = vector.extract_strided_slice %218 {offsets = [0, 0, 0], sizes = [16, 1, 128], strides = [1, 1, 1]} : vector<16x2x128xf32> to vector<16x1x128xf32>
    %220 = vector.shape_cast %219 : vector<16x1x128xf32> to vector<16x128xf32>
    %221 = vector.extract_strided_slice %218 {offsets = [0, 1, 0], sizes = [16, 1, 128], strides = [1, 1, 1]} : vector<16x2x128xf32> to vector<16x1x128xf32>
    %222 = vector.shape_cast %221 : vector<16x1x128xf32> to vector<16x128xf32>
    %223 = arith.maximumf %220, %222 : vector<16x128xf32>
    %c0_246 = arith.constant 0 : index
    %c0_247 = arith.constant 0 : index
    %224 = vector.load %arg4[%c0_246, %c0_247] : memref<1x128xf32, #tpu.memory_space<vmem>>, vector<1x128xf32>
    %225 = vector.broadcast %224 : vector<1x128xf32> to vector<16x128xf32>
    %226 = arith.addf %223, %225 : vector<16x128xf32>
    %cst_248 = arith.constant 0.000000e+00 : f32
    %227 = vector.broadcast %cst_248 : f32 to vector<16x128xf32>
    %228 = arith.maximumf %226, %227 : vector<16x128xf32>
    %c16_249 = arith.constant 16 : index
    %c0_250 = arith.constant 0 : index
    %229 = vector.load %arg5[%c16_249, %c0_250] : memref<64x128xf32, #tpu.memory_space<vmem>>, vector<16x128xf32>
    tpu.vector_store %arg5[%c16_249, %c0_250], %228 {strides = array<i32>} : memref<64x128xf32, #tpu.memory_space<vmem>>, vector<16x128xf32>,
    %c128_251 = arith.constant 128 : index
    %c0_252 = arith.constant 0 : index
    %230 = vector.load %arg7[%c128_251, %c0_252] : memref<256x128xf32, #tpu.memory_space<vmem>>, vector<32x128xf32>
    %c160 = arith.constant 160 : index
    %c0_253 = arith.constant 0 : index
    %231 = vector.load %arg7[%c160, %c0_253] : memref<256x128xf32, #tpu.memory_space<vmem>>, vector<32x128xf32>
    %232 = arith.maximumf %230, %231 : vector<32x128xf32>
    %233 = vector.shape_cast %232 : vector<32x128xf32> to vector<16x2x128xf32>
    %234 = vector.extract_strided_slice %233 {offsets = [0, 0, 0], sizes = [16, 1, 128], strides = [1, 1, 1]} : vector<16x2x128xf32> to vector<16x1x128xf32>
    %235 = vector.shape_cast %234 : vector<16x1x128xf32> to vector<16x128xf32>
    %236 = vector.extract_strided_slice %233 {offsets = [0, 1, 0], sizes = [16, 1, 128], strides = [1, 1, 1]} : vector<16x2x128xf32> to vector<16x1x128xf32>
    %237 = vector.shape_cast %236 : vector<16x1x128xf32> to vector<16x128xf32>
    %238 = arith.maximumf %235, %237 : vector<16x128xf32>
    %c0_254 = arith.constant 0 : index
    %c0_255 = arith.constant 0 : index
    %239 = vector.load %arg4[%c0_254, %c0_255] : memref<1x128xf32, #tpu.memory_space<vmem>>, vector<1x128xf32>
    %240 = vector.broadcast %239 : vector<1x128xf32> to vector<16x128xf32>
    %241 = arith.addf %238, %240 : vector<16x128xf32>
    %cst_256 = arith.constant 0.000000e+00 : f32
    %242 = vector.broadcast %cst_256 : f32 to vector<16x128xf32>
    %243 = arith.maximumf %241, %242 : vector<16x128xf32>
    %c32_257 = arith.constant 32 : index
    %c0_258 = arith.constant 0 : index
    %244 = vector.load %arg5[%c32_257, %c0_258] : memref<64x128xf32, #tpu.memory_space<vmem>>, vector<16x128xf32>
    tpu.vector_store %arg5[%c32_257, %c0_258], %243 {strides = array<i32>} : memref<64x128xf32, #tpu.memory_space<vmem>>, vector<16x128xf32>,
    %c192 = arith.constant 192 : index
    %c0_259 = arith.constant 0 : index
    %245 = vector.load %arg7[%c192, %c0_259] : memref<256x128xf32, #tpu.memory_space<vmem>>, vector<32x128xf32>
    %c224 = arith.constant 224 : index
    %c0_260 = arith.constant 0 : index
    %246 = vector.load %arg7[%c224, %c0_260] : memref<256x128xf32, #tpu.memory_space<vmem>>, vector<32x128xf32>
    %247 = arith.maximumf %245, %246 : vector<32x128xf32>
    %248 = vector.shape_cast %247 : vector<32x128xf32> to vector<16x2x128xf32>
    %249 = vector.extract_strided_slice %248 {offsets = [0, 0, 0], sizes = [16, 1, 128], strides = [1, 1, 1]} : vector<16x2x128xf32> to vector<16x1x128xf32>
    %250 = vector.shape_cast %249 : vector<16x1x128xf32> to vector<16x128xf32>
    %251 = vector.extract_strided_slice %248 {offsets = [0, 1, 0], sizes = [16, 1, 128], strides = [1, 1, 1]} : vector<16x2x128xf32> to vector<16x1x128xf32>
    %252 = vector.shape_cast %251 : vector<16x1x128xf32> to vector<16x128xf32>
    %253 = arith.maximumf %250, %252 : vector<16x128xf32>
    %c0_261 = arith.constant 0 : index
    %c0_262 = arith.constant 0 : index
    %254 = vector.load %arg4[%c0_261, %c0_262] : memref<1x128xf32, #tpu.memory_space<vmem>>, vector<1x128xf32>
    %255 = vector.broadcast %254 : vector<1x128xf32> to vector<16x128xf32>
    %256 = arith.addf %253, %255 : vector<16x128xf32>
    %cst_263 = arith.constant 0.000000e+00 : f32
    %257 = vector.broadcast %cst_263 : f32 to vector<16x128xf32>
    %258 = arith.maximumf %256, %257 : vector<16x128xf32>
    %c48 = arith.constant 48 : index
    %c0_264 = arith.constant 0 : index
    %259 = vector.load %arg5[%c48, %c0_264] : memref<64x128xf32, #tpu.memory_space<vmem>>, vector<16x128xf32>
    tpu.vector_store %arg5[%c48, %c0_264], %258 {strides = array<i32>} : memref<64x128xf32, #tpu.memory_space<vmem>>, vector<16x128xf32>,
    return
  }
}

</mosaic_0001>

<bundles_post_ra>
// kernel: cnn_mnist_forward.1
= control target key start
LH: loop header
LB: loop body
LE: loop exit
PB: predicated region body
PF: predicated region fallthrough
CT: control target
= control target key end

     0   :  { %vm217_vm0 = vcmask 1040384   ;;  %vm72_vm1 = vcmask 203776   ;;  %vm19878_vm2 = vmmov 1   ;;  %vm2447_vm4 = vcmask 1041408   ;;  %s23480_s1 = inlined_call_operand.vmem [shape: f32[25,10], index: 1, kind: input, shape index: {}]   ;;  %s23481_s0 = inlined_call_operand.vmem [shape: f32[4,384,25], index: 0, kind: input, shape index: {}]   ;;  %s23482_s3 = inlined_call_operand.vmem [shape: f32[25,10,128], index: 3, kind: input, shape index: {}]   ;;  %s23483_s2 = inlined_call_operand.vmem [shape: f32[1,10], index: 2, kind: input, shape index: {}]   ;;  %s23484_s4 = inlined_call_operand.vmem [shape: f32[1,128], index: 4, kind: input, shape index: {}]   ;;  %s23485_s5 = inlined_call_operand.vmem [shape: f32[64,128], index: 5, kind: output, shape index: {}]  }
   0x1   :  { %v68_v0 = vld [vmem:[%s23480_s1] sm:$0xff]  ;;  %v69_v1 = vld [vmem:[%s23480_s1 + $0x8] sm:$0xff]  ;;  %v70_v2 = vld [vmem:[%s23480_s1 + $0x10] sm:$0xff]  ;;  %vm2267_vm6 = vcmask 80896   ;;  %vm13939_vm7 = vcmask 1041409   ;;  %vm13941_vm8 = vcmask 1042434  }
   0x2   :  { %v19920_v3 = vpack.c.bf16 %v69_v1, %v68_v0  ;;  %v71_v4 = vld [vmem:[%s23480_s1 + $0x18] sm:$0x1]  ;;  %v20_v5 = vld [vmem:[%s23481_s0] sm:$0xff]  ;;  %vm19931_vm3 = vmpackc.low %vm217_vm0, %vm19878_vm2  ;;  %vm13943_vm9 = vcmask 1043459   ;;  %vm13945_vm10 = vcmask 1044484   ;;  %vm13947_vm11 = vcmask 1045509  }
   0x3   :  { %v19928_v6 = vpack.c.bf16 %v71_v4, %v70_v2  ;;  %17303 = vmatprep.mubr.msk.f32.mxu1 %vm72_vm1, %v20_v5  ;;  %v21_v8 = vld [vmem:[%s23481_s0 + $0x8] sm:$0xff]  ;;  %v22_v9 = vld [vmem:[%s23481_s0 + $0x10] sm:$0xff]  ;;  %v23_v10 = vld [vmem:[%s23481_s0 + $0x18] sm:$0xff]  ;;  %vm13949_vm12 = vcmask 1046534   ;;  %vm13951_vm13 = vcmask 1047559  }
   0x4   :  { %18916 = vmatprep.subr.bf16.mxu1 %v19920_v3  ;;  %v24_v11 = vld [vmem:[%s23481_s0 + $0x20] sm:$0xff]  ;;  %v25_v12 = vld [vmem:[%s23481_s0 + $0x28] sm:$0xff]  ;;  %v26_v13 = vld [vmem:[%s23481_s0 + $0x30] sm:$0xff] }
   0x5   :  { %18918 = vmatpush3.bf16.msra.mxu1 %v19920_v3  ;;  %v27_v14 = vld [vmem:[%s23481_s0 + $0x38] sm:$0xff]  ;;  %v28_v15 = vld [vmem:[%s23481_s0 + $0x40] sm:$0xff]  ;;  %v29_v16 = vld [vmem:[%s23481_s0 + $0x48] sm:$0xff] }
   0x6   :  { %18921 = vmatprep.subr.msk.bf16.mxu1 %vm19931_vm3, %v19928_v6  ;;  %v30_v17 = vld [vmem:[%s23481_s0 + $0x50] sm:$0xff]  ;;  %v31_v18 = vld [vmem:[%s23481_s0 + $0x58] sm:$0xff]  ;;  %v32_v19 = vld [vmem:[%s23481_s0 + $0x60] sm:$0xff] }
   0x7   :  { %v33_v20 = vld [vmem:[%s23481_s0 + $0x68] sm:$0xff]  ;;  %v34_v21 = vld [vmem:[%s23481_s0 + $0x70] sm:$0xff]  ;;  %v35_v22 = vld [vmem:[%s23481_s0 + $0x78] sm:$0xff] }
   0x8   :  { %v36_v23 = vld [vmem:[%s23481_s0 + $0x80] sm:$0xff]  ;;  %v37_v24 = vld [vmem:[%s23481_s0 + $0x88] sm:$0xff]  ;;  %v38_v25 = vld [vmem:[%s23481_s0 + $0x90] sm:$0xff] }
   0x9   :  { %18924 = vmatpush3.bf16.msk.msra.mxu1 %vm19931_vm3, %v19928_v6  ;;  %v39_v26 = vld [vmem:[%s23481_s0 + $0x98] sm:$0xff]  ;;  %v40_v27 = vld [vmem:[%s23481_s0 + $0xa0] sm:$0xff]  ;;  %v41_v28 = vld [vmem:[%s23481_s0 + $0xa8] sm:$0xff] }
   0xa   :  { %18926 = vmatprep.subr.bf16.mxu1 %v19920_v3  ;;  %v42_v29 = vld [vmem:[%s23481_s0 + $0xb0] sm:$0xff]  ;;  %v43_v30 = vld [vmem:[%s23481_s0 + $0xb8] sm:$0xff]  ;;  %v44_v31 = vld [vmem:[%s23481_s0 + $0xc0] sm:$0xff] }
   0xb   :  { %v45_v32 = vld [vmem:[%s23481_s0 + $0xc8] sm:$0xff]  ;;  %v46_v33 = vld [vmem:[%s23481_s0 + $0xd0] sm:$0xff]  ;;  %v47_v34 = vld [vmem:[%s23481_s0 + $0xd8] sm:$0xff] }
   0xc   :  { %17304 = vmatmul.mubr.msk.f32.vlgmr.msra.gmra.mrb[0].mxu1 %vm72_vm1, %v21_v8  ;;  %v48_v35 = vld [vmem:[%s23481_s0 + $0xe0] sm:$0xff]  ;;  %v49_v36 = vld [vmem:[%s23481_s0 + $0xe8] sm:$0xff]  ;;  %v50_v37 = vld [vmem:[%s23481_s0 + $0xf0] sm:$0xff] }
   0xd   :  { %18928 = vmatpush3.bf16.msra.mxu1 %v19920_v3  ;;  %17306 = vmatprep.mubr.msk.f32.mxu1 %vm72_vm1, %v22_v9  ;;  %v51_v38 = vld [vmem:[%s23481_s0 + $0xf8] sm:$0xff]  ;;  %v52_v39 = vld [vmem:[%s23481_s0 + $0x100] sm:$0xff]  ;;  %v53_v40 = vld [vmem:[%s23481_s0 + $0x108] sm:$0xff] }
   0xe   :  { %18931 = vmatprep.subr.msk.bf16.mxu1 %vm19931_vm3, %v19928_v6  ;;  %v54_v41 = vld [vmem:[%s23481_s0 + $0x110] sm:$0xff]  ;;  %v55_v42 = vld [vmem:[%s23481_s0 + $0x118] sm:$0xff]  ;;  %v56_v43 = vld [vmem:[%s23481_s0 + $0x120] sm:$0xff] }
   0xf   :  { %v57_v44 = vld [vmem:[%s23481_s0 + $0x128] sm:$0xff]  ;;  %v58_v45 = vld [vmem:[%s23481_s0 + $0x130] sm:$0xff]  ;;  %v59_v46 = vld [vmem:[%s23481_s0 + $0x138] sm:$0xff] }
  0x10   :  { %17307 = vmatmul.mubr.msk.f32.gmra.mrb[2].mxu1 %vm72_vm1, %v23_v10  ;;  %v60_v47 = vld [vmem:[%s23481_s0 + $0x140] sm:$0xff]  ;;  %v61_v48 = vld [vmem:[%s23481_s0 + $0x148] sm:$0xff]  ;;  %v62_v49 = vld [vmem:[%s23481_s0 + $0x150] sm:$0xff] }
  0x11   :  { %17309 = vmatprep.mubr.msk.f32.mxu1 %vm72_vm1, %v24_v11  ;;  %18934 = vmatpush3.bf16.msk.msra.mxu1 %vm19931_vm3, %v19928_v6  ;;  %v63_v50 = vld [vmem:[%s23481_s0 + $0x158] sm:$0xff]  ;;  %v64_v51 = vld [vmem:[%s23481_s0 + $0x160] sm:$0xff]  ;;  %v65_v52 = vld [vmem:[%s23481_s0 + $0x168] sm:$0xff] }
  0x12   :  { %18936 = vmatprep.subr.bf16.mxu1 %v19920_v3  ;;  %v66_v53 = vld [vmem:[%s23481_s0 + $0x170] sm:$0xff]  ;;  %v67_v54 = vld [vmem:[%s23481_s0 + $0x178] sm:$0xff]  ;;  %v15004_v55 = vld [vmem:[%s23481_s0 + $0x180] sm:$0xff] }
  0x13   :  { %v15005_v56 = vld [vmem:[%s23481_s0 + $0x188] sm:$0xff]  ;;  %v15006_v57 = vld [vmem:[%s23481_s0 + $0x190] sm:$0xff]  ;;  %v15007_v58 = vld [vmem:[%s23481_s0 + $0x198] sm:$0xff] }
  0x14   :  { %17310 = vmatmul.mubr.msk.f32.gmra.mrb[4].mxu1 %vm72_vm1, %v25_v12  ;;  %v15008_v59 = vld [vmem:[%s23481_s0 + $0x1a0] sm:$0xff]  ;;  %v15009_v60 = vld [vmem:[%s23481_s0 + $0x1a8] sm:$0xff]  ;;  %v15010_v61 = vld [vmem:[%s23481_s0 + $0x1b0] sm:$0xff] }
  0x15   :  { %17312 = vmatprep.mubr.msk.f32.mxu1 %vm72_vm1, %v26_v13  ;;  %v15011_v62 = vld [vmem:[%s23481_s0 + $0x1b8] sm:$0xff]  ;;  %v15012_v63 = vld [vmem:[%s23481_s0 + $0x1c0] sm:$0xff]  ;;  %v15013_v0 = vld [vmem:[%s23481_s0 + $0x1c8] sm:$0xff] }
  0x16   :  { %v15014_v1 = vld [vmem:[%s23481_s0 + $0x1d0] sm:$0xff]  ;;  %v15015_v2 = vld [vmem:[%s23481_s0 + $0x1d8] sm:$0xff]  ;;  %v15016_v4 = vld [vmem:[%s23481_s0 + $0x1e0] sm:$0xff] }
  0x17   :  { %v15017_v5 = vld [vmem:[%s23481_s0 + $0x1e8] sm:$0xff]  ;;  %v15018_v8 = vld [vmem:[%s23481_s0 + $0x1f0] sm:$0xff]  ;;  %v15019_v9 = vld [vmem:[%s23481_s0 + $0x1f8] sm:$0xff] }
  0x18   :  { %17313 = vmatmul.mubr.msk.f32.gmra.mrb[6].mxu1 %vm72_vm1, %v27_v14  ;;  %v15020_v10 = vld [vmem:[%s23481_s0 + $0x200] sm:$0xff]  ;;  %v15021_v11 = vld [vmem:[%s23481_s0 + $0x208] sm:$0xff]  ;;  %v15022_v12 = vld [vmem:[%s23481_s0 + $0x210] sm:$0xff] }
  0x19   :  { %17315 = vmatprep.mubr.msk.f32.mxu1 %vm72_vm1, %v28_v15  ;;  %v15023_v13 = vld [vmem:[%s23481_s0 + $0x218] sm:$0xff]  ;;  %v15024_v14 = vld [vmem:[%s23481_s0 + $0x220] sm:$0xff]  ;;  %v15025_v15 = vld [vmem:[%s23481_s0 + $0x228] sm:$0xff] }
  0x1a   :  { %v15111_v7 = vld [vmem:[%s23481_s0 + $0x350] sm:$0xff]  ;;  %vm20981_vm5 = vmpackc.low %vm2447_vm4, %vm19878_vm2 }
  0x1c   :  { %17316 = vmatmul.mubr.msk.f32.gmra.mrb[8].mxu1 %vm72_vm1, %v29_v16  ;;  %v15026_v16 = vld [vmem:[%s23481_s0 + $0x230] sm:$0xff] }
  0x1d   :  { %17318 = vmatprep.mubr.msk.f32.mxu1 %vm72_vm1, %v30_v17  ;;  %v15027_v17 = vld [vmem:[%s23481_s0 + $0x238] sm:$0xff] }
  0x20   :  { %17319 = vmatmul.mubr.msk.f32.gmra.mrb[10].mxu1 %vm72_vm1, %v31_v18  ;;  %v15028_v18 = vld [vmem:[%s23481_s0 + $0x240] sm:$0xff] }
  0x21   :  { %17321 = vmatprep.mubr.msk.f32.mxu1 %vm72_vm1, %v32_v19  ;;  %v15029_v19 = vld [vmem:[%s23481_s0 + $0x248] sm:$0xff] }
  0x24   :  { %17322 = vmatmul.mubr.msk.f32.gmra.mrb[12].mxu1 %vm72_vm1, %v33_v20  ;;  %v15030_v20 = vld [vmem:[%s23481_s0 + $0x250] sm:$0xff] }
  0x25   :  { %17324 = vmatprep.mubr.msk.f32.mxu1 %vm72_vm1, %v34_v21  ;;  %v15031_v21 = vld [vmem:[%s23481_s0 + $0x258] sm:$0xff] }
  0x28   :  { %17325 = vmatmul.mubr.msk.f32.gmra.mrb[14].mxu1 %vm72_vm1, %v35_v22  ;;  %v15032_v22 = vld [vmem:[%s23481_s0 + $0x260] sm:$0xff] }
  0x29   :  { %17327 = vmatprep.mubr.msk.f32.mxu1 %vm72_vm1, %v36_v23  ;;  %v15033_v23 = vld [vmem:[%s23481_s0 + $0x268] sm:$0xff] }
  0x2c   :  { %17328 = vmatmul.mubr.msk.f32.gmra.mrb[16].mxu1 %vm72_vm1, %v37_v24  ;;  %v15034_v24 = vld [vmem:[%s23481_s0 + $0x270] sm:$0xff] }
  0x2d   :  { %17330 = vmatprep.mubr.msk.f32.mxu1 %vm72_vm1, %v38_v25  ;;  %v15035_v25 = vld [vmem:[%s23481_s0 + $0x278] sm:$0xff] }
  0x30   :  { %17331 = vmatmul.mubr.msk.f32.gmra.mrb[18].mxu1 %vm72_vm1, %v39_v26  ;;  %v15036_v26 = vld [vmem:[%s23481_s0 + $0x280] sm:$0xff] }
  0x31   :  { %17333 = vmatprep.mubr.msk.f32.mxu1 %vm72_vm1, %v40_v27  ;;  %v15037_v27 = vld [vmem:[%s23481_s0 + $0x288] sm:$0xff] }
  0x34   :  { %17334 = vmatmul.mubr.msk.f32.gmra.mrb[20].mxu1 %vm72_vm1, %v41_v28  ;;  %v15038_v28 = vld [vmem:[%s23481_s0 + $0x290] sm:$0xff] }
  0x35   :  { %17336 = vmatprep.mubr.msk.f32.mxu1 %vm72_vm1, %v42_v29  ;;  %v15039_v29 = vld [vmem:[%s23481_s0 + $0x298] sm:$0xff] }
  0x38   :  { %17337 = vmatmul.mubr.msk.f32.gmra.mrb[22].mxu1 %vm72_vm1, %v43_v30  ;;  %v15040_v30 = vld [vmem:[%s23481_s0 + $0x2a0] sm:$0xff] }
  0x39   :  { %17339 = vmatprep.mubr.msk.f32.mxu1 %vm72_vm1, %v44_v31  ;;  %v15041_v31 = vld [vmem:[%s23481_s0 + $0x2a8] sm:$0xff] }
  0x3c   :  { %17340 = vmatmul.mubr.msk.f32.gmra.mrb[24].mxu1 %vm72_vm1, %v45_v32  ;;  %v15042_v32 = vld [vmem:[%s23481_s0 + $0x2b0] sm:$0xff] }
  0x3d   :  { %17342 = vmatprep.mubr.msk.f32.mxu1 %vm72_vm1, %v46_v33  ;;  %v15043_v33 = vld [vmem:[%s23481_s0 + $0x2b8] sm:$0xff] }
  0x40   :  { %17343 = vmatmul.mubr.msk.f32.gmra.mrb[26].mxu1 %vm72_vm1, %v47_v34  ;;  %v15044_v34 = vld [vmem:[%s23481_s0 + $0x2c0] sm:$0xff] }
  0x41   :  { %17345 = vmatprep.mubr.msk.f32.mxu1 %vm72_vm1, %v48_v35  ;;  %v15045_v35 = vld [vmem:[%s23481_s0 + $0x2c8] sm:$0xff] }
  0x44   :  { %17346 = vmatmul.mubr.msk.f32.gmra.mrb[28].mxu1 %vm72_vm1, %v49_v36  ;;  %v15046_v36 = vld [vmem:[%s23481_s0 + $0x2d0] sm:$0xff] }
  0x45   :  { %17348 = vmatprep.mubr.msk.f32.mxu1 %vm72_vm1, %v50_v37  ;;  %v15047_v37 = vld [vmem:[%s23481_s0 + $0x2d8] sm:$0xff] }
  0x48   :  { %17349 = vmatmul.mubr.msk.f32.gmra.mrb[30].mxu1 %vm72_vm1, %v51_v38  ;;  %v15048_v38 = vld [vmem:[%s23481_s0 + $0x2e0] sm:$0xff] }
  0x49   :  { %17351 = vmatprep.mubr.msk.f32.mxu1 %vm72_vm1, %v52_v39  ;;  %v15049_v39 = vld [vmem:[%s23481_s0 + $0x2e8] sm:$0xff] }
  0x4c   :  { %17352 = vmatmul.mubr.msk.f32.gmra.mrb[32].mxu1 %vm72_vm1, %v53_v40  ;;  %v15050_v40 = vld [vmem:[%s23481_s0 + $0x2f0] sm:$0xff] }
  0x4d   :  { %17354 = vmatprep.mubr.msk.f32.mxu1 %vm72_vm1, %v54_v41  ;;  %v15051_v41 = vld [vmem:[%s23481_s0 + $0x2f8] sm:$0xff] }
  0x50   :  { %17355 = vmatmul.mubr.msk.f32.gmra.mrb[34].mxu1 %vm72_vm1, %v55_v42  ;;  %v15101_v42 = vld [vmem:[%s23481_s0 + $0x300] sm:$0xff] }
  0x51   :  { %17357 = vmatprep.mubr.msk.f32.mxu1 %vm72_vm1, %v56_v43  ;;  %v15102_v43 = vld [vmem:[%s23481_s0 + $0x308] sm:$0xff] }
  0x54   :  { %17358 = vmatmul.mubr.msk.f32.gmra.mrb[36].mxu1 %vm72_vm1, %v57_v44  ;;  %v15103_v44 = vld [vmem:[%s23481_s0 + $0x310] sm:$0xff] }
  0x55   :  { %17360 = vmatprep.mubr.msk.f32.mxu1 %vm72_vm1, %v58_v45  ;;  %v15104_v45 = vld [vmem:[%s23481_s0 + $0x318] sm:$0xff] }
  0x58   :  { %17361 = vmatmul.mubr.msk.f32.gmra.mrb[38].mxu1 %vm72_vm1, %v59_v46  ;;  %v15105_v46 = vld [vmem:[%s23481_s0 + $0x320] sm:$0xff] }
  0x59   :  { %17363 = vmatprep.mubr.msk.f32.mxu1 %vm72_vm1, %v60_v47  ;;  %v15107_v47 = vld [vmem:[%s23481_s0 + $0x330] sm:$0xff] }
  0x5c   :  { %17364 = vmatmul.mubr.msk.f32.gmra.mrb[40].mxu1 %vm72_vm1, %v61_v48  ;;  %v15108_v48 = vld [vmem:[%s23481_s0 + $0x338] sm:$0xff] }
  0x5d   :  { %17366 = vmatprep.mubr.msk.f32.mxu1 %vm72_vm1, %v62_v49  ;;  %v15109_v49 = vld [vmem:[%s23481_s0 + $0x340] sm:$0xff] }
  0x60   :  { %17367 = vmatmul.mubr.msk.f32.gmra.mrb[42].mxu1 %vm72_vm1, %v63_v50  ;;  %v15112_v50 = vld [vmem:[%s23481_s0 + $0x358] sm:$0xff] }
  0x61   :  { %17369 = vmatprep.mubr.msk.f32.mxu1 %vm72_vm1, %v64_v51  ;;  %v15113_v51 = vld [vmem:[%s23481_s0 + $0x360] sm:$0xff] }
  0x64   :  { %17370 = vmatmul.mubr.msk.f32.gmra.mrb[44].mxu1 %vm72_vm1, %v65_v52 }
  0x65   :  { %17372 = vmatprep.mubr.msk.f32.mxu1 %vm72_vm1, %v66_v53 }
  0x68   :  { %17373 = vmatmul.mubr.msk.f32.gmra.mrb[46].mxu1 %vm72_vm1, %v67_v54  ;;  %v15114_v54 = vld [vmem:[%s23481_s0 + $0x368] sm:$0xff] }
  0x69   :  { %17383 = vmatprep.mubr.msk.f32.mxu1 %vm72_vm1, %v15004_v55  ;;  %v15115_v55 = vld [vmem:[%s23481_s0 + $0x370] sm:$0xff] }
  0x6c   :  { %17384 = vmatmul.mubr.msk.f32.vlgmr.msra.gmra.mrb[48].mxu1 %vm72_vm1, %v15005_v56 }
  0x6d   :  { %18938 = vmatpush3.bf16.msra.mxu1 %v19920_v3  ;;  %17386 = vmatprep.mubr.msk.f32.mxu1 %vm72_vm1, %v15006_v57 }
  0x6e   :  { %18941 = vmatprep.subr.msk.bf16.mxu1 %vm19931_vm3, %v19928_v6 }
  0x70   :  { %17387 = vmatmul.mubr.msk.f32.gmra.mrb[50].mxu1 %vm72_vm1, %v15007_v58  ;;  %v15116_v58 = vld [vmem:[%s23481_s0 + $0x378] sm:$0xff] }
  0x71   :  { %17389 = vmatprep.mubr.msk.f32.mxu1 %vm72_vm1, %v15008_v59  ;;  %18944 = vmatpush3.bf16.msk.msra.mxu1 %vm19931_vm3, %v19928_v6  ;;  %v15117_v59 = vld [vmem:[%s23481_s0 + $0x380] sm:$0xff] }
  0x72   :  { %18946 = vmatprep.subr.bf16.mxu1 %v19920_v3 }
  0x74   :  { %17390 = vmatmul.mubr.msk.f32.gmra.mrb[52].mxu1 %vm72_vm1, %v15009_v60 }
  0x75   :  { %17392 = vmatprep.mubr.msk.f32.mxu1 %vm72_vm1, %v15010_v61 }
  0x78   :  { %17393 = vmatmul.mubr.msk.f32.gmra.mrb[54].mxu1 %vm72_vm1, %v15011_v62  ;;  %v15118_v62 = vld [vmem:[%s23481_s0 + $0x388] sm:$0xff] }
  0x79   :  { %17395 = vmatprep.mubr.msk.f32.mxu1 %vm72_vm1, %v15012_v63  ;;  %v15119_v63 = vld [vmem:[%s23481_s0 + $0x390] sm:$0xff] }
  0x7c   :  { %17396 = vmatmul.mubr.msk.f32.gmra.mrb[56].mxu1 %vm72_vm1, %v15013_v0 }
  0x7d   :  { %17398 = vmatprep.mubr.msk.f32.mxu1 %vm72_vm1, %v15014_v1 }
  0x80   :  { %17399 = vmatmul.mubr.msk.f32.gmra.mrb[58].mxu1 %vm72_vm1, %v15015_v2  ;;  %v15120_v2 = vld [vmem:[%s23481_s0 + $0x398] sm:$0xff] }
  0x81   :  { %17401 = vmatprep.mubr.msk.f32.mxu1 %vm72_vm1, %v15016_v4  ;;  %v15121_v4 = vld [vmem:[%s23481_s0 + $0x3a0] sm:$0xff] }
  0x84   :  { %17402 = vmatmul.mubr.msk.f32.gmra.mrb[60].mxu1 %vm72_vm1, %v15017_v5 }
  0x85   :  { %17404 = vmatprep.mubr.msk.f32.mxu1 %vm72_vm1, %v15018_v8 }
  0x88   :  { %17405 = vmatmul.mubr.msk.f32.gmra.mrb[62].mxu1 %vm72_vm1, %v15019_v9  ;;  %v15122_v9 = vld [vmem:[%s23481_s0 + $0x3a8] sm:$0xff] }
  0x89   :  { %17407 = vmatprep.mubr.msk.f32.mxu1 %vm72_vm1, %v15020_v10  ;;  %v15123_v10 = vld [vmem:[%s23481_s0 + $0x3b0] sm:$0xff] }
  0x8c   :  { %17408 = vmatmul.mubr.msk.f32.gmra.mrb[64].mxu1 %vm72_vm1, %v15021_v11 }
  0x8d   :  { %17410 = vmatprep.mubr.msk.f32.mxu1 %vm72_vm1, %v15022_v12 }
  0x90   :  { %17411 = vmatmul.mubr.msk.f32.gmra.mrb[66].mxu1 %vm72_vm1, %v15023_v13  ;;  %v15124_v13 = vld [vmem:[%s23481_s0 + $0x3b8] sm:$0xff] }
  0x91   :  { %17413 = vmatprep.mubr.msk.f32.mxu1 %vm72_vm1, %v15024_v14  ;;  %v15125_v14 = vld [vmem:[%s23481_s0 + $0x3c0] sm:$0xff] }
  0x94   :  { %17414 = vmatmul.mubr.msk.f32.gmra.mrb[68].mxu1 %vm72_vm1, %v15025_v15 }
  0x95   :  { %17416 = vmatprep.mubr.msk.f32.mxu1 %vm72_vm1, %v15026_v16 }
  0x98   :  { %17417 = vmatmul.mubr.msk.f32.gmra.mrb[70].mxu1 %vm72_vm1, %v15027_v17  ;;  %v15126_v17 = vld [vmem:[%s23481_s0 + $0x3c8] sm:$0xff] }
  0x99   :  { %17419 = vmatprep.mubr.msk.f32.mxu1 %vm72_vm1, %v15028_v18  ;;  %v15127_v18 = vld [vmem:[%s23481_s0 + $0x3d0] sm:$0xff] }
  0x9c   :  { %17420 = vmatmul.mubr.msk.f32.gmra.mrb[72].mxu1 %vm72_vm1, %v15029_v19 }
  0x9d   :  { %17422 = vmatprep.mubr.msk.f32.mxu1 %vm72_vm1, %v15030_v20 }
  0xa0   :  { %17423 = vmatmul.mubr.msk.f32.gmra.mrb[74].mxu1 %vm72_vm1, %v15031_v21  ;;  %v15128_v21 = vld [vmem:[%s23481_s0 + $0x3d8] sm:$0xff] }
  0xa1   :  { %17425 = vmatprep.mubr.msk.f32.mxu1 %vm72_vm1, %v15032_v22  ;;  %v15129_v22 = vld [vmem:[%s23481_s0 + $0x3e0] sm:$0xff] }
  0xa4   :  { %17426 = vmatmul.mubr.msk.f32.gmra.mrb[76].mxu1 %vm72_vm1, %v15033_v23 }
  0xa5   :  { %17428 = vmatprep.mubr.msk.f32.mxu1 %vm72_vm1, %v15034_v24 }
  0xa8   :  { %17429 = vmatmul.mubr.msk.f32.gmra.mrb[78].mxu1 %vm72_vm1, %v15035_v25  ;;  %v15130_v25 = vld [vmem:[%s23481_s0 + $0x3e8] sm:$0xff] }
  0xa9   :  { %17431 = vmatprep.mubr.msk.f32.mxu1 %vm72_vm1, %v15036_v26  ;;  %v15131_v26 = vld [vmem:[%s23481_s0 + $0x3f0] sm:$0xff] }
  0xac   :  { %17432 = vmatmul.mubr.msk.f32.gmra.mrb[80].mxu1 %vm72_vm1, %v15037_v27 }
  0xad   :  { %17434 = vmatprep.mubr.msk.f32.mxu1 %vm72_vm1, %v15038_v28 }
  0xb0   :  { %17435 = vmatmul.mubr.msk.f32.gmra.mrb[82].mxu1 %vm72_vm1, %v15039_v29  ;;  %v15132_v29 = vld [vmem:[%s23481_s0 + $0x3f8] sm:$0xff] }
  0xb1   :  { %17437 = vmatprep.mubr.msk.f32.mxu1 %vm72_vm1, %v15040_v30  ;;  %v15133_v30 = vld [vmem:[%s23481_s0 + $0x400] sm:$0xff] }
  0xb4   :  { %17438 = vmatmul.mubr.msk.f32.gmra.mrb[84].mxu1 %vm72_vm1, %v15041_v31 }
  0xb5   :  { %17440 = vmatprep.mubr.msk.f32.mxu1 %vm72_vm1, %v15042_v32 }
  0xb8   :  { %17441 = vmatmul.mubr.msk.f32.gmra.mrb[86].mxu1 %vm72_vm1, %v15043_v33  ;;  %v15134_v33 = vld [vmem:[%s23481_s0 + $0x408] sm:$0xff] }
  0xb9   :  { %17443 = vmatprep.mubr.msk.f32.mxu1 %vm72_vm1, %v15044_v34  ;;  %v15135_v34 = vld [vmem:[%s23481_s0 + $0x410] sm:$0xff] }
  0xbc   :  { %17444 = vmatmul.mubr.msk.f32.gmra.mrb[88].mxu1 %vm72_vm1, %v15045_v35 }
  0xbd   :  { %17446 = vmatprep.mubr.msk.f32.mxu1 %vm72_vm1, %v15046_v36 }
  0xc0   :  { %17447 = vmatmul.mubr.msk.f32.gmra.mrb[90].mxu1 %vm72_vm1, %v15047_v37  ;;  %v15136_v37 = vld [vmem:[%s23481_s0 + $0x418] sm:$0xff] }
  0xc1   :  { %17449 = vmatprep.mubr.msk.f32.mxu1 %vm72_vm1, %v15048_v38  ;;  %v15137_v38 = vld [vmem:[%s23481_s0 + $0x420] sm:$0xff] }
  0xc4   :  { %17450 = vmatmul.mubr.msk.f32.gmra.mrb[92].mxu1 %vm72_vm1, %v15049_v39 }
  0xc5   :  { %17452 = vmatprep.mubr.msk.f32.mxu1 %vm72_vm1, %v15050_v40 }
  0xc8   :  { %17453 = vmatmul.mubr.msk.f32.gmra.mrb[94].mxu1 %vm72_vm1, %v15051_v41  ;;  %v15138_v41 = vld [vmem:[%s23481_s0 + $0x428] sm:$0xff] }
  0xc9   :  { %17463 = vmatprep.mubr.msk.f32.mxu1 %vm72_vm1, %v15101_v42  ;;  %v15139_v42 = vld [vmem:[%s23481_s0 + $0x430] sm:$0xff] }
  0xcc   :  { %17464 = vmatmul.mubr.msk.f32.vlgmr.msra.gmra.mrb[96].mxu1 %vm72_vm1, %v15102_v43 }
  0xcd   :  { %18948 = vmatpush3.bf16.msra.mxu1 %v19920_v3  ;;  %17466 = vmatprep.mubr.msk.f32.mxu1 %vm72_vm1, %v15103_v44  ;;  %v15106_v3 = vld [vmem:[%s23481_s0 + $0x328] sm:$0xff] }
  0xce   :  { %18951 = vmatprep.subr.msk.bf16.mxu1 %vm19931_vm3, %v19928_v6 }
  0xd0   :  { %17467 = vmatmul.mubr.msk.f32.gmra.mrb[98].mxu1 %vm72_vm1, %v15104_v45  ;;  %v15140_v45 = vld [vmem:[%s23481_s0 + $0x438] sm:$0xff] }
  0xd1   :  { %17469 = vmatprep.mubr.msk.f32.mxu1 %vm72_vm1, %v15105_v46  ;;  %18954 = vmatpush3.bf16.msk.msra.mxu1 %vm19931_vm3, %v19928_v6  ;;  %v15110_v6 = vld [vmem:[%s23481_s0 + $0x348] sm:$0xff]  ;;  %v15141_v46 = vld [vmem:[%s23481_s0 + $0x440] sm:$0xff] }
  0xd4   :  { %17470 = vmatmul.mubr.msk.f32.gmra.mrb[100].mxu1 %vm72_vm1, %v15106_v3 }
  0xd5   :  { %17472 = vmatprep.mubr.msk.f32.mxu1 %vm72_vm1, %v15107_v47 }
  0xd8   :  { %17473 = vmatmul.mubr.msk.f32.gmra.mrb[102].mxu1 %vm72_vm1, %v15108_v48  ;;  %v15142_v48 = vld [vmem:[%s23481_s0 + $0x448] sm:$0xff] }
  0xd9   :  { %17475 = vmatprep.mubr.msk.f32.mxu1 %vm72_vm1, %v15109_v49  ;;  %v15143_v49 = vld [vmem:[%s23481_s0 + $0x450] sm:$0xff] }
  0xdc   :  { %17476 = vmatmul.mubr.msk.f32.gmra.mrb[104].mxu1 %vm72_vm1, %v15110_v6 }
  0xdd   :  { %17478 = vmatprep.mubr.msk.f32.mxu1 %vm72_vm1, %v15111_v7 }
  0xdf   :  { %v20398_v52 = vpop.f32.mrb[0].mxu1 }
  0xe0   :  { %v20400_v53 = vpop.f32.mrb[1].mxu1  ;;  %17479 = vmatmul.mubr.msk.f32.gmra.mrb[106].mxu1 %vm72_vm1, %v15112_v50  ;;  %v15144_v50 = vld [vmem:[%s23481_s0 + $0x458] sm:$0xff] }
  0xe1   :  { %17481 = vmatprep.mubr.msk.f32.mxu1 %vm72_vm1, %v15113_v51  ;;  %v15145_v51 = vld [vmem:[%s23481_s0 + $0x460] sm:$0xff] }
  0xe3   :  { %v20410_v56 = vpop.f32.mrb[2].mxu1 }
  0xe4   :  { %v20412_v57 = vpop.f32.mrb[3].mxu1  ;;  %17482 = vmatmul.mubr.msk.f32.gmra.mrb[108].mxu1 %vm72_vm1, %v15114_v54 }
  0xe5   :  { %17484 = vmatprep.mubr.msk.f32.mxu1 %vm72_vm1, %v15115_v55 }
  0xe7   :  { %v20422_v60 = vpop.f32.mrb[4].mxu1 }
  0xe8   :  { %v20424_v61 = vpop.f32.mrb[5].mxu1  ;;  %17485 = vmatmul.mubr.msk.f32.gmra.mrb[110].mxu1 %vm72_vm1, %v15116_v58  ;;  %v15146_v58 = vld [vmem:[%s23481_s0 + $0x468] sm:$0xff] }
  0xe9   :  { %17487 = vmatprep.mubr.msk.f32.mxu1 %vm72_vm1, %v15117_v59  ;;  %v15147_v59 = vld [vmem:[%s23481_s0 + $0x470] sm:$0xff] }
  0xeb   :  { %v20434_v0 = vpop.f32.mrb[6].mxu1 }
  0xec   :  { %v20436_v1 = vpop.f32.mrb[7].mxu1  ;;  %17488 = vmatmul.mubr.msk.f32.gmra.mrb[112].mxu1 %vm72_vm1, %v15118_v62 }
  0xed   :  { %17490 = vmatprep.mubr.msk.f32.mxu1 %vm72_vm1, %v15119_v63 }
  0xef   :  { %v20446_v5 = vpop.f32.mrb[8].mxu1 }
  0xf0   :  { %v20448_v8 = vpop.f32.mrb[9].mxu1  ;;  %17491 = vmatmul.mubr.msk.f32.gmra.mrb[114].mxu1 %vm72_vm1, %v15120_v2  ;;  %v15148_v2 = vld [vmem:[%s23481_s0 + $0x478] sm:$0xff] }
  0xf1   :  { %17493 = vmatprep.mubr.msk.f32.mxu1 %vm72_vm1, %v15121_v4  ;;  %v15198_v4 = vld [vmem:[%s23481_s0 + $0x480] sm:$0xff] }
  0xf3   :  { %v20458_v11 = vpop.f32.mrb[10].mxu1 }
  0xf4   :  { %v20460_v12 = vpop.f32.mrb[11].mxu1  ;;  %17494 = vmatmul.mubr.msk.f32.gmra.mrb[116].mxu1 %vm72_vm1, %v15122_v9 }
  0xf5   :  { %17496 = vmatprep.mubr.msk.f32.mxu1 %vm72_vm1, %v15123_v10 }
  0xf7   :  { %v20470_v15 = vpop.f32.mrb[12].mxu1 }
  0xf8   :  { %v20472_v16 = vpop.f32.mrb[13].mxu1  ;;  %17497 = vmatmul.mubr.msk.f32.gmra.mrb[118].mxu1 %vm72_vm1, %v15124_v13  ;;  %v15199_v13 = vld [vmem:[%s23481_s0 + $0x488] sm:$0xff] }
  0xf9   :  { %17499 = vmatprep.mubr.msk.f32.mxu1 %vm72_vm1, %v15125_v14  ;;  %v15200_v14 = vld [vmem:[%s23481_s0 + $0x490] sm:$0xff] }
  0xfb   :  { %v20482_v19 = vpop.f32.mrb[14].mxu1 }
  0xfc   :  { %v20484_v20 = vpop.f32.mrb[15].mxu1  ;;  %17500 = vmatmul.mubr.msk.f32.gmra.mrb[120].mxu1 %vm72_vm1, %v15126_v17 }
  0xfd   :  { %17502 = vmatprep.mubr.msk.f32.mxu1 %vm72_vm1, %v15127_v18 }
  0xff   :  { %v20494_v23 = vpop.f32.mrb[16].mxu1 }
 0x100   :  { %v20496_v24 = vpop.f32.mrb[17].mxu1  ;;  %17503 = vmatmul.mubr.msk.f32.gmra.mrb[122].mxu1 %vm72_vm1, %v15128_v21  ;;  %v15201_v21 = vld [vmem:[%s23481_s0 + $0x498] sm:$0xff] }
 0x101   :  { %17505 = vmatprep.mubr.msk.f32.mxu1 %vm72_vm1, %v15129_v22  ;;  %v15202_v22 = vld [vmem:[%s23481_s0 + $0x4a0] sm:$0xff] }
 0x103   :  { %v20506_v27 = vpop.f32.mrb[18].mxu1 }
 0x104   :  { %v20508_v28 = vpop.f32.mrb[19].mxu1  ;;  %17506 = vmatmul.mubr.msk.f32.gmra.mrb[124].mxu1 %vm72_vm1, %v15130_v25 }
 0x105   :  { %17508 = vmatprep.mubr.msk.f32.mxu1 %vm72_vm1, %v15131_v26 }
 0x107   :  { %v20518_v31 = vpop.f32.mrb[20].mxu1 }
 0x108   :  { %23586 = vst [vmem:[#allocation4_spill] sm:$0xff] %v20518_v31  ;;  %v20520_v32 = vpop.f32.mrb[21].mxu1  ;;  %17509 = vmatmul.mubr.msk.f32.gmra.mrb[126].mxu1 %vm72_vm1, %v15132_v29  ;;  %v15203_v29 = vld [vmem:[%s23481_s0 + $0x4a8] sm:$0xff] }
 0x109   :  { %23587 = vst [vmem:[#allocation5_spill] sm:$0xff] %v20520_v32  ;;  %17511 = vmatprep.mubr.msk.f32.mxu1 %vm72_vm1, %v15133_v30  ;;  %v15204_v30 = vld [vmem:[%s23481_s0 + $0x4b0] sm:$0xff] }
 0x10b   :  { %v20530_v35 = vpop.f32.mrb[22].mxu1 }
 0x10c   :  { %23588 = vst [vmem:[#allocation6_spill] sm:$0xff] %v20530_v35  ;;  %v20532_v36 = vpop.f32.mrb[23].mxu1  ;;  %17512 = vmatmul.mubr.msk.f32.gmra.mrb[128].mxu1 %vm72_vm1, %v15134_v33 }
 0x10d   :  { %23589 = vst [vmem:[#allocation7_spill] sm:$0xff] %v20532_v36  ;;  %17514 = vmatprep.mubr.msk.f32.mxu1 %vm72_vm1, %v15135_v34 }
 0x10f   :  { %v20542_v39 = vpop.f32.mrb[24].mxu1 }
 0x110   :  { %23590 = vst [vmem:[#allocation8_spill] sm:$0xff] %v20542_v39  ;;  %v20544_v40 = vpop.f32.mrb[25].mxu1  ;;  %17515 = vmatmul.mubr.msk.f32.gmra.mrb[130].mxu1 %vm72_vm1, %v15136_v37  ;;  %v15205_v37 = vld [vmem:[%s23481_s0 + $0x4b8] sm:$0xff] }
 0x111   :  { %23591 = vst [vmem:[#allocation9_spill] sm:$0xff] %v20544_v40  ;;  %17517 = vmatprep.mubr.msk.f32.mxu1 %vm72_vm1, %v15137_v38  ;;  %v15206_v38 = vld [vmem:[%s23481_s0 + $0x4c0] sm:$0xff] }
 0x113   :  { %v20554_v43 = vpop.f32.mrb[26].mxu1 }
 0x114   :  { %23592 = vst [vmem:[#allocation10_spill] sm:$0xff] %v20554_v43  ;;  %v20556_v44 = vpop.f32.mrb[27].mxu1  ;;  %17518 = vmatmul.mubr.msk.f32.gmra.mrb[132].mxu1 %vm72_vm1, %v15138_v41 }
 0x115   :  { %23593 = vst [vmem:[#allocation11_spill] sm:$0xff] %v20556_v44  ;;  %17520 = vmatprep.mubr.msk.f32.mxu1 %vm72_vm1, %v15139_v42 }
 0x117   :  { %v20566_v3 = vpop.f32.mrb[28].mxu1 }
 0x118   :  { %23594 = vst [vmem:[#allocation12_spill] sm:$0xff] %v20566_v3  ;;  %v20568_v47 = vpop.f32.mrb[29].mxu1  ;;  %17521 = vmatmul.mubr.msk.f32.gmra.mrb[134].mxu1 %vm72_vm1, %v15140_v45  ;;  %v15207_v45 = vld [vmem:[%s23481_s0 + $0x4c8] sm:$0xff] }
 0x119   :  { %23595 = vst [vmem:[#allocation13_spill] sm:$0xff] %v20568_v47  ;;  %17523 = vmatprep.mubr.msk.f32.mxu1 %vm72_vm1, %v15141_v46  ;;  %v15208_v46 = vld [vmem:[%s23481_s0 + $0x4d0] sm:$0xff] }
 0x11b   :  { %v20578_v6 = vpop.f32.mrb[30].mxu1 }
 0x11c   :  { %23596 = vst [vmem:[#allocation14_spill] sm:$0xff] %v20578_v6  ;;  %v20580_v7 = vpop.f32.mrb[31].mxu1  ;;  %17524 = vmatmul.mubr.msk.f32.gmra.mrb[136].mxu1 %vm72_vm1, %v15142_v48  ;;  %v15330_v6 = vld [vmem:[%s23482_s3 + $0x18] sm:$0x3] }
 0x11d   :  { %23597 = vst [vmem:[#allocation15_spill] sm:$0xff] %v20580_v7  ;;  %17526 = vmatprep.mubr.msk.f32.mxu1 %vm72_vm1, %v15143_v49  ;;  %v15329_v7 = vld [vmem:[%s23482_s3 + $0x10] sm:$0xff] }
 0x11e   :  { %v21114_v3 = vpack.c.bf16 %v15330_v6, %v15329_v7 }
 0x11f   :  { %v20590_v54 = vpop.f32.mrb[32].mxu1 }
 0x120   :  { %23598 = vst [vmem:[#allocation16_spill] sm:$0xff] %v20590_v54  ;;  %v20592_v55 = vpop.f32.mrb[33].mxu1  ;;  %17527 = vmatmul.mubr.msk.f32.gmra.mrb[138].mxu1 %vm72_vm1, %v15144_v50  ;;  %v15209_v50 = vld [vmem:[%s23481_s0 + $0x4d8] sm:$0xff] }
 0x121   :  { %23599 = vst [vmem:[#allocation17_spill] sm:$0xff] %v20592_v55  ;;  %17529 = vmatprep.mubr.msk.f32.mxu1 %vm72_vm1, %v15145_v51  ;;  %v15210_v51 = vld [vmem:[%s23481_s0 + $0x4e0] sm:$0xff] }
 0x123   :  { %v20602_v62 = vpop.f32.mrb[34].mxu1 }
 0x124   :  { %23600 = vst [vmem:[#allocation18_spill] sm:$0xff] %v20602_v62  ;;  %v20604_v63 = vpop.f32.mrb[35].mxu1  ;;  %17530 = vmatmul.mubr.msk.f32.gmra.mrb[140].mxu1 %vm72_vm1, %v15146_v58 }
 0x125   :  { %23601 = vst [vmem:[#allocation19_spill] sm:$0xff] %v20604_v63  ;;  %17532 = vmatprep.mubr.msk.f32.mxu1 %vm72_vm1, %v15147_v59 }
 0x127   :  { %v20614_v9 = vpop.f32.mrb[36].mxu1 }
 0x128   :  { %23602 = vst [vmem:[#allocation20_spill] sm:$0xff] %v20614_v9  ;;  %v20616_v10 = vpop.f32.mrb[37].mxu1  ;;  %17533 = vmatmul.mubr.msk.f32.gmra.mrb[142].mxu1 %vm72_vm1, %v15148_v2  ;;  %v15610_v9 = vld [vmem:[%s23482_s3 + $0x98] sm:$0x3] }
 0x129   :  { %23603 = vst [vmem:[#allocation21_spill] sm:$0xff] %v20616_v10  ;;  %17543 = vmatprep.mubr.msk.f32.mxu1 %vm72_vm1, %v15198_v4 }
 0x12b   :  { %v20626_v17 = vpop.f32.mrb[38].mxu1 }
 0x12c   :  { %23604 = vst [vmem:[#allocation22_spill] sm:$0xff] %v20626_v17  ;;  %v20628_v18 = vpop.f32.mrb[39].mxu1  ;;  %17544 = vmatmul.mubr.msk.f32.vlgmr.msra.gmra.mrb[144].mxu1 %vm72_vm1, %v15199_v13  ;;  %v15211_v13 = vld [vmem:[%s23481_s0 + $0x4e8] sm:$0xff] }
 0x12d   :  { %23605 = vst [vmem:[#allocation23_spill] sm:$0xff] %v20628_v18  ;;  %17546 = vmatprep.mubr.msk.f32.mxu1 %vm72_vm1, %v15200_v14  ;;  %v15212_v14 = vld [vmem:[%s23481_s0 + $0x4f0] sm:$0xff] }
 0x12f   :  { %v20638_v25 = vpop.f32.mrb[40].mxu1 }
 0x130   :  { %23606 = vst [vmem:[#allocation24_spill] sm:$0xff] %v20638_v25  ;;  %v20640_v26 = vpop.f32.mrb[41].mxu1  ;;  %17547 = vmatmul.mubr.msk.f32.gmra.mrb[146].mxu1 %vm72_vm1, %v15201_v21 }
 0x131   :  { %23607 = vst [vmem:[#allocation25_spill] sm:$0xff] %v20640_v26  ;;  %17549 = vmatprep.mubr.msk.f32.mxu1 %vm72_vm1, %v15202_v22 }
 0x133   :  { %v20650_v33 = vpop.f32.mrb[42].mxu1 }
 0x134   :  { %23608 = vst [vmem:[#allocation26_spill] sm:$0xff] %v20650_v33  ;;  %v20652_v34 = vpop.f32.mrb[43].mxu1  ;;  %17550 = vmatmul.mubr.msk.f32.gmra.mrb[148].mxu1 %vm72_vm1, %v15203_v29 }
 0x135   :  { %23609 = vst [vmem:[#allocation27_spill] sm:$0xff] %v20652_v34  ;;  %17552 = vmatprep.mubr.msk.f32.mxu1 %vm72_vm1, %v15204_v30 }
 0x137   :  { %v20662_v41 = vpop.f32.mrb[44].mxu1 }
 0x138   :  { %23610 = vst [vmem:[#allocation28_spill] sm:$0xff] %v20662_v41  ;;  %v20664_v42 = vpop.f32.mrb[45].mxu1  ;;  %17553 = vmatmul.mubr.msk.f32.gmra.mrb[150].mxu1 %vm72_vm1, %v15205_v37  ;;  %v15213_v37 = vld [vmem:[%s23481_s0 + $0x4f8] sm:$0xff] }
 0x139   :  { %23611 = vst [vmem:[#allocation29_spill] sm:$0xff] %v20664_v42  ;;  %17555 = vmatprep.mubr.msk.f32.mxu1 %vm72_vm1, %v15206_v38  ;;  %v15214_v38 = vld [vmem:[%s23481_s0 + $0x500] sm:$0xff] }
 0x13b   :  { %v20674_v48 = vpop.f32.mrb[46].mxu1 }
 0x13c   :  { %23612 = vst [vmem:[#allocation30_spill] sm:$0xff] %v20674_v48  ;;  %v20676_v49 = vpop.f32.mrb[47].mxu1  ;;  %17556 = vmatmul.mubr.msk.f32.gmra.mrb[152].mxu1 %vm72_vm1, %v15207_v45 }
 0x13d   :  { %23613 = vst [vmem:[#allocation31_spill] sm:$0xff] %v20676_v49  ;;  %17558 = vmatprep.mubr.msk.f32.mxu1 %vm72_vm1, %v15208_v46 }
 0x13f   :  { %v20686_v58 = vpop.f32.mrb[48].mxu1 }
 0x140   :  { %v20690_v2 = vpop.f32.mrb[49].mxu1  ;;  %17559 = vmatmul.mubr.msk.f32.gmra.mrb[154].mxu1 %vm72_vm1, %v15209_v50 }
 0x141   :  { %17561 = vmatprep.mubr.msk.f32.mxu1 %vm72_vm1, %v15210_v51  ;;  %v15218_v51 = vld [vmem:[%s23481_s0 + $0x520] sm:$0xff] }
 0x143   :  { %v20702_v21 = vpop.f32.mrb[50].mxu1 }
 0x144   :  { %v20706_v29 = vpop.f32.mrb[51].mxu1  ;;  %17562 = vmatmul.mubr.msk.f32.gmra.mrb[156].mxu1 %vm72_vm1, %v15211_v13  ;;  %v15215_v13 = vld [vmem:[%s23481_s0 + $0x508] sm:$0xff] }
 0x145   :  { %17564 = vmatprep.mubr.msk.f32.mxu1 %vm72_vm1, %v15212_v14  ;;  %v15216_v14 = vld [vmem:[%s23481_s0 + $0x510] sm:$0xff] }
 0x147   :  { %v20718_v45 = vpop.f32.mrb[52].mxu1 }
 0x148   :  { %v20722_v50 = vpop.f32.mrb[53].mxu1  ;;  %17565 = vmatmul.mubr.msk.f32.gmra.mrb[158].mxu1 %vm72_vm1, %v15213_v37  ;;  %v15220_v37 = vld [vmem:[%s23481_s0 + $0x530] sm:$0xff] }
 0x149   :  { %17567 = vmatprep.mubr.msk.f32.mxu1 %vm72_vm1, %v15214_v38  ;;  %v15217_v38 = vld [vmem:[%s23481_s0 + $0x518] sm:$0xff] }
 0x14b   :  { %v20734_v30 = vpop.f32.mrb[54].mxu1 }
 0x14c   :  { %v20738_v22 = vpop.f32.mrb[55].mxu1  ;;  %17568 = vmatmul.mubr.msk.f32.gmra.mrb[160].mxu1 %vm72_vm1, %v15215_v13  ;;  %v15222_v13 = vld [vmem:[%s23481_s0 + $0x540] sm:$0xff] }
 0x14d   :  { %23614 = vst [vmem:[#allocation32_spill] sm:$0xff] %v20738_v22  ;;  %17570 = vmatprep.mubr.msk.f32.mxu1 %vm72_vm1, %v15216_v14  ;;  %v15219_v14 = vld [vmem:[%s23481_s0 + $0x528] sm:$0xff] }
 0x14f   :  { %v20750_v4 = vpop.f32.mrb[56].mxu1 }
 0x150   :  { %23615 = vst [vmem:[#allocation33_spill] sm:$0xff] %v20750_v4  ;;  %v20754_v59 = vpop.f32.mrb[57].mxu1  ;;  %17571 = vmatmul.mubr.msk.f32.gmra.mrb[162].mxu1 %vm72_vm1, %v15217_v38  ;;  %v15221_v38 = vld [vmem:[%s23481_s0 + $0x538] sm:$0xff] }
 0x151   :  { %23616 = vst [vmem:[#allocation34_spill] sm:$0xff] %v20754_v59  ;;  %17573 = vmatprep.mubr.msk.f32.mxu1 %vm72_vm1, %v15218_v51  ;;  %v15224_v51 = vld [vmem:[%s23481_s0 + $0x550] sm:$0xff] }
 0x153   :  { %v20766_v22 = vpop.f32.mrb[58].mxu1 }
 0x154   :  { %23617 = vst [vmem:[#allocation35_spill] sm:$0xff] %v20766_v22  ;;  %v20770_v4 = vpop.f32.mrb[59].mxu1  ;;  %17574 = vmatmul.mubr.msk.f32.gmra.mrb[164].mxu1 %vm72_vm1, %v15219_v14  ;;  %v15223_v14 = vld [vmem:[%s23481_s0 + $0x548] sm:$0xff] }
 0x155   :  { %23618 = vst [vmem:[#allocation36_spill] sm:$0xff] %v20770_v4  ;;  %17576 = vmatprep.mubr.msk.f32.mxu1 %vm72_vm1, %v15220_v37  ;;  %v15226_v37 = vld [vmem:[%s23481_s0 + $0x560] sm:$0xff] }
 0x157   :  { %v20782_v59 = vpop.f32.mrb[60].mxu1 }
 0x158   :  { %23619 = vst [vmem:[#allocation37_spill] sm:$0xff] %v20782_v59  ;;  %v20786_v22 = vpop.f32.mrb[61].mxu1  ;;  %17577 = vmatmul.mubr.msk.f32.gmra.mrb[166].mxu1 %vm72_vm1, %v15221_v38  ;;  %v15225_v38 = vld [vmem:[%s23481_s0 + $0x558] sm:$0xff] }
 0x159   :  { %23620 = vst [vmem:[#allocation38_spill] sm:$0xff] %v20786_v22  ;;  %17579 = vmatprep.mubr.msk.f32.mxu1 %vm72_vm1, %v15222_v13  ;;  %v15228_v13 = vld [vmem:[%s23481_s0 + $0x570] sm:$0xff] }
 0x15b   :  { %v20798_v4 = vpop.f32.mrb[62].mxu1 }
 0x15c   :  { %23621 = vst [vmem:[#allocation39_spill] sm:$0xff] %v20798_v4  ;;  %v20802_v59 = vpop.f32.mrb[63].mxu1  ;;  %17580 = vmatmul.mubr.msk.f32.gmra.mrb[168].mxu1 %vm72_vm1, %v15223_v14  ;;  %v15227_v14 = vld [vmem:[%s23481_s0 + $0x568] sm:$0xff] }
 0x15d   :  { %23622 = vst [vmem:[#allocation40_spill] sm:$0xff] %v20802_v59  ;;  %17582 = vmatprep.mubr.msk.f32.mxu1 %vm72_vm1, %v15224_v51  ;;  %v15230_v51 = vld [vmem:[%s23481_s0 + $0x580] sm:$0xff] }
 0x15f   :  { %v20814_v22 = vpop.f32.mrb[64].mxu1 }
 0x160   :  { %23623 = vst [vmem:[#allocation41_spill] sm:$0xff] %v20814_v22  ;;  %v20818_v4 = vpop.f32.mrb[65].mxu1  ;;  %17583 = vmatmul.mubr.msk.f32.gmra.mrb[170].mxu1 %vm72_vm1, %v15225_v38  ;;  %v15229_v38 = vld [vmem:[%s23481_s0 + $0x578] sm:$0xff] }
 0x161   :  { %23624 = vst [vmem:[#allocation42_spill] sm:$0xff] %v20818_v4  ;;  %17585 = vmatprep.mubr.msk.f32.mxu1 %vm72_vm1, %v15226_v37  ;;  %v15232_v37 = vld [vmem:[%s23481_s0 + $0x590] sm:$0xff] }
 0x163   :  { %v20830_v59 = vpop.f32.mrb[66].mxu1 }
 0x164   :  { %23625 = vst [vmem:[#allocation43_spill] sm:$0xff] %v20830_v59  ;;  %v20834_v22 = vpop.f32.mrb[67].mxu1  ;;  %17586 = vmatmul.mubr.msk.f32.gmra.mrb[172].mxu1 %vm72_vm1, %v15227_v14  ;;  %v15231_v14 = vld [vmem:[%s23481_s0 + $0x588] sm:$0xff] }
 0x165   :  { %23626 = vst [vmem:[#allocation44_spill] sm:$0xff] %v20834_v22  ;;  %17588 = vmatprep.mubr.msk.f32.mxu1 %vm72_vm1, %v15228_v13  ;;  %v15234_v13 = vld [vmem:[%s23481_s0 + $0x5a0] sm:$0xff] }
 0x167   :  { %v20846_v4 = vpop.f32.mrb[68].mxu1 }
 0x168   :  { %23627 = vst [vmem:[#allocation45_spill] sm:$0xff] %v20846_v4  ;;  %v20850_v59 = vpop.f32.mrb[69].mxu1  ;;  %17589 = vmatmul.mubr.msk.f32.gmra.mrb[174].mxu1 %vm72_vm1, %v15229_v38  ;;  %v15233_v38 = vld [vmem:[%s23481_s0 + $0x598] sm:$0xff] }
 0x169   :  { %23628 = vst [vmem:[#allocation46_spill] sm:$0xff] %v20850_v59  ;;  %17591 = vmatprep.mubr.msk.f32.mxu1 %vm72_vm1, %v15230_v51  ;;  %v15236_v51 = vld [vmem:[%s23481_s0 + $0x5b0] sm:$0xff] }
 0x16b   :  { %v20862_v22 = vpop.f32.mrb[70].mxu1 }
 0x16c   :  { %23629 = vst [vmem:[#allocation47_spill] sm:$0xff] %v20862_v22  ;;  %v20866_v4 = vpop.f32.mrb[71].mxu1  ;;  %17592 = vmatmul.mubr.msk.f32.gmra.mrb[176].mxu1 %vm72_vm1, %v15231_v14  ;;  %v15235_v14 = vld [vmem:[%s23481_s0 + $0x5a8] sm:$0xff] }
 0x16d   :  { %23630 = vst [vmem:[#allocation48_spill] sm:$0xff] %v20866_v4  ;;  %17594 = vmatprep.mubr.msk.f32.mxu1 %vm72_vm1, %v15232_v37  ;;  %v15238_v37 = vld [vmem:[%s23481_s0 + $0x5c0] sm:$0xff] }
 0x16f   :  { %v20878_v59 = vpop.f32.mrb[72].mxu1 }
 0x170   :  { %23631 = vst [vmem:[#allocation49_spill] sm:$0xff] %v20878_v59  ;;  %v20882_v22 = vpop.f32.mrb[73].mxu1  ;;  %17595 = vmatmul.mubr.msk.f32.gmra.mrb[178].mxu1 %vm72_vm1, %v15233_v38  ;;  %v15237_v38 = vld [vmem:[%s23481_s0 + $0x5b8] sm:$0xff] }
 0x171   :  { %23632 = vst [vmem:[#allocation50_spill] sm:$0xff] %v20882_v22  ;;  %17597 = vmatprep.mubr.msk.f32.mxu1 %vm72_vm1, %v15234_v13  ;;  %v15240_v13 = vld [vmem:[%s23481_s0 + $0x5d0] sm:$0xff] }
 0x173   :  { %v20894_v4 = vpop.f32.mrb[74].mxu1 }
 0x174   :  { %23633 = vst [vmem:[#allocation51_spill] sm:$0xff] %v20894_v4  ;;  %v20898_v59 = vpop.f32.mrb[75].mxu1  ;;  %17598 = vmatmul.mubr.msk.f32.gmra.mrb[180].mxu1 %vm72_vm1, %v15235_v14  ;;  %v15239_v14 = vld [vmem:[%s23481_s0 + $0x5c8] sm:$0xff] }
 0x175   :  { %23634 = vst [vmem:[#allocation52_spill] sm:$0xff] %v20898_v59  ;;  %17600 = vmatprep.mubr.msk.f32.mxu1 %vm72_vm1, %v15236_v51  ;;  %v15242_v51 = vld [vmem:[%s23481_s0 + $0x5e0] sm:$0xff] }
 0x177   :  { %v20910_v22 = vpop.f32.mrb[76].mxu1 }
 0x178   :  { %23635 = vst [vmem:[#allocation53_spill] sm:$0xff] %v20910_v22  ;;  %v20914_v4 = vpop.f32.mrb[77].mxu1  ;;  %17601 = vmatmul.mubr.msk.f32.gmra.mrb[182].mxu1 %vm72_vm1, %v15237_v38  ;;  %v15241_v38 = vld [vmem:[%s23481_s0 + $0x5d8] sm:$0xff] }
 0x179   :  { %23636 = vst [vmem:[#allocation54_spill] sm:$0xff] %v20914_v4  ;;  %17603 = vmatprep.mubr.msk.f32.mxu1 %vm72_vm1, %v15238_v37  ;;  %v15244_v37 = vld [vmem:[%s23481_s0 + $0x5f0] sm:$0xff] }
 0x17b   :  { %v20926_v59 = vpop.f32.mrb[78].mxu1 }
 0x17c   :  { %23637 = vst [vmem:[#allocation55_spill] sm:$0xff] %v20926_v59  ;;  %v20930_v22 = vpop.f32.mrb[79].mxu1  ;;  %17604 = vmatmul.mubr.msk.f32.gmra.mrb[184].mxu1 %vm72_vm1, %v15239_v14  ;;  %v15243_v14 = vld [vmem:[%s23481_s0 + $0x5e8] sm:$0xff] }
 0x17d   :  { %23638 = vst [vmem:[#allocation56_spill] sm:$0xff] %v20930_v22  ;;  %17606 = vmatprep.mubr.msk.f32.mxu1 %vm72_vm1, %v15240_v13 }
 0x17f   :  { %v20942_v4 = vpop.f32.mrb[80].mxu1 }
 0x180   :  { %23639 = vst [vmem:[#allocation57_spill] sm:$0xff] %v20942_v4  ;;  %v20946_v59 = vpop.f32.mrb[81].mxu1  ;;  %17607 = vmatmul.mubr.msk.f32.gmra.mrb[186].mxu1 %vm72_vm1, %v15241_v38  ;;  %v15245_v38 = vld [vmem:[%s23481_s0 + $0x5f8] sm:$0xff] }
 0x181   :  { %23640 = vst [vmem:[#allocation58_spill] sm:$0xff] %v20946_v59  ;;  %17609 = vmatprep.mubr.msk.f32.mxu1 %vm72_vm1, %v15242_v51  ;;  %v2350_v59 = vld [vmem:[%s23482_s3 + $0x8] sm:$0x3] }
 0x183   :  { %v20958_v22 = vpop.f32.mrb[82].mxu1 }
 0x184   :  { %23641 = vst [vmem:[#allocation59_spill] sm:$0xff] %v20958_v22  ;;  %v20962_v4 = vpop.f32.mrb[83].mxu1  ;;  %17610 = vmatmul.mubr.msk.f32.gmra.mrb[188].mxu1 %vm72_vm1, %v15243_v14 }
 0x185   :  { %23642 = vst [vmem:[#allocation60_spill] sm:$0xff] %v20962_v4  ;;  %17612 = vmatprep.mubr.msk.f32.mxu1 %vm72_vm1, %v15244_v37  ;;  %v2349_v4 = vld [vmem:[%s23482_s3] sm:$0xff] }
 0x186   :  { %v18955_v14 = vpack.c.bf16 %v2350_v59, %v2349_v4 }
 0x187   :  { %v20971_v13 = vpop.f32.mrb[84].mxu1 }
 0x188   :  { %23643 = vst [vmem:[#allocation61_spill] sm:$0xff] %v20971_v13  ;;  %v20975_v46 = vpop.f32.mrb[85].mxu1  ;;  %17613 = vmatmul.mubr.msk.f32.gmra.mrb[190].mxu1 %vm72_vm1, %v15245_v38  ;;  %18957 = vmatprep.subr.msk.bf16.mxu1 %vm20981_vm5, %v18955_v14 }
 0x189   :  { %23644 = vst [vmem:[#allocation62_spill] sm:$0xff] %v20975_v46  ;;  %18960 = vmatpush3.bf16.msk.msra.mxu1 %vm20981_vm5, %v18955_v14  ;;  %v15609_v14 = vld [vmem:[%s23482_s3 + $0x90] sm:$0xff] }
 0x18a   :  { %v21027_v38 = vpack.c.bf16 %v15610_v9, %v15609_v14  ;;  %v15645_v9 = vld [vmem:[%s23482_s3 + $0xa8] sm:$0x3]  ;;  %18963 = vmatprep.subr.msk.bf16.mxu1 %vm20981_vm5, %v21114_v3 }
 0x18b   :  { %v20985_v51 = vpop.f32.mrb[86].mxu1 }
 0x18c   :  { %23647 = vst [vmem:[#allocation63_spill] sm:$0xff] %v20985_v51  ;;  %v20995_v13 = vpop.f32.mrb[87].mxu1  ;;  %23654 = vst [vmem:[#allocation70_spill] sm:$0xff] %v21027_v38  ;;  %19011 = vmatprep.subr.msk.bf16.mxu0 %vm20981_vm5, %v21027_v38 }
 0x18d   :  { %23648 = vst [vmem:[#allocation64_spill] sm:$0xff] %v20995_v13  ;;  %19014 = vmatpush3.bf16.msk.msra.mxu0 %vm20981_vm5, %v21027_v38  ;;  %v15644_v38 = vld [vmem:[%s23482_s3 + $0xa0] sm:$0xff] }
 0x18f   :  { %v21001_v10 = vpop.f32.mrb[88].mxu1 }
 0x190   :  { %23649 = vst [vmem:[#allocation65_spill] sm:$0xff] %v21001_v10  ;;  %v21007_v63 = vpop.f32.mrb[89].mxu1 }
 0x191   :  { %23650 = vst [vmem:[#allocation66_spill] sm:$0xff] %v21007_v63 }
 0x193   :  { %v21011_v59 = vpop.f32.mrb[90].mxu1 }
 0x194   :  { %23651 = vst [vmem:[#allocation67_spill] sm:$0xff] %v21011_v59  ;;  %v21015_v46 = vpop.f32.mrb[91].mxu1 }
 0x195   :  { %23652 = vst [vmem:[#allocation68_spill] sm:$0xff] %v21015_v46 }
 0x197   :  { %v21025_v10 = vpop.f32.mrb[92].mxu1 }
 0x198   :  { %23653 = vst [vmem:[#allocation69_spill] sm:$0xff] %v21025_v10  ;;  %v21031_v59 = vpop.f32.mrb[93].mxu1 }
 0x199   :  { %23655 = vst [vmem:[#allocation71_spill] sm:$0xff] %v21031_v59 }
 0x19b   :  { %v21041_v46 = vpop.f32.mrb[94].mxu1 }
 0x19c   :  { %23656 = vst [vmem:[#allocation72_spill] sm:$0xff] %v21041_v46  ;;  %v21045_v14 = vpop.f32.mrb[95].mxu1  ;;  %v21063_v46 = vpack.c.bf16 %v15645_v9, %v15644_v38 }
 0x19d   :  { %23657 = vst [vmem:[#allocation73_spill] sm:$0xff] %v21045_v14 }
 0x19e   :  { %19017 = vmatprep.subr.msk.bf16.mxu0 %vm20981_vm5, %v21063_v46 }
 0x19f   :  { %v21049_v10 = vpop.f32.mrb[96].mxu1 }
 0x1a0   :  { %v21051_v13 = vpop.f32.mrb[97].mxu1 }
 0x1a3   :  { %v21053_v59 = vpop.f32.mrb[98].mxu1 }
 0x1a4   :  { %v21055_v42 = vpop.f32.mrb[99].mxu1 }
 0x1a7   :  { %v21065_v48 = vpop.f32.mrb[100].mxu1 }
 0x1a8   :  { %v21067_v4 = vpop.f32.mrb[101].mxu1 }
 0x1ab   :  { %v21072_v14 = vpop.f32.mrb[102].mxu1 }
 0x1ac   :  { %v21074_v49 = vpop.f32.mrb[103].mxu1 }
 0x1af   :  { %v21076_v41 = vpop.f32.mrb[104].mxu1 }
 0x1b0   :  { %v21078_v34 = vpop.f32.mrb[105].mxu1 }
 0x1b3   :  { %v21080_v33 = vpop.f32.mrb[106].mxu1 }
 0x1b4   :  { %v21082_v38 = vpop.f32.mrb[107].mxu1 }
 0x1b7   :  { %v21084_v9 = vpop.f32.mrb[108].mxu1 }
 0x1b8   :  { %v21086_v63 = vpop.f32.mrb[109].mxu1 }
 0x1bb   :  { %v21088_v26 = vpop.f32.mrb[110].mxu1 }
 0x1bc   :  { %v21090_v25 = vpop.f32.mrb[111].mxu1 }
 0x1bf   :  { %v21092_v18 = vpop.f32.mrb[112].mxu1 }
 0x1c0   :  { %v21094_v51 = vpop.f32.mrb[113].mxu1 }
 0x1c3   :  { %v21096_v17 = vpop.f32.mrb[114].mxu1 }
 0x1c4   :  { %v21098_v22 = vpop.f32.mrb[115].mxu1 }
 0x1c7   :  { %v21100_v62 = vpop.f32.mrb[116].mxu1 }
 0x1c8   :  { %v21102_v55 = vpop.f32.mrb[117].mxu1 }
 0x1c9   :  { %23658 = vst [vmem:[#allocation74_spill] sm:$0xff] %v21102_v55 }
 0x1cb   :  { %v21104_v54 = vpop.f32.mrb[118].mxu1 }
 0x1cc   :  { %23659 = vst [vmem:[#allocation75_spill] sm:$0xff] %v21104_v54  ;;  %v21112_v47 = vpop.f32.mrb[119].mxu1 }
 0x1cd   :  { %23660 = vst [vmem:[#allocation76_spill] sm:$0xff] %v21112_v47 }
 0x1cf   :  { %v21119_v44 = vpop.f32.mrb[120].mxu1 }
 0x1d0   :  { %23661 = vst [vmem:[#allocation77_spill] sm:$0xff] %v21119_v44  ;;  %v21121_v43 = vpop.f32.mrb[121].mxu1 }
 0x1d1   :  { %23662 = vst [vmem:[#allocation78_spill] sm:$0xff] %v21121_v43 }
 0x1d3   :  { %v21123_v40 = vpop.f32.mrb[122].mxu1 }
 0x1d4   :  { %23663 = vst [vmem:[#allocation79_spill] sm:$0xff] %v21123_v40  ;;  %v21125_v39 = vpop.f32.mrb[123].mxu1 }
 0x1d5   :  { %23664 = vst [vmem:[#allocation80_spill] sm:$0xff] %v21125_v39 }
 0x1d7   :  { %v21127_v36 = vpop.f32.mrb[124].mxu1 }
 0x1d8   :  { %23665 = vst [vmem:[#allocation81_spill] sm:$0xff] %v21127_v36  ;;  %v21129_v35 = vpop.f32.mrb[125].mxu1 }
 0x1d9   :  { %23666 = vst [vmem:[#allocation82_spill] sm:$0xff] %v21129_v35 }
 0x1db   :  { %v21131_v54 = vpop.f32.mrb[126].mxu1 }
 0x1dc   :  { %23667 = vst [vmem:[#allocation83_spill] sm:$0xff] %v21131_v54  ;;  %v21133_v6 = vpop.f32.mrb[127].mxu1 }
 0x1dd   :  { %23668 = vst [vmem:[#allocation84_spill] sm:$0xff] %v21133_v6 }
 0x1df   :  { %v21135_v7 = vpop.f32.mrb[128].mxu1 }
 0x1e0   :  { %23669 = vst [vmem:[#allocation85_spill] sm:$0xff] %v21135_v7  ;;  %v21137_v47 = vpop.f32.mrb[129].mxu1 }
 0x1e1   :  { %23670 = vst [vmem:[#allocation86_spill] sm:$0xff] %v21137_v47 }
 0x1e3   :  { %v21139_v32 = vpop.f32.mrb[130].mxu1 }
 0x1e4   :  { %23671 = vst [vmem:[#allocation87_spill] sm:$0xff] %v21139_v32  ;;  %v21141_v44 = vpop.f32.mrb[131].mxu1 }
 0x1e5   :  { %23672 = vst [vmem:[#allocation88_spill] sm:$0xff] %v21141_v44 }
 0x1e7   :  { %v21143_v43 = vpop.f32.mrb[132].mxu1 }
 0x1e8   :  { %23673 = vst [vmem:[#allocation89_spill] sm:$0xff] %v21143_v43  ;;  %v21145_v40 = vpop.f32.mrb[133].mxu1 }
 0x1e9   :  { %23674 = vst [vmem:[#allocation90_spill] sm:$0xff] %v21145_v40 }
 0x1eb   :  { %v21147_v39 = vpop.f32.mrb[134].mxu1 }
 0x1ec   :  { %23675 = vst [vmem:[#allocation91_spill] sm:$0xff] %v21147_v39  ;;  %v21149_v36 = vpop.f32.mrb[135].mxu1 }
 0x1ed   :  { %23676 = vst [vmem:[#allocation92_spill] sm:$0xff] %v21149_v36 }
 0x1ef   :  { %v21151_v35 = vpop.f32.mrb[136].mxu1 }
 0x1f0   :  { %23677 = vst [vmem:[#allocation93_spill] sm:$0xff] %v21151_v35  ;;  %v21153_v54 = vpop.f32.mrb[137].mxu1 }
 0x1f1   :  { %23678 = vst [vmem:[#allocation94_spill] sm:$0xff] %v21153_v54  ;;  %v21171_v54 = vld [vmem:[%s23483_s2] ss:$0 sm:$0xff] }
 0x1f3   :  { %v21155_v6 = vpop.f32.mrb[138].mxu1 }
 0x1f4   :  { %23679 = vst [vmem:[#allocation95_spill] sm:$0xff] %v21155_v6  ;;  %v21157_v7 = vpop.f32.mrb[139].mxu1 }
 0x1f5   :  { %23680 = vst [vmem:[#allocation96_spill] sm:$0xff] %v21157_v7 }
 0x1f7   :  { %v21159_v47 = vpop.f32.mrb[140].mxu1 }
 0x1f8   :  { %23681 = vst [vmem:[#allocation97_spill] sm:$0xff] %v21159_v47  ;;  %v21161_v32 = vpop.f32.mrb[141].mxu1  ;;  %v23685_v47 = vmax.f32 %v20398_v52, %v20686_v58  ;;  %v23687_v52 = vmax.f32 %v20410_v56, %v20702_v21  ;;  %v23690_v21 = vmax.f32 %v20424_v61, %v20722_v50  ;;  %v15365_v61 = vld [vmem:[%s23482_s3 + $0x28] sm:$0x3] }
 0x1f9   :  { %23682 = vst [vmem:[#allocation98_spill] sm:$0xff] %v21161_v32 }
 0x1fb   :  { %v21163_v44 = vpop.f32.mrb[142].mxu1 }
 0x1fc   :  { %23683 = vst [vmem:[#allocation99_spill] sm:$0xff] %v21163_v44  ;;  %v21165_v43 = vpop.f32.mrb[143].mxu1  ;;  %v23686_v44 = vmax.f32 %v20400_v53, %v20690_v2  ;;  %v23688_v53 = vmax.f32 %v20412_v57, %v20706_v29 }
 0x1fd   :  { %23684 = vst [vmem:[#allocation100_spill] sm:$0xff] %v21165_v43 }
 0x1ff   :  { %v17545_v40 = vpop.f32.mrb[144].mxu1 }
 0x200   :  { %v2069_v39 = vmax.f32 %v21049_v10, %v17545_v40  ;;  %v1829_v36 = vpop.f32.mrb[145].mxu1 }
 0x201   :  { %v2068_v6 = vmax.f32 %v21051_v13, %v1829_v36 }
 0x202   :  { %v2117_v7 = vmax.f32 %v23685_v47, %v2069_v39 }
 0x203   :  { %v2116_v32 = vmax.f32 %v23686_v44, %v2068_v6  ;;  %v17548_v43 = vpop.f32.mrb[146].mxu1 }
 0x204   :  { %v2172_v35 = vadd.f32 %v21171_v54, %v2117_v7  ;;  %v2071_v40 = vmax.f32 %v21053_v59, %v17548_v43  ;;  %v1839_v10 = vpop.f32.mrb[147].mxu1  ;;  %v23691_v7 = vmax.f32 %v20434_v0, %v20734_v30 }
 0x205   :  { %v2171_v31 = vadd.f32 %v21171_v54, %v2116_v32  ;;  %v2070_v55 = vmax.f32 %v21055_v42, %v1839_v10  ;;  %v23692_v10 = vld [vmem:[#allocation32_spill] sm:$0xff] }
 0x206   :  { %v2220_v36 = vmax.f32 %v2172_v35, 0.0  ;;  %v2119_v39 = vmax.f32 %v23687_v52, %v2071_v40 }
 0x207   :  { %v2219_v47 = vmax.f32 %v2171_v31, 0.0  ;;  %v2118_v44 = vmax.f32 %v23688_v53, %v2070_v55  ;;  %v17551_v58 = vpop.f32.mrb[148].mxu1  ;;  %v23689_v31 = vmax.f32 %v20422_v60, %v20718_v45  ;;  %v15364_v45 = vld [vmem:[%s23482_s3 + $0x20] sm:$0xff] }
 0x208   :  { %2269 = vst.msk [vmem:[#allocation2 + $0x8] sm:$0xff] %vm2267_vm6, %v2220_v36  ;;  %v2174_v43 = vadd.f32 %v21171_v54, %v2119_v39  ;;  %v2073_v2 = vmax.f32 %v21065_v48, %v17551_v58  ;;  %v1849_v32 = vpop.f32.mrb[149].mxu1  ;;  %v23693_v36 = vmax.f32 %v20436_v1, %v23692_v10  ;;  %v21223_v58 = vpack.c.bf16 %v15365_v61, %v15364_v45 }
 0x209   :  { %2268 = vst.msk [vmem:[#allocation2] sm:$0xff] %vm2267_vm6, %v2219_v47  ;;  %v2173_v35 = vadd.f32 %v21171_v54, %v2118_v44  ;;  %v2072_v56 = vmax.f32 %v21067_v4, %v1849_v32 }
 0x20a   :  { %v2222_v42 = vmax.f32 %v2174_v43, 0.0  ;;  %v2121_v57 = vmax.f32 %v23689_v31, %v2073_v2  ;;  %v23694_v2 = vld [vmem:[#allocation33_spill] sm:$0xff] }
 0x20b   :  { %v2221_v55 = vmax.f32 %v2173_v35, 0.0  ;;  %v2120_v29 = vmax.f32 %v23690_v21, %v2072_v56  ;;  %v17554_v13 = vpop.f32.mrb[150].mxu1  ;;  %v23695_v32 = vmax.f32 %v20446_v5, %v23694_v2  ;;  %v23696_v56 = vld [vmem:[#allocation34_spill] sm:$0xff] }
 0x20c   :  { %2271 = vst.msk [vmem:[#allocation2 + $0x18] sm:$0xff] %vm2267_vm6, %v2222_v42  ;;  %v2176_v48 = vadd.f32 %v21171_v54, %v2121_v57  ;;  %v2075_v59 = vmax.f32 %v21072_v14, %v17554_v13  ;;  %v1859_v6 = vpop.f32.mrb[151].mxu1  ;;  %v23697_v42 = vmax.f32 %v20448_v8, %v23696_v56 }
 0x20d   :  { %2270 = vst.msk [vmem:[#allocation2 + $0x10] sm:$0xff] %vm2267_vm6, %v2221_v55  ;;  %v2175_v4 = vadd.f32 %v21171_v54, %v2120_v29  ;;  %v2074_v60 = vmax.f32 %v21074_v49, %v1859_v6 }
 0x20e   :  { %v2224_v50 = vmax.f32 %v2176_v48, 0.0  ;;  %v2123_v14 = vmax.f32 %v23691_v7, %v2075_v59  ;;  %v23698_v48 = vld [vmem:[#allocation35_spill] sm:$0xff] }
 0x20f   :  { %v2223_v40 = vmax.f32 %v2175_v4, 0.0  ;;  %v2122_v52 = vmax.f32 %v23693_v36, %v2074_v60  ;;  %v17557_v39 = vpop.f32.mrb[152].mxu1  ;;  %v2318_v1 = vld [vmem:[#allocation2 + $0x8] sm:$0xff]  ;;  %v23699_v59 = vmax.f32 %v20458_v11, %v23698_v48  ;;  %v15679_v36 = vld [vmem:[%s23482_s3 + $0xb0] sm:$0xff] }
 0x210   :  { %2273 = vst.msk [vmem:[#allocation2 + $0x28] sm:$0xff] %vm2267_vm6, %v2224_v50  ;;  %v2178_v49 = vadd.f32 %v21171_v54, %v2123_v14  ;;  %v2077_v47 = vmax.f32 %v21076_v41, %v17557_v39  ;;  %v1869_v53 = vpop.f32.mrb[153].mxu1  ;;  %v2317_v44 = vld [vmem:[#allocation2] sm:$0xff]  ;;  %v23700_v4 = vld [vmem:[#allocation36_spill] sm:$0xff]  ;;  %v23702_v39 = vld [vmem:[#allocation37_spill] sm:$0xff] }
 0x211   :  { %2272 = vst.msk [vmem:[#allocation2 + $0x20] sm:$0xff] %vm2267_vm6, %v2223_v40  ;;  %v2177_v0 = vadd.f32 %v21171_v54, %v2122_v52  ;;  %v2076_v30 = vmax.f32 %v21078_v34, %v1869_v53  ;;  %17619 = vmatprep.mubr.msk.f32.mxu1 %vm2267_vm6, %v2317_v44  ;;  %v23701_v60 = vmax.f32 %v20460_v12, %v23700_v4  ;;  %v23704_v53 = vld [vmem:[#allocation38_spill] sm:$0xff] }
 0x212   :  { %v2226_v43 = vmax.f32 %v2178_v49, 0.0  ;;  %v2125_v35 = vmax.f32 %v23695_v32, %v2077_v47  ;;  %17620 = vmatmul.mubr.msk.f32.vlgmr.msra.gmra.mrb[192].mxu1 %vm2267_vm6, %v2318_v1  ;;  %v23703_v49 = vmax.f32 %v20470_v15, %v23702_v39  ;;  %v23705_v44 = vmax.f32 %v20472_v16, %v23704_v53 }
 0x213   :  { %v2225_v41 = vmax.f32 %v2177_v0, 0.0  ;;  %v2124_v31 = vmax.f32 %v23697_v42, %v2076_v30  ;;  %v17560_v57 = vpop.f32.mrb[154].mxu1  ;;  %18966 = vmatpush3.bf16.msk.msra.mxu1 %vm20981_vm5, %v21114_v3  ;;  %v2320_v3 = vld [vmem:[#allocation2 + $0x18] sm:$0xff] }
 0x214   :  { %2275 = vst.msk [vmem:[#allocation2 + $0x38] sm:$0xff] %vm2267_vm6, %v2226_v43  ;;  %v2180_v34 = vadd.f32 %v21171_v54, %v2125_v35  ;;  %v2079_v55 = vmax.f32 %v21080_v33, %v17560_v57  ;;  %v1879_v5 = vpop.f32.mrb[155].mxu1  ;;  %v2319_v21 = vld [vmem:[#allocation2 + $0x10] sm:$0xff]  ;;  %18969 = vmatprep.subr.msk.bf16.mxu1 %vm20981_vm5, %v21223_v58 }
 0x215   :  { %2274 = vst.msk [vmem:[#allocation2 + $0x30] sm:$0xff] %vm2267_vm6, %v2225_v41  ;;  %v2179_v8 = vadd.f32 %v21171_v54, %v2124_v31  ;;  %v2078_v29 = vmax.f32 %v21082_v38, %v1879_v5  ;;  %17622 = vmatprep.mubr.msk.f32.mxu1 %vm2267_vm6, %v2319_v21  ;;  %v23708_v5 = vld [vmem:[#allocation40_spill] sm:$0xff] }
 0x216   :  { %v2228_v13 = vmax.f32 %v2180_v34, 0.0  ;;  %v2127_v33 = vmax.f32 %v23699_v59, %v2079_v55  ;;  %17623 = vmatmul.mubr.msk.f32.gmra.mrb[194].mxu1 %vm2267_vm6, %v2320_v3  ;;  %v23709_v21 = vmax.f32 %v20484_v20, %v23708_v5 }
 0x217   :  { %v2227_v6 = vmax.f32 %v2179_v8, 0.0  ;;  %v2126_v45 = vmax.f32 %v23701_v60, %v2078_v29  ;;  %v17563_v61 = vpop.f32.mrb[156].mxu1  ;;  %v2322_v12 = vld [vmem:[#allocation2 + $0x28] sm:$0xff] }
 0x218   :  { %2277 = vst.msk [vmem:[#allocation2 + $0x48] sm:$0xff] %vm2267_vm6, %v2228_v13  ;;  %v2182_v38 = vadd.f32 %v21171_v54, %v2127_v33  ;;  %v2081_v50 = vmax.f32 %v21084_v9, %v17563_v61  ;;  %v1889_v7 = vpop.f32.mrb[157].mxu1  ;;  %v2321_v14 = vld [vmem:[#allocation2 + $0x20] sm:$0xff]  ;;  %v15680_v9 = vld [vmem:[%s23482_s3 + $0xb8] sm:$0x3] }
 0x219   :  { %v6380_v40 = vld [vmem:[#allocation2 + $0x24] sm:$0xff]  ;;  %2276 = vst.msk [vmem:[#allocation2 + $0x40] sm:$0xff] %vm2267_vm6, %v2227_v6  ;;  %v2181_v11 = vadd.f32 %v21171_v54, %v2126_v45  ;;  %v2080_v10 = vmax.f32 %v21086_v63, %v1889_v7  ;;  %17625 = vmatprep.mubr.msk.f32.mxu1 %vm2267_vm6, %v2321_v14  ;;  %v21280_v15 = vpack.c.bf16 %v15680_v9, %v15679_v36  ;;  %v23710_v6 = vld [vmem:[#allocation41_spill] sm:$0xff] }
 0x21a   :  { %18087 = vmatprep.mubr.msk.f32.mxu0 %vm2267_vm6, %v6380_v40  ;;  %v2230_v52 = vmax.f32 %v2182_v38, 0.0  ;;  %v2129_v47 = vmax.f32 %v23703_v49, %v2081_v50  ;;  %17626 = vmatmul.mubr.msk.f32.gmra.mrb[196].mxu1 %vm2267_vm6, %v2322_v12  ;;  %v23711_v4 = vmax.f32 %v20494_v23, %v23710_v6 }
 0x21b   :  { %v2229_v63 = vmax.f32 %v2181_v11, 0.0  ;;  %v2128_v0 = vmax.f32 %v23705_v44, %v2080_v10  ;;  %v17566_v30 = vpop.f32.mrb[158].mxu1  ;;  %v2324_v42 = vld [vmem:[#allocation2 + $0x38] sm:$0xff] }
 0x21c   :  { %2279 = vst.msk [vmem:[#allocation2 + $0x58] sm:$0xff] %vm2267_vm6, %v2230_v52  ;;  %v2184_v1 = vadd.f32 %v21171_v54, %v2129_v47  ;;  %v2083_v43 = vmax.f32 %v21088_v26, %v17566_v30  ;;  %v1899_v2 = vpop.f32.mrb[159].mxu1  ;;  %v2323_v32 = vld [vmem:[#allocation2 + $0x30] sm:$0xff]  ;;  %v23706_v26 = vld [vmem:[#allocation39_spill] sm:$0xff] }
 0x21d   :  { %v6381_v35 = vld [vmem:[#allocation2 + $0x2c] sm:$0xff]  ;;  %v6382_v41 = vld [vmem:[#allocation2 + $0x34] sm:$0xff]  ;;  %2278 = vst.msk [vmem:[#allocation2 + $0x50] sm:$0xff] %vm2267_vm6, %v2229_v63  ;;  %v2183_v56 = vadd.f32 %v21171_v54, %v2128_v0  ;;  %v2082_v16 = vmax.f32 %v21090_v25, %v1899_v2  ;;  %17628 = vmatprep.mubr.msk.f32.mxu1 %vm2267_vm6, %v2323_v32  ;;  %v23707_v57 = vmax.f32 %v20482_v19, %v23706_v26 }
 0x21e   :  { %18088 = vmatmul.mubr.msk.f32.vlgmr.msra.gmra.mrb[0].mxu0 %vm2267_vm6, %v6381_v35  ;;  %v2232_v31 = vmax.f32 %v2184_v1, 0.0  ;;  %17629 = vmatmul.mubr.msk.f32.gmra.mrb[198].mxu1 %vm2267_vm6, %v2324_v42  ;;  %v23718_v32 = vld [vmem:[#allocation74_spill] sm:$0xff]  ;;  %v23722_v26 = vld [vmem:[#allocation5_spill] sm:$0xff] }
 0x21f   :  { %v2131_v34 = vmax.f32 %v23707_v57, %v2083_v43  ;;  %18090 = vmatprep.mubr.msk.f32.mxu0 %vm2267_vm6, %v6382_v41  ;;  %v2231_v55 = vmax.f32 %v2183_v56, 0.0  ;;  %v2130_v8 = vmax.f32 %v23709_v21, %v2082_v16  ;;  %19020 = vmatpush3.bf16.msk.msra.mxu0 %vm20981_vm5, %v21063_v46  ;;  %v17569_v25 = vpop.f32.mrb[160].mxu1  ;;  %v23720_v56 = vld [vmem:[#allocation45_spill] sm:$0xff]  ;;  %v23723_v57 = vld [vmem:[#allocation46_spill] sm:$0xff] }
 0x220   :  { %2281 = vst.msk [vmem:[#allocation2 + $0x68] sm:$0xff] %vm2267_vm6, %v2232_v31  ;;  %v2085_v19 = vmax.f32 %v21092_v18, %v17569_v25  ;;  %v1909_v3 = vpop.f32.mrb[161].mxu1  ;;  %v21301_v13 = vld [vmem:[#allocation2 + $0x40] sm:$0xff]  ;;  %19023 = vmatprep.subr.msk.bf16.mxu0 %vm20981_vm5, %v21280_v15  ;;  %v21312_v18 = vld [vmem:[#allocation2 + $0x48] sm:$0xff] }
 0x221   :  { %v2186_v29 = vadd.f32 %v21171_v54, %v2131_v34  ;;  %v6383_v48 = vld [vmem:[#allocation2 + $0x3c] sm:$0xff]  ;;  %v6384_v59 = vld [vmem:[#allocation2 + $0x44] sm:$0xff]  ;;  %2280 = vst.msk [vmem:[#allocation2 + $0x60] sm:$0xff] %vm2267_vm6, %v2231_v55  ;;  %v2185_v20 = vadd.f32 %v21171_v54, %v2130_v8  ;;  %v2084_v46 = vmax.f32 %v21094_v51, %v1909_v3  ;;  %17631 = vmatprep.mubr.msk.f32.mxu1 %vm2267_vm6, %v21301_v13 }
 0x222   :  { %18091 = vmatmul.mubr.msk.f32.gmra.mrb[2].mxu0 %vm2267_vm6, %v6383_v48  ;;  %v2133_v60 = vmax.f32 %v23711_v4, %v2085_v19  ;;  %17632 = vmatmul.mubr.msk.f32.gmra.mrb[200].mxu1 %vm2267_vm6, %v21312_v18  ;;  %v23712_v51 = vld [vmem:[#allocation42_spill] sm:$0xff]  ;;  %v23724_v34 = vmax.f32 %v23722_v26, %v23723_v57  ;;  %v23725_v8 = vld [vmem:[#allocation75_spill] sm:$0xff] }
 0x223   :  { %v2234_v33 = vmax.f32 %v2186_v29, 0.0  ;;  %18093 = vmatprep.mubr.msk.f32.mxu0 %vm2267_vm6, %v6384_v59  ;;  %v2233_v45 = vmax.f32 %v2185_v20, 0.0  ;;  %v23713_v61 = vmax.f32 %v20496_v24, %v23712_v51  ;;  %v17572_v50 = vpop.f32.mrb[162].mxu1  ;;  %v21334_v24 = vld [vmem:[#allocation2 + $0x58] sm:$0xff]  ;;  %v23726_v20 = vld [vmem:[#allocation76_spill] sm:$0xff] }
 0x224   :  { %v2188_v7 = vadd.f32 %v21171_v54, %v2133_v60  ;;  %v2087_v14 = vmax.f32 %v21096_v17, %v17572_v50  ;;  %v1919_v40 = vpop.f32.mrb[163].mxu1  ;;  %v21326_v23 = vld [vmem:[#allocation2 + $0x50] sm:$0xff]  ;;  %v23714_v17 = vld [vmem:[#allocation43_spill] sm:$0xff]  ;;  %v23727_v4 = vld [vmem:[#allocation6_spill] sm:$0xff] }
 0x225   :  { %v2132_v38 = vmax.f32 %v23713_v61, %v2084_v46  ;;  %2283 = vst.msk [vmem:[#allocation2 + $0x78] sm:$0xff] %vm2267_vm6, %v2234_v33  ;;  %v6385_v11 = vld [vmem:[#allocation2 + $0x4c] sm:$0xff]  ;;  %v6386_v10 = vld [vmem:[#allocation2 + $0x54] sm:$0xff]  ;;  %2282 = vst.msk [vmem:[#allocation2 + $0x70] sm:$0xff] %vm2267_vm6, %v2233_v45  ;;  %v2086_v36 = vmax.f32 %v21098_v22, %v1919_v40  ;;  %17634 = vmatprep.mubr.msk.f32.mxu1 %vm2267_vm6, %v21326_v23  ;;  %v23715_v52 = vmax.f32 %v20506_v27, %v23714_v17 }
 0x226   :  { %18094 = vmatmul.mubr.msk.f32.gmra.mrb[4].mxu0 %vm2267_vm6, %v6385_v11  ;;  %v2236_v9 = vmax.f32 %v2188_v7, 0.0  ;;  %17635 = vmatmul.mubr.msk.f32.gmra.mrb[202].mxu1 %vm2267_vm6, %v21334_v24  ;;  %v23716_v22 = vld [vmem:[#allocation44_spill] sm:$0xff]  ;;  %v23728_v60 = vld [vmem:[#allocation47_spill] sm:$0xff] }
 0x227   :  { %v2187_v12 = vadd.f32 %v21171_v54, %v2132_v38  ;;  %v2135_v39 = vmax.f32 %v23715_v52, %v2087_v14  ;;  %18096 = vmatprep.mubr.msk.f32.mxu0 %vm2267_vm6, %v6386_v10  ;;  %v23717_v47 = vmax.f32 %v20508_v28, %v23716_v22  ;;  %v17575_v53 = vpop.f32.mrb[164].mxu1  ;;  %v21356_v28 = vld [vmem:[#allocation2 + $0x68] sm:$0xff]  ;;  %v23729_v45 = vmax.f32 %v23727_v4, %v23728_v60  ;;  %v23730_v38 = vld [vmem:[#allocation7_spill] sm:$0xff]  ;;  %v23733_v10 = vld [vmem:[#allocation77_spill] sm:$0xff] }
 0x228   :  { %2285 = vst.msk [vmem:[#allocation2 + $0x88] sm:$0xff] %vm2267_vm6, %v2236_v9  ;;  %v2089_v0 = vmax.f32 %v21100_v62, %v17575_v53  ;;  %v1929_v30 = vpop.f32.mrb[165].mxu1  ;;  %v21348_v27 = vld [vmem:[#allocation2 + $0x60] sm:$0xff]  ;;  %v23719_v62 = vld [vmem:[#allocation4_spill] sm:$0xff] }
 0x229   :  { %v2235_v49 = vmax.f32 %v2187_v12, 0.0  ;;  %v2134_v63 = vmax.f32 %v23717_v47, %v2086_v36  ;;  %v2190_v44 = vadd.f32 %v21171_v54, %v2135_v39  ;;  %v6387_v1 = vld [vmem:[#allocation2 + $0x5c] sm:$0xff]  ;;  %v6388_v43 = vld [vmem:[#allocation2 + $0x64] sm:$0xff]  ;;  %v2088_v35 = vmax.f32 %v23718_v32, %v1929_v30  ;;  %17637 = vmatprep.mubr.msk.f32.mxu1 %vm2267_vm6, %v21348_v27 }
 0x22a   :  { %18097 = vmatmul.mubr.msk.f32.gmra.mrb[6].mxu0 %vm2267_vm6, %v6387_v1  ;;  %v23721_v16 = vmax.f32 %v23719_v62, %v23720_v56  ;;  %17638 = vmatmul.mubr.msk.f32.gmra.mrb[204].mxu1 %vm2267_vm6, %v21356_v28  ;;  %v23731_v50 = vld [vmem:[#allocation48_spill] sm:$0xff]  ;;  %v23741_v56 = vld [vmem:[#allocation79_spill] sm:$0xff] }
 0x22b   :  { %2284 = vst.msk [vmem:[#allocation2 + $0x80] sm:$0xff] %vm2267_vm6, %v2235_v49  ;;  %v2189_v2 = vadd.f32 %v21171_v54, %v2134_v63  ;;  %v2238_v41 = vmax.f32 %v2190_v44, 0.0  ;;  %18099 = vmatprep.mubr.msk.f32.mxu0 %vm2267_vm6, %v6388_v43  ;;  %v2136_v55 = vmax.f32 %v23724_v34, %v2088_v35  ;;  %v17578_v5 = vpop.f32.mrb[166].mxu1  ;;  %v23732_v7 = vmax.f32 %v23730_v38, %v23731_v50  ;;  %v23734_v49 = vld [vmem:[#allocation78_spill] sm:$0xff]  ;;  %v23735_v53 = vld [vmem:[#allocation8_spill] sm:$0xff]  ;;  %v23736_v44 = vld [vmem:[#allocation49_spill] sm:$0xff] }
 0x22c   :  { %v2137_v42 = vmax.f32 %v23721_v16, %v2089_v0  ;;  %v2091_v25 = vmax.f32 %v23725_v8, %v17578_v5  ;;  %v1939_v29 = vpop.f32.mrb[167].mxu1  ;;  %v21370_v19 = vld [vmem:[#allocation2 + $0x70] sm:$0xff]  ;;  %v21378_v33 = vld [vmem:[#allocation2 + $0x78] sm:$0xff]  ;;  %v23737_v0 = vmax.f32 %v23735_v53, %v23736_v44 }
 0x22d   :  { %v2237_v31 = vmax.f32 %v2189_v2, 0.0  ;;  %2287 = vst.msk [vmem:[#allocation2 + $0x98] sm:$0xff] %vm2267_vm6, %v2238_v41  ;;  %v6389_v3 = vld [vmem:[#allocation2 + $0x6c] sm:$0xff]  ;;  %v6390_v48 = vld [vmem:[#allocation2 + $0x74] sm:$0xff]  ;;  %v2191_v59 = vadd.f32 %v21171_v54, %v2136_v55  ;;  %v2090_v46 = vmax.f32 %v23726_v20, %v1939_v29  ;;  %17640 = vmatprep.mubr.msk.f32.mxu1 %vm2267_vm6, %v21370_v19  ;;  %v23744_v29 = vld [vmem:[#allocation51_spill] sm:$0xff] }
 0x22e   :  { %v2192_v21 = vadd.f32 %v21171_v54, %v2137_v42  ;;  %18100 = vmatmul.mubr.msk.f32.gmra.mrb[8].mxu0 %vm2267_vm6, %v6389_v3  ;;  %v2139_v51 = vmax.f32 %v23729_v45, %v2091_v25  ;;  %17641 = vmatmul.mubr.msk.f32.gmra.mrb[206].mxu1 %vm2267_vm6, %v21378_v33  ;;  %v23738_v43 = vld [vmem:[#allocation9_spill] sm:$0xff]  ;;  %v23739_v2 = vld [vmem:[#allocation50_spill] sm:$0xff]  ;;  %v23742_v55 = vld [vmem:[#allocation80_spill] sm:$0xff] }
 0x22f   :  { %2286 = vst.msk [vmem:[#allocation2 + $0x90] sm:$0xff] %vm2267_vm6, %v2237_v31  ;;  %18102 = vmatprep.mubr.msk.f32.mxu0 %vm2267_vm6, %v6390_v48  ;;  %v2239_v61 = vmax.f32 %v2191_v59, 0.0  ;;  %v2138_v14 = vmax.f32 %v23732_v7, %v2090_v46  ;;  %v17581_v40 = vpop.f32.mrb[168].mxu1  ;;  %v21400_v47 = vld [vmem:[#allocation2 + $0x88] sm:$0xff]  ;;  %v23740_v32 = vmax.f32 %v23738_v43, %v23739_v2  ;;  %v23743_v25 = vld [vmem:[#allocation10_spill] sm:$0xff]  ;;  %v23746_v20 = vld [vmem:[#allocation11_spill] sm:$0xff] }
 0x230   :  { %v2240_v6 = vmax.f32 %v2192_v21, 0.0  ;;  %v2194_v11 = vadd.f32 %v21171_v54, %v2139_v51  ;;  %v2093_v12 = vmax.f32 %v23733_v10, %v17581_v40  ;;  %v1949_v36 = vpop.f32.mrb[169].mxu1  ;;  %v23745_v3 = vmax.f32 %v23743_v25, %v23744_v29  ;;  %v23747_v46 = vld [vmem:[#allocation52_spill] sm:$0xff]  ;;  %v23749_v51 = vld [vmem:[#allocation81_spill] sm:$0xff]  ;;  %v23755_v53 = vld [vmem:[#allocation54_spill] sm:$0xff] }
 0x231   :  { %2288 = vst.msk [vmem:[#allocation2 + $0xa0] sm:$0xff] %vm2267_vm6, %v2239_v61  ;;  %v2193_v39 = vadd.f32 %v21171_v54, %v2138_v14  ;;  %v2092_v22 = vmax.f32 %v23734_v49, %v1949_v36  ;;  %v23757_v43 = vld [vmem:[#allocation83_spill] sm:$0xff] }
 0x232   :  { %2289 = vst.msk [vmem:[#allocation2 + $0xa8] sm:$0xff] %vm2267_vm6, %v2240_v6  ;;  %v21392_v9 = vld [vmem:[#allocation2 + $0x80] sm:$0xff]  ;;  %v2242_v63 = vmax.f32 %v2194_v11, 0.0  ;;  %v2141_v30 = vmax.f32 %v23737_v0, %v2093_v12  ;;  %v23748_v6 = vmax.f32 %v23746_v20, %v23747_v46  ;;  %v23750_v11 = vld [vmem:[#allocation82_spill] sm:$0xff] }
 0x233   :  { %v6391_v17 = vld [vmem:[#allocation2 + $0x7c] sm:$0xff]  ;;  %v6392_v52 = vld [vmem:[#allocation2 + $0x84] sm:$0xff]  ;;  %17643 = vmatprep.mubr.msk.f32.mxu1 %vm2267_vm6, %v21392_v9  ;;  %v2241_v1 = vmax.f32 %v2193_v39, 0.0  ;;  %v2140_v35 = vmax.f32 %v23740_v32, %v2092_v22  ;;  %v17584_v41 = vpop.f32.mrb[170].mxu1 }
 0x234   :  { %18103 = vmatmul.mubr.msk.f32.gmra.mrb[10].mxu0 %vm2267_vm6, %v6391_v17  ;;  %17644 = vmatmul.mubr.msk.f32.gmra.mrb[208].mxu1 %vm2267_vm6, %v21400_v47  ;;  %2291 = vst.msk [vmem:[#allocation2 + $0xb8] sm:$0xff] %vm2267_vm6, %v2242_v63  ;;  %v2196_v62 = vadd.f32 %v21171_v54, %v2141_v30  ;;  %v2095_v16 = vmax.f32 %v23741_v56, %v17584_v41  ;;  %v1959_v42 = vpop.f32.mrb[171].mxu1  ;;  %v21422_v21 = vld [vmem:[#allocation2 + $0x98] sm:$0xff]  ;;  %v23751_v17 = vld [vmem:[#allocation12_spill] sm:$0xff]  ;;  %v23754_v63 = vld [vmem:[#allocation13_spill] sm:$0xff] }
 0x235   :  { %18105 = vmatprep.mubr.msk.f32.mxu0 %vm2267_vm6, %v6392_v52  ;;  %2290 = vst.msk [vmem:[#allocation2 + $0xb0] sm:$0xff] %vm2267_vm6, %v2241_v1  ;;  %v2195_v34 = vadd.f32 %v21171_v54, %v2140_v35  ;;  %v2094_v5 = vmax.f32 %v23742_v55, %v1959_v42  ;;  %v23752_v52 = vld [vmem:[#allocation53_spill] sm:$0xff]  ;;  %v23756_v44 = vmax.f32 %v23754_v63, %v23755_v53  ;;  %v23758_v56 = vld [vmem:[#allocation84_spill] sm:$0xff]  ;;  %v23759_v55 = vld [vmem:[#allocation14_spill] sm:$0xff] }
 0x236   :  { %v21414_v31 = vld [vmem:[#allocation2 + $0x90] sm:$0xff]  ;;  %v2244_v8 = vmax.f32 %v2196_v62, 0.0  ;;  %v2143_v48 = vmax.f32 %v23745_v3, %v2095_v16  ;;  %v23753_v39 = vmax.f32 %v23751_v17, %v23752_v52  ;;  %v23762_v3 = vld [vmem:[#allocation15_spill] sm:$0xff] }
 0x237   :  { %v6393_v26 = vld [vmem:[#allocation2 + $0x8c] sm:$0xff]  ;;  %v6394_v57 = vld [vmem:[#allocation2 + $0x94] sm:$0xff]  ;;  %17646 = vmatprep.mubr.msk.f32.mxu1 %vm2267_vm6, %v21414_v31  ;;  %v2243_v59 = vmax.f32 %v2195_v34, 0.0  ;;  %v2142_v4 = vmax.f32 %v23748_v6, %v2094_v5  ;;  %v17587_v60 = vpop.f32.mrb[172].mxu1  ;;  %v23760_v5 = vld [vmem:[#allocation55_spill] sm:$0xff] }
 0x238   :  { %18106 = vmatmul.mubr.msk.f32.gmra.mrb[12].mxu0 %vm2267_vm6, %v6393_v26  ;;  %17647 = vmatmul.mubr.msk.f32.gmra.mrb[210].mxu1 %vm2267_vm6, %v21422_v21  ;;  %2293 = vst.msk [vmem:[#allocation2 + $0xc8] sm:$0xff] %vm2267_vm6, %v2244_v8  ;;  %v2198_v45 = vadd.f32 %v21171_v54, %v2143_v48  ;;  %v2097_v61 = vmax.f32 %v23749_v51, %v17587_v60  ;;  %v1969_v38 = vpop.f32.mrb[173].mxu1  ;;  %v21436_v50 = vld [vmem:[#allocation2 + $0xa0] sm:$0xff]  ;;  %v23763_v48 = vld [vmem:[#allocation56_spill] sm:$0xff] }
 0x239   :  { %18108 = vmatprep.mubr.msk.f32.mxu0 %vm2267_vm6, %v6394_v57  ;;  %v6395_v7 = vld [vmem:[#allocation2 + $0x9c] sm:$0xff]  ;;  %v6396_v14 = vld [vmem:[#allocation2 + $0xa4] sm:$0xff]  ;;  %2292 = vst.msk [vmem:[#allocation2 + $0xc0] sm:$0xff] %vm2267_vm6, %v2243_v59  ;;  %v2197_v40 = vadd.f32 %v21171_v54, %v2142_v4  ;;  %v2096_v10 = vmax.f32 %v23750_v11, %v1969_v38  ;;  %17649 = vmatprep.mubr.msk.f32.mxu1 %vm2267_vm6, %v21436_v50  ;;  %v23765_v4 = vld [vmem:[#allocation85_spill] sm:$0xff] }
 0x23a   :  { %v21444_v12 = vld [vmem:[#allocation2 + $0xa8] sm:$0xff]  ;;  %v2246_v36 = vmax.f32 %v2198_v45, 0.0  ;;  %v2145_v49 = vmax.f32 %v23753_v39, %v2097_v61  ;;  %v15714_v26 = vld [vmem:[%s23482_s3 + $0xc0] sm:$0xff]  ;;  %v23761_v8 = vmax.f32 %v23759_v55, %v23760_v5  ;;  %v23764_v59 = vmax.f32 %v23762_v3, %v23763_v48  ;;  %v23766_v38 = vld [vmem:[#allocation86_spill] sm:$0xff] }
 0x23b   :  { %v2245_v22 = vmax.f32 %v2197_v40, 0.0  ;;  %v2144_v0 = vmax.f32 %v23756_v44, %v2096_v10  ;;  %v17590_v30 = vpop.f32.mrb[174].mxu1  ;;  %v21466_v42 = vld [vmem:[#allocation2 + $0xb8] sm:$0xff]  ;;  %v15715_v57 = vld [vmem:[%s23482_s3 + $0xc8] sm:$0x3]  ;;  %v23768_v10 = vld [vmem:[#allocation57_spill] sm:$0xff] }
 0x23c   :  { %18109 = vmatmul.mubr.msk.f32.gmra.mrb[14].mxu0 %vm2267_vm6, %v6395_v7  ;;  %17650 = vmatmul.mubr.msk.f32.gmra.mrb[212].mxu1 %vm2267_vm6, %v21444_v12  ;;  %2295 = vst.msk [vmem:[#allocation2 + $0xd8] sm:$0xff] %vm2267_vm6, %v2246_v36  ;;  %v2200_v1 = vadd.f32 %v21171_v54, %v2145_v49  ;;  %v2099_v2 = vmax.f32 %v23757_v43, %v17590_v30  ;;  %v1979_v32 = vpop.f32.mrb[175].mxu1  ;;  %v21458_v35 = vld [vmem:[#allocation2 + $0xb0] sm:$0xff]  ;;  %v23767_v11 = vld [vmem:[#allocation16_spill] sm:$0xff]  ;;  %v23771_v49 = vld [vmem:[#allocation58_spill] sm:$0xff] }
 0x23d   :  { %18111 = vmatprep.mubr.msk.f32.mxu0 %vm2267_vm6, %v6396_v14  ;;  %v6397_v41 = vld [vmem:[#allocation2 + $0xac] sm:$0xff]  ;;  %2294 = vst.msk [vmem:[#allocation2 + $0xd0] sm:$0xff] %vm2267_vm6, %v2245_v22  ;;  %v2199_v62 = vadd.f32 %v21171_v54, %v2144_v0  ;;  %v2098_v16 = vmax.f32 %v23758_v56, %v1979_v32  ;;  %17652 = vmatprep.mubr.msk.f32.mxu1 %vm2267_vm6, %v21458_v35  ;;  %v23773_v44 = vld [vmem:[#allocation87_spill] sm:$0xff] }
 0x23e   :  { %v2248_v34 = vmax.f32 %v2200_v1, 0.0  ;;  %v2147_v25 = vmax.f32 %v23761_v8, %v2099_v2  ;;  %v21489_v61 = vpack.c.bf16 %v15715_v57, %v15714_v26  ;;  %v23769_v36 = vmax.f32 %v23767_v11, %v23768_v10  ;;  %v23770_v39 = vld [vmem:[#allocation17_spill] sm:$0xff]  ;;  %v23774_v43 = vld [vmem:[#allocation88_spill] sm:$0xff]  ;;  %v23778_v57 = vld [vmem:[#allocation19_spill] sm:$0xff] }
 0x23f   :  { %v2247_v29 = vmax.f32 %v2199_v62, 0.0  ;;  %v2146_v20 = vmax.f32 %v23764_v59, %v2098_v16  ;;  %v17593_v46 = vpop.f32.mrb[176].mxu1  ;;  %v21498_v14 = vld [vmem:[#allocation2 + $0xc8] sm:$0xff]  ;;  %v23772_v22 = vmax.f32 %v23770_v39, %v23771_v49  ;;  %v23776_v62 = vld [vmem:[#allocation59_spill] sm:$0xff] }
 0x240   :  { %18112 = vmatmul.mubr.msk.f32.gmra.mrb[16].mxu0 %vm2267_vm6, %v6397_v41  ;;  %17653 = vmatmul.mubr.msk.f32.gmra.mrb[214].mxu1 %vm2267_vm6, %v21466_v42  ;;  %2297 = vst.msk [vmem:[#allocation2 + $0xe8] sm:$0xff] %vm2267_vm6, %v2248_v34  ;;  %v2202_v6 = vadd.f32 %v21171_v54, %v2147_v25  ;;  %v2101_v60 = vmax.f32 %v23765_v4, %v17593_v46  ;;  %v1989_v45 = vpop.f32.mrb[177].mxu1  ;;  %v21487_v51 = vld [vmem:[#allocation2 + $0xc0] sm:$0xff]  ;;  %v23775_v41 = vld [vmem:[#allocation18_spill] sm:$0xff]  ;;  %v23779_v34 = vld [vmem:[#allocation60_spill] sm:$0xff] }
 0x241   :  { %18139 = vmatprep.mubr.msk.f32.mxu0 %vm2267_vm6, %v21301_v13  ;;  %2296 = vst.msk [vmem:[#allocation2 + $0xe0] sm:$0xff] %vm2267_vm6, %v2247_v29  ;;  %v2201_v13 = vadd.f32 %v21171_v54, %v2146_v20  ;;  %v2100_v7 = vmax.f32 %v23766_v38, %v1989_v45  ;;  %17655 = vmatprep.mubr.msk.f32.mxu1 %vm2267_vm6, %v21487_v51  ;;  %v23781_v25 = vld [vmem:[#allocation89_spill] sm:$0xff]  ;;  %v23783_v4 = vld [vmem:[#allocation20_spill] sm:$0xff] }
 0x242   :  { %v2250_v40 = vmax.f32 %v2202_v6, 0.0  ;;  %v2149_v17 = vmax.f32 %v23769_v36, %v2101_v60  ;;  %v23777_v56 = vmax.f32 %v23775_v41, %v23776_v62  ;;  %v23780_v55 = vmax.f32 %v23778_v57, %v23779_v34  ;;  %v23784_v60 = vld [vmem:[#allocation61_spill] sm:$0xff]  ;;  %v23794_v41 = vld [vmem:[#allocation23_spill] sm:$0xff]  ;;  %v23795_v62 = vld [vmem:[#allocation64_spill] sm:$0xff] }
 0x243   :  { %v2249_v52 = vmax.f32 %v2201_v13, 0.0  ;;  %v2148_v63 = vmax.f32 %v23772_v22, %v2100_v7  ;;  %v21528_v2 = vld [vmem:[#allocation2 + $0xd8] sm:$0xff]  ;;  %v23785_v45 = vmax.f32 %v23783_v4, %v23784_v60  ;;  %v23786_v7 = vld [vmem:[#allocation21_spill] sm:$0xff] }
 0x244   :  { %18140 = vmatmul.mubr.msk.f32.vlgmr.msra.gmra.mrb[0].mxu0 %vm2267_vm6, %v21312_v18  ;;  %17656 = vmatmul.mubr.msk.f32.gmra.mrb[216].mxu1 %vm2267_vm6, %v21498_v14  ;;  %v17596_v18 = vpop.f32.mrb[178].mxu1  ;;  %2299 = vst.msk [vmem:[#allocation2 + $0xf8] sm:$0xff] %vm2267_vm6, %v2250_v40  ;;  %v2204_v53 = vadd.f32 %v21171_v54, %v2149_v17  ;;  %v21516_v1 = vld [vmem:[#allocation2 + $0xd0] sm:$0xff]  ;;  %v23787_v40 = vld [vmem:[#allocation62_spill] sm:$0xff]  ;;  %v23789_v17 = vld [vmem:[#allocation91_spill] sm:$0xff] }
 0x245   :  { %18142 = vmatprep.mubr.msk.f32.mxu0 %vm2267_vm6, %v21326_v23  ;;  %19026 = vmatpush3.bf16.msk.msra.mxu0 %vm20981_vm5, %v21280_v15  ;;  %v2103_v0 = vmax.f32 %v23773_v44, %v17596_v18  ;;  %v1999_v30 = vpop.f32.mrb[179].mxu1  ;;  %2298 = vst.msk [vmem:[#allocation2 + $0xf0] sm:$0xff] %vm2267_vm6, %v2249_v52  ;;  %v2203_v23 = vadd.f32 %v21171_v54, %v2148_v63  ;;  %v23797_v34 = vld [vmem:[#allocation93_spill] sm:$0xff] }
 0x246   :  { %19029 = vmatprep.subr.msk.bf16.mxu0 %vm20981_vm5, %v21489_v61  ;;  %v2102_v15 = vmax.f32 %v23774_v43, %v1999_v30  ;;  %17658 = vmatprep.mubr.msk.f32.mxu1 %vm2267_vm6, %v21516_v1  ;;  %v2252_v32 = vmax.f32 %v2204_v53, 0.0  ;;  %v23788_v11 = vmax.f32 %v23786_v7, %v23787_v40  ;;  %v15399_v53 = vld [vmem:[%s23482_s3 + $0x30] sm:$0xff]  ;;  %v23792_v30 = vld [vmem:[#allocation63_spill] sm:$0xff] }
 0x247   :  { %v2151_v16 = vmax.f32 %v23777_v56, %v2103_v0  ;;  %v2251_v26 = vmax.f32 %v2203_v23, 0.0  ;;  %v17599_v8 = vpop.f32.mrb[180].mxu1  ;;  %v21552_v46 = vld [vmem:[#allocation2 + $0xe8] sm:$0xff]  ;;  %v23791_v0 = vld [vmem:[#allocation22_spill] sm:$0xff]  ;;  %v23796_v56 = vmax.f32 %v23794_v41, %v23795_v62 }
 0x248   :  { %18143 = vmatmul.mubr.msk.f32.gmra.mrb[2].mxu0 %vm2267_vm6, %v21334_v24  ;;  %17659 = vmatmul.mubr.msk.f32.gmra.mrb[218].mxu1 %vm2267_vm6, %v21528_v2  ;;  %v2150_v5 = vmax.f32 %v23780_v55, %v2102_v15  ;;  %2301 = vst.msk [vmem:[#allocation2 + $0x108] sm:$0xff] %vm2267_vm6, %v2252_v32  ;;  %v2105_v29 = vmax.f32 %v23781_v25, %v17599_v8  ;;  %v2009_v3 = vpop.f32.mrb[181].mxu1  ;;  %v21543_v48 = vld [vmem:[#allocation2 + $0xe0] sm:$0xff]  ;;  %v2742_v4 = vld [vmem:[#allocation2 + $0x11] sm:$0xff] }
 0x249   :  { %18145 = vmatprep.mubr.msk.f32.mxu0 %vm2267_vm6, %v21348_v27  ;;  %v2206_v24 = vadd.f32 %v21171_v54, %v2151_v16  ;;  %2300 = vst.msk [vmem:[#allocation2 + $0x100] sm:$0xff] %vm2267_vm6, %v2251_v26  ;;  %v23782_v27 = vld [vmem:[#allocation90_spill] sm:$0xff]  ;;  %17661 = vmatprep.mubr.msk.f32.mxu1 %vm2267_vm6, %v21543_v48  ;;  %v23793_v23 = vmax.f32 %v23791_v0, %v23792_v30  ;;  %v2740_v15 = vld [vmem:[#allocation2 + $0x1] sm:$0xff] }
 0x24a   :  { %v2205_v59 = vadd.f32 %v21171_v54, %v2150_v5  ;;  %v2104_v20 = vmax.f32 %v23782_v27, %v2009_v3  ;;  %v2153_v13 = vmax.f32 %v23785_v45, %v2105_v29  ;;  %v2741_v29 = vld [vmem:[#allocation2 + $0x9] sm:$0xff]  ;;  %v23810_v0 = vld [vmem:[#allocation27_spill] sm:$0xff]  ;;  %v23814_v62 = vld [vmem:[#allocation98_spill] sm:$0xff] }
 0x24b   :  { %v2254_v6 = vmax.f32 %v2206_v24, 0.0  ;;  %v17602_v36 = vpop.f32.mrb[182].mxu1  ;;  %v21576_v18 = vld [vmem:[#allocation2 + $0xf8] sm:$0xff]  ;;  %v23800_v27 = vld [vmem:[#allocation65_spill] sm:$0xff]  ;;  %v23811_v30 = vld [vmem:[#allocation68_spill] sm:$0xff] }
 0x24c   :  { %18146 = vmatmul.mubr.msk.f32.gmra.mrb[4].mxu0 %vm2267_vm6, %v21356_v28  ;;  %17662 = vmatmul.mubr.msk.f32.gmra.mrb[220].mxu1 %vm2267_vm6, %v21552_v46  ;;  %v2253_v38 = vmax.f32 %v2205_v59, 0.0  ;;  %v2152_v10 = vmax.f32 %v23788_v11, %v2104_v20  ;;  %v2208_v28 = vadd.f32 %v21171_v54, %v2153_v13  ;;  %v2107_v52 = vmax.f32 %v23789_v17, %v17602_v36  ;;  %v2019_v39 = vpop.f32.mrb[183].mxu1  ;;  %v21567_v49 = vld [vmem:[#allocation2 + $0xf0] sm:$0xff]  ;;  %v23798_v24 = vld [vmem:[#allocation94_spill] sm:$0xff]  ;;  %v23799_v59 = vld [vmem:[#allocation24_spill] sm:$0xff] }
 0x24d   :  { %18148 = vmatprep.mubr.msk.f32.mxu0 %vm2267_vm6, %v21370_v19  ;;  %2303 = vst.msk [vmem:[#allocation2 + $0x118] sm:$0xff] %vm2267_vm6, %v2254_v6  ;;  %v23790_v19 = vld [vmem:[#allocation92_spill] sm:$0xff]  ;;  %17664 = vmatprep.mubr.msk.f32.mxu1 %vm2267_vm6, %v21567_v49  ;;  %v23801_v20 = vmax.f32 %v23799_v59, %v23800_v27  ;;  %v23802_v45 = vld [vmem:[#allocation25_spill] sm:$0xff]  ;;  %v23803_v13 = vld [vmem:[#allocation66_spill] sm:$0xff] }
 0x24e   :  { %2302 = vst.msk [vmem:[#allocation2 + $0x110] sm:$0xff] %vm2267_vm6, %v2253_v38  ;;  %v2207_v22 = vadd.f32 %v21171_v54, %v2152_v10  ;;  %v2106_v63 = vmax.f32 %v23790_v19, %v2019_v39  ;;  %v2256_v44 = vmax.f32 %v2208_v28, 0.0  ;;  %v2155_v43 = vmax.f32 %v23793_v23, %v2107_v52  ;;  %v23805_v11 = vld [vmem:[#allocation95_spill] sm:$0xff]  ;;  %v23806_v28 = vld [vmem:[#allocation96_spill] sm:$0xff]  ;;  %v23807_v39 = vld [vmem:[#allocation26_spill] sm:$0xff] }
 0x24f   :  { %v17605_v26 = vpop.f32.mrb[184].mxu1  ;;  %v23804_v38 = vmax.f32 %v23802_v45, %v23803_v13  ;;  %v23812_v23 = vmax.f32 %v23810_v0, %v23811_v30  ;;  %v23822_v45 = vld [vmem:[#allocation100_spill] sm:$0xff]  ;;  %v2758_v30 = vld [vmem:[#allocation2 + $0x91] sm:$0xff] }
 0x250   :  { %18149 = vmatmul.mubr.msk.f32.gmra.mrb[6].mxu0 %vm2267_vm6, %v21378_v33  ;;  %17665 = vmatmul.mubr.msk.f32.gmra.mrb[222].mxu1 %vm2267_vm6, %v21576_v18  ;;  %v15400_v33 = vld [vmem:[%s23482_s3 + $0x38] sm:$0x3]  ;;  %v2255_v32 = vmax.f32 %v2207_v22, 0.0  ;;  %v2154_v16 = vmax.f32 %v23796_v56, %v2106_v63  ;;  %2305 = vst.msk [vmem:[#allocation2 + $0x128] sm:$0xff] %vm2267_vm6, %v2256_v44  ;;  %v2210_v57 = vadd.f32 %v21171_v54, %v2155_v43  ;;  %v23808_v22 = vld [vmem:[#allocation67_spill] sm:$0xff]  ;;  %v2757_v0 = vld [vmem:[#allocation2 + $0x89] sm:$0xff] }
 0x251   :  { %18151 = vmatprep.mubr.msk.f32.mxu0 %vm2267_vm6, %v21392_v9  ;;  %17671 = vmatprep.mubr.msk.f32.mxu1 %vm2267_vm6, %v2740_v15  ;;  %v2109_v55 = vmax.f32 %v23797_v34, %v17605_v26  ;;  %v2029_v9 = vpop.f32.mrb[185].mxu1  ;;  %v21598_v5 = vpack.c.bf16 %v15400_v33, %v15399_v53  ;;  %v23809_v19 = vmax.f32 %v23807_v39, %v23808_v22  ;;  %v2744_v53 = vld [vmem:[#allocation2 + $0x21] sm:$0xff]  ;;  %v23813_v33 = vld [vmem:[#allocation97_spill] sm:$0xff] }
 0x252   :  { %2304 = vst.msk [vmem:[#allocation2 + $0x120] sm:$0xff] %vm2267_vm6, %v2255_v32  ;;  %v2209_v8 = vadd.f32 %v21171_v54, %v2154_v16  ;;  %v2108_v25 = vmax.f32 %v23798_v24, %v2029_v9  ;;  %v2258_v3 = vmax.f32 %v2210_v57, 0.0  ;;  %v2745_v16 = vld [vmem:[#allocation2 + $0x29] sm:$0xff] }
 0x253   :  { %v2157_v6 = vmax.f32 %v23801_v20, %v2109_v55  ;;  %v17608_v40 = vpop.f32.mrb[186].mxu1  ;;  %v23815_v57 = vld [vmem:[#allocation28_spill] sm:$0xff]  ;;  %v23816_v34 = vld [vmem:[#allocation69_spill] sm:$0xff]  ;;  %v23821_v20 = vld [vmem:[#allocation99_spill] sm:$0xff] }
 0x254   :  { %18152 = vmatmul.mubr.msk.f32.gmra.mrb[8].mxu0 %vm2267_vm6, %v21400_v47  ;;  %17672 = vmatmul.mubr.msk.f32.vlgmr.msra.gmra.mrb[192].mxu1 %vm2267_vm6, %v2741_v29  ;;  %v2257_v60 = vmax.f32 %v2209_v8, 0.0  ;;  %v2156_v7 = vmax.f32 %v23804_v38, %v2108_v25  ;;  %2307 = vst.msk [vmem:[#allocation2 + $0x138] sm:$0xff] %vm2267_vm6, %v2258_v3  ;;  %v2111_v10 = vmax.f32 %v23805_v11, %v17608_v40  ;;  %v2746_v8 = vld [vmem:[#allocation2 + $0x31] sm:$0xff]  ;;  %v23819_v29 = vld [vmem:[#allocation71_spill] sm:$0xff] }
 0x255   :  { %18154 = vmatprep.mubr.msk.f32.mxu0 %vm2267_vm6, %v21414_v31  ;;  %17674 = vmatprep.mubr.msk.f32.mxu1 %vm2267_vm6, %v2742_v4  ;;  %v2212_v47 = vadd.f32 %v21171_v54, %v2157_v6  ;;  %v2039_v31 = vpop.f32.mrb[187].mxu1  ;;  %v23817_v55 = vmax.f32 %v23815_v57, %v23816_v34  ;;  %v23818_v25 = vld [vmem:[#allocation29_spill] sm:$0xff]  ;;  %v2747_v38 = vld [vmem:[#allocation2 + $0x39] sm:$0xff] }
 0x256   :  { %18972 = vmatpush3.bf16.msk.msra.mxu1 %vm20981_vm5, %v21223_v58  ;;  %2306 = vst.msk [vmem:[#allocation2 + $0x130] sm:$0xff] %vm2267_vm6, %v2257_v60  ;;  %v2211_v36 = vadd.f32 %v21171_v54, %v2156_v7  ;;  %v2110_v17 = vmax.f32 %v23806_v28, %v2039_v31  ;;  %v2743_v58 = vld [vmem:[#allocation2 + $0x19] sm:$0xff]  ;;  %v2159_v63 = vmax.f32 %v23809_v19, %v2111_v10  ;;  %v19879_v60 = vmov 0.0   ;;  %v21672_v31 = vld [vmem:[#allocation2 + $0x41] sm:$0xff]  ;;  %v2750_v19 = vld [vmem:[#allocation2 + $0x51] sm:$0xff] }
 0x257   :  { %18975 = vmatprep.subr.msk.bf16.mxu1 %vm20981_vm5, %v21598_v5  ;;  %v2260_v52 = vmax.f32 %v2212_v47, 0.0  ;;  %v17611_v15 = vpop.f32.mrb[188].mxu1  ;;  %v23820_v3 = vmax.f32 %v23818_v25, %v23819_v29  ;;  %2316 = vst.msk [vmem:[#allocation2 + $0x180] sm:$0xff] %vm2267_vm6, %v19879_v60  ;;  %v23823_v40 = vld [vmem:[#allocation30_spill] sm:$0xff]  ;;  %v23824_v47 = vld [vmem:[#allocation72_spill] sm:$0xff]  ;;  %v23826_v28 = vld [vmem:[#allocation31_spill] sm:$0xff] }
 0x258   :  { %18155 = vmatmul.mubr.msk.f32.gmra.mrb[10].mxu0 %vm2267_vm6, %v21422_v21  ;;  %17675 = vmatmul.mubr.msk.f32.gmra.mrb[194].mxu1 %vm2267_vm6, %v2743_v58  ;;  %v2259_v44 = vmax.f32 %v2211_v36, 0.0  ;;  %v2158_v43 = vmax.f32 %v23812_v23, %v2110_v17  ;;  %v2214_v21 = vadd.f32 %v21171_v54, %v2159_v63  ;;  %v2113_v32 = vmax.f32 %v23813_v33, %v17611_v15  ;;  %v2049_v41 = vpop.f32.mrb[189].mxu1  ;;  %v23827_v17 = vld [vmem:[#allocation73_spill] sm:$0xff]  ;;  %v2759_v23 = vld [vmem:[#allocation2 + $0x99] sm:$0xff]  ;;  %v2760_v15 = vld [vmem:[#allocation2 + $0xa1] sm:$0xff] }
 0x259   :  { %18157 = vmatprep.mubr.msk.f32.mxu0 %vm2267_vm6, %v21436_v50  ;;  %17677 = vmatprep.mubr.msk.f32.mxu1 %vm2267_vm6, %v2744_v53  ;;  %2309 = vst.msk [vmem:[#allocation2 + $0x148] sm:$0xff] %vm2267_vm6, %v2260_v52  ;;  %v2112_v56 = vmax.f32 %v23814_v62, %v2049_v41  ;;  %v23825_v11 = vmax.f32 %v23823_v40, %v23824_v47  ;;  %v2754_v53 = vld [vmem:[#allocation2 + $0x71] sm:$0xff]  ;;  %v2761_v33 = vld [vmem:[#allocation2 + $0xa9] sm:$0xff]  ;;  %v2763_v62 = vld [vmem:[#allocation2 + $0xb9] sm:$0xff] }
 0x25a   :  { %2308 = vst.msk [vmem:[#allocation2 + $0x140] sm:$0xff] %vm2267_vm6, %v2259_v44  ;;  %v2213_v50 = vadd.f32 %v21171_v54, %v2158_v43  ;;  %v2262_v26 = vmax.f32 %v2214_v21, 0.0  ;;  %v2161_v9 = vmax.f32 %v23817_v55, %v2113_v32  ;;  %v23828_v58 = vmax.f32 %v23826_v28, %v23827_v17  ;;  %v2756_v44 = vld [vmem:[#allocation2 + $0x81] sm:$0xff]  ;;  %v2762_v41 = vld [vmem:[#allocation2 + $0xb1] sm:$0xff]  ;;  %v2765_v34 = vld [vmem:[#allocation2 + $0xc9] sm:$0xff] }
 0x25b   :  { %v2160_v59 = vmax.f32 %v23820_v3, %v2112_v56  ;;  %v17614_v27 = vpop.f32.mrb[190].mxu1  ;;  %v6863_v43 = vld [vmem:[#allocation2 + $0x120] sm:$0xff]  ;;  %v6864_v21 = vld [vmem:[#allocation2 + $0x128] sm:$0xff]  ;;  %v15749_v56 = vld [vmem:[%s23482_s3 + $0xd0] sm:$0xff] }
 0x25c   :  { %18158 = vmatmul.mubr.msk.f32.gmra.mrb[12].mxu0 %vm2267_vm6, %v21444_v12  ;;  %17678 = vmatmul.mubr.msk.f32.gmra.mrb[196].mxu1 %vm2267_vm6, %v2745_v16  ;;  %v2261_v24 = vmax.f32 %v2213_v50, 0.0  ;;  %2311 = vst.msk [vmem:[#allocation2 + $0x158] sm:$0xff] %vm2267_vm6, %v2262_v26  ;;  %v2216_v12 = vadd.f32 %v21171_v54, %v2161_v9  ;;  %v2115_v6 = vmax.f32 %v23821_v20, %v17614_v27  ;;  %v2059_v4 = vpop.f32.mrb[191].mxu1  ;;  %v6866_v50 = vld [vmem:[#allocation2 + $0x138] sm:$0xff]  ;;  %v2764_v26 = vld [vmem:[#allocation2 + $0xc1] sm:$0xff]  ;;  %v3200_v60 = vld [vmem:[#allocation2 + $0x2a] sm:$0xff] }
 0x25d   :  { %18160 = vmatprep.mubr.msk.f32.mxu0 %vm2267_vm6, %v21458_v35  ;;  %17680 = vmatprep.mubr.msk.f32.mxu1 %vm2267_vm6, %v2746_v8  ;;  %v2215_v35 = vadd.f32 %v21171_v54, %v2160_v59  ;;  %v2114_v13 = vmax.f32 %v23822_v45, %v2059_v4  ;;  %v6865_v32 = vld [vmem:[#allocation2 + $0x130] sm:$0xff]  ;;  %v15750_v16 = vld [vmem:[%s23482_s3 + $0xd8] sm:$0x3]  ;;  %v2768_v8 = vld [vmem:[#allocation2 + $0xe1] sm:$0xff] }
 0x25e   :  { %2310 = vst.msk [vmem:[#allocation2 + $0x150] sm:$0xff] %vm2267_vm6, %v2261_v24  ;;  %v2264_v7 = vmax.f32 %v2216_v12, 0.0  ;;  %v2163_v10 = vmax.f32 %v23825_v11, %v2115_v6  ;;  %v21731_v57 = vpack.c.bf16 %v15750_v16, %v15749_v56  ;;  %v2766_v55 = vld [vmem:[#allocation2 + $0xd1] sm:$0xff]  ;;  %v2767_v9 = vld [vmem:[#allocation2 + $0xd9] sm:$0xff]  ;;  %v2769_v24 = vld [vmem:[#allocation2 + $0xe9] sm:$0xff] }
 0x25f   :  { %v2263_v36 = vmax.f32 %v2215_v35, 0.0  ;;  %v2162_v52 = vmax.f32 %v23828_v58, %v2114_v13  ;;  %v2771_v25 = vld [vmem:[#allocation2 + $0xf9] sm:$0xff]  ;;  %v15435_v3 = vld [vmem:[%s23482_s3 + $0x48] sm:$0x3]  ;;  %v3196_v12 = vld [vmem:[#allocation2 + $0xa] sm:$0xff] }
 0x260   :  { %18161 = vmatmul.mubr.msk.f32.gmra.mrb[14].mxu0 %vm2267_vm6, %v21466_v42  ;;  %17681 = vmatmul.mubr.msk.f32.gmra.mrb[198].mxu1 %vm2267_vm6, %v2747_v38  ;;  %2313 = vst.msk [vmem:[#allocation2 + $0x168] sm:$0xff] %vm2267_vm6, %v2264_v7  ;;  %v2218_v42 = vadd.f32 %v21171_v54, %v2163_v10  ;;  %v15434_v29 = vld [vmem:[%s23482_s3 + $0x40] sm:$0xff]  ;;  %v3197_v20 = vld [vmem:[#allocation2 + $0x12] sm:$0xff]  ;;  %v3204_v13 = vld [vmem:[#allocation2 + $0x4a] sm:$0xff] }
 0x261   :  { %18163 = vmatprep.mubr.msk.f32.mxu0 %vm2267_vm6, %v21487_v51  ;;  %17683 = vmatprep.mubr.msk.f32.mxu1 %vm2267_vm6, %v21672_v31  ;;  %2312 = vst.msk [vmem:[#allocation2 + $0x160] sm:$0xff] %vm2267_vm6, %v2263_v36  ;;  %v2217_v39 = vadd.f32 %v21171_v54, %v2162_v52  ;;  %v2749_v51 = vld [vmem:[#allocation2 + $0x49] sm:$0xff]  ;;  %v2751_v54 = vld [vmem:[#allocation2 + $0x59] sm:$0xff]  ;;  %v21761_v27 = vpack.c.bf16 %v15435_v3, %v15434_v29  ;;  %v7316_v58 = vld [vmem:[#allocation2 + $0x111] sm:$0xff] }
 0x262   :  { %v2266_v22 = vmax.f32 %v2218_v42, 0.0  ;;  %v3195_v59 = vld [vmem:[#allocation2 + $0x2] sm:$0xff]  ;;  %v3198_v6 = vld [vmem:[#allocation2 + $0x1a] sm:$0xff]  ;;  %v3205_v38 = vld [vmem:[#allocation2 + $0x52] sm:$0xff] }
 0x263   :  { %v2265_v63 = vmax.f32 %v2217_v39, 0.0  ;;  %v3199_v4 = vld [vmem:[#allocation2 + $0x22] sm:$0xff]  ;;  %v3202_v35 = vld [vmem:[#allocation2 + $0x3a] sm:$0xff]  ;;  %v3208_v47 = vld [vmem:[#allocation2 + $0x6a] sm:$0xff] }
 0x264   :  { %18164 = vmatmul.mubr.msk.f32.gmra.mrb[16].mxu0 %vm2267_vm6, %v21498_v14  ;;  %17684 = vmatmul.mubr.msk.f32.gmra.mrb[200].mxu1 %vm2267_vm6, %v2749_v51  ;;  %2315 = vst.msk [vmem:[#allocation2 + $0x178] sm:$0xff] %vm2267_vm6, %v2266_v22  ;;  %v2752_v14 = vld [vmem:[#allocation2 + $0x61] sm:$0xff]  ;;  %v3209_v11 = vld [vmem:[#allocation2 + $0x72] sm:$0xff]  ;;  %v7315_v28 = vld [vmem:[#allocation2 + $0x109] sm:$0xff] }
 0x265   :  { %18166 = vmatprep.mubr.msk.f32.mxu0 %vm2267_vm6, %v21516_v1  ;;  %17686 = vmatprep.mubr.msk.f32.mxu1 %vm2267_vm6, %v2750_v19  ;;  %2314 = vst.msk [vmem:[#allocation2 + $0x170] sm:$0xff] %vm2267_vm6, %v2265_v63  ;;  %v2753_v1 = vld [vmem:[#allocation2 + $0x69] sm:$0xff]  ;;  %v3206_v7 = vld [vmem:[#allocation2 + $0x5a] sm:$0xff]  ;;  %v3213_v52 = vld [vmem:[#allocation2 + $0x92] sm:$0xff] }
 0x266   :  { %v3203_v45 = vld [vmem:[#allocation2 + $0x42] sm:$0xff]  ;;  %v3210_v10 = vld [vmem:[#allocation2 + $0x7a] sm:$0xff]  ;;  %v3212_v17 = vld [vmem:[#allocation2 + $0x8a] sm:$0xff] }
 0x267   :  { %v3207_v40 = vld [vmem:[#allocation2 + $0x62] sm:$0xff]  ;;  %v7317_v42 = vld [vmem:[#allocation2 + $0x119] sm:$0xff]  ;;  %v3216_v63 = vld [vmem:[#allocation2 + $0xaa] sm:$0xff] }
 0x268   :  { %18167 = vmatmul.mubr.msk.f32.gmra.mrb[18].mxu0 %vm2267_vm6, %v21528_v2  ;;  %17687 = vmatmul.mubr.msk.f32.gmra.mrb[202].mxu1 %vm2267_vm6, %v2751_v54  ;;  %v2755_v2 = vld [vmem:[#allocation2 + $0x79] sm:$0xff]  ;;  %v3211_v36 = vld [vmem:[#allocation2 + $0x82] sm:$0xff] }
 0x269   :  { %18169 = vmatprep.mubr.msk.f32.mxu0 %vm2267_vm6, %v21543_v48  ;;  %17689 = vmatprep.mubr.msk.f32.mxu1 %vm2267_vm6, %v2752_v14  ;;  %v6859_v48 = vld [vmem:[#allocation2 + $0x100] sm:$0xff]  ;;  %v3664_v29 = vld [vmem:[#allocation2 + $0x73] sm:$0xff] }
 0x26a   :  { %v3214_v39 = vld [vmem:[#allocation2 + $0x9a] sm:$0xff]  ;;  %v3215_v22 = vld [vmem:[#allocation2 + $0xa2] sm:$0xff] }
 0x26b   :  { %v3653_v56 = vld [vmem:[#allocation2 + $0x1b] sm:$0xff]  ;;  %v3654_v16 = vld [vmem:[#allocation2 + $0x23] sm:$0xff] }
 0x26c   :  { %18170 = vmatmul.mubr.msk.f32.gmra.mrb[20].mxu0 %vm2267_vm6, %v21552_v46  ;;  %17690 = vmatmul.mubr.msk.f32.gmra.mrb[204].mxu1 %vm2267_vm6, %v2753_v1  ;;  %v6860_v46 = vld [vmem:[#allocation2 + $0x108] sm:$0xff]  ;;  %v3665_v3 = vld [vmem:[#allocation2 + $0x7b] sm:$0xff] }
 0x26d   :  { %18172 = vmatprep.mubr.msk.f32.mxu0 %vm2267_vm6, %v21567_v49  ;;  %17692 = vmatprep.mubr.msk.f32.mxu1 %vm2267_vm6, %v2754_v53  ;;  %v6861_v49 = vld [vmem:[#allocation2 + $0x110] sm:$0xff] }
 0x270   :  { %18173 = vmatmul.mubr.msk.f32.gmra.mrb[22].mxu0 %vm2267_vm6, %v21576_v18  ;;  %17693 = vmatmul.mubr.msk.f32.gmra.mrb[206].mxu1 %vm2267_vm6, %v2755_v2  ;;  %v6862_v18 = vld [vmem:[#allocation2 + $0x118] sm:$0xff] }
 0x271   :  { %18175 = vmatprep.mubr.msk.f32.mxu0 %vm2267_vm6, %v6859_v48  ;;  %17695 = vmatprep.mubr.msk.f32.mxu1 %vm2267_vm6, %v2756_v44  ;;  %v15785_v48 = vld [vmem:[%s23482_s3 + $0xe8] sm:$0x3] }
 0x274   :  { %18176 = vmatmul.mubr.msk.f32.gmra.mrb[24].mxu0 %vm2267_vm6, %v6860_v46  ;;  %17696 = vmatmul.mubr.msk.f32.gmra.mrb[208].mxu1 %vm2267_vm6, %v2757_v0 }
 0x275   :  { %18178 = vmatprep.mubr.msk.f32.mxu0 %vm2267_vm6, %v6861_v49  ;;  %17698 = vmatprep.mubr.msk.f32.mxu1 %vm2267_vm6, %v2758_v30  ;;  %v3221_v49 = vld [vmem:[#allocation2 + $0xd2] sm:$0xff] }
 0x278   :  { %18179 = vmatmul.mubr.msk.f32.gmra.mrb[26].mxu0 %vm2267_vm6, %v6862_v18  ;;  %17699 = vmatmul.mubr.msk.f32.gmra.mrb[210].mxu1 %vm2267_vm6, %v2759_v23  ;;  %v3223_v18 = vld [vmem:[#allocation2 + $0xe2] sm:$0xff] }
 0x279   :  { %18181 = vmatprep.mubr.msk.f32.mxu0 %vm2267_vm6, %v6863_v43  ;;  %17701 = vmatprep.mubr.msk.f32.mxu1 %vm2267_vm6, %v2760_v15  ;;  %v3225_v43 = vld [vmem:[#allocation2 + $0xf2] sm:$0xff] }
 0x27c   :  { %18182 = vmatmul.mubr.msk.f32.gmra.mrb[28].mxu0 %vm2267_vm6, %v6864_v21  ;;  %17702 = vmatmul.mubr.msk.f32.gmra.mrb[212].mxu1 %vm2267_vm6, %v2761_v33  ;;  %v3650_v21 = vld [vmem:[#allocation2 + $0x3] sm:$0xff] }
 0x27d   :  { %18184 = vmatprep.mubr.msk.f32.mxu0 %vm2267_vm6, %v6865_v32  ;;  %17704 = vmatprep.mubr.msk.f32.mxu1 %vm2267_vm6, %v2762_v41  ;;  %v15470_v32 = vld [vmem:[%s23482_s3 + $0x58] sm:$0x3] }
 0x280   :  { %18185 = vmatmul.mubr.msk.f32.gmra.mrb[30].mxu0 %vm2267_vm6, %v6866_v50  ;;  %17705 = vmatmul.mubr.msk.f32.gmra.mrb[214].mxu1 %vm2267_vm6, %v2763_v62  ;;  %v3651_v50 = vld [vmem:[#allocation2 + $0xb] sm:$0xff] }
 0x281   :  { %18191 = vmatprep.mubr.msk.f32.mxu0 %vm2267_vm6, %v21672_v31  ;;  %17707 = vmatprep.mubr.msk.f32.mxu1 %vm2267_vm6, %v2764_v26  ;;  %v7314_v31 = vld [vmem:[#allocation2 + $0x101] sm:$0xff] }
 0x284   :  { %18192 = vmatmul.mubr.msk.f32.vlgmr.msra.gmra.mrb[0].mxu0 %vm2267_vm6, %v2749_v51  ;;  %17708 = vmatmul.mubr.msk.f32.gmra.mrb[216].mxu1 %vm2267_vm6, %v2765_v34  ;;  %v7318_v51 = vld [vmem:[#allocation2 + $0x121] sm:$0xff] }
 0x285   :  { %18194 = vmatprep.mubr.msk.f32.mxu0 %vm2267_vm6, %v2750_v19  ;;  %19032 = vmatpush3.bf16.msk.msra.mxu0 %vm20981_vm5, %v21489_v61  ;;  %v2770_v61 = vld [vmem:[#allocation2 + $0xf1] sm:$0xff]  ;;  %v7319_v19 = vld [vmem:[#allocation2 + $0x129] sm:$0xff] }
 0x286   :  { %17710 = vmatprep.mubr.msk.f32.mxu1 %vm2267_vm6, %v2766_v55  ;;  %19035 = vmatprep.subr.msk.bf16.mxu0 %vm20981_vm5, %v21731_v57 }
 0x288   :  { %18195 = vmatmul.mubr.msk.f32.gmra.mrb[2].mxu0 %vm2267_vm6, %v2751_v54  ;;  %17711 = vmatmul.mubr.msk.f32.gmra.mrb[218].mxu1 %vm2267_vm6, %v2767_v9  ;;  %v7320_v54 = vld [vmem:[#allocation2 + $0x131] sm:$0xff] }
 0x289   :  { %18197 = vmatprep.mubr.msk.f32.mxu0 %vm2267_vm6, %v2752_v14  ;;  %17713 = vmatprep.mubr.msk.f32.mxu1 %vm2267_vm6, %v2768_v8  ;;  %v3217_v14 = vld [vmem:[#allocation2 + $0xb2] sm:$0xff] }
 0x28c   :  { %18198 = vmatmul.mubr.msk.f32.gmra.mrb[4].mxu0 %vm2267_vm6, %v2753_v1  ;;  %17714 = vmatmul.mubr.msk.f32.gmra.mrb[220].mxu1 %vm2267_vm6, %v2769_v24  ;;  %v7321_v1 = vld [vmem:[#allocation2 + $0x139] sm:$0xff] }
 0x28d   :  { %18200 = vmatprep.mubr.msk.f32.mxu0 %vm2267_vm6, %v2754_v53  ;;  %17716 = vmatprep.mubr.msk.f32.mxu1 %vm2267_vm6, %v2770_v61  ;;  %v3218_v53 = vld [vmem:[#allocation2 + $0xba] sm:$0xff] }
 0x290   :  { %18201 = vmatmul.mubr.msk.f32.gmra.mrb[6].mxu0 %vm2267_vm6, %v2755_v2  ;;  %17717 = vmatmul.mubr.msk.f32.gmra.mrb[222].mxu1 %vm2267_vm6, %v2771_v25  ;;  %v15784_v2 = vld [vmem:[%s23482_s3 + $0xe0] sm:$0xff] }
 0x291   :  { %18203 = vmatprep.mubr.msk.f32.mxu0 %vm2267_vm6, %v2756_v44  ;;  %17723 = vmatprep.mubr.msk.f32.mxu1 %vm2267_vm6, %v3195_v59  ;;  %v3219_v44 = vld [vmem:[#allocation2 + $0xc2] sm:$0xff]  ;;  %v21823_v46 = vpack.c.bf16 %v15785_v48, %v15784_v2 }
 0x292   :  { %v7769_v59 = vld [vmem:[#allocation2 + $0x102] sm:$0xff] }
 0x293   :  { %v4108_v2 = vld [vmem:[#allocation2 + $0x1c] sm:$0xff]  ;;  %v4109_v48 = vld [vmem:[#allocation2 + $0x24] sm:$0xff] }
 0x294   :  { %18204 = vmatmul.mubr.msk.f32.gmra.mrb[8].mxu0 %vm2267_vm6, %v2757_v0  ;;  %17724 = vmatmul.mubr.msk.f32.vlgmr.msra.gmra.mrb[192].mxu1 %vm2267_vm6, %v3196_v12  ;;  %v3220_v0 = vld [vmem:[#allocation2 + $0xca] sm:$0xff] }
 0x295   :  { %18206 = vmatprep.mubr.msk.f32.mxu0 %vm2267_vm6, %v2758_v30  ;;  %17726 = vmatprep.mubr.msk.f32.mxu1 %vm2267_vm6, %v3197_v20  ;;  %v3222_v30 = vld [vmem:[#allocation2 + $0xda] sm:$0xff]  ;;  %v7770_v12 = vld [vmem:[#allocation2 + $0x10a] sm:$0xff] }
 0x296   :  { %18978 = vmatpush3.bf16.msk.msra.mxu1 %vm20981_vm5, %v21598_v5  ;;  %v3201_v5 = vld [vmem:[#allocation2 + $0x32] sm:$0xff] }
 0x297   :  { %18981 = vmatprep.subr.msk.bf16.mxu1 %vm20981_vm5, %v21761_v27  ;;  %v3667_v20 = vld [vmem:[#allocation2 + $0x8b] sm:$0xff] }
 0x298   :  { %18207 = vmatmul.mubr.msk.f32.gmra.mrb[10].mxu0 %vm2267_vm6, %v2759_v23  ;;  %17727 = vmatmul.mubr.msk.f32.gmra.mrb[194].mxu1 %vm2267_vm6, %v3198_v6  ;;  %v3224_v23 = vld [vmem:[#allocation2 + $0xea] sm:$0xff]  ;;  %v7771_v6 = vld [vmem:[#allocation2 + $0x112] sm:$0xff] }
 0x299   :  { %18209 = vmatprep.mubr.msk.f32.mxu0 %vm2267_vm6, %v2760_v15  ;;  %17729 = vmatprep.mubr.msk.f32.mxu1 %vm2267_vm6, %v3199_v4  ;;  %v3226_v15 = vld [vmem:[#allocation2 + $0xfa] sm:$0xff] }
 0x29a   :  { %v3668_v4 = vld [vmem:[#allocation2 + $0x93] sm:$0xff] }
 0x29c   :  { %18210 = vmatmul.mubr.msk.f32.gmra.mrb[12].mxu0 %vm2267_vm6, %v2761_v33  ;;  %17730 = vmatmul.mubr.msk.f32.gmra.mrb[196].mxu1 %vm2267_vm6, %v3200_v60  ;;  %v15469_v33 = vld [vmem:[%s23482_s3 + $0x50] sm:$0xff]  ;;  %v7772_v60 = vld [vmem:[#allocation2 + $0x11a] sm:$0xff] }
 0x29d   :  { %18212 = vmatprep.mubr.msk.f32.mxu0 %vm2267_vm6, %v2762_v41  ;;  %17732 = vmatprep.mubr.msk.f32.mxu1 %vm2267_vm6, %v3201_v5  ;;  %v21853_v41 = vpack.c.bf16 %v15470_v32, %v15469_v33  ;;  %v3669_v5 = vld [vmem:[#allocation2 + $0x9b] sm:$0xff]  ;;  %v8224_v32 = vld [vmem:[#allocation2 + $0x103] sm:$0xff] }
 0x29e   :  { %v4120_v33 = vld [vmem:[#allocation2 + $0x7c] sm:$0xff] }
 0x2a0   :  { %18213 = vmatmul.mubr.msk.f32.gmra.mrb[14].mxu0 %vm2267_vm6, %v2763_v62  ;;  %17733 = vmatmul.mubr.msk.f32.gmra.mrb[198].mxu1 %vm2267_vm6, %v3202_v35  ;;  %v3652_v62 = vld [vmem:[#allocation2 + $0x13] sm:$0xff]  ;;  %v7773_v35 = vld [vmem:[#allocation2 + $0x122] sm:$0xff] }
 0x2a1   :  { %18215 = vmatprep.mubr.msk.f32.mxu0 %vm2267_vm6, %v2764_v26  ;;  %17735 = vmatprep.mubr.msk.f32.mxu1 %vm2267_vm6, %v3203_v45  ;;  %v3655_v26 = vld [vmem:[#allocation2 + $0x2b] sm:$0xff] }
 0x2a4   :  { %18216 = vmatmul.mubr.msk.f32.gmra.mrb[16].mxu0 %vm2267_vm6, %v2765_v34  ;;  %17736 = vmatmul.mubr.msk.f32.gmra.mrb[200].mxu1 %vm2267_vm6, %v3204_v13  ;;  %v3657_v34 = vld [vmem:[#allocation2 + $0x3b] sm:$0xff] }
 0x2a5   :  { %18218 = vmatprep.mubr.msk.f32.mxu0 %vm2267_vm6, %v2766_v55  ;;  %17738 = vmatprep.mubr.msk.f32.mxu1 %vm2267_vm6, %v3205_v38  ;;  %v3658_v55 = vld [vmem:[#allocation2 + $0x43] sm:$0xff] }
 0x2a8   :  { %18219 = vmatmul.mubr.msk.f32.gmra.mrb[18].mxu0 %vm2267_vm6, %v2767_v9  ;;  %17739 = vmatmul.mubr.msk.f32.gmra.mrb[202].mxu1 %vm2267_vm6, %v3206_v7  ;;  %v3659_v9 = vld [vmem:[#allocation2 + $0x4b] sm:$0xff] }
 0x2a9   :  { %18221 = vmatprep.mubr.msk.f32.mxu0 %vm2267_vm6, %v2768_v8  ;;  %17741 = vmatprep.mubr.msk.f32.mxu1 %vm2267_vm6, %v3207_v40  ;;  %v3660_v8 = vld [vmem:[#allocation2 + $0x53] sm:$0xff] }
 0x2ac   :  { %18222 = vmatmul.mubr.msk.f32.gmra.mrb[20].mxu0 %vm2267_vm6, %v2769_v24  ;;  %17742 = vmatmul.mubr.msk.f32.gmra.mrb[204].mxu1 %vm2267_vm6, %v3208_v47  ;;  %v3661_v24 = vld [vmem:[#allocation2 + $0x5b] sm:$0xff] }
 0x2ad   :  { %18224 = vmatprep.mubr.msk.f32.mxu0 %vm2267_vm6, %v2770_v61  ;;  %17744 = vmatprep.mubr.msk.f32.mxu1 %vm2267_vm6, %v3209_v11  ;;  %v3662_v61 = vld [vmem:[#allocation2 + $0x63] sm:$0xff] }
 0x2b0   :  { %18225 = vmatmul.mubr.msk.f32.gmra.mrb[22].mxu0 %vm2267_vm6, %v2771_v25  ;;  %17745 = vmatmul.mubr.msk.f32.gmra.mrb[206].mxu1 %vm2267_vm6, %v3210_v10  ;;  %v3663_v25 = vld [vmem:[#allocation2 + $0x6b] sm:$0xff] }
 0x2b1   :  { %18227 = vmatprep.mubr.msk.f32.mxu0 %vm2267_vm6, %v7314_v31  ;;  %17747 = vmatprep.mubr.msk.f32.mxu1 %vm2267_vm6, %v3211_v36  ;;  %v15820_v31 = vld [vmem:[%s23482_s3 + $0xf8] sm:$0x3] }
 0x2b4   :  { %18228 = vmatmul.mubr.msk.f32.gmra.mrb[24].mxu0 %vm2267_vm6, %v7315_v28  ;;  %17748 = vmatmul.mubr.msk.f32.gmra.mrb[208].mxu1 %vm2267_vm6, %v3212_v17 }
 0x2b5   :  { %18230 = vmatprep.mubr.msk.f32.mxu0 %vm2267_vm6, %v7316_v58  ;;  %17750 = vmatprep.mubr.msk.f32.mxu1 %vm2267_vm6, %v3213_v52  ;;  %v3676_v58 = vld [vmem:[#allocation2 + $0xd3] sm:$0xff] }
 0x2b8   :  { %18231 = vmatmul.mubr.msk.f32.gmra.mrb[26].mxu0 %vm2267_vm6, %v7317_v42  ;;  %17751 = vmatmul.mubr.msk.f32.gmra.mrb[210].mxu1 %vm2267_vm6, %v3214_v39  ;;  %v3678_v42 = vld [vmem:[#allocation2 + $0xe3] sm:$0xff] }
 0x2b9   :  { %18233 = vmatprep.mubr.msk.f32.mxu0 %vm2267_vm6, %v7318_v51  ;;  %17753 = vmatprep.mubr.msk.f32.mxu1 %vm2267_vm6, %v3215_v22  ;;  %v3680_v51 = vld [vmem:[#allocation2 + $0xf3] sm:$0xff] }
 0x2bc   :  { %18234 = vmatmul.mubr.msk.f32.gmra.mrb[28].mxu0 %vm2267_vm6, %v7319_v19  ;;  %17754 = vmatmul.mubr.msk.f32.gmra.mrb[212].mxu1 %vm2267_vm6, %v3216_v63  ;;  %v4105_v19 = vld [vmem:[#allocation2 + $0x4] sm:$0xff] }
 0x2bd   :  { %18236 = vmatprep.mubr.msk.f32.mxu0 %vm2267_vm6, %v7320_v54  ;;  %17756 = vmatprep.mubr.msk.f32.mxu1 %vm2267_vm6, %v3217_v14  ;;  %v15505_v54 = vld [vmem:[%s23482_s3 + $0x68] sm:$0x3] }
 0x2c0   :  { %18237 = vmatmul.mubr.msk.f32.gmra.mrb[30].mxu0 %vm2267_vm6, %v7321_v1  ;;  %17757 = vmatmul.mubr.msk.f32.gmra.mrb[214].mxu1 %vm2267_vm6, %v3218_v53  ;;  %v4106_v1 = vld [vmem:[#allocation2 + $0xc] sm:$0xff] }
 0x2c1   :  { %18243 = vmatprep.mubr.msk.f32.mxu0 %vm2267_vm6, %v3203_v45  ;;  %17759 = vmatprep.mubr.msk.f32.mxu1 %vm2267_vm6, %v3219_v44  ;;  %v3670_v45 = vld [vmem:[#allocation2 + $0xa3] sm:$0xff] }
 0x2c4   :  { %18244 = vmatmul.mubr.msk.f32.vlgmr.msra.gmra.mrb[0].mxu0 %vm2267_vm6, %v3204_v13  ;;  %17760 = vmatmul.mubr.msk.f32.gmra.mrb[216].mxu1 %vm2267_vm6, %v3220_v0  ;;  %v7774_v13 = vld [vmem:[#allocation2 + $0x12a] sm:$0xff] }
 0x2c5   :  { %18246 = vmatprep.mubr.msk.f32.mxu0 %vm2267_vm6, %v3205_v38  ;;  %19038 = vmatpush3.bf16.msk.msra.mxu0 %vm20981_vm5, %v21731_v57  ;;  %v3656_v57 = vld [vmem:[#allocation2 + $0x33] sm:$0xff]  ;;  %v3671_v38 = vld [vmem:[#allocation2 + $0xab] sm:$0xff] }
 0x2c6   :  { %17762 = vmatprep.mubr.msk.f32.mxu1 %vm2267_vm6, %v3221_v49  ;;  %19041 = vmatprep.subr.msk.bf16.mxu0 %vm20981_vm5, %v21823_v46 }
 0x2c8   :  { %18247 = vmatmul.mubr.msk.f32.gmra.mrb[2].mxu0 %vm2267_vm6, %v3206_v7  ;;  %17763 = vmatmul.mubr.msk.f32.gmra.mrb[218].mxu1 %vm2267_vm6, %v3222_v30  ;;  %v7775_v7 = vld [vmem:[#allocation2 + $0x132] sm:$0xff] }
 0x2c9   :  { %18249 = vmatprep.mubr.msk.f32.mxu0 %vm2267_vm6, %v3207_v40  ;;  %17765 = vmatprep.mubr.msk.f32.mxu1 %vm2267_vm6, %v3223_v18  ;;  %v3672_v40 = vld [vmem:[#allocation2 + $0xb3] sm:$0xff] }
 0x2cc   :  { %18250 = vmatmul.mubr.msk.f32.gmra.mrb[4].mxu0 %vm2267_vm6, %v3208_v47  ;;  %17766 = vmatmul.mubr.msk.f32.gmra.mrb[220].mxu1 %vm2267_vm6, %v3224_v23  ;;  %v7776_v47 = vld [vmem:[#allocation2 + $0x13a] sm:$0xff] }
 0x2cd   :  { %18252 = vmatprep.mubr.msk.f32.mxu0 %vm2267_vm6, %v3209_v11  ;;  %17768 = vmatprep.mubr.msk.f32.mxu1 %vm2267_vm6, %v3225_v43  ;;  %v3673_v11 = vld [vmem:[#allocation2 + $0xbb] sm:$0xff] }
 0x2d0   :  { %18253 = vmatmul.mubr.msk.f32.gmra.mrb[6].mxu0 %vm2267_vm6, %v3210_v10  ;;  %17769 = vmatmul.mubr.msk.f32.gmra.mrb[222].mxu1 %vm2267_vm6, %v3226_v15  ;;  %v15819_v10 = vld [vmem:[%s23482_s3 + $0xf0] sm:$0xff] }
 0x2d1   :  { %18255 = vmatprep.mubr.msk.f32.mxu0 %vm2267_vm6, %v3211_v36  ;;  %17775 = vmatprep.mubr.msk.f32.mxu1 %vm2267_vm6, %v3650_v21  ;;  %v3674_v36 = vld [vmem:[#allocation2 + $0xc3] sm:$0xff]  ;;  %v21915_v28 = vpack.c.bf16 %v15820_v31, %v15819_v10  ;;  %v4119_v21 = vld [vmem:[#allocation2 + $0x74] sm:$0xff] }
 0x2d2   :  { %v4563_v10 = vld [vmem:[#allocation2 + $0x38] sm:$0xff]  ;;  %v4564_v31 = vld [vmem:[#allocation2 + $0x40] sm:$0xff] }
 0x2d4   :  { %18256 = vmatmul.mubr.msk.f32.gmra.mrb[8].mxu0 %vm2267_vm6, %v3212_v17  ;;  %17776 = vmatmul.mubr.msk.f32.vlgmr.msra.gmra.mrb[192].mxu1 %vm2267_vm6, %v3651_v50  ;;  %v3675_v17 = vld [vmem:[#allocation2 + $0xcb] sm:$0xff] }
 0x2d5   :  { %18258 = vmatprep.mubr.msk.f32.mxu0 %vm2267_vm6, %v3213_v52  ;;  %17778 = vmatprep.mubr.msk.f32.mxu1 %vm2267_vm6, %v3652_v62  ;;  %v3677_v52 = vld [vmem:[#allocation2 + $0xdb] sm:$0xff]  ;;  %v8225_v50 = vld [vmem:[#allocation2 + $0x10b] sm:$0xff] }
 0x2d6   :  { %18984 = vmatpush3.bf16.msk.msra.mxu1 %vm20981_vm5, %v21761_v27  ;;  %v3666_v27 = vld [vmem:[#allocation2 + $0x83] sm:$0xff]  ;;  %v4122_v62 = vld [vmem:[#allocation2 + $0x8c] sm:$0xff] }
 0x2d7   :  { %18987 = vmatprep.subr.msk.bf16.mxu1 %vm20981_vm5, %v21853_v41 }
 0x2d8   :  { %18259 = vmatmul.mubr.msk.f32.gmra.mrb[10].mxu0 %vm2267_vm6, %v3214_v39  ;;  %17779 = vmatmul.mubr.msk.f32.gmra.mrb[194].mxu1 %vm2267_vm6, %v3653_v56  ;;  %v3679_v39 = vld [vmem:[#allocation2 + $0xeb] sm:$0xff]  ;;  %v8226_v56 = vld [vmem:[#allocation2 + $0x113] sm:$0xff] }
 0x2d9   :  { %18261 = vmatprep.mubr.msk.f32.mxu0 %vm2267_vm6, %v3215_v22  ;;  %17781 = vmatprep.mubr.msk.f32.mxu1 %vm2267_vm6, %v3654_v16  ;;  %v3681_v22 = vld [vmem:[#allocation2 + $0xfb] sm:$0xff] }
 0x2da   :  { %v4123_v16 = vld [vmem:[#allocation2 + $0x94] sm:$0xff] }
 0x2dc   :  { %18262 = vmatmul.mubr.msk.f32.gmra.mrb[12].mxu0 %vm2267_vm6, %v3216_v63  ;;  %17782 = vmatmul.mubr.msk.f32.gmra.mrb[196].mxu1 %vm2267_vm6, %v3655_v26  ;;  %v15504_v63 = vld [vmem:[%s23482_s3 + $0x60] sm:$0xff] }
 0x2dd   :  { %18264 = vmatprep.mubr.msk.f32.mxu0 %vm2267_vm6, %v3217_v14  ;;  %17784 = vmatprep.mubr.msk.f32.mxu1 %vm2267_vm6, %v3656_v57  ;;  %v21945_v14 = vpack.c.bf16 %v15505_v54, %v15504_v63  ;;  %v8227_v26 = vld [vmem:[#allocation2 + $0x11b] sm:$0xff]  ;;  %v8679_v54 = vld [vmem:[#allocation2 + $0x104] sm:$0xff] }
 0x2de   :  { %v4124_v57 = vld [vmem:[#allocation2 + $0x9c] sm:$0xff] }
 0x2df   :  { %v4575_v63 = vld [vmem:[#allocation2 + $0x98] sm:$0xff] }
 0x2e0   :  { %18265 = vmatmul.mubr.msk.f32.gmra.mrb[14].mxu0 %vm2267_vm6, %v3218_v53  ;;  %17785 = vmatmul.mubr.msk.f32.gmra.mrb[198].mxu1 %vm2267_vm6, %v3657_v34  ;;  %v4107_v53 = vld [vmem:[#allocation2 + $0x14] sm:$0xff]  ;;  %v8228_v34 = vld [vmem:[#allocation2 + $0x123] sm:$0xff] }
 0x2e1   :  { %18267 = vmatprep.mubr.msk.f32.mxu0 %vm2267_vm6, %v3219_v44  ;;  %17787 = vmatprep.mubr.msk.f32.mxu1 %vm2267_vm6, %v3658_v55  ;;  %v4110_v44 = vld [vmem:[#allocation2 + $0x2c] sm:$0xff] }
 0x2e4   :  { %18268 = vmatmul.mubr.msk.f32.gmra.mrb[16].mxu0 %vm2267_vm6, %v3220_v0  ;;  %17788 = vmatmul.mubr.msk.f32.gmra.mrb[200].mxu1 %vm2267_vm6, %v3659_v9  ;;  %v4112_v0 = vld [vmem:[#allocation2 + $0x3c] sm:$0xff] }
 0x2e5   :  { %18270 = vmatprep.mubr.msk.f32.mxu0 %vm2267_vm6, %v3221_v49  ;;  %17790 = vmatprep.mubr.msk.f32.mxu1 %vm2267_vm6, %v3660_v8  ;;  %v4113_v49 = vld [vmem:[#allocation2 + $0x44] sm:$0xff] }
 0x2e8   :  { %18271 = vmatmul.mubr.msk.f32.gmra.mrb[18].mxu0 %vm2267_vm6, %v3222_v30  ;;  %17791 = vmatmul.mubr.msk.f32.gmra.mrb[202].mxu1 %vm2267_vm6, %v3661_v24  ;;  %v4114_v30 = vld [vmem:[#allocation2 + $0x4c] sm:$0xff] }
 0x2e9   :  { %18273 = vmatprep.mubr.msk.f32.mxu0 %vm2267_vm6, %v3223_v18  ;;  %17793 = vmatprep.mubr.msk.f32.mxu1 %vm2267_vm6, %v3662_v61  ;;  %v4115_v18 = vld [vmem:[#allocation2 + $0x54] sm:$0xff] }
 0x2ec   :  { %18274 = vmatmul.mubr.msk.f32.gmra.mrb[20].mxu0 %vm2267_vm6, %v3224_v23  ;;  %17794 = vmatmul.mubr.msk.f32.gmra.mrb[204].mxu1 %vm2267_vm6, %v3663_v25  ;;  %v4116_v23 = vld [vmem:[#allocation2 + $0x5c] sm:$0xff] }
 0x2ed   :  { %18276 = vmatprep.mubr.msk.f32.mxu0 %vm2267_vm6, %v3225_v43  ;;  %17796 = vmatprep.mubr.msk.f32.mxu1 %vm2267_vm6, %v3664_v29  ;;  %v4117_v43 = vld [vmem:[#allocation2 + $0x64] sm:$0xff] }
 0x2f0   :  { %18277 = vmatmul.mubr.msk.f32.gmra.mrb[22].mxu0 %vm2267_vm6, %v3226_v15  ;;  %17797 = vmatmul.mubr.msk.f32.gmra.mrb[206].mxu1 %vm2267_vm6, %v3665_v3  ;;  %v4118_v15 = vld [vmem:[#allocation2 + $0x6c] sm:$0xff] }
 0x2f1   :  { %18279 = vmatprep.mubr.msk.f32.mxu0 %vm2267_vm6, %v7769_v59  ;;  %17799 = vmatprep.mubr.msk.f32.mxu1 %vm2267_vm6, %v3666_v27  ;;  %v15855_v59 = vld [vmem:[%s23482_s3 + $0x108] sm:$0x3] }
 0x2f4   :  { %18280 = vmatmul.mubr.msk.f32.gmra.mrb[24].mxu0 %vm2267_vm6, %v7770_v12  ;;  %17800 = vmatmul.mubr.msk.f32.gmra.mrb[208].mxu1 %vm2267_vm6, %v3667_v20 }
 0x2f5   :  { %18282 = vmatprep.mubr.msk.f32.mxu0 %vm2267_vm6, %v7771_v6  ;;  %17802 = vmatprep.mubr.msk.f32.mxu1 %vm2267_vm6, %v3668_v4  ;;  %v4131_v6 = vld [vmem:[#allocation2 + $0xd4] sm:$0xff] }
 0x2f8   :  { %18283 = vmatmul.mubr.msk.f32.gmra.mrb[26].mxu0 %vm2267_vm6, %v7772_v60  ;;  %17803 = vmatmul.mubr.msk.f32.gmra.mrb[210].mxu1 %vm2267_vm6, %v3669_v5  ;;  %v4133_v60 = vld [vmem:[#allocation2 + $0xe4] sm:$0xff] }
 0x2f9   :  { %18285 = vmatprep.mubr.msk.f32.mxu0 %vm2267_vm6, %v7773_v35  ;;  %17805 = vmatprep.mubr.msk.f32.mxu1 %vm2267_vm6, %v3670_v45  ;;  %v4135_v35 = vld [vmem:[#allocation2 + $0xf4] sm:$0xff] }
 0x2fc   :  { %18286 = vmatmul.mubr.msk.f32.gmra.mrb[28].mxu0 %vm2267_vm6, %v7774_v13  ;;  %17806 = vmatmul.mubr.msk.f32.gmra.mrb[212].mxu1 %vm2267_vm6, %v3671_v38  ;;  %v4560_v13 = vld [vmem:[#allocation2 + $0x20] sm:$0xff] }
 0x2fd   :  { %18288 = vmatprep.mubr.msk.f32.mxu0 %vm2267_vm6, %v7775_v7  ;;  %17808 = vmatprep.mubr.msk.f32.mxu1 %vm2267_vm6, %v3672_v40  ;;  %v15540_v7 = vld [vmem:[%s23482_s3 + $0x78] sm:$0x3] }
 0x300   :  { %18289 = vmatmul.mubr.msk.f32.gmra.mrb[30].mxu0 %vm2267_vm6, %v7776_v47  ;;  %17809 = vmatmul.mubr.msk.f32.gmra.mrb[214].mxu1 %vm2267_vm6, %v3673_v11  ;;  %v4561_v47 = vld [vmem:[#allocation2 + $0x28] sm:$0xff] }
 0x301   :  { %18295 = vmatprep.mubr.msk.f32.mxu0 %vm2267_vm6, %v3658_v55  ;;  %17811 = vmatprep.mubr.msk.f32.mxu1 %vm2267_vm6, %v3674_v36  ;;  %v4125_v55 = vld [vmem:[#allocation2 + $0xa4] sm:$0xff] }
 0x304   :  { %18296 = vmatmul.mubr.msk.f32.vlgmr.msra.gmra.mrb[0].mxu0 %vm2267_vm6, %v3659_v9  ;;  %17812 = vmatmul.mubr.msk.f32.gmra.mrb[216].mxu1 %vm2267_vm6, %v3675_v17  ;;  %v8229_v9 = vld [vmem:[#allocation2 + $0x12b] sm:$0xff] }
 0x305   :  { %18298 = vmatprep.mubr.msk.f32.mxu0 %vm2267_vm6, %v3660_v8  ;;  %19044 = vmatpush3.bf16.msk.msra.mxu0 %vm20981_vm5, %v21823_v46  ;;  %v4111_v46 = vld [vmem:[#allocation2 + $0x34] sm:$0xff]  ;;  %v4126_v8 = vld [vmem:[#allocation2 + $0xac] sm:$0xff] }
 0x306   :  { %17814 = vmatprep.mubr.msk.f32.mxu1 %vm2267_vm6, %v3676_v58  ;;  %19047 = vmatprep.subr.msk.bf16.mxu0 %vm20981_vm5, %v21915_v28 }
 0x308   :  { %18299 = vmatmul.mubr.msk.f32.gmra.mrb[2].mxu0 %vm2267_vm6, %v3661_v24  ;;  %17815 = vmatmul.mubr.msk.f32.gmra.mrb[218].mxu1 %vm2267_vm6, %v3677_v52  ;;  %v8230_v24 = vld [vmem:[#allocation2 + $0x133] sm:$0xff] }
 0x309   :  { %18301 = vmatprep.mubr.msk.f32.mxu0 %vm2267_vm6, %v3662_v61  ;;  %17817 = vmatprep.mubr.msk.f32.mxu1 %vm2267_vm6, %v3678_v42  ;;  %v4127_v61 = vld [vmem:[#allocation2 + $0xb4] sm:$0xff] }
 0x30c   :  { %18302 = vmatmul.mubr.msk.f32.gmra.mrb[4].mxu0 %vm2267_vm6, %v3663_v25  ;;  %17818 = vmatmul.mubr.msk.f32.gmra.mrb[220].mxu1 %vm2267_vm6, %v3679_v39  ;;  %v8231_v25 = vld [vmem:[#allocation2 + $0x13b] sm:$0xff] }
 0x30d   :  { %18304 = vmatprep.mubr.msk.f32.mxu0 %vm2267_vm6, %v3664_v29  ;;  %17820 = vmatprep.mubr.msk.f32.mxu1 %vm2267_vm6, %v3680_v51  ;;  %v4128_v29 = vld [vmem:[#allocation2 + $0xbc] sm:$0xff] }
 0x310   :  { %18305 = vmatmul.mubr.msk.f32.gmra.mrb[6].mxu0 %vm2267_vm6, %v3665_v3  ;;  %17821 = vmatmul.mubr.msk.f32.gmra.mrb[222].mxu1 %vm2267_vm6, %v3681_v22  ;;  %v15854_v3 = vld [vmem:[%s23482_s3 + $0x100] sm:$0xff] }
 0x311   :  { %18307 = vmatprep.mubr.msk.f32.mxu0 %vm2267_vm6, %v3666_v27  ;;  %17827 = vmatprep.mubr.msk.f32.mxu1 %vm2267_vm6, %v4105_v19  ;;  %v4129_v27 = vld [vmem:[#allocation2 + $0xc4] sm:$0xff]  ;;  %v22007_v12 = vpack.c.bf16 %v15855_v59, %v15854_v3  ;;  %v4574_v19 = vld [vmem:[#allocation2 + $0x90] sm:$0xff]  ;;  %v5018_v3 = vld [vmem:[#allocation2 + $0x39] sm:$0xff] }
 0x312   :  { %v5019_v59 = vld [vmem:[#allocation2 + $0x41] sm:$0xff] }
 0x314   :  { %18308 = vmatmul.mubr.msk.f32.gmra.mrb[8].mxu0 %vm2267_vm6, %v3667_v20  ;;  %17828 = vmatmul.mubr.msk.f32.vlgmr.msra.gmra.mrb[192].mxu1 %vm2267_vm6, %v4106_v1  ;;  %v4130_v20 = vld [vmem:[#allocation2 + $0xcc] sm:$0xff] }
 0x315   :  { %18310 = vmatprep.mubr.msk.f32.mxu0 %vm2267_vm6, %v3668_v4  ;;  %17830 = vmatprep.mubr.msk.f32.mxu1 %vm2267_vm6, %v4107_v53  ;;  %v4132_v4 = vld [vmem:[#allocation2 + $0xdc] sm:$0xff]  ;;  %v8680_v1 = vld [vmem:[#allocation2 + $0x10c] sm:$0xff] }
 0x316   :  { %18990 = vmatpush3.bf16.msk.msra.mxu1 %vm20981_vm5, %v21853_v41  ;;  %v4121_v41 = vld [vmem:[#allocation2 + $0x84] sm:$0xff] }
 0x317   :  { %18993 = vmatprep.subr.msk.bf16.mxu1 %vm20981_vm5, %v21945_v14  ;;  %v4577_v53 = vld [vmem:[#allocation2 + $0xa8] sm:$0xff] }
 0x318   :  { %18311 = vmatmul.mubr.msk.f32.gmra.mrb[10].mxu0 %vm2267_vm6, %v3669_v5  ;;  %17831 = vmatmul.mubr.msk.f32.gmra.mrb[194].mxu1 %vm2267_vm6, %v4108_v2  ;;  %v4134_v5 = vld [vmem:[#allocation2 + $0xec] sm:$0xff]  ;;  %v8681_v2 = vld [vmem:[#allocation2 + $0x114] sm:$0xff] }
 0x319   :  { %18313 = vmatprep.mubr.msk.f32.mxu0 %vm2267_vm6, %v3670_v45  ;;  %17833 = vmatprep.mubr.msk.f32.mxu1 %vm2267_vm6, %v4109_v48  ;;  %v4136_v45 = vld [vmem:[#allocation2 + $0xfc] sm:$0xff]  ;;  %v4578_v48 = vld [vmem:[#allocation2 + $0xb0] sm:$0xff] }
 0x31c   :  { %18314 = vmatmul.mubr.msk.f32.gmra.mrb[12].mxu0 %vm2267_vm6, %v3671_v38  ;;  %17834 = vmatmul.mubr.msk.f32.gmra.mrb[196].mxu1 %vm2267_vm6, %v4110_v44  ;;  %v15539_v38 = vld [vmem:[%s23482_s3 + $0x70] sm:$0xff]  ;;  %v8682_v44 = vld [vmem:[#allocation2 + $0x11c] sm:$0xff] }
 0x31d   :  { %18316 = vmatprep.mubr.msk.f32.mxu0 %vm2267_vm6, %v3672_v40  ;;  %17836 = vmatprep.mubr.msk.f32.mxu1 %vm2267_vm6, %v4111_v46  ;;  %v22037_v40 = vpack.c.bf16 %v15540_v7, %v15539_v38  ;;  %v4579_v46 = vld [vmem:[#allocation2 + $0xb8] sm:$0xff]  ;;  %v9134_v7 = vld [vmem:[#allocation2 + $0x120] sm:$0xff] }
 0x31e   :  { %v5030_v38 = vld [vmem:[#allocation2 + $0x99] sm:$0xff] }
 0x320   :  { %18317 = vmatmul.mubr.msk.f32.gmra.mrb[14].mxu0 %vm2267_vm6, %v3673_v11  ;;  %17837 = vmatmul.mubr.msk.f32.gmra.mrb[198].mxu1 %vm2267_vm6, %v4112_v0  ;;  %v4562_v11 = vld [vmem:[#allocation2 + $0x30] sm:$0xff]  ;;  %v8683_v0 = vld [vmem:[#allocation2 + $0x124] sm:$0xff] }
 0x321   :  { %18319 = vmatprep.mubr.msk.f32.mxu0 %vm2267_vm6, %v3674_v36  ;;  %17839 = vmatprep.mubr.msk.f32.mxu1 %vm2267_vm6, %v4113_v49  ;;  %v4565_v36 = vld [vmem:[#allocation2 + $0x48] sm:$0xff] }
 0x324   :  { %18320 = vmatmul.mubr.msk.f32.gmra.mrb[16].mxu0 %vm2267_vm6, %v3675_v17  ;;  %17840 = vmatmul.mubr.msk.f32.gmra.mrb[200].mxu1 %vm2267_vm6, %v4114_v30  ;;  %v4567_v17 = vld [vmem:[#allocation2 + $0x58] sm:$0xff] }
 0x325   :  { %18322 = vmatprep.mubr.msk.f32.mxu0 %vm2267_vm6, %v3676_v58  ;;  %17842 = vmatprep.mubr.msk.f32.mxu1 %vm2267_vm6, %v4115_v18  ;;  %v4568_v58 = vld [vmem:[#allocation2 + $0x60] sm:$0xff] }
 0x328   :  { %18323 = vmatmul.mubr.msk.f32.gmra.mrb[18].mxu0 %vm2267_vm6, %v3677_v52  ;;  %17843 = vmatmul.mubr.msk.f32.gmra.mrb[202].mxu1 %vm2267_vm6, %v4116_v23  ;;  %v4569_v52 = vld [vmem:[#allocation2 + $0x68] sm:$0xff] }
 0x329   :  { %18325 = vmatprep.mubr.msk.f32.mxu0 %vm2267_vm6, %v3678_v42  ;;  %17845 = vmatprep.mubr.msk.f32.mxu1 %vm2267_vm6, %v4117_v43  ;;  %v4570_v42 = vld [vmem:[#allocation2 + $0x70] sm:$0xff] }
 0x32c   :  { %18326 = vmatmul.mubr.msk.f32.gmra.mrb[20].mxu0 %vm2267_vm6, %v3679_v39  ;;  %17846 = vmatmul.mubr.msk.f32.gmra.mrb[204].mxu1 %vm2267_vm6, %v4118_v15  ;;  %v4571_v39 = vld [vmem:[#allocation2 + $0x78] sm:$0xff] }
 0x32d   :  { %18328 = vmatprep.mubr.msk.f32.mxu0 %vm2267_vm6, %v3680_v51  ;;  %17848 = vmatprep.mubr.msk.f32.mxu1 %vm2267_vm6, %v4119_v21  ;;  %v4572_v51 = vld [vmem:[#allocation2 + $0x80] sm:$0xff] }
 0x330   :  { %18329 = vmatmul.mubr.msk.f32.gmra.mrb[22].mxu0 %vm2267_vm6, %v3681_v22  ;;  %17849 = vmatmul.mubr.msk.f32.gmra.mrb[206].mxu1 %vm2267_vm6, %v4120_v33  ;;  %v4573_v22 = vld [vmem:[#allocation2 + $0x88] sm:$0xff] }
 0x331   :  { %18331 = vmatprep.mubr.msk.f32.mxu0 %vm2267_vm6, %v8224_v32  ;;  %17851 = vmatprep.mubr.msk.f32.mxu1 %vm2267_vm6, %v4121_v41  ;;  %v15890_v32 = vld [vmem:[%s23482_s3 + $0x118] sm:$0x3] }
 0x334   :  { %18332 = vmatmul.mubr.msk.f32.gmra.mrb[24].mxu0 %vm2267_vm6, %v8225_v50  ;;  %17852 = vmatmul.mubr.msk.f32.gmra.mrb[208].mxu1 %vm2267_vm6, %v4122_v62 }
 0x335   :  { %18334 = vmatprep.mubr.msk.f32.mxu0 %vm2267_vm6, %v8226_v56  ;;  %17854 = vmatprep.mubr.msk.f32.mxu1 %vm2267_vm6, %v4123_v16  ;;  %v4586_v56 = vld [vmem:[#allocation2 + $0xf0] sm:$0xff] }
 0x338   :  { %18335 = vmatmul.mubr.msk.f32.gmra.mrb[26].mxu0 %vm2267_vm6, %v8227_v26  ;;  %17855 = vmatmul.mubr.msk.f32.gmra.mrb[210].mxu1 %vm2267_vm6, %v4124_v57  ;;  %v4588_v26 = vld [vmem:[#allocation2 + $0x100] sm:$0xff] }
 0x339   :  { %18337 = vmatprep.mubr.msk.f32.mxu0 %vm2267_vm6, %v8228_v34  ;;  %17857 = vmatprep.mubr.msk.f32.mxu1 %vm2267_vm6, %v4125_v55  ;;  %v4590_v34 = vld [vmem:[#allocation2 + $0x110] sm:$0xff] }
 0x33c   :  { %18338 = vmatmul.mubr.msk.f32.gmra.mrb[28].mxu0 %vm2267_vm6, %v8229_v9  ;;  %17858 = vmatmul.mubr.msk.f32.gmra.mrb[212].mxu1 %vm2267_vm6, %v4126_v8  ;;  %v5015_v9 = vld [vmem:[#allocation2 + $0x21] sm:$0xff] }
 0x33d   :  { %18340 = vmatprep.mubr.msk.f32.mxu0 %vm2267_vm6, %v8230_v24  ;;  %17860 = vmatprep.mubr.msk.f32.mxu1 %vm2267_vm6, %v4127_v61  ;;  %v15575_v24 = vld [vmem:[%s23482_s3 + $0x88] sm:$0x3] }
 0x340   :  { %18341 = vmatmul.mubr.msk.f32.gmra.mrb[30].mxu0 %vm2267_vm6, %v8231_v25  ;;  %17861 = vmatmul.mubr.msk.f32.gmra.mrb[214].mxu1 %vm2267_vm6, %v4128_v29  ;;  %v5016_v25 = vld [vmem:[#allocation2 + $0x29] sm:$0xff] }
 0x341   :  { %18347 = vmatprep.mubr.msk.f32.mxu0 %vm2267_vm6, %v4113_v49  ;;  %17863 = vmatprep.mubr.msk.f32.mxu1 %vm2267_vm6, %v4129_v27  ;;  %v4580_v49 = vld [vmem:[#allocation2 + $0xc0] sm:$0xff] }
 0x344   :  { %18348 = vmatmul.mubr.msk.f32.vlgmr.msra.gmra.mrb[0].mxu0 %vm2267_vm6, %v4114_v30  ;;  %17864 = vmatmul.mubr.msk.f32.gmra.mrb[216].mxu1 %vm2267_vm6, %v4130_v20  ;;  %v8684_v30 = vld [vmem:[#allocation2 + $0x12c] sm:$0xff] }
 0x345   :  { %18350 = vmatprep.mubr.msk.f32.mxu0 %vm2267_vm6, %v4115_v18  ;;  %19050 = vmatpush3.bf16.msk.msra.mxu0 %vm20981_vm5, %v21915_v28  ;;  %v4566_v28 = vld [vmem:[#allocation2 + $0x50] sm:$0xff]  ;;  %v4581_v18 = vld [vmem:[#allocation2 + $0xc8] sm:$0xff] }
 0x346   :  { %17866 = vmatprep.mubr.msk.f32.mxu1 %vm2267_vm6, %v4131_v6  ;;  %19053 = vmatprep.subr.msk.bf16.mxu0 %vm20981_vm5, %v22007_v12 }
 0x348   :  { %18351 = vmatmul.mubr.msk.f32.gmra.mrb[2].mxu0 %vm2267_vm6, %v4116_v23  ;;  %17867 = vmatmul.mubr.msk.f32.gmra.mrb[218].mxu1 %vm2267_vm6, %v4132_v4  ;;  %v8685_v23 = vld [vmem:[#allocation2 + $0x134] sm:$0xff] }
 0x349   :  { %18353 = vmatprep.mubr.msk.f32.mxu0 %vm2267_vm6, %v4117_v43  ;;  %17869 = vmatprep.mubr.msk.f32.mxu1 %vm2267_vm6, %v4133_v60  ;;  %v4582_v43 = vld [vmem:[#allocation2 + $0xd0] sm:$0xff] }
 0x34c   :  { %18354 = vmatmul.mubr.msk.f32.gmra.mrb[4].mxu0 %vm2267_vm6, %v4118_v15  ;;  %17870 = vmatmul.mubr.msk.f32.gmra.mrb[220].mxu1 %vm2267_vm6, %v4134_v5  ;;  %v8686_v15 = vld [vmem:[#allocation2 + $0x13c] sm:$0xff] }
 0x34d   :  { %18356 = vmatprep.mubr.msk.f32.mxu0 %vm2267_vm6, %v4119_v21  ;;  %17872 = vmatprep.mubr.msk.f32.mxu1 %vm2267_vm6, %v4135_v35  ;;  %v4583_v21 = vld [vmem:[#allocation2 + $0xd8] sm:$0xff] }
 0x350   :  { %18357 = vmatmul.mubr.msk.f32.gmra.mrb[6].mxu0 %vm2267_vm6, %v4120_v33  ;;  %17873 = vmatmul.mubr.msk.f32.gmra.mrb[222].mxu1 %vm2267_vm6, %v4136_v45  ;;  %v15889_v33 = vld [vmem:[%s23482_s3 + $0x110] sm:$0xff] }
 0x351   :  { %18359 = vmatprep.mubr.msk.f32.mxu0 %vm2267_vm6, %v4121_v41  ;;  %17879 = vmatprep.mubr.msk.f32.mxu1 %vm2267_vm6, %v4560_v13  ;;  %v4584_v41 = vld [vmem:[#allocation2 + $0xe0] sm:$0xff]  ;;  %v22099_v50 = vpack.c.bf16 %v15890_v32, %v15889_v33  ;;  %v5029_v13 = vld [vmem:[#allocation2 + $0x91] sm:$0xff] }
 0x352   :  { %v5475_v33 = vld [vmem:[#allocation2 + $0x4a] sm:$0xff]  ;;  %v5476_v32 = vld [vmem:[#allocation2 + $0x52] sm:$0xff] }
 0x354   :  { %18360 = vmatmul.mubr.msk.f32.gmra.mrb[8].mxu0 %vm2267_vm6, %v4122_v62  ;;  %17880 = vmatmul.mubr.msk.f32.vlgmr.msra.gmra.mrb[192].mxu1 %vm2267_vm6, %v4561_v47  ;;  %v4585_v62 = vld [vmem:[#allocation2 + $0xe8] sm:$0xff] }
 0x355   :  { %18362 = vmatprep.mubr.msk.f32.mxu0 %vm2267_vm6, %v4123_v16  ;;  %17882 = vmatprep.mubr.msk.f32.mxu1 %vm2267_vm6, %v4562_v11  ;;  %v4587_v16 = vld [vmem:[#allocation2 + $0xf8] sm:$0xff]  ;;  %v9135_v47 = vld [vmem:[#allocation2 + $0x128] sm:$0xff] }
 0x356   :  { %18996 = vmatpush3.bf16.msk.msra.mxu1 %vm20981_vm5, %v21945_v14  ;;  %v4576_v14 = vld [vmem:[#allocation2 + $0xa0] sm:$0xff]  ;;  %v5032_v11 = vld [vmem:[#allocation2 + $0xa9] sm:$0xff] }
 0x357   :  { %18999 = vmatprep.subr.msk.bf16.mxu1 %vm20981_vm5, %v22037_v40 }
 0x358   :  { %18363 = vmatmul.mubr.msk.f32.gmra.mrb[10].mxu0 %vm2267_vm6, %v4124_v57  ;;  %17883 = vmatmul.mubr.msk.f32.gmra.mrb[194].mxu1 %vm2267_vm6, %v4563_v10  ;;  %v4589_v57 = vld [vmem:[#allocation2 + $0x108] sm:$0xff]  ;;  %v9136_v10 = vld [vmem:[#allocation2 + $0x130] sm:$0xff] }
 0x359   :  { %18365 = vmatprep.mubr.msk.f32.mxu0 %vm2267_vm6, %v4125_v55  ;;  %17885 = vmatprep.mubr.msk.f32.mxu1 %vm2267_vm6, %v4564_v31  ;;  %v4591_v55 = vld [vmem:[#allocation2 + $0x118] sm:$0xff] }
 0x35a   :  { %v5033_v31 = vld [vmem:[#allocation2 + $0xb1] sm:$0xff] }
 0x35c   :  { %18366 = vmatmul.mubr.msk.f32.gmra.mrb[12].mxu0 %vm2267_vm6, %v4126_v8  ;;  %17886 = vmatmul.mubr.msk.f32.gmra.mrb[196].mxu1 %vm2267_vm6, %v4565_v36  ;;  %v15574_v8 = vld [vmem:[%s23482_s3 + $0x80] sm:$0xff]  ;;  %v9137_v36 = vld [vmem:[#allocation2 + $0x138] sm:$0xff] }
 0x35d   :  { %18368 = vmatprep.mubr.msk.f32.mxu0 %vm2267_vm6, %v4127_v61  ;;  %17888 = vmatprep.mubr.msk.f32.mxu1 %vm2267_vm6, %v4566_v28  ;;  %v22129_v61 = vpack.c.bf16 %v15575_v24, %v15574_v8  ;;  %v5034_v28 = vld [vmem:[#allocation2 + $0xb9] sm:$0xff]  ;;  %v5486_v8 = vld [vmem:[#allocation2 + $0xa2] sm:$0xff] }
 0x35e   :  { %v22256_v24 = vld [vmem:[#allocation2 + $0x129] sm:$0xff] }
 0x360   :  { %18369 = vmatmul.mubr.msk.f32.gmra.mrb[14].mxu0 %vm2267_vm6, %v4128_v29  ;;  %17889 = vmatmul.mubr.msk.f32.gmra.mrb[198].mxu1 %vm2267_vm6, %v4567_v17  ;;  %v5017_v29 = vld [vmem:[#allocation2 + $0x31] sm:$0xff]  ;;  %v9138_v17 = vld [vmem:[#allocation2 + $0x140] sm:$0xff] }
 0x361   :  { %18371 = vmatprep.mubr.msk.f32.mxu0 %vm2267_vm6, %v4129_v27  ;;  %17891 = vmatprep.mubr.msk.f32.mxu1 %vm2267_vm6, %v4568_v58  ;;  %v5020_v27 = vld [vmem:[#allocation2 + $0x49] sm:$0xff] }
 0x364   :  { %18372 = vmatmul.mubr.msk.f32.gmra.mrb[16].mxu0 %vm2267_vm6, %v4130_v20  ;;  %17892 = vmatmul.mubr.msk.f32.gmra.mrb[200].mxu1 %vm2267_vm6, %v4569_v52  ;;  %v5022_v20 = vld [vmem:[#allocation2 + $0x59] sm:$0xff] }
 0x365   :  { %18374 = vmatprep.mubr.msk.f32.mxu0 %vm2267_vm6, %v4131_v6  ;;  %17894 = vmatprep.mubr.msk.f32.mxu1 %vm2267_vm6, %v4570_v42  ;;  %v5023_v6 = vld [vmem:[#allocation2 + $0x61] sm:$0xff] }
 0x368   :  { %18375 = vmatmul.mubr.msk.f32.gmra.mrb[18].mxu0 %vm2267_vm6, %v4132_v4  ;;  %17895 = vmatmul.mubr.msk.f32.gmra.mrb[202].mxu1 %vm2267_vm6, %v4571_v39  ;;  %v5024_v4 = vld [vmem:[#allocation2 + $0x69] sm:$0xff] }
 0x369   :  { %18377 = vmatprep.mubr.msk.f32.mxu0 %vm2267_vm6, %v4133_v60  ;;  %17897 = vmatprep.mubr.msk.f32.mxu1 %vm2267_vm6, %v4572_v51  ;;  %v5025_v60 = vld [vmem:[#allocation2 + $0x71] sm:$0xff] }
 0x36c   :  { %18378 = vmatmul.mubr.msk.f32.gmra.mrb[20].mxu0 %vm2267_vm6, %v4134_v5  ;;  %17898 = vmatmul.mubr.msk.f32.gmra.mrb[204].mxu1 %vm2267_vm6, %v4573_v22  ;;  %v5026_v5 = vld [vmem:[#allocation2 + $0x79] sm:$0xff] }
 0x36d   :  { %18380 = vmatprep.mubr.msk.f32.mxu0 %vm2267_vm6, %v4135_v35  ;;  %17900 = vmatprep.mubr.msk.f32.mxu1 %vm2267_vm6, %v4574_v19  ;;  %v5027_v35 = vld [vmem:[#allocation2 + $0x81] sm:$0xff] }
 0x370   :  { %18381 = vmatmul.mubr.msk.f32.gmra.mrb[22].mxu0 %vm2267_vm6, %v4136_v45  ;;  %17901 = vmatmul.mubr.msk.f32.gmra.mrb[206].mxu1 %vm2267_vm6, %v4575_v63  ;;  %v5028_v45 = vld [vmem:[#allocation2 + $0x89] sm:$0xff] }
 0x371   :  { %18383 = vmatprep.mubr.msk.f32.mxu0 %vm2267_vm6, %v8679_v54  ;;  %17903 = vmatprep.mubr.msk.f32.mxu1 %vm2267_vm6, %v4576_v14  ;;  %v15925_v54 = vld [vmem:[%s23482_s3 + $0x128] sm:$0x3] }
 0x374   :  { %18384 = vmatmul.mubr.msk.f32.gmra.mrb[24].mxu0 %vm2267_vm6, %v8680_v1  ;;  %17904 = vmatmul.mubr.msk.f32.gmra.mrb[208].mxu1 %vm2267_vm6, %v4577_v53 }
 0x375   :  { %18386 = vmatprep.mubr.msk.f32.mxu0 %vm2267_vm6, %v8681_v2  ;;  %17906 = vmatprep.mubr.msk.f32.mxu1 %vm2267_vm6, %v4578_v48  ;;  %v5041_v2 = vld [vmem:[#allocation2 + $0xf1] sm:$0xff] }
 0x378   :  { %18387 = vmatmul.mubr.msk.f32.gmra.mrb[26].mxu0 %vm2267_vm6, %v8682_v44  ;;  %17907 = vmatmul.mubr.msk.f32.gmra.mrb[210].mxu1 %vm2267_vm6, %v4579_v46  ;;  %v5043_v44 = vld [vmem:[#allocation2 + $0x101] sm:$0xff] }
 0x379   :  { %18389 = vmatprep.mubr.msk.f32.mxu0 %vm2267_vm6, %v8683_v0  ;;  %17909 = vmatprep.mubr.msk.f32.mxu1 %vm2267_vm6, %v4580_v49  ;;  %v5045_v0 = vld [vmem:[#allocation2 + $0x111] sm:$0xff] }
 0x37c   :  { %18390 = vmatmul.mubr.msk.f32.gmra.mrb[28].mxu0 %vm2267_vm6, %v8684_v30  ;;  %17910 = vmatmul.mubr.msk.f32.gmra.mrb[212].mxu1 %vm2267_vm6, %v4581_v18  ;;  %v5470_v30 = vld [vmem:[#allocation2 + $0x22] sm:$0xff] }
 0x37d   :  { %18392 = vmatprep.mubr.msk.f32.mxu0 %vm2267_vm6, %v8685_v23  ;;  %17912 = vmatprep.mubr.msk.f32.mxu1 %vm2267_vm6, %v4582_v43  ;;  %v5472_v23 = vld [vmem:[#allocation2 + $0x32] sm:$0xff] }
 0x380   :  { %18393 = vmatmul.mubr.msk.f32.gmra.mrb[30].mxu0 %vm2267_vm6, %v8686_v15  ;;  %17913 = vmatmul.mubr.msk.f32.gmra.mrb[214].mxu1 %vm2267_vm6, %v4583_v21  ;;  %v5473_v15 = vld [vmem:[#allocation2 + $0x3a] sm:$0xff] }
 0x381   :  { %18399 = vmatprep.mubr.msk.f32.mxu0 %vm2267_vm6, %v4568_v58  ;;  %17915 = vmatprep.mubr.msk.f32.mxu1 %vm2267_vm6, %v4584_v41  ;;  %v5035_v58 = vld [vmem:[#allocation2 + $0xc1] sm:$0xff] }
 0x384   :  { %18400 = vmatmul.mubr.msk.f32.vlgmr.msra.gmra.mrb[0].mxu0 %vm2267_vm6, %v4569_v52  ;;  %17916 = vmatmul.mubr.msk.f32.gmra.mrb[216].mxu1 %vm2267_vm6, %v4585_v62  ;;  %v9139_v52 = vld [vmem:[#allocation2 + $0x148] sm:$0xff] }
 0x385   :  { %18402 = vmatprep.mubr.msk.f32.mxu0 %vm2267_vm6, %v4570_v42  ;;  %19056 = vmatpush3.bf16.msk.msra.mxu0 %vm20981_vm5, %v22007_v12  ;;  %v5021_v12 = vld [vmem:[#allocation2 + $0x51] sm:$0xff]  ;;  %v5036_v42 = vld [vmem:[#allocation2 + $0xc9] sm:$0xff] }
 0x386   :  { %17918 = vmatprep.mubr.msk.f32.mxu1 %vm2267_vm6, %v4586_v56  ;;  %19059 = vmatprep.subr.msk.bf16.mxu0 %vm20981_vm5, %v22099_v50 }
 0x388   :  { %18403 = vmatmul.mubr.msk.f32.gmra.mrb[2].mxu0 %vm2267_vm6, %v4571_v39  ;;  %17919 = vmatmul.mubr.msk.f32.gmra.mrb[218].mxu1 %vm2267_vm6, %v4587_v16  ;;  %v9140_v39 = vld [vmem:[#allocation2 + $0x150] sm:$0xff] }
 0x389   :  { %18405 = vmatprep.mubr.msk.f32.mxu0 %vm2267_vm6, %v4572_v51  ;;  %17921 = vmatprep.mubr.msk.f32.mxu1 %vm2267_vm6, %v4588_v26  ;;  %v5037_v51 = vld [vmem:[#allocation2 + $0xd1] sm:$0xff] }
 0x38c   :  { %18406 = vmatmul.mubr.msk.f32.gmra.mrb[4].mxu0 %vm2267_vm6, %v4573_v22  ;;  %17922 = vmatmul.mubr.msk.f32.gmra.mrb[220].mxu1 %vm2267_vm6, %v4589_v57  ;;  %v9141_v22 = vld [vmem:[#allocation2 + $0x158] sm:$0xff] }
 0x38d   :  { %18408 = vmatprep.mubr.msk.f32.mxu0 %vm2267_vm6, %v4574_v19  ;;  %17924 = vmatprep.mubr.msk.f32.mxu1 %vm2267_vm6, %v4590_v34  ;;  %v5038_v19 = vld [vmem:[#allocation2 + $0xd9] sm:$0xff] }
 0x390   :  { %18409 = vmatmul.mubr.msk.f32.gmra.mrb[6].mxu0 %vm2267_vm6, %v4575_v63  ;;  %17925 = vmatmul.mubr.msk.f32.gmra.mrb[222].mxu1 %vm2267_vm6, %v4591_v55  ;;  %v15924_v63 = vld [vmem:[%s23482_s3 + $0x120] sm:$0xff] }
 0x391   :  { %18411 = vmatprep.mubr.msk.f32.mxu0 %vm2267_vm6, %v4576_v14  ;;  %17931 = vmatprep.mubr.msk.f32.mxu1 %vm2267_vm6, %v5015_v9  ;;  %v5039_v14 = vld [vmem:[#allocation2 + $0xe1] sm:$0xff]  ;;  %v22191_v1 = vpack.c.bf16 %v15925_v54, %v15924_v63  ;;  %v5934_v54 = vld [vmem:[#allocation2 + $0x6b] sm:$0xff] }
 0x392   :  { %v22250_v9 = vld [vmem:[#allocation2 + $0x121] sm:$0xff] }
 0x393   :  { %v5933_v63 = vld [vmem:[#allocation2 + $0x63] sm:$0xff] }
 0x394   :  { %18412 = vmatmul.mubr.msk.f32.gmra.mrb[8].mxu0 %vm2267_vm6, %v4577_v53  ;;  %17932 = vmatmul.mubr.msk.f32.vlgmr.msra.gmra.mrb[192].mxu1 %vm2267_vm6, %v5016_v25  ;;  %v5040_v53 = vld [vmem:[#allocation2 + $0xe9] sm:$0xff]  ;;  %v22260_v25 = vld [vmem:[#allocation2 + $0x131] sm:$0xff] }
 0x395   :  { %18414 = vmatprep.mubr.msk.f32.mxu0 %vm2267_vm6, %v4578_v48  ;;  %17934 = vmatprep.mubr.msk.f32.mxu1 %vm2267_vm6, %v5017_v29  ;;  %v5042_v48 = vld [vmem:[#allocation2 + $0xf9] sm:$0xff] }
 0x396   :  { %19002 = vmatpush3.bf16.msk.msra.mxu1 %vm20981_vm5, %v22037_v40  ;;  %v5031_v40 = vld [vmem:[#allocation2 + $0xa1] sm:$0xff]  ;;  %v5488_v29 = vld [vmem:[#allocation2 + $0xb2] sm:$0xff] }
 0x397   :  { %19005 = vmatprep.subr.msk.bf16.mxu1 %vm20981_vm5, %v22129_v61 }
 0x398   :  { %18415 = vmatmul.mubr.msk.f32.gmra.mrb[10].mxu0 %vm2267_vm6, %v4579_v46  ;;  %17935 = vmatmul.mubr.msk.f32.gmra.mrb[194].mxu1 %vm2267_vm6, %v5018_v3  ;;  %v5044_v46 = vld [vmem:[#allocation2 + $0x109] sm:$0xff]  ;;  %v22266_v3 = vld [vmem:[#allocation2 + $0x139] sm:$0xff] }
 0x399   :  { %18417 = vmatprep.mubr.msk.f32.mxu0 %vm2267_vm6, %v4580_v49  ;;  %17937 = vmatprep.mubr.msk.f32.mxu1 %vm2267_vm6, %v5019_v59  ;;  %v5046_v49 = vld [vmem:[#allocation2 + $0x119] sm:$0xff] }
 0x39a   :  { %v5489_v59 = vld [vmem:[#allocation2 + $0xba] sm:$0xff] }
 0x39c   :  { %18418 = vmatmul.mubr.msk.f32.gmra.mrb[12].mxu0 %vm2267_vm6, %v4581_v18  ;;  %17938 = vmatmul.mubr.msk.f32.gmra.mrb[196].mxu1 %vm2267_vm6, %v5020_v27  ;;  %v5471_v18 = vld [vmem:[#allocation2 + $0x2a] sm:$0xff]  ;;  %v22270_v27 = vld [vmem:[#allocation2 + $0x141] sm:$0xff] }
 0x39d   :  { %18420 = vmatprep.mubr.msk.f32.mxu0 %vm2267_vm6, %v4582_v43  ;;  %17940 = vmatprep.mubr.msk.f32.mxu1 %vm2267_vm6, %v5021_v12  ;;  %v23829_v43 = vld [vmem:[#allocation70_spill] sm:$0xff]  ;;  %v5490_v12 = vld [vmem:[#allocation2 + $0xc2] sm:$0xff] }
 0x3a0   :  { %18421 = vmatmul.mubr.msk.f32.gmra.mrb[14].mxu0 %vm2267_vm6, %v4583_v21  ;;  %17941 = vmatmul.mubr.msk.f32.gmra.mrb[198].mxu1 %vm2267_vm6, %v5022_v20  ;;  %v5474_v21 = vld [vmem:[#allocation2 + $0x42] sm:$0xff] }
 0x3a1   :  { %18423 = vmatprep.mubr.msk.f32.mxu0 %vm2267_vm6, %v4584_v41  ;;  %17943 = vmatprep.mubr.msk.f32.mxu1 %vm2267_vm6, %v5023_v6  ;;  %v5477_v41 = vld [vmem:[#allocation2 + $0x5a] sm:$0xff]  ;;  %v22276_v20 = vld [vmem:[#allocation2 + $0x149] sm:$0xff] }
 0x3a4   :  { %18424 = vmatmul.mubr.msk.f32.gmra.mrb[16].mxu0 %vm2267_vm6, %v4585_v62  ;;  %17944 = vmatmul.mubr.msk.f32.gmra.mrb[200].mxu1 %vm2267_vm6, %v5024_v4  ;;  %v5479_v62 = vld [vmem:[#allocation2 + $0x6a] sm:$0xff] }
 0x3a5   :  { %18426 = vmatprep.mubr.msk.f32.mxu0 %vm2267_vm6, %v4586_v56  ;;  %17946 = vmatprep.mubr.msk.f32.mxu1 %vm2267_vm6, %v5025_v60  ;;  %v5480_v56 = vld [vmem:[#allocation2 + $0x72] sm:$0xff] }
 0x3a8   :  { %18427 = vmatmul.mubr.msk.f32.gmra.mrb[18].mxu0 %vm2267_vm6, %v4587_v16  ;;  %17947 = vmatmul.mubr.msk.f32.gmra.mrb[202].mxu1 %vm2267_vm6, %v5026_v5  ;;  %v5481_v16 = vld [vmem:[#allocation2 + $0x7a] sm:$0xff] }
 0x3a9   :  { %18429 = vmatprep.mubr.msk.f32.mxu0 %vm2267_vm6, %v4588_v26  ;;  %17949 = vmatprep.mubr.msk.f32.mxu1 %vm2267_vm6, %v5027_v35  ;;  %v5482_v26 = vld [vmem:[#allocation2 + $0x82] sm:$0xff] }
 0x3ac   :  { %18430 = vmatmul.mubr.msk.f32.gmra.mrb[20].mxu0 %vm2267_vm6, %v4589_v57  ;;  %17950 = vmatmul.mubr.msk.f32.gmra.mrb[204].mxu1 %vm2267_vm6, %v5028_v45  ;;  %v5483_v57 = vld [vmem:[#allocation2 + $0x8a] sm:$0xff] }
 0x3ad   :  { %18432 = vmatprep.mubr.msk.f32.mxu0 %vm2267_vm6, %v4590_v34  ;;  %17952 = vmatprep.mubr.msk.f32.mxu1 %vm2267_vm6, %v5029_v13  ;;  %v5484_v34 = vld [vmem:[#allocation2 + $0x92] sm:$0xff] }
 0x3b0   :  { %18433 = vmatmul.mubr.msk.f32.gmra.mrb[22].mxu0 %vm2267_vm6, %v4591_v55  ;;  %17953 = vmatmul.mubr.msk.f32.gmra.mrb[206].mxu1 %vm2267_vm6, %v5030_v38  ;;  %v5485_v55 = vld [vmem:[#allocation2 + $0x9a] sm:$0xff] }
 0x3b1   :  { %18435 = vmatprep.mubr.msk.f32.mxu0 %vm2267_vm6, %v9134_v7  ;;  %17955 = vmatprep.mubr.msk.f32.mxu1 %vm2267_vm6, %v5031_v40 }
 0x3b4   :  { %18436 = vmatmul.mubr.msk.f32.gmra.mrb[24].mxu0 %vm2267_vm6, %v9135_v47  ;;  %17956 = vmatmul.mubr.msk.f32.gmra.mrb[208].mxu1 %vm2267_vm6, %v5032_v11  ;;  %v22304_v47 = vld [vmem:[#allocation2 + $0xf2] sm:$0xff] }
 0x3b5   :  { %18438 = vmatprep.mubr.msk.f32.mxu0 %vm2267_vm6, %v9136_v10  ;;  %17958 = vmatprep.mubr.msk.f32.mxu1 %vm2267_vm6, %v5033_v31  ;;  %v22320_v10 = vld [vmem:[#allocation2 + $0x102] sm:$0xff] }
 0x3b8   :  { %18439 = vmatmul.mubr.msk.f32.gmra.mrb[26].mxu0 %vm2267_vm6, %v9137_v36  ;;  %17959 = vmatmul.mubr.msk.f32.gmra.mrb[210].mxu1 %vm2267_vm6, %v5034_v28  ;;  %v22330_v36 = vld [vmem:[#allocation2 + $0x112] sm:$0xff] }
 0x3b9   :  { %18441 = vmatprep.mubr.msk.f32.mxu0 %vm2267_vm6, %v9138_v17  ;;  %17961 = vmatprep.mubr.msk.f32.mxu1 %vm2267_vm6, %v5035_v58  ;;  %v5925_v17 = vld [vmem:[#allocation2 + $0x23] sm:$0xff] }
 0x3bc   :  { %18442 = vmatmul.mubr.msk.f32.gmra.mrb[28].mxu0 %vm2267_vm6, %v9139_v52  ;;  %17962 = vmatmul.mubr.msk.f32.gmra.mrb[212].mxu1 %vm2267_vm6, %v5036_v42  ;;  %v5927_v52 = vld [vmem:[#allocation2 + $0x33] sm:$0xff] }
 0x3bd   :  { %18444 = vmatprep.mubr.msk.f32.mxu0 %vm2267_vm6, %v9140_v39  ;;  %17964 = vmatprep.mubr.msk.f32.mxu1 %vm2267_vm6, %v5037_v51  ;;  %v5929_v39 = vld [vmem:[#allocation2 + $0x43] sm:$0xff] }
 0x3c0   :  { %18445 = vmatmul.mubr.msk.f32.gmra.mrb[30].mxu0 %vm2267_vm6, %v9141_v22  ;;  %17965 = vmatmul.mubr.msk.f32.gmra.mrb[214].mxu1 %vm2267_vm6, %v5038_v19  ;;  %v5931_v22 = vld [vmem:[#allocation2 + $0x53] sm:$0xff] }
 0x3c1   :  { %18451 = vmatprep.mubr.msk.f32.mxu0 %vm2267_vm6, %v5023_v6  ;;  %17967 = vmatprep.mubr.msk.f32.mxu1 %vm2267_vm6, %v5039_v14  ;;  %v5491_v6 = vld [vmem:[#allocation2 + $0xca] sm:$0xff] }
 0x3c4   :  { %18452 = vmatmul.mubr.msk.f32.vlgmr.msra.gmra.mrb[0].mxu0 %vm2267_vm6, %v5024_v4  ;;  %17968 = vmatmul.mubr.msk.f32.gmra.mrb[216].mxu1 %vm2267_vm6, %v5040_v53  ;;  %v22280_v4 = vld [vmem:[#allocation2 + $0x151] sm:$0xff] }
 0x3c5   :  { %18454 = vmatprep.mubr.msk.f32.mxu0 %vm2267_vm6, %v5025_v60  ;;  %19062 = vmatpush3.bf16.msk.msra.mxu0 %vm20981_vm5, %v22099_v50  ;;  %v5478_v50 = vld [vmem:[#allocation2 + $0x62] sm:$0xff]  ;;  %v5492_v60 = vld [vmem:[#allocation2 + $0xd2] sm:$0xff] }
 0x3c6   :  { %17970 = vmatprep.mubr.msk.f32.mxu1 %vm2267_vm6, %v5041_v2  ;;  %19065 = vmatprep.subr.msk.bf16.mxu0 %vm20981_vm5, %v22191_v1 }
 0x3c8   :  { %18455 = vmatmul.mubr.msk.f32.gmra.mrb[2].mxu0 %vm2267_vm6, %v5026_v5  ;;  %17971 = vmatmul.mubr.msk.f32.gmra.mrb[218].mxu1 %vm2267_vm6, %v5042_v48  ;;  %v22286_v5 = vld [vmem:[#allocation2 + $0x159] sm:$0xff] }
 0x3c9   :  { %18457 = vmatprep.mubr.msk.f32.mxu0 %vm2267_vm6, %v5027_v35  ;;  %17973 = vmatprep.mubr.msk.f32.mxu1 %vm2267_vm6, %v5043_v44  ;;  %v5493_v35 = vld [vmem:[#allocation2 + $0xda] sm:$0xff] }
 0x3cc   :  { %18458 = vmatmul.mubr.msk.f32.gmra.mrb[4].mxu0 %vm2267_vm6, %v5028_v45  ;;  %17974 = vmatmul.mubr.msk.f32.gmra.mrb[220].mxu1 %vm2267_vm6, %v5044_v46  ;;  %v15959_v45 = vld [vmem:[%s23482_s3 + $0x130] sm:$0xff] }
 0x3cd   :  { %18460 = vmatprep.mubr.msk.f32.mxu0 %vm2267_vm6, %v5029_v13  ;;  %17976 = vmatprep.mubr.msk.f32.mxu1 %vm2267_vm6, %v5045_v0  ;;  %v15960_v13 = vld [vmem:[%s23482_s3 + $0x138] sm:$0x3] }
 0x3ce   :  { %v22299_v7 = vpack.c.bf16 %v15960_v13, %v15959_v45  ;;  %v22522_v45 = vld [vmem:[#allocation2 + $0xbc] sm:$0xff]  ;;  %v22528_v13 = vld [vmem:[#allocation2 + $0xc4] sm:$0xff] }
 0x3d0   :  { %18461 = vmatmul.mubr.msk.f32.gmra.mrb[6].mxu0 %vm2267_vm6, %v5030_v38  ;;  %17977 = vmatmul.mubr.msk.f32.gmra.mrb[222].mxu1 %vm2267_vm6, %v5046_v49  ;;  %v5494_v38 = vld [vmem:[#allocation2 + $0xe2] sm:$0xff] }
 0x3d1   :  { %18463 = vmatprep.mubr.msk.f32.mxu0 %vm2267_vm6, %v5031_v40  ;;  %17983 = vmatprep.mubr.msk.f32.mxu1 %vm2267_vm6, %v5470_v30  ;;  %v5495_v40 = vld [vmem:[#allocation2 + $0xea] sm:$0xff] }
 0x3d2   :  { %v22404_v30 = vld [vmem:[#allocation2 + $0xab] sm:$0xff] }
 0x3d4   :  { %18464 = vmatmul.mubr.msk.f32.gmra.mrb[8].mxu0 %vm2267_vm6, %v5032_v11  ;;  %17984 = vmatmul.mubr.msk.f32.vlgmr.msra.gmra.mrb[192].mxu1 %vm2267_vm6, %v5471_v18  ;;  %v22315_v11 = vld [vmem:[#allocation2 + $0xfa] sm:$0xff]  ;;  %v22406_v18 = vld [vmem:[#allocation2 + $0x132] sm:$0xff] }
 0x3d5   :  { %18466 = vmatprep.mubr.msk.f32.mxu0 %vm2267_vm6, %v5033_v31  ;;  %17986 = vmatprep.mubr.msk.f32.mxu1 %vm2267_vm6, %v5472_v23  ;;  %v22325_v31 = vld [vmem:[#allocation2 + $0x10a] sm:$0xff]  ;;  %v22412_v23 = vld [vmem:[#allocation2 + $0xb3] sm:$0xff] }
 0x3d6   :  { %19008 = vmatpush3.bf16.msk.msra.mxu1 %vm20981_vm5, %v22129_v61  ;;  %v5487_v61 = vld [vmem:[#allocation2 + $0xaa] sm:$0xff] }
 0x3d7   :  { %19105 = vmatprep.subr.msk.bf16.mxu1 %vm20981_vm5, %v23829_v43 }
 0x3d8   :  { %18467 = vmatmul.mubr.msk.f32.gmra.mrb[10].mxu0 %vm2267_vm6, %v5034_v28  ;;  %17987 = vmatmul.mubr.msk.f32.gmra.mrb[194].mxu1 %vm2267_vm6, %v5473_v15  ;;  %v22335_v28 = vld [vmem:[#allocation2 + $0x11a] sm:$0xff] }
 0x3d9   :  { %18469 = vmatprep.mubr.msk.f32.mxu0 %vm2267_vm6, %v5035_v58  ;;  %17989 = vmatprep.mubr.msk.f32.mxu1 %vm2267_vm6, %v5474_v21  ;;  %v5926_v58 = vld [vmem:[#allocation2 + $0x2b] sm:$0xff]  ;;  %v22420_v15 = vld [vmem:[#allocation2 + $0xbb] sm:$0xff] }
 0x3da   :  { %v22422_v21 = vld [vmem:[#allocation2 + $0x142] sm:$0xff] }
 0x3dc   :  { %18470 = vmatmul.mubr.msk.f32.gmra.mrb[12].mxu0 %vm2267_vm6, %v5036_v42  ;;  %17990 = vmatmul.mubr.msk.f32.gmra.mrb[196].mxu1 %vm2267_vm6, %v5475_v33  ;;  %v5928_v42 = vld [vmem:[#allocation2 + $0x3b] sm:$0xff]  ;;  %v22428_v33 = vld [vmem:[#allocation2 + $0xc3] sm:$0xff] }
 0x3dd   :  { %18472 = vmatprep.mubr.msk.f32.mxu0 %vm2267_vm6, %v5037_v51  ;;  %17992 = vmatprep.mubr.msk.f32.mxu1 %vm2267_vm6, %v5476_v32  ;;  %v5930_v51 = vld [vmem:[#allocation2 + $0x4b] sm:$0xff] }
 0x3de   :  { %v22432_v32 = vld [vmem:[#allocation2 + $0x14a] sm:$0xff] }
 0x3e0   :  { %18473 = vmatmul.mubr.msk.f32.gmra.mrb[14].mxu0 %vm2267_vm6, %v5038_v19  ;;  %17993 = vmatmul.mubr.msk.f32.gmra.mrb[198].mxu1 %vm2267_vm6, %v5477_v41  ;;  %v5932_v19 = vld [vmem:[#allocation2 + $0x5b] sm:$0xff]  ;;  %v22436_v41 = vld [vmem:[#allocation2 + $0xcb] sm:$0xff] }
 0x3e1   :  { %18475 = vmatprep.mubr.msk.f32.mxu0 %vm2267_vm6, %v5039_v14  ;;  %17995 = vmatprep.mubr.msk.f32.mxu1 %vm2267_vm6, %v5478_v50  ;;  %v5935_v14 = vld [vmem:[#allocation2 + $0x73] sm:$0xff] }
 0x3e4   :  { %18476 = vmatmul.mubr.msk.f32.gmra.mrb[16].mxu0 %vm2267_vm6, %v5040_v53  ;;  %17996 = vmatmul.mubr.msk.f32.gmra.mrb[200].mxu1 %vm2267_vm6, %v5479_v62  ;;  %v22370_v53 = vld [vmem:[#allocation2 + $0x83] sm:$0xff] }
 0x3e5   :  { %18478 = vmatprep.mubr.msk.f32.mxu0 %vm2267_vm6, %v5041_v2  ;;  %17998 = vmatprep.mubr.msk.f32.mxu1 %vm2267_vm6, %v5480_v56  ;;  %v22376_v2 = vld [vmem:[#allocation2 + $0x8b] sm:$0xff] }
 0x3e8   :  { %18479 = vmatmul.mubr.msk.f32.gmra.mrb[18].mxu0 %vm2267_vm6, %v5042_v48  ;;  %17999 = vmatmul.mubr.msk.f32.gmra.mrb[202].mxu1 %vm2267_vm6, %v5481_v16  ;;  %v22382_v48 = vld [vmem:[#allocation2 + $0x93] sm:$0xff] }
 0x3e9   :  { %18481 = vmatprep.mubr.msk.f32.mxu0 %vm2267_vm6, %v5043_v44  ;;  %18001 = vmatprep.mubr.msk.f32.mxu1 %vm2267_vm6, %v5482_v26  ;;  %v22388_v44 = vld [vmem:[#allocation2 + $0x9b] sm:$0xff] }
 0x3ec   :  { %18482 = vmatmul.mubr.msk.f32.gmra.mrb[20].mxu0 %vm2267_vm6, %v5044_v46  ;;  %18002 = vmatmul.mubr.msk.f32.gmra.mrb[204].mxu1 %vm2267_vm6, %v5483_v57  ;;  %v22390_v46 = vld [vmem:[#allocation2 + $0x122] sm:$0xff] }
 0x3ed   :  { %18484 = vmatprep.mubr.msk.f32.mxu0 %vm2267_vm6, %v5045_v0  ;;  %18004 = vmatprep.mubr.msk.f32.mxu1 %vm2267_vm6, %v5484_v34  ;;  %v22396_v0 = vld [vmem:[#allocation2 + $0xa3] sm:$0xff] }
 0x3f0   :  { %18485 = vmatmul.mubr.msk.f32.gmra.mrb[22].mxu0 %vm2267_vm6, %v5046_v49  ;;  %18005 = vmatmul.mubr.msk.f32.gmra.mrb[206].mxu1 %vm2267_vm6, %v5485_v55  ;;  %v22400_v49 = vld [vmem:[#allocation2 + $0x12a] sm:$0xff] }
 0x3f1   :  { %18487 = vmatprep.mubr.msk.f32.mxu0 %vm2267_vm6, %v22250_v9  ;;  %18007 = vmatprep.mubr.msk.f32.mxu1 %vm2267_vm6, %v5486_v8 }
 0x3f4   :  { %18488 = vmatmul.mubr.msk.f32.gmra.mrb[24].mxu0 %vm2267_vm6, %v22256_v24  ;;  %18008 = vmatmul.mubr.msk.f32.gmra.mrb[208].mxu1 %vm2267_vm6, %v5487_v61 }
 0x3f5   :  { %18490 = vmatprep.mubr.msk.f32.mxu0 %vm2267_vm6, %v22260_v25  ;;  %18010 = vmatprep.mubr.msk.f32.mxu1 %vm2267_vm6, %v5488_v29 }
 0x3f8   :  { %18491 = vmatmul.mubr.msk.f32.gmra.mrb[26].mxu0 %vm2267_vm6, %v22266_v3  ;;  %18011 = vmatmul.mubr.msk.f32.gmra.mrb[210].mxu1 %vm2267_vm6, %v5489_v59 }
 0x3f9   :  { %18493 = vmatprep.mubr.msk.f32.mxu0 %vm2267_vm6, %v22270_v27  ;;  %18013 = vmatprep.mubr.msk.f32.mxu1 %vm2267_vm6, %v5490_v12 }
 0x3fc   :  { %18494 = vmatmul.mubr.msk.f32.gmra.mrb[28].mxu0 %vm2267_vm6, %v22276_v20  ;;  %18014 = vmatmul.mubr.msk.f32.gmra.mrb[212].mxu1 %vm2267_vm6, %v5491_v6 }
 0x3fd   :  { %18496 = vmatprep.mubr.msk.f32.mxu0 %vm2267_vm6, %v22280_v4  ;;  %18016 = vmatprep.mubr.msk.f32.mxu1 %vm2267_vm6, %v5492_v60 }
 0x400   :  { %18497 = vmatmul.mubr.msk.f32.gmra.mrb[30].mxu0 %vm2267_vm6, %v22286_v5  ;;  %18017 = vmatmul.mubr.msk.f32.gmra.mrb[214].mxu1 %vm2267_vm6, %v5493_v35 }
 0x401   :  { %18503 = vmatprep.mubr.msk.f32.mxu0 %vm2267_vm6, %v5478_v50  ;;  %18019 = vmatprep.mubr.msk.f32.mxu1 %vm2267_vm6, %v5494_v38  ;;  %v22438_v50 = vld [vmem:[#allocation2 + $0x152] sm:$0xff] }
 0x404   :  { %18504 = vmatmul.mubr.msk.f32.vlgmr.msra.gmra.mrb[0].mxu0 %vm2267_vm6, %v5479_v62  ;;  %18020 = vmatmul.mubr.msk.f32.gmra.mrb[216].mxu1 %vm2267_vm6, %v5495_v40  ;;  %v22444_v62 = vld [vmem:[#allocation2 + $0xd3] sm:$0xff] }
 0x405   :  { %18506 = vmatprep.mubr.msk.f32.mxu0 %vm2267_vm6, %v5480_v56  ;;  %19068 = vmatpush3.bf16.msk.msra.mxu0 %vm20981_vm5, %v22191_v1  ;;  %v5936_v1 = vld [vmem:[#allocation2 + $0x7b] sm:$0xff] }
 0x406   :  { %18022 = vmatprep.mubr.msk.f32.mxu1 %vm2267_vm6, %v22304_v47  ;;  %19071 = vmatprep.subr.msk.bf16.mxu0 %vm20981_vm5, %v22299_v7  ;;  %v22448_v56 = vld [vmem:[#allocation2 + $0x15a] sm:$0xff] }
 0x408   :  { %18507 = vmatmul.mubr.msk.f32.gmra.mrb[2].mxu0 %vm2267_vm6, %v5481_v16  ;;  %18023 = vmatmul.mubr.msk.f32.gmra.mrb[218].mxu1 %vm2267_vm6, %v22315_v11  ;;  %v22452_v16 = vld [vmem:[#allocation2 + $0xdb] sm:$0xff] }
 0x409   :  { %18509 = vmatprep.mubr.msk.f32.mxu0 %vm2267_vm6, %v5482_v26  ;;  %18025 = vmatprep.mubr.msk.f32.mxu1 %vm2267_vm6, %v22320_v10  ;;  %v15994_v26 = vld [vmem:[%s23482_s3 + $0x140] sm:$0xff] }
 0x40c   :  { %18510 = vmatmul.mubr.msk.f32.gmra.mrb[4].mxu0 %vm2267_vm6, %v5483_v57  ;;  %18026 = vmatmul.mubr.msk.f32.gmra.mrb[220].mxu1 %vm2267_vm6, %v22325_v31  ;;  %v15995_v57 = vld [vmem:[%s23482_s3 + $0x148] sm:$0x3] }
 0x40d   :  { %18512 = vmatprep.mubr.msk.f32.mxu0 %vm2267_vm6, %v5484_v34  ;;  %18028 = vmatprep.mubr.msk.f32.mxu1 %vm2267_vm6, %v22330_v36  ;;  %v22463_v34 = vld [vmem:[#allocation2 + $0xe3] sm:$0xff] }
 0x410   :  { %18513 = vmatmul.mubr.msk.f32.gmra.mrb[6].mxu0 %vm2267_vm6, %v5485_v55  ;;  %18029 = vmatmul.mubr.msk.f32.gmra.mrb[222].mxu1 %vm2267_vm6, %v22335_v28  ;;  %v22467_v55 = vpack.c.bf16 %v15995_v57, %v15994_v26  ;;  %v22618_v26 = vld [vmem:[#allocation2 + $0x143] sm:$0xff]  ;;  %v22622_v57 = vld [vmem:[#allocation2 + $0x14b] sm:$0xff] }
 0x411   :  { %18515 = vmatprep.mubr.msk.f32.mxu0 %vm2267_vm6, %v5486_v8  ;;  %18035 = vmatprep.mubr.msk.f32.mxu1 %vm2267_vm6, %v5925_v17  ;;  %v22470_v8 = vld [vmem:[#allocation2 + $0xeb] sm:$0xff]  ;;  %23845 = vst [vmem:[#allocation45_spill] sm:$0xff] %v22618_v26  ;;  %23846 = vst [vmem:[#allocation5_spill] sm:$0xff] %v22622_v57 }
 0x412   :  { %v22552_v17 = vld [vmem:[#allocation2 + $0xe4] sm:$0xff] }
 0x413   :  { %23833 = vst [vmem:[#allocation35_spill] sm:$0xff] %v22552_v17 }
 0x414   :  { %18516 = vmatmul.mubr.msk.f32.gmra.mrb[8].mxu0 %vm2267_vm6, %v5487_v61  ;;  %18036 = vmatmul.mubr.msk.f32.vlgmr.msra.gmra.mrb[192].mxu1 %vm2267_vm6, %v5926_v58  ;;  %v22475_v61 = vld [vmem:[#allocation2 + $0xf3] sm:$0xff] }
 0x415   :  { %18518 = vmatprep.mubr.msk.f32.mxu0 %vm2267_vm6, %v5488_v29  ;;  %18038 = vmatprep.mubr.msk.f32.mxu1 %vm2267_vm6, %v5927_v52  ;;  %v22486_v29 = vld [vmem:[#allocation2 + $0xfb] sm:$0xff]  ;;  %v22558_v58 = vld [vmem:[#allocation2 + $0xec] sm:$0xff] }
 0x416   :  { %19106 = vmatpush3.bf16.msk.msra.mxu1 %vm20981_vm5, %v23829_v43  ;;  %v22416_v43 = vld [vmem:[#allocation2 + $0x13a] sm:$0xff]  ;;  %23834 = vst [vmem:[#allocation36_spill] sm:$0xff] %v22558_v58 }
 0x417   :  { %v22564_v52 = vld [vmem:[#allocation2 + $0xf4] sm:$0xff] }
 0x418   :  { %18519 = vmatmul.mubr.msk.f32.gmra.mrb[10].mxu0 %vm2267_vm6, %v5489_v59  ;;  %18039 = vmatmul.mubr.msk.f32.gmra.mrb[194].mxu1 %vm2267_vm6, %v5928_v42  ;;  %v22492_v59 = vld [vmem:[#allocation2 + $0x103] sm:$0xff]  ;;  %23835 = vst [vmem:[#allocation37_spill] sm:$0xff] %v22564_v52 }
 0x419   :  { %18521 = vmatprep.mubr.msk.f32.mxu0 %vm2267_vm6, %v5490_v12  ;;  %18041 = vmatprep.mubr.msk.f32.mxu1 %vm2267_vm6, %v5929_v39  ;;  %v22498_v12 = vld [vmem:[#allocation2 + $0x10b] sm:$0xff]  ;;  %v22570_v42 = vld [vmem:[#allocation2 + $0xfc] sm:$0xff] }
 0x41a   :  { %23836 = vst [vmem:[#allocation38_spill] sm:$0xff] %v22570_v42  ;;  %v22576_v39 = vld [vmem:[#allocation2 + $0x104] sm:$0xff] }
 0x41b   :  { %23837 = vst [vmem:[#allocation39_spill] sm:$0xff] %v22576_v39 }
 0x41c   :  { %18522 = vmatmul.mubr.msk.f32.gmra.mrb[12].mxu0 %vm2267_vm6, %v5491_v6  ;;  %18042 = vmatmul.mubr.msk.f32.gmra.mrb[196].mxu1 %vm2267_vm6, %v5930_v51  ;;  %v22504_v6 = vld [vmem:[#allocation2 + $0x113] sm:$0xff] }
 0x41d   :  { %18524 = vmatprep.mubr.msk.f32.mxu0 %vm2267_vm6, %v5492_v60  ;;  %18044 = vmatprep.mubr.msk.f32.mxu1 %vm2267_vm6, %v5931_v22  ;;  %23830 = vst [vmem:[#allocation32_spill] sm:$0xff] %v22504_v6  ;;  %v22510_v60 = vld [vmem:[#allocation2 + $0x11b] sm:$0xff]  ;;  %v22582_v51 = vld [vmem:[#allocation2 + $0x10c] sm:$0xff] }
 0x41e   :  { %23831 = vst [vmem:[#allocation33_spill] sm:$0xff] %v22510_v60  ;;  %23838 = vst [vmem:[#allocation40_spill] sm:$0xff] %v22582_v51  ;;  %v22588_v22 = vld [vmem:[#allocation2 + $0x114] sm:$0xff] }
 0x41f   :  { %23839 = vst [vmem:[#allocation41_spill] sm:$0xff] %v22588_v22 }
 0x420   :  { %18525 = vmatmul.mubr.msk.f32.gmra.mrb[14].mxu0 %vm2267_vm6, %v5493_v35  ;;  %18045 = vmatmul.mubr.msk.f32.gmra.mrb[198].mxu1 %vm2267_vm6, %v5932_v19  ;;  %v22516_v35 = vld [vmem:[#allocation2 + $0xb4] sm:$0xff]  ;;  %v22594_v19 = vld [vmem:[#allocation2 + $0x11c] sm:$0xff] }
 0x421   :  { %18527 = vmatprep.mubr.msk.f32.mxu0 %vm2267_vm6, %v5494_v38  ;;  %18047 = vmatprep.mubr.msk.f32.mxu1 %vm2267_vm6, %v5933_v63  ;;  %v22534_v38 = vld [vmem:[#allocation2 + $0xcc] sm:$0xff]  ;;  %23840 = vst [vmem:[#allocation42_spill] sm:$0xff] %v22594_v19 }
 0x424   :  { %18528 = vmatmul.mubr.msk.f32.gmra.mrb[16].mxu0 %vm2267_vm6, %v5495_v40  ;;  %18048 = vmatmul.mubr.msk.f32.gmra.mrb[200].mxu1 %vm2267_vm6, %v5934_v54  ;;  %v22546_v40 = vld [vmem:[#allocation2 + $0xdc] sm:$0xff]  ;;  %v23878_v37 = vld [vmem:[#allocation32_spill] sm:$0xff] }
 0x425   :  { %18530 = vmatprep.mubr.msk.f32.mxu0 %vm2267_vm6, %v22304_v47  ;;  %18050 = vmatprep.mubr.msk.f32.mxu1 %vm2267_vm6, %v5935_v14  ;;  %23832 = vst [vmem:[#allocation34_spill] sm:$0xff] %v22546_v40 }
 0x428   :  { %18531 = vmatmul.mubr.msk.f32.gmra.mrb[18].mxu0 %vm2267_vm6, %v22315_v11  ;;  %18051 = vmatmul.mubr.msk.f32.gmra.mrb[202].mxu1 %vm2267_vm6, %v5936_v1 }
 0x429   :  { %18533 = vmatprep.mubr.msk.f32.mxu0 %vm2267_vm6, %v22320_v10  ;;  %18053 = vmatprep.mubr.msk.f32.mxu1 %vm2267_vm6, %v22370_v53 }
 0x42c   :  { %18534 = vmatmul.mubr.msk.f32.gmra.mrb[20].mxu0 %vm2267_vm6, %v22325_v31  ;;  %18054 = vmatmul.mubr.msk.f32.gmra.mrb[204].mxu1 %vm2267_vm6, %v22376_v2 }
 0x42d   :  { %18536 = vmatprep.mubr.msk.f32.mxu0 %vm2267_vm6, %v22330_v36  ;;  %18056 = vmatprep.mubr.msk.f32.mxu1 %vm2267_vm6, %v22382_v48 }
 0x430   :  { %18537 = vmatmul.mubr.msk.f32.gmra.mrb[22].mxu0 %vm2267_vm6, %v22335_v28  ;;  %18057 = vmatmul.mubr.msk.f32.gmra.mrb[206].mxu1 %vm2267_vm6, %v22388_v44 }
 0x431   :  { %18539 = vmatprep.mubr.msk.f32.mxu0 %vm2267_vm6, %v22390_v46  ;;  %18059 = vmatprep.mubr.msk.f32.mxu1 %vm2267_vm6, %v22396_v0 }
 0x434   :  { %18540 = vmatmul.mubr.msk.f32.gmra.mrb[24].mxu0 %vm2267_vm6, %v22400_v49  ;;  %18060 = vmatmul.mubr.msk.f32.gmra.mrb[208].mxu1 %vm2267_vm6, %v22404_v30 }
 0x435   :  { %18542 = vmatprep.mubr.msk.f32.mxu0 %vm2267_vm6, %v22406_v18  ;;  %18062 = vmatprep.mubr.msk.f32.mxu1 %vm2267_vm6, %v22412_v23 }
 0x438   :  { %18543 = vmatmul.mubr.msk.f32.gmra.mrb[26].mxu0 %vm2267_vm6, %v22416_v43  ;;  %18063 = vmatmul.mubr.msk.f32.gmra.mrb[210].mxu1 %vm2267_vm6, %v22420_v15 }
 0x439   :  { %18545 = vmatprep.mubr.msk.f32.mxu0 %vm2267_vm6, %v22422_v21  ;;  %18065 = vmatprep.mubr.msk.f32.mxu1 %vm2267_vm6, %v22428_v33 }
 0x43c   :  { %18546 = vmatmul.mubr.msk.f32.gmra.mrb[28].mxu0 %vm2267_vm6, %v22432_v32  ;;  %18066 = vmatmul.mubr.msk.f32.gmra.mrb[212].mxu1 %vm2267_vm6, %v22436_v41 }
 0x43d   :  { %18548 = vmatprep.mubr.msk.f32.mxu0 %vm2267_vm6, %v22438_v50  ;;  %18068 = vmatprep.mubr.msk.f32.mxu1 %vm2267_vm6, %v22444_v62 }
 0x440   :  { %18549 = vmatmul.mubr.msk.f32.gmra.mrb[30].mxu0 %vm2267_vm6, %v22448_v56  ;;  %18069 = vmatmul.mubr.msk.f32.gmra.mrb[214].mxu1 %vm2267_vm6, %v22452_v16 }
 0x441   :  { %18555 = vmatprep.mubr.msk.f32.mxu0 %vm2267_vm6, %v5933_v63  ;;  %18071 = vmatprep.mubr.msk.f32.mxu1 %vm2267_vm6, %v22463_v34  ;;  %v22602_v63 = vld [vmem:[#allocation2 + $0x123] sm:$0xff] }
 0x442   :  { %23841 = vst [vmem:[#allocation43_spill] sm:$0xff] %v22602_v63 }
 0x444   :  { %18556 = vmatmul.mubr.msk.f32.vlgmr.msra.gmra.mrb[0].mxu0 %vm2267_vm6, %v5934_v54  ;;  %18072 = vmatmul.mubr.msk.f32.gmra.mrb[216].mxu1 %vm2267_vm6, %v22470_v8  ;;  %v22606_v54 = vld [vmem:[#allocation2 + $0x12b] sm:$0xff] }
 0x445   :  { %18558 = vmatprep.mubr.msk.f32.mxu0 %vm2267_vm6, %v5935_v14  ;;  %19074 = vmatpush3.bf16.msk.msra.mxu0 %vm20981_vm5, %v22299_v7  ;;  %v22540_v7 = vld [vmem:[#allocation2 + $0xd4] sm:$0xff]  ;;  %23842 = vst [vmem:[#allocation44_spill] sm:$0xff] %v22606_v54 }
 0x446   :  { %18074 = vmatprep.mubr.msk.f32.mxu1 %vm2267_vm6, %v22475_v61  ;;  %19077 = vmatprep.subr.msk.bf16.mxu0 %vm20981_vm5, %v22467_v55  ;;  %v22610_v14 = vld [vmem:[#allocation2 + $0x133] sm:$0xff] }
 0x447   :  { %23843 = vst [vmem:[#allocation74_spill] sm:$0xff] %v22610_v14 }
 0x448   :  { %18559 = vmatmul.mubr.msk.f32.gmra.mrb[2].mxu0 %vm2267_vm6, %v5936_v1  ;;  %18075 = vmatmul.mubr.msk.f32.gmra.mrb[218].mxu1 %vm2267_vm6, %v22486_v29  ;;  %v22614_v1 = vld [vmem:[#allocation2 + $0x13b] sm:$0xff] }
 0x449   :  { %18561 = vmatprep.mubr.msk.f32.mxu0 %vm2267_vm6, %v22370_v53  ;;  %18077 = vmatprep.mubr.msk.f32.mxu1 %vm2267_vm6, %v22492_v59  ;;  %23844 = vst [vmem:[#allocation4_spill] sm:$0xff] %v22614_v1 }
 0x44c   :  { %18562 = vmatmul.mubr.msk.f32.gmra.mrb[4].mxu0 %vm2267_vm6, %v22376_v2  ;;  %18078 = vmatmul.mubr.msk.f32.gmra.mrb[220].mxu1 %vm2267_vm6, %v22498_v12 }
 0x44d   :  { %18564 = vmatprep.mubr.msk.f32.mxu0 %vm2267_vm6, %v22382_v48  ;;  %18080 = vmatprep.mubr.msk.f32.mxu1 %vm2267_vm6, %v22504_v6 }
 0x450   :  { %18565 = vmatmul.mubr.msk.f32.gmra.mrb[6].mxu0 %vm2267_vm6, %v22388_v44  ;;  %18081 = vmatmul.mubr.msk.f32.gmra.mrb[222].mxu1 %vm2267_vm6, %v22510_v60 }
 0x451   :  { %18567 = vmatprep.mubr.msk.f32.mxu0 %vm2267_vm6, %v22396_v0  ;;  %18114 = vmatprep.mubr.msk.f32.mxu1 %vm2267_vm6, %v22516_v35 }
 0x454   :  { %18568 = vmatmul.mubr.msk.f32.gmra.mrb[8].mxu0 %vm2267_vm6, %v22404_v30  ;;  %18115 = vmatmul.mubr.msk.f32.vlgmr.msra.gmra.mrb[210].mxu1 %vm2267_vm6, %v22522_v45 }
 0x455   :  { %18570 = vmatprep.mubr.msk.f32.mxu0 %vm2267_vm6, %v22412_v23  ;;  %18117 = vmatprep.mubr.msk.f32.mxu1 %vm2267_vm6, %v22528_v13 }
 0x458   :  { %18571 = vmatmul.mubr.msk.f32.gmra.mrb[10].mxu0 %vm2267_vm6, %v22420_v15  ;;  %18118 = vmatmul.mubr.msk.f32.gmra.mrb[212].mxu1 %vm2267_vm6, %v22534_v38 }
 0x459   :  { %18573 = vmatprep.mubr.msk.f32.mxu0 %vm2267_vm6, %v22428_v33  ;;  %18120 = vmatprep.mubr.msk.f32.mxu1 %vm2267_vm6, %v22540_v7 }
 0x45c   :  { %18574 = vmatmul.mubr.msk.f32.gmra.mrb[12].mxu0 %vm2267_vm6, %v22436_v41  ;;  %18121 = vmatmul.mubr.msk.f32.gmra.mrb[214].mxu1 %vm2267_vm6, %v22546_v40 }
 0x45d   :  { %18576 = vmatprep.mubr.msk.f32.mxu0 %vm2267_vm6, %v22444_v62  ;;  %18123 = vmatprep.mubr.msk.f32.mxu1 %vm2267_vm6, %v22552_v17 }
 0x460   :  { %18577 = vmatmul.mubr.msk.f32.gmra.mrb[14].mxu0 %vm2267_vm6, %v22452_v16  ;;  %18124 = vmatmul.mubr.msk.f32.gmra.mrb[216].mxu1 %vm2267_vm6, %v22558_v58 }
 0x461   :  { %18579 = vmatprep.mubr.msk.f32.mxu0 %vm2267_vm6, %v22463_v34  ;;  %18126 = vmatprep.mubr.msk.f32.mxu1 %vm2267_vm6, %v22564_v52 }
 0x464   :  { %18580 = vmatmul.mubr.msk.f32.gmra.mrb[16].mxu0 %vm2267_vm6, %v22470_v8  ;;  %18127 = vmatmul.mubr.msk.f32.gmra.mrb[218].mxu1 %vm2267_vm6, %v22570_v42 }
 0x465   :  { %18582 = vmatprep.mubr.msk.f32.mxu0 %vm2267_vm6, %v22475_v61  ;;  %18129 = vmatprep.mubr.msk.f32.mxu1 %vm2267_vm6, %v22576_v39 }
 0x468   :  { %18583 = vmatmul.mubr.msk.f32.gmra.mrb[18].mxu0 %vm2267_vm6, %v22486_v29  ;;  %18130 = vmatmul.mubr.msk.f32.gmra.mrb[220].mxu1 %vm2267_vm6, %v22582_v51 }
 0x469   :  { %18585 = vmatprep.mubr.msk.f32.mxu0 %vm2267_vm6, %v22492_v59  ;;  %18132 = vmatprep.mubr.msk.f32.mxu1 %vm2267_vm6, %v22588_v22 }
 0x46c   :  { %18586 = vmatmul.mubr.msk.f32.gmra.mrb[20].mxu0 %vm2267_vm6, %v22498_v12  ;;  %18133 = vmatmul.mubr.msk.f32.gmra.mrb[222].mxu1 %vm2267_vm6, %v22594_v19 }
 0x46d   :  { %18588 = vmatprep.mubr.msk.f32.mxu0 %vm2267_vm6, %v22504_v6  ;;  %v10933_v6 = vld [vmem:[#allocation2 + $0x7c] sm:$0xff] }
 0x470   :  { %18589 = vmatmul.mubr.msk.f32.gmra.mrb[22].mxu0 %vm2267_vm6, %v22510_v60  ;;  %v10931_v60 = vld [vmem:[#allocation2 + $0x6c] sm:$0xff] }
 0x471   :  { %18591 = vmatprep.mubr.msk.f32.mxu0 %vm2267_vm6, %v22602_v63  ;;  %v10930_v63 = vld [vmem:[#allocation2 + $0x64] sm:$0xff] }
 0x474   :  { %18592 = vmatmul.mubr.msk.f32.gmra.mrb[24].mxu0 %vm2267_vm6, %v22606_v54  ;;  %v22626_v54 = vld [vmem:[#allocation2 + $0x153] sm:$0xff] }
 0x475   :  { %18594 = vmatprep.mubr.msk.f32.mxu0 %vm2267_vm6, %v22610_v14  ;;  %23847 = vst [vmem:[#allocation46_spill] sm:$0xff] %v22626_v54  ;;  %v22630_v14 = vld [vmem:[#allocation2 + $0x15b] sm:$0xff] }
 0x476   :  { %23848 = vst [vmem:[#allocation75_spill] sm:$0xff] %v22630_v14 }
 0x478   :  { %18595 = vmatmul.mubr.msk.f32.gmra.mrb[26].mxu0 %vm2267_vm6, %v22614_v1  ;;  %v16029_v1 = vld [vmem:[%s23482_s3 + $0x150] sm:$0xff] }
 0x479   :  { %18597 = vmatprep.mubr.msk.f32.mxu0 %vm2267_vm6, %v22618_v26  ;;  %v16030_v26 = vld [vmem:[%s23482_s3 + $0x158] sm:$0x3] }
 0x47c   :  { %18598 = vmatmul.mubr.msk.f32.gmra.mrb[28].mxu0 %vm2267_vm6, %v22622_v57  ;;  %v19081_v57 = vpack.c.bf16 %v16030_v26, %v16029_v1  ;;  %v22701_v1 = vld [vmem:[#allocation2 + $0x124] sm:$0xff]  ;;  %v22705_v26 = vld [vmem:[#allocation2 + $0x12c] sm:$0xff] }
 0x47d   :  { %18600 = vmatprep.mubr.msk.f32.mxu0 %vm2267_vm6, %v22626_v54  ;;  %v10932_v54 = vld [vmem:[#allocation2 + $0x74] sm:$0xff]  ;;  %23849 = vst [vmem:[#allocation76_spill] sm:$0xff] %v22701_v1  ;;  %23850 = vst [vmem:[#allocation6_spill] sm:$0xff] %v22705_v26 }
 0x480   :  { %18601 = vmatmul.mubr.msk.f32.gmra.mrb[30].mxu0 %vm2267_vm6, %v22630_v14  ;;  %v22649_v14 = vld [vmem:[#allocation2 + $0x84] sm:$0xff] }
 0x481   :  { %18607 = vmatprep.mubr.msk.f32.mxu0 %vm2267_vm6, %v10930_v63  ;;  %v22653_v63 = vld [vmem:[#allocation2 + $0x8c] sm:$0xff] }
 0x484   :  { %18608 = vmatmul.mubr.msk.f32.vlgmr.msra.gmra.mrb[0].mxu0 %vm2267_vm6, %v10931_v60  ;;  %v22657_v60 = vld [vmem:[#allocation2 + $0x94] sm:$0xff] }
 0x485   :  { %18610 = vmatprep.mubr.msk.f32.mxu0 %vm2267_vm6, %v10932_v54  ;;  %19080 = vmatpush3.bf16.msk.msra.mxu0 %vm20981_vm5, %v22467_v55  ;;  %v22661_v55 = vld [vmem:[#allocation2 + $0x9c] sm:$0xff]  ;;  %v22669_v54 = vld [vmem:[#allocation2 + $0xac] sm:$0xff] }
 0x486   :  { %19083 = vmatprep.subr.msk.bf16.mxu0 %vm20981_vm5, %v19081_v57 }
 0x488   :  { %18611 = vmatmul.mubr.msk.f32.gmra.mrb[2].mxu0 %vm2267_vm6, %v10933_v6  ;;  %v22665_v6 = vld [vmem:[#allocation2 + $0xa4] sm:$0xff] }
 0x489   :  { %18613 = vmatprep.mubr.msk.f32.mxu0 %vm2267_vm6, %v22649_v14 }
 0x48c   :  { %18614 = vmatmul.mubr.msk.f32.gmra.mrb[4].mxu0 %vm2267_vm6, %v22653_v63 }
 0x48d   :  { %18616 = vmatprep.mubr.msk.f32.mxu0 %vm2267_vm6, %v22657_v60 }
 0x490   :  { %18617 = vmatmul.mubr.msk.f32.gmra.mrb[6].mxu0 %vm2267_vm6, %v22661_v55 }
 0x491   :  { %18619 = vmatprep.mubr.msk.f32.mxu0 %vm2267_vm6, %v22665_v6 }
 0x494   :  { %18620 = vmatmul.mubr.msk.f32.gmra.mrb[8].mxu0 %vm2267_vm6, %v22669_v54 }
 0x495   :  { %18622 = vmatprep.mubr.msk.f32.mxu0 %vm2267_vm6, %v22516_v35 }
 0x498   :  { %18623 = vmatmul.mubr.msk.f32.gmra.mrb[10].mxu0 %vm2267_vm6, %v22522_v45 }
 0x499   :  { %18625 = vmatprep.mubr.msk.f32.mxu0 %vm2267_vm6, %v22528_v13 }
 0x49c   :  { %18626 = vmatmul.mubr.msk.f32.gmra.mrb[12].mxu0 %vm2267_vm6, %v22534_v38 }
 0x49d   :  { %18628 = vmatprep.mubr.msk.f32.mxu0 %vm2267_vm6, %v22540_v7 }
 0x4a0   :  { %18629 = vmatmul.mubr.msk.f32.gmra.mrb[14].mxu0 %vm2267_vm6, %v22546_v40 }
 0x4a1   :  { %18631 = vmatprep.mubr.msk.f32.mxu0 %vm2267_vm6, %v22552_v17 }
 0x4a4   :  { %18632 = vmatmul.mubr.msk.f32.gmra.mrb[16].mxu0 %vm2267_vm6, %v22558_v58 }
 0x4a5   :  { %18634 = vmatprep.mubr.msk.f32.mxu0 %vm2267_vm6, %v22564_v52  ;;  %v11388_v52 = vld [vmem:[#allocation2 + $0x98] sm:$0xff] }
 0x4a8   :  { %18635 = vmatmul.mubr.msk.f32.gmra.mrb[18].mxu0 %vm2267_vm6, %v22570_v42  ;;  %v11386_v42 = vld [vmem:[#allocation2 + $0x88] sm:$0xff] }
 0x4a9   :  { %18637 = vmatprep.mubr.msk.f32.mxu0 %vm2267_vm6, %v22576_v39  ;;  %v22709_v39 = vld [vmem:[#allocation2 + $0x134] sm:$0xff] }
 0x4aa   :  { %23851 = vst [vmem:[#allocation47_spill] sm:$0xff] %v22709_v39 }
 0x4ac   :  { %18638 = vmatmul.mubr.msk.f32.gmra.mrb[20].mxu0 %vm2267_vm6, %v22582_v51  ;;  %v22713_v51 = vld [vmem:[#allocation2 + $0x13c] sm:$0xff] }
 0x4ad   :  { %18640 = vmatprep.mubr.msk.f32.mxu0 %vm2267_vm6, %v22588_v22  ;;  %23852 = vst [vmem:[#allocation7_spill] sm:$0xff] %v22713_v51  ;;  %v11385_v22 = vld [vmem:[#allocation2 + $0x80] sm:$0xff] }
 0x4b0   :  { %18641 = vmatmul.mubr.msk.f32.gmra.mrb[22].mxu0 %vm2267_vm6, %v22594_v19  ;;  %v22717_v19 = vld [vmem:[#allocation2 + $0x144] sm:$0xff] }
 0x4b1   :  { %18643 = vmatprep.mubr.msk.f32.mxu0 %vm2267_vm6, %v22701_v1  ;;  %23853 = vst [vmem:[#allocation48_spill] sm:$0xff] %v22717_v19  ;;  %v22721_v1 = vld [vmem:[#allocation2 + $0x14c] sm:$0xff] }
 0x4b2   :  { %23854 = vst [vmem:[#allocation77_spill] sm:$0xff] %v22721_v1 }
 0x4b4   :  { %18644 = vmatmul.mubr.msk.f32.gmra.mrb[24].mxu0 %vm2267_vm6, %v22705_v26  ;;  %v22725_v26 = vld [vmem:[#allocation2 + $0x154] sm:$0xff] }
 0x4b5   :  { %18646 = vmatprep.mubr.msk.f32.mxu0 %vm2267_vm6, %v22709_v39  ;;  %23855 = vst [vmem:[#allocation78_spill] sm:$0xff] %v22725_v26  ;;  %v22729_v39 = vld [vmem:[#allocation2 + $0x15c] sm:$0xff] }
 0x4b6   :  { %23856 = vst [vmem:[#allocation8_spill] sm:$0xff] %v22729_v39 }
 0x4b8   :  { %18647 = vmatmul.mubr.msk.f32.gmra.mrb[26].mxu0 %vm2267_vm6, %v22713_v51  ;;  %v16064_v51 = vld [vmem:[%s23482_s3 + $0x160] sm:$0xff] }
 0x4b9   :  { %18649 = vmatprep.mubr.msk.f32.mxu0 %vm2267_vm6, %v22717_v19  ;;  %v16065_v19 = vld [vmem:[%s23482_s3 + $0x168] sm:$0x3] }
 0x4bc   :  { %18650 = vmatmul.mubr.msk.f32.gmra.mrb[28].mxu0 %vm2267_vm6, %v22721_v1  ;;  %v22740_v1 = vpack.c.bf16 %v16065_v19, %v16064_v51  ;;  %v11390_v51 = vld [vmem:[#allocation2 + $0xa8] sm:$0xff]  ;;  %v11393_v19 = vld [vmem:[#allocation2 + $0xc0] sm:$0xff] }
 0x4bd   :  { %18652 = vmatprep.mubr.msk.f32.mxu0 %vm2267_vm6, %v22725_v26  ;;  %v11387_v26 = vld [vmem:[#allocation2 + $0x90] sm:$0xff] }
 0x4c0   :  { %18653 = vmatmul.mubr.msk.f32.gmra.mrb[30].mxu0 %vm2267_vm6, %v22729_v39  ;;  %v11389_v39 = vld [vmem:[#allocation2 + $0xa0] sm:$0xff] }
 0x4c1   :  { %18659 = vmatprep.mubr.msk.f32.mxu0 %vm2267_vm6, %v11385_v22  ;;  %v11392_v22 = vld [vmem:[#allocation2 + $0xb8] sm:$0xff] }
 0x4c4   :  { %18660 = vmatmul.mubr.msk.f32.vlgmr.msra.gmra.mrb[0].mxu0 %vm2267_vm6, %v11386_v42  ;;  %v11391_v42 = vld [vmem:[#allocation2 + $0xb0] sm:$0xff] }
 0x4c5   :  { %18662 = vmatprep.mubr.msk.f32.mxu0 %vm2267_vm6, %v11387_v26  ;;  %19086 = vmatpush3.bf16.msk.msra.mxu0 %vm20981_vm5, %v19081_v57  ;;  %v11394_v57 = vld [vmem:[#allocation2 + $0xc8] sm:$0xff]  ;;  %v11395_v26 = vld [vmem:[#allocation2 + $0xd0] sm:$0xff] }
 0x4c6   :  { %19089 = vmatprep.subr.msk.bf16.mxu0 %vm20981_vm5, %v22740_v1 }
 0x4c8   :  { %18663 = vmatmul.mubr.msk.f32.gmra.mrb[2].mxu0 %vm2267_vm6, %v11388_v52  ;;  %v11396_v52 = vld [vmem:[#allocation2 + $0xd8] sm:$0xff] }
 0x4c9   :  { %18665 = vmatprep.mubr.msk.f32.mxu0 %vm2267_vm6, %v11389_v39  ;;  %v11397_v39 = vld [vmem:[#allocation2 + $0xe0] sm:$0xff] }
 0x4cc   :  { %18666 = vmatmul.mubr.msk.f32.gmra.mrb[4].mxu0 %vm2267_vm6, %v11390_v51  ;;  %v11398_v51 = vld [vmem:[#allocation2 + $0xe8] sm:$0xff] }
 0x4cd   :  { %18668 = vmatprep.mubr.msk.f32.mxu0 %vm2267_vm6, %v11391_v42  ;;  %v11399_v42 = vld [vmem:[#allocation2 + $0xf0] sm:$0xff] }
 0x4d0   :  { %18669 = vmatmul.mubr.msk.f32.gmra.mrb[6].mxu0 %vm2267_vm6, %v11392_v22  ;;  %v11400_v22 = vld [vmem:[#allocation2 + $0xf8] sm:$0xff] }
 0x4d1   :  { %18671 = vmatprep.mubr.msk.f32.mxu0 %vm2267_vm6, %v11393_v19  ;;  %v11401_v19 = vld [vmem:[#allocation2 + $0x100] sm:$0xff] }
 0x4d4   :  { %18672 = vmatmul.mubr.msk.f32.gmra.mrb[8].mxu0 %vm2267_vm6, %v11394_v57  ;;  %v11402_v57 = vld [vmem:[#allocation2 + $0x108] sm:$0xff] }
 0x4d5   :  { %18674 = vmatprep.mubr.msk.f32.mxu0 %vm2267_vm6, %v11395_v26  ;;  %v11403_v26 = vld [vmem:[#allocation2 + $0x110] sm:$0xff] }
 0x4d8   :  { %18675 = vmatmul.mubr.msk.f32.gmra.mrb[10].mxu0 %vm2267_vm6, %v11396_v52  ;;  %v11404_v52 = vld [vmem:[#allocation2 + $0x118] sm:$0xff] }
 0x4d9   :  { %18677 = vmatprep.mubr.msk.f32.mxu0 %vm2267_vm6, %v11397_v39 }
 0x4dc   :  { %18678 = vmatmul.mubr.msk.f32.gmra.mrb[12].mxu0 %vm2267_vm6, %v11398_v51  ;;  %v11405_v51 = vld [vmem:[#allocation2 + $0x120] sm:$0xff] }
 0x4dd   :  { %18680 = vmatprep.mubr.msk.f32.mxu0 %vm2267_vm6, %v11399_v42  ;;  %v11406_v42 = vld [vmem:[#allocation2 + $0x128] sm:$0xff] }
 0x4e0   :  { %18681 = vmatmul.mubr.msk.f32.gmra.mrb[14].mxu0 %vm2267_vm6, %v11400_v22 }
 0x4e1   :  { %18683 = vmatprep.mubr.msk.f32.mxu0 %vm2267_vm6, %v11401_v19  ;;  %v11407_v19 = vld [vmem:[#allocation2 + $0x130] sm:$0xff] }
 0x4e4   :  { %18684 = vmatmul.mubr.msk.f32.gmra.mrb[16].mxu0 %vm2267_vm6, %v11402_v57 }
 0x4e5   :  { %18686 = vmatprep.mubr.msk.f32.mxu0 %vm2267_vm6, %v11403_v26  ;;  %v11408_v26 = vld [vmem:[#allocation2 + $0x138] sm:$0xff] }
 0x4e7   :  { %v22765_v39 = vpop.f32.mrb[192].mxu1 }
 0x4e8   :  { %23857 = vst [vmem:[#allocation49_spill] sm:$0xff] %v22765_v39  ;;  %18687 = vmatmul.mubr.msk.f32.gmra.mrb[18].mxu0 %vm2267_vm6, %v11404_v52  ;;  %v22768_v58 = vpop.f32.mrb[193].mxu1  ;;  %v11409_v52 = vld [vmem:[#allocation2 + $0x140] sm:$0xff] }
 0x4e9   :  { %23858 = vst [vmem:[#allocation9_spill] sm:$0xff] %v22768_v58  ;;  %18689 = vmatprep.mubr.msk.f32.mxu0 %vm2267_vm6, %v11405_v51  ;;  %v11410_v51 = vld [vmem:[#allocation2 + $0x148] sm:$0xff] }
 0x4eb   :  { %v22771_v22 = vpop.f32.mrb[194].mxu1 }
 0x4ec   :  { %23859 = vst [vmem:[#allocation50_spill] sm:$0xff] %v22771_v22  ;;  %18690 = vmatmul.mubr.msk.f32.gmra.mrb[20].mxu0 %vm2267_vm6, %v11406_v42  ;;  %v22774_v57 = vpop.f32.mrb[195].mxu1  ;;  %v11411_v42 = vld [vmem:[#allocation2 + $0x150] sm:$0xff] }
 0x4ed   :  { %23860 = vst [vmem:[#allocation79_spill] sm:$0xff] %v22774_v57  ;;  %18692 = vmatprep.mubr.msk.f32.mxu0 %vm2267_vm6, %v11407_v19  ;;  %v11412_v19 = vld [vmem:[#allocation2 + $0x158] sm:$0xff] }
 0x4ef   :  { %v22777_v17 = vpop.f32.mrb[196].mxu1 }
 0x4f0   :  { %23861 = vst [vmem:[#allocation80_spill] sm:$0xff] %v22777_v17  ;;  %18693 = vmatmul.mubr.msk.f32.gmra.mrb[22].mxu0 %vm2267_vm6, %v11408_v26  ;;  %v22780_v39 = vpop.f32.mrb[197].mxu1  ;;  %v11413_v26 = vld [vmem:[#allocation2 + $0x160] sm:$0xff] }
 0x4f1   :  { %23862 = vst [vmem:[#allocation10_spill] sm:$0xff] %v22780_v39  ;;  %18695 = vmatprep.mubr.msk.f32.mxu0 %vm2267_vm6, %v11409_v52  ;;  %v11414_v52 = vld [vmem:[#allocation2 + $0x168] sm:$0xff] }
 0x4f3   :  { %v22783_v58 = vpop.f32.mrb[198].mxu1 }
 0x4f4   :  { %23863 = vst [vmem:[#allocation51_spill] sm:$0xff] %v22783_v58  ;;  %18696 = vmatmul.mubr.msk.f32.gmra.mrb[24].mxu0 %vm2267_vm6, %v11410_v51  ;;  %v22786_v22 = vpop.f32.mrb[199].mxu1  ;;  %v11415_v51 = vld [vmem:[#allocation2 + $0x170] sm:$0xff] }
 0x4f5   :  { %23864 = vst [vmem:[#allocation11_spill] sm:$0xff] %v22786_v22  ;;  %18698 = vmatprep.mubr.msk.f32.mxu0 %vm2267_vm6, %v11411_v42  ;;  %v11416_v42 = vld [vmem:[#allocation2 + $0x178] sm:$0xff] }
 0x4f6   :  { %v11842_v22 = vld [vmem:[#allocation2 + $0x91] sm:$0xff] }
 0x4f7   :  { %v22789_v57 = vpop.f32.mrb[200].mxu1 }
 0x4f8   :  { %23865 = vst [vmem:[#allocation52_spill] sm:$0xff] %v22789_v57  ;;  %18699 = vmatmul.mubr.msk.f32.gmra.mrb[26].mxu0 %vm2267_vm6, %v11412_v19  ;;  %v22792_v17 = vpop.f32.mrb[201].mxu1  ;;  %v16099_v19 = vld [vmem:[%s23482_s3 + $0x170] sm:$0xff] }
 0x4f9   :  { %23866 = vst [vmem:[#allocation81_spill] sm:$0xff] %v22792_v17  ;;  %18701 = vmatprep.mubr.msk.f32.mxu0 %vm2267_vm6, %v11413_v26  ;;  %v16100_v17 = vld [vmem:[%s23482_s3 + $0x178] sm:$0x3] }
 0x4fb   :  { %v22795_v39 = vpop.f32.mrb[202].mxu1 }
 0x4fc   :  { %23867 = vst [vmem:[#allocation82_spill] sm:$0xff] %v22795_v39  ;;  %18702 = vmatmul.mubr.msk.f32.gmra.mrb[28].mxu0 %vm2267_vm6, %v11414_v52  ;;  %v22798_v58 = vpop.f32.mrb[203].mxu1  ;;  %v11840_v39 = vld [vmem:[#allocation2 + $0x81] sm:$0xff] }
 0x4fd   :  { %23868 = vst [vmem:[#allocation12_spill] sm:$0xff] %v22798_v58  ;;  %18704 = vmatprep.mubr.msk.f32.mxu0 %vm2267_vm6, %v11415_v51  ;;  %v22813_v58 = vpack.c.bf16 %v16100_v17, %v16099_v19  ;;  %v11841_v51 = vld [vmem:[#allocation2 + $0x89] sm:$0xff]  ;;  %v11843_v17 = vld [vmem:[#allocation2 + $0x99] sm:$0xff] }
 0x4ff   :  { %v22807_v26 = vpop.f32.mrb[204].mxu1 }
 0x500   :  { %18705 = vmatmul.mubr.msk.f32.gmra.mrb[30].mxu0 %vm2267_vm6, %v11416_v42  ;;  %v22810_v52 = vpop.f32.mrb[205].mxu1  ;;  %v11844_v42 = vld [vmem:[#allocation2 + $0xa1] sm:$0xff] }
 0x501   :  { %18711 = vmatprep.mubr.msk.f32.mxu0 %vm2267_vm6, %v11840_v39 }
 0x503   :  { %v22815_v57 = vpop.f32.mrb[206].mxu1 }
 0x504   :  { %18712 = vmatmul.mubr.msk.f32.vlgmr.msra.gmra.mrb[0].mxu0 %vm2267_vm6, %v11841_v51  ;;  %v22818_v40 = vpop.f32.mrb[207].mxu1  ;;  %v11845_v51 = vld [vmem:[#allocation2 + $0xa9] sm:$0xff] }
 0x505   :  { %23869 = vst [vmem:[#allocation53_spill] sm:$0xff] %v22818_v40  ;;  %18714 = vmatprep.mubr.msk.f32.mxu0 %vm2267_vm6, %v11842_v22  ;;  %19092 = vmatpush3.bf16.msk.msra.mxu0 %vm20981_vm5, %v22740_v1  ;;  %v11846_v22 = vld [vmem:[#allocation2 + $0xb1] sm:$0xff]  ;;  %v11847_v1 = vld [vmem:[#allocation2 + $0xb9] sm:$0xff]  ;;  %v11848_v40 = vld [vmem:[#allocation2 + $0xc1] sm:$0xff] }
 0x506   :  { %19095 = vmatprep.subr.msk.bf16.mxu0 %vm20981_vm5, %v22813_v58 }
 0x507   :  { %v22827_v39 = vpop.f32.mrb[208].mxu1 }
 0x508   :  { %23870 = vst [vmem:[#allocation13_spill] sm:$0xff] %v22827_v39  ;;  %18715 = vmatmul.mubr.msk.f32.gmra.mrb[2].mxu0 %vm2267_vm6, %v11843_v17  ;;  %v22830_v19 = vpop.f32.mrb[209].mxu1  ;;  %v11849_v39 = vld [vmem:[#allocation2 + $0xc9] sm:$0xff]  ;;  %v11850_v17 = vld [vmem:[#allocation2 + $0xd1] sm:$0xff] }
 0x509   :  { %23871 = vst [vmem:[#allocation54_spill] sm:$0xff] %v22830_v19  ;;  %18717 = vmatprep.mubr.msk.f32.mxu0 %vm2267_vm6, %v11844_v42  ;;  %v11851_v19 = vld [vmem:[#allocation2 + $0xd9] sm:$0xff]  ;;  %v11852_v42 = vld [vmem:[#allocation2 + $0xe1] sm:$0xff] }
 0x50c   :  { %18718 = vmatmul.mubr.msk.f32.gmra.mrb[4].mxu0 %vm2267_vm6, %v11845_v51  ;;  %v11853_v51 = vld [vmem:[#allocation2 + $0xe9] sm:$0xff] }
 0x50d   :  { %18720 = vmatprep.mubr.msk.f32.mxu0 %vm2267_vm6, %v11846_v22  ;;  %v11854_v22 = vld [vmem:[#allocation2 + $0xf1] sm:$0xff] }
 0x510   :  { %18721 = vmatmul.mubr.msk.f32.gmra.mrb[6].mxu0 %vm2267_vm6, %v11847_v1  ;;  %v11855_v1 = vld [vmem:[#allocation2 + $0xf9] sm:$0xff] }
 0x511   :  { %18723 = vmatprep.mubr.msk.f32.mxu0 %vm2267_vm6, %v11848_v40  ;;  %v11856_v40 = vld [vmem:[#allocation2 + $0x101] sm:$0xff] }
 0x514   :  { %18724 = vmatmul.mubr.msk.f32.gmra.mrb[8].mxu0 %vm2267_vm6, %v11849_v39  ;;  %v11857_v39 = vld [vmem:[#allocation2 + $0x109] sm:$0xff] }
 0x515   :  { %18726 = vmatprep.mubr.msk.f32.mxu0 %vm2267_vm6, %v11850_v17  ;;  %v11858_v17 = vld [vmem:[#allocation2 + $0x111] sm:$0xff] }
 0x518   :  { %18727 = vmatmul.mubr.msk.f32.gmra.mrb[10].mxu0 %vm2267_vm6, %v11851_v19  ;;  %v11859_v19 = vld [vmem:[#allocation2 + $0x119] sm:$0xff] }
 0x519   :  { %18729 = vmatprep.mubr.msk.f32.mxu0 %vm2267_vm6, %v11852_v42 }
 0x51c   :  { %18730 = vmatmul.mubr.msk.f32.gmra.mrb[12].mxu0 %vm2267_vm6, %v11853_v51 }
 0x51d   :  { %18732 = vmatprep.mubr.msk.f32.mxu0 %vm2267_vm6, %v11854_v22 }
 0x520   :  { %18733 = vmatmul.mubr.msk.f32.gmra.mrb[14].mxu0 %vm2267_vm6, %v11855_v1 }
 0x521   :  { %18735 = vmatprep.mubr.msk.f32.mxu0 %vm2267_vm6, %v11856_v40 }
 0x524   :  { %18736 = vmatmul.mubr.msk.f32.gmra.mrb[16].mxu0 %vm2267_vm6, %v11857_v39 }
 0x525   :  { %18738 = vmatprep.mubr.msk.f32.mxu0 %vm2267_vm6, %v11858_v17 }
 0x527   :  { %v22847_v42 = vpop.f32.mrb[210].mxu1 }
 0x528   :  { %18739 = vmatmul.mubr.msk.f32.gmra.mrb[18].mxu0 %vm2267_vm6, %v11859_v19  ;;  %v22850_v51 = vpop.f32.mrb[211].mxu1 }
 0x529   :  { %18741 = vmatprep.mubr.msk.f32.mxu0 %vm2267_vm6, %v22250_v9 }
 0x52b   :  { %v22854_v22 = vpop.f32.mrb[212].mxu1 }
 0x52c   :  { %18742 = vmatmul.mubr.msk.f32.gmra.mrb[20].mxu0 %vm2267_vm6, %v22256_v24  ;;  %v22858_v1 = vpop.f32.mrb[213].mxu1 }
 0x52d   :  { %18744 = vmatprep.mubr.msk.f32.mxu0 %vm2267_vm6, %v22260_v25 }
 0x52f   :  { %v22862_v40 = vpop.f32.mrb[214].mxu1 }
 0x530   :  { %18745 = vmatmul.mubr.msk.f32.gmra.mrb[22].mxu0 %vm2267_vm6, %v22266_v3  ;;  %v22866_v39 = vpop.f32.mrb[215].mxu1  ;;  %v11868_v3 = vld [vmem:[#allocation2 + $0x161] sm:$0xff] }
 0x531   :  { %18747 = vmatprep.mubr.msk.f32.mxu0 %vm2267_vm6, %v22270_v27  ;;  %v11869_v27 = vld [vmem:[#allocation2 + $0x169] sm:$0xff] }
 0x533   :  { %v22870_v9 = vpop.f32.mrb[216].mxu1 }
 0x534   :  { %18748 = vmatmul.mubr.msk.f32.gmra.mrb[24].mxu0 %vm2267_vm6, %v22276_v20  ;;  %v22874_v24 = vpop.f32.mrb[217].mxu1  ;;  %v11870_v20 = vld [vmem:[#allocation2 + $0x171] sm:$0xff] }
 0x535   :  { %23872 = vst [vmem:[#allocation83_spill] sm:$0xff] %v22874_v24  ;;  %18750 = vmatprep.mubr.msk.f32.mxu0 %vm2267_vm6, %v22280_v4  ;;  %v11871_v4 = vld [vmem:[#allocation2 + $0x179] sm:$0xff] }
 0x537   :  { %v22878_v25 = vpop.f32.mrb[218].mxu1 }
 0x538   :  { %23873 = vst [vmem:[#allocation84_spill] sm:$0xff] %v22878_v25  ;;  %18751 = vmatmul.mubr.msk.f32.gmra.mrb[26].mxu0 %vm2267_vm6, %v22286_v5  ;;  %v22882_v17 = vpop.f32.mrb[219].mxu1  ;;  %v16134_v5 = vld [vmem:[%s23482_s3 + $0x180] sm:$0xff]  ;;  %v12297_v25 = vld [vmem:[#allocation2 + $0x92] sm:$0xff] }
 0x539   :  { %23874 = vst [vmem:[#allocation14_spill] sm:$0xff] %v22882_v17  ;;  %18753 = vmatprep.mubr.msk.f32.mxu0 %vm2267_vm6, %v11868_v3  ;;  %v16135_v17 = vld [vmem:[%s23482_s3 + $0x188] sm:$0x3] }
 0x53b   :  { %v22885_v19 = vpop.f32.mrb[220].mxu1 }
 0x53c   :  { %23875 = vst [vmem:[#allocation55_spill] sm:$0xff] %v22885_v19  ;;  %18754 = vmatmul.mubr.msk.f32.gmra.mrb[28].mxu0 %vm2267_vm6, %v11869_v27  ;;  %v22888_v24 = vpop.f32.mrb[221].mxu1  ;;  %v12295_v19 = vld [vmem:[#allocation2 + $0x82] sm:$0xff] }
 0x53d   :  { %23876 = vst [vmem:[#allocation15_spill] sm:$0xff] %v22888_v24  ;;  %18756 = vmatprep.mubr.msk.f32.mxu0 %vm2267_vm6, %v11870_v20  ;;  %v19099_v24 = vpack.c.bf16 %v16135_v17, %v16134_v5  ;;  %v12296_v20 = vld [vmem:[#allocation2 + $0x8a] sm:$0xff]  ;;  %v12303_v5 = vld [vmem:[#allocation2 + $0xc2] sm:$0xff] }
 0x53e   :  { %v12300_v17 = vld [vmem:[#allocation2 + $0xaa] sm:$0xff] }
 0x53f   :  { %v22897_v3 = vpop.f32.mrb[222].mxu1 }
 0x540   :  { %18757 = vmatmul.mubr.msk.f32.gmra.mrb[30].mxu0 %vm2267_vm6, %v11871_v4  ;;  %v22900_v27 = vpop.f32.mrb[223].mxu1  ;;  %v12298_v4 = vld [vmem:[#allocation2 + $0x9a] sm:$0xff] }
 0x541   :  { %23877 = vst [vmem:[#allocation56_spill] sm:$0xff] %v22900_v27  ;;  %18763 = vmatprep.mubr.msk.f32.mxu0 %vm2267_vm6, %v12295_v19  ;;  %v12299_v27 = vld [vmem:[#allocation2 + $0xa2] sm:$0xff]  ;;  %v12301_v19 = vld [vmem:[#allocation2 + $0xb2] sm:$0xff] }
 0x544   :  { %18764 = vmatmul.mubr.msk.f32.vlgmr.msra.gmra.mrb[0].mxu0 %vm2267_vm6, %v12296_v20  ;;  %v12305_v20 = vld [vmem:[#allocation2 + $0xd2] sm:$0xff] }
 0x545   :  { %18766 = vmatprep.mubr.msk.f32.mxu0 %vm2267_vm6, %v12297_v25  ;;  %19098 = vmatpush3.bf16.msk.msra.mxu0 %vm20981_vm5, %v22813_v58  ;;  %v12302_v25 = vld [vmem:[#allocation2 + $0xba] sm:$0xff]  ;;  %v12304_v58 = vld [vmem:[#allocation2 + $0xca] sm:$0xff] }
 0x546   :  { %19101 = vmatprep.subr.msk.bf16.mxu0 %vm20981_vm5, %v19099_v24 }
 0x548   :  { %18767 = vmatmul.mubr.msk.f32.gmra.mrb[2].mxu0 %vm2267_vm6, %v12298_v4  ;;  %v12306_v4 = vld [vmem:[#allocation2 + $0xda] sm:$0xff] }
 0x549   :  { %18769 = vmatprep.mubr.msk.f32.mxu0 %vm2267_vm6, %v12299_v27  ;;  %v12307_v27 = vld [vmem:[#allocation2 + $0xe2] sm:$0xff] }
 0x54c   :  { %18770 = vmatmul.mubr.msk.f32.gmra.mrb[4].mxu0 %vm2267_vm6, %v12300_v17  ;;  %v12308_v17 = vld [vmem:[#allocation2 + $0xea] sm:$0xff] }
 0x54d   :  { %18772 = vmatprep.mubr.msk.f32.mxu0 %vm2267_vm6, %v12301_v19 }
 0x550   :  { %18773 = vmatmul.mubr.msk.f32.gmra.mrb[6].mxu0 %vm2267_vm6, %v12302_v25 }
 0x551   :  { %18775 = vmatprep.mubr.msk.f32.mxu0 %vm2267_vm6, %v12303_v5  ;;  %v23905_v5 = vld [vmem:[#allocation49_spill] sm:$0xff] }
 0x554   :  { %18776 = vmatmul.mubr.msk.f32.gmra.mrb[8].mxu0 %vm2267_vm6, %v12304_v58 }
 0x555   :  { %18778 = vmatprep.mubr.msk.f32.mxu0 %vm2267_vm6, %v12305_v20 }
 0x558   :  { %18779 = vmatmul.mubr.msk.f32.gmra.mrb[10].mxu0 %vm2267_vm6, %v12306_v4  ;;  %v23906_v4 = vld [vmem:[#allocation9_spill] sm:$0xff] }
 0x559   :  { %18781 = vmatprep.mubr.msk.f32.mxu0 %vm2267_vm6, %v12307_v27 }
 0x55c   :  { %18782 = vmatmul.mubr.msk.f32.gmra.mrb[12].mxu0 %vm2267_vm6, %v12308_v17 }
 0x55d   :  { %18784 = vmatprep.mubr.msk.f32.mxu0 %vm2267_vm6, %v22304_v47  ;;  %v12323_v47 = vld [vmem:[#allocation2 + $0x162] sm:$0xff] }
 0x560   :  { %18785 = vmatmul.mubr.msk.f32.gmra.mrb[14].mxu0 %vm2267_vm6, %v22315_v11  ;;  %v12324_v11 = vld [vmem:[#allocation2 + $0x16a] sm:$0xff] }
 0x561   :  { %18787 = vmatprep.mubr.msk.f32.mxu0 %vm2267_vm6, %v22320_v10  ;;  %v12325_v10 = vld [vmem:[#allocation2 + $0x172] sm:$0xff] }
 0x564   :  { %18788 = vmatmul.mubr.msk.f32.gmra.mrb[16].mxu0 %vm2267_vm6, %v22325_v31  ;;  %v12326_v31 = vld [vmem:[#allocation2 + $0x17a] sm:$0xff] }
 0x565   :  { %18790 = vmatprep.mubr.msk.f32.mxu0 %vm2267_vm6, %v22330_v36  ;;  %v23879_v36 = vld [vmem:[#allocation33_spill] sm:$0xff] }
 0x568   :  { %18791 = vmatmul.mubr.msk.f32.gmra.mrb[18].mxu0 %vm2267_vm6, %v22335_v28  ;;  %v23880_v28 = vld [vmem:[#allocation43_spill] sm:$0xff] }
 0x569   :  { %18793 = vmatprep.mubr.msk.f32.mxu0 %vm2267_vm6, %v22390_v46  ;;  %v23885_v46 = vld [vmem:[#allocation5_spill] sm:$0xff] }
 0x56c   :  { %18794 = vmatmul.mubr.msk.f32.gmra.mrb[20].mxu0 %vm2267_vm6, %v22400_v49  ;;  %v23887_v49 = vld [vmem:[#allocation75_spill] sm:$0xff] }
 0x56d   :  { %18796 = vmatprep.mubr.msk.f32.mxu0 %vm2267_vm6, %v22406_v18  ;;  %v12779_v18 = vld [vmem:[#allocation2 + $0x16b] sm:$0xff] }
 0x570   :  { %18797 = vmatmul.mubr.msk.f32.gmra.mrb[22].mxu0 %vm2267_vm6, %v22416_v43  ;;  %v12781_v43 = vld [vmem:[#allocation2 + $0x17b] sm:$0xff] }
 0x571   :  { %18799 = vmatprep.mubr.msk.f32.mxu0 %vm2267_vm6, %v22422_v21  ;;  %v23889_v21 = vld [vmem:[#allocation35_spill] sm:$0xff] }
 0x574   :  { %18800 = vmatmul.mubr.msk.f32.gmra.mrb[24].mxu0 %vm2267_vm6, %v22432_v32  ;;  %v23891_v32 = vld [vmem:[#allocation37_spill] sm:$0xff] }
 0x575   :  { %18802 = vmatprep.mubr.msk.f32.mxu0 %vm2267_vm6, %v22438_v50  ;;  %v23893_v50 = vld [vmem:[#allocation39_spill] sm:$0xff] }
 0x578   :  { %18803 = vmatmul.mubr.msk.f32.gmra.mrb[26].mxu0 %vm2267_vm6, %v22448_v56  ;;  %v23895_v56 = vld [vmem:[#allocation41_spill] sm:$0xff] }
 0x579   :  { %18805 = vmatprep.mubr.msk.f32.mxu0 %vm2267_vm6, %v12323_v47 }
 0x57c   :  { %18806 = vmatmul.mubr.msk.f32.gmra.mrb[28].mxu0 %vm2267_vm6, %v12324_v11 }
 0x57d   :  { %18808 = vmatprep.mubr.msk.f32.mxu0 %vm2267_vm6, %v12325_v10  ;;  %v23907_v10 = vld [vmem:[#allocation50_spill] sm:$0xff] }
 0x580   :  { %18809 = vmatmul.mubr.msk.f32.gmra.mrb[30].mxu0 %vm2267_vm6, %v12326_v31 }
 0x581   :  { %18815 = vmatprep.mubr.msk.f32.mxu0 %vm2267_vm6, %v22370_v53  ;;  %v23881_v53 = vld [vmem:[#allocation44_spill] sm:$0xff] }
 0x584   :  { %18816 = vmatmul.mubr.msk.f32.vlgmr.msra.gmra.mrb[0].mxu0 %vm2267_vm6, %v22376_v2  ;;  %v23882_v2 = vld [vmem:[#allocation74_spill] sm:$0xff] }
 0x585   :  { %18818 = vmatprep.mubr.msk.f32.mxu0 %vm2267_vm6, %v22382_v48  ;;  %19104 = vmatpush3.bf16.msk.msra.mxu0 %vm20981_vm5, %v19099_v24  ;;  %v23883_v48 = vld [vmem:[#allocation4_spill] sm:$0xff] }
 0x588   :  { %18819 = vmatmul.mubr.msk.f32.gmra.mrb[2].mxu0 %vm2267_vm6, %v22388_v44  ;;  %v23884_v44 = vld [vmem:[#allocation45_spill] sm:$0xff] }
 0x589   :  { %18821 = vmatprep.mubr.msk.f32.mxu0 %vm2267_vm6, %v22396_v0  ;;  %v23886_v0 = vld [vmem:[#allocation46_spill] sm:$0xff] }
 0x58c   :  { %18822 = vmatmul.mubr.msk.f32.gmra.mrb[4].mxu0 %vm2267_vm6, %v22404_v30  ;;  %v12778_v30 = vld [vmem:[#allocation2 + $0x163] sm:$0xff] }
 0x58d   :  { %18824 = vmatprep.mubr.msk.f32.mxu0 %vm2267_vm6, %v22412_v23  ;;  %v12780_v23 = vld [vmem:[#allocation2 + $0x173] sm:$0xff] }
 0x590   :  { %18825 = vmatmul.mubr.msk.f32.gmra.mrb[6].mxu0 %vm2267_vm6, %v22420_v15  ;;  %v23888_v15 = vld [vmem:[#allocation34_spill] sm:$0xff] }
 0x591   :  { %18827 = vmatprep.mubr.msk.f32.mxu0 %vm2267_vm6, %v22428_v33  ;;  %v23890_v33 = vld [vmem:[#allocation36_spill] sm:$0xff] }
 0x594   :  { %18828 = vmatmul.mubr.msk.f32.gmra.mrb[8].mxu0 %vm2267_vm6, %v22436_v41  ;;  %v23892_v41 = vld [vmem:[#allocation38_spill] sm:$0xff] }
 0x595   :  { %18830 = vmatprep.mubr.msk.f32.mxu0 %vm2267_vm6, %v22444_v62  ;;  %v23894_v62 = vld [vmem:[#allocation40_spill] sm:$0xff] }
 0x598   :  { %18831 = vmatmul.mubr.msk.f32.gmra.mrb[10].mxu0 %vm2267_vm6, %v22452_v16  ;;  %v23896_v16 = vld [vmem:[#allocation42_spill] sm:$0xff] }
 0x599   :  { %18833 = vmatprep.mubr.msk.f32.mxu0 %vm2267_vm6, %v22463_v34  ;;  %v23897_v34 = vld [vmem:[#allocation76_spill] sm:$0xff] }
 0x59c   :  { %18834 = vmatmul.mubr.msk.f32.gmra.mrb[12].mxu0 %vm2267_vm6, %v22470_v8  ;;  %v23898_v8 = vld [vmem:[#allocation6_spill] sm:$0xff] }
 0x59d   :  { %18836 = vmatprep.mubr.msk.f32.mxu0 %vm2267_vm6, %v22475_v61  ;;  %v23899_v61 = vld [vmem:[#allocation47_spill] sm:$0xff] }
 0x5a0   :  { %18837 = vmatmul.mubr.msk.f32.gmra.mrb[14].mxu0 %vm2267_vm6, %v22486_v29  ;;  %v23900_v29 = vld [vmem:[#allocation7_spill] sm:$0xff] }
 0x5a1   :  { %18839 = vmatprep.mubr.msk.f32.mxu0 %vm2267_vm6, %v22492_v59  ;;  %v23901_v59 = vld [vmem:[#allocation48_spill] sm:$0xff] }
 0x5a4   :  { %18840 = vmatmul.mubr.msk.f32.gmra.mrb[16].mxu0 %vm2267_vm6, %v22498_v12  ;;  %v23902_v12 = vld [vmem:[#allocation77_spill] sm:$0xff] }
 0x5a5   :  { %18842 = vmatprep.mubr.msk.f32.mxu0 %vm2267_vm6, %v23878_v37 }
 0x5a8   :  { %18843 = vmatmul.mubr.msk.f32.gmra.mrb[18].mxu0 %vm2267_vm6, %v23879_v36  ;;  %v23908_v36 = vld [vmem:[#allocation79_spill] sm:$0xff] }
 0x5a9   :  { %18845 = vmatprep.mubr.msk.f32.mxu0 %vm2267_vm6, %v23880_v28 }
 0x5ac   :  { %18846 = vmatmul.mubr.msk.f32.gmra.mrb[20].mxu0 %vm2267_vm6, %v23881_v53 }
 0x5ad   :  { %18848 = vmatprep.mubr.msk.f32.mxu0 %vm2267_vm6, %v23882_v2 }
 0x5b0   :  { %18849 = vmatmul.mubr.msk.f32.gmra.mrb[22].mxu0 %vm2267_vm6, %v23883_v48 }
 0x5b1   :  { %18851 = vmatprep.mubr.msk.f32.mxu0 %vm2267_vm6, %v23884_v44  ;;  %v23909_v44 = vld [vmem:[#allocation80_spill] sm:$0xff] }
 0x5b4   :  { %18852 = vmatmul.mubr.msk.f32.gmra.mrb[24].mxu0 %vm2267_vm6, %v23885_v46 }
 0x5b5   :  { %18854 = vmatprep.mubr.msk.f32.mxu0 %vm2267_vm6, %v23886_v0 }
 0x5b8   :  { %18855 = vmatmul.mubr.msk.f32.gmra.mrb[26].mxu0 %vm2267_vm6, %v23887_v49  ;;  %v23910_v49 = vld [vmem:[#allocation10_spill] sm:$0xff] }
 0x5b9   :  { %18857 = vmatprep.mubr.msk.f32.mxu0 %vm2267_vm6, %v12778_v30 }
 0x5bc   :  { %18858 = vmatmul.mubr.msk.f32.gmra.mrb[28].mxu0 %vm2267_vm6, %v12779_v18 }
 0x5bd   :  { %18860 = vmatprep.mubr.msk.f32.mxu0 %vm2267_vm6, %v12780_v23 }
 0x5c0   :  { %18861 = vmatmul.mubr.msk.f32.gmra.mrb[30].mxu0 %vm2267_vm6, %v12781_v43 }
 0x5c1   :  { %18867 = vmatprep.mubr.msk.f32.mxu0 %vm2267_vm6, %v22649_v14  ;;  %v13236_v14 = vld [vmem:[#allocation2 + $0x17c] sm:$0xff] }
 0x5c4   :  { %18868 = vmatmul.mubr.msk.f32.vlgmr.msra.gmra.mrb[0].mxu0 %vm2267_vm6, %v22653_v63  ;;  %v19880_v63 = vmov 1983009808  }
 0x5c5   :  { %18870 = vmatprep.mubr.msk.f32.mxu0 %vm2267_vm6, %v22657_v60  ;;  %v13646_v60 = vunpack.c.l.s4 %v19880_v63 }
 0x5c8   :  { %18871 = vmatmul.mubr.msk.f32.gmra.mrb[2].mxu0 %vm2267_vm6, %v22661_v55  ;;  %v13648_v55 = vlaneseq }
 0x5c9   :  { %18873 = vmatprep.mubr.msk.f32.mxu0 %vm2267_vm6, %v22665_v6  ;;  %v16185_v6 = vld [vmem:[%s23484_s4] ss:$0 sm:$0xff] }
 0x5ca   :  { %v13649_v24 = vshrl.u32 %v13648_v55, 7  ;;  %v13798_v25 = vcombine.high %v16185_v6, %v16185_v6 }
 0x5cc   :  { %18874 = vmatmul.mubr.msk.f32.gmra.mrb[4].mxu0 %vm2267_vm6, %v22669_v54  ;;  %v13647_v54 = vunpack.c.0.s8 %v13646_v60 }
 0x5cd   :  { %18876 = vmatprep.mubr.msk.f32.mxu0 %vm2267_vm6, %v22516_v35  ;;  %v23903_v35 = vld [vmem:[#allocation78_spill] sm:$0xff] }
 0x5ce   :  { %v23080_v17 = vsub.s32 %v13647_v54, %v13649_v24 }
 0x5d0   :  { %18877 = vmatmul.mubr.msk.f32.gmra.mrb[6].mxu0 %vm2267_vm6, %v22522_v45  ;;  %v23904_v45 = vld [vmem:[#allocation8_spill] sm:$0xff]  ;;  %v23083_v11 = vrot.slane %v13798_v25, %v23080_v17  ;;  %v23088_v53 = vrot.slane %v16185_v6, %v23080_v17 }
 0x5d1   :  { %18879 = vmatprep.mubr.msk.f32.mxu0 %vm2267_vm6, %v22528_v13  ;;  %v13233_v13 = vld [vmem:[#allocation2 + $0x164] sm:$0xff] }
 0x5d2   :  { %v23092_v48 = vcombine.high %v23083_v11, %v23083_v11  ;;  %v23098_v18 = vcombine.high %v23088_v53, %v23088_v53  ;;  %v23101_v43 = vrot.slane %v23083_v11, 1 }
 0x5d4   :  { %18880 = vmatmul.mubr.msk.f32.gmra.mrb[8].mxu0 %vm2267_vm6, %v22534_v38  ;;  %v13234_v38 = vld [vmem:[#allocation2 + $0x16c] sm:$0xff] }
 0x5d5   :  { %18882 = vmatprep.mubr.msk.f32.mxu0 %vm2267_vm6, %v22540_v7  ;;  %v13235_v7 = vld [vmem:[#allocation2 + $0x174] sm:$0xff] }
 0x5d8   :  { %18883 = vmatmul.mubr.msk.f32.gmra.mrb[10].mxu0 %vm2267_vm6, %v23888_v15  ;;  %v23104_v15 = vrot.slane %v23092_v48, 1 }
 0x5d9   :  { %18885 = vmatprep.mubr.msk.f32.mxu0 %vm2267_vm6, %v23889_v21  ;;  %v23106_v21 = vsub.s32 0, %v13649_v24 }
 0x5dc   :  { %18886 = vmatmul.mubr.msk.f32.gmra.mrb[12].mxu0 %vm2267_vm6, %v23890_v33 }
 0x5dd   :  { %18888 = vmatprep.mubr.msk.f32.mxu0 %vm2267_vm6, %v23891_v32 }
 0x5e0   :  { %18889 = vmatmul.mubr.msk.f32.gmra.mrb[14].mxu0 %vm2267_vm6, %v23892_v41 }
 0x5e1   :  { %18891 = vmatprep.mubr.msk.f32.mxu0 %vm2267_vm6, %v23893_v50 }
 0x5e4   :  { %18892 = vmatmul.mubr.msk.f32.gmra.mrb[16].mxu0 %vm2267_vm6, %v23894_v62  ;;  %v23110_v62 = vrot.slane %v23088_v53, 1 }
 0x5e5   :  { %18894 = vmatprep.mubr.msk.f32.mxu0 %vm2267_vm6, %v23895_v56  ;;  %v23911_v56 = vld [vmem:[#allocation51_spill] sm:$0xff] }
 0x5e8   :  { %18895 = vmatmul.mubr.msk.f32.gmra.mrb[18].mxu0 %vm2267_vm6, %v23896_v16 }
 0x5e9   :  { %18897 = vmatprep.mubr.msk.f32.mxu0 %vm2267_vm6, %v23897_v34 }
 0x5ec   :  { %18898 = vmatmul.mubr.msk.f32.gmra.mrb[20].mxu0 %vm2267_vm6, %v23898_v8 }
 0x5ed   :  { %18900 = vmatprep.mubr.msk.f32.mxu0 %vm2267_vm6, %v23899_v61 }
 0x5f0   :  { %18901 = vmatmul.mubr.msk.f32.gmra.mrb[22].mxu0 %vm2267_vm6, %v23900_v29  ;;  %v23115_v29 = vrot.slane %v23098_v18, 1 }
 0x5f1   :  { %18903 = vmatprep.mubr.msk.f32.mxu0 %vm2267_vm6, %v23901_v59  ;;  %v23912_v59 = vld [vmem:[#allocation11_spill] sm:$0xff] }
 0x5f4   :  { %18904 = vmatmul.mubr.msk.f32.gmra.mrb[24].mxu0 %vm2267_vm6, %v23902_v12 }
 0x5f5   :  { %18906 = vmatprep.mubr.msk.f32.mxu0 %vm2267_vm6, %v23903_v35 }
 0x5f8   :  { %18907 = vmatmul.mubr.msk.f32.gmra.mrb[26].mxu0 %vm2267_vm6, %v23904_v45 }
 0x5f9   :  { %18909 = vmatprep.mubr.msk.f32.mxu0 %vm2267_vm6, %v13233_v13 }
 0x5fc   :  { %18910 = vmatmul.mubr.msk.f32.gmra.mrb[28].mxu0 %vm2267_vm6, %v13234_v38 }
 0x5fd   :  { %18912 = vmatprep.mubr.msk.f32.mxu0 %vm2267_vm6, %v13235_v7 }
 0x600   :  { %18913 = vmatmul.mubr.msk.f32.gmra.mrb[30].mxu0 %vm2267_vm6, %v13236_v14 }
 0x697   :  { %v18869_v19 = vpop.f32.mrb[0].mxu0 }
 0x698   :  { %v19107_v58 = vadd.f32 %v18869_v19, %v23905_v5  ;;  %v13405_v20 = vpop.f32.mrb[1].mxu0 }
 0x699   :  { %v19108_v27 = vadd.f32 %v13405_v20, %v23906_v4 }
 0x69b   :  { %v18872_v47 = vpop.f32.mrb[2].mxu0 }
 0x69c   :  { %v19109_v31 = vadd.f32 %v18872_v47, %v23907_v10  ;;  %v13415_v37 = vpop.f32.mrb[3].mxu0 }
 0x69d   :  { %v19110_v28 = vadd.f32 %v13415_v37, %v23908_v36 }
 0x69f   :  { %v18875_v2 = vpop.f32.mrb[4].mxu0 }
 0x6a0   :  { %v19111_v46 = vadd.f32 %v18875_v2, %v23909_v44  ;;  %v13425_v0 = vpop.f32.mrb[5].mxu0 }
 0x6a1   :  { %v19112_v30 = vadd.f32 %v13425_v0, %v23910_v49 }
 0x6a2   :  { %v13637_v23 = vmax.f32 %v19107_v58, %v19111_v46 }
 0x6a3   :  { %v13636_v33 = vmax.f32 %v19108_v27, %v19112_v30  ;;  %v18878_v32 = vpop.f32.mrb[6].mxu0 }
 0x6a4   :  { %v13661_v41 = vcombine.high %v13637_v23, %v13637_v23  ;;  %v13668_v50 = vrot.slane %v13637_v23, %v23080_v17  ;;  %v19113_v16 = vadd.f32 %v18878_v32, %v23911_v56  ;;  %v13435_v34 = vpop.f32.mrb[7].mxu0 }
 0x6a5   :  { %v13644_v8 = vcombine.high %v13636_v33, %v13636_v33  ;;  %v13651_v61 = vrot.slane %v13636_v33, %v23080_v17  ;;  %v19114_v12 = vadd.f32 %v13435_v34, %v23912_v59 }
 0x6a6   :  { %v13675_v35 = vrot.slane %v13661_v41, %v23080_v17  ;;  %v13676_v45 = vcombine.high %v13668_v50, %v13668_v50  ;;  %v16173_v13 = vrot.slane %v13668_v50, 9  ;;  %v13639_v38 = vmax.f32 %v19109_v31, %v19113_v16 }
 0x6a7   :  { %v13658_v7 = vrot.slane %v13644_v8, %v23080_v17  ;;  %v13659_v14 = vcombine.high %v13651_v61, %v13651_v61  ;;  %v16169_v63 = vrot.slane %v13651_v61, 9  ;;  %v23120_v60 = vmax.f32 %v19110_v28, %v19114_v12  ;;  %v23122_v55 = vpop.f32.mrb[8].mxu0 }
 0x6a8   :  { %v13677_v6 = vcombine.high %v13675_v35, %v13675_v35  ;;  %v16174_v54 = vrot.slane %v13676_v45, 9  ;;  %v16175_v24 = vrot.slane %v13675_v35, 9  ;;  %v13780_v19 = vmax.f32 %v13668_v50, %v16173_v13  ;;  %v23124_v25 = vpop.f32.mrb[9].mxu0 }
 0x6a9   :  { %v13660_v5 = vcombine.high %v13658_v7, %v13658_v7  ;;  %v16170_v58 = vrot.slane %v13659_v14, 9  ;;  %v16171_v20 = vrot.slane %v13658_v7, 9  ;;  %v13776_v4 = vmax.f32 %v13651_v61, %v16169_v63 }
 0x6aa   :  { %v16176_v27 = vrot.slane %v13677_v6, 9  ;;  %v13781_v47 = vmax.f32 %v13676_v45, %v16174_v54  ;;  %v13782_v10 = vmax.f32 %v13675_v35, %v16175_v24  ;;  %v13831_v31 = vadd.f32 %v23083_v11, %v13780_v19 }
 0x6ab   :  { %v16172_v37 = vrot.slane %v13660_v5, 9  ;;  %v13777_v36 = vmax.f32 %v13659_v14, %v16170_v58  ;;  %v13778_v28 = vmax.f32 %v13658_v7, %v16171_v20  ;;  %v13827_v2 = vadd.f32 %v23088_v53, %v13776_v4  ;;  %v23128_v44 = vpop.f32.mrb[10].mxu0 }
 0x6ac   :  { %v13783_v46 = vmax.f32 %v13677_v6, %v16176_v27  ;;  %v13832_v0 = vadd.f32 %v23101_v43, %v13781_v47  ;;  %v13833_v49 = vadd.f32 %v23092_v48, %v13782_v10  ;;  %v13847_v30 = vmax.f32 %v13831_v31, 0.0  ;;  %v23132_v23 = vpop.f32.mrb[11].mxu0 }
 0x6ad   :  { %v13779_v33 = vmax.f32 %v13660_v5, %v16172_v37  ;;  %v13828_v32 = vadd.f32 %v23110_v62, %v13777_v36  ;;  %v13829_v41 = vadd.f32 %v23098_v18, %v13778_v28  ;;  %v13843_v50 = vmax.f32 %v13827_v2, 0.0 }
 0x6ae   :  { %v13834_v56 = vadd.f32 %v23104_v15, %v13783_v46  ;;  %v13848_v16 = vmax.f32 %v13832_v0, 0.0  ;;  %v13849_v34 = vmax.f32 %v13833_v49, 0.0  ;;  %v13894_v8 = vrot.slane %v13847_v30, %v23106_v21 }
 0x6af   :  { %v13830_v61 = vadd.f32 %v23115_v29, %v13779_v33  ;;  %v13844_v59 = vmax.f32 %v13828_v32, 0.0  ;;  %v13845_v12 = vmax.f32 %v13829_v41, 0.0  ;;  %v13878_v35 = vrot.slane %v13843_v50, %v23106_v21  ;;  %v23140_v45 = vpop.f32.mrb[12].mxu0 }
 0x6b0   :  { %v13850_v13 = vmax.f32 %v13834_v56, 0.0  ;;  %v13898_v7 = vrot.slane %v13848_v16, %v23106_v21  ;;  %v13902_v14 = vrot.slane %v13849_v34, %v23106_v21  ;;  %v13695_v63 = vcombine.high %v13639_v38, %v13639_v38  ;;  %v23144_v6 = vpop.f32.mrb[13].mxu0 }
 0x6b1   :  { %v13846_v54 = vmax.f32 %v13830_v61, 0.0  ;;  %v13882_v24 = vrot.slane %v13844_v59, %v23106_v21  ;;  %v13886_v19 = vrot.slane %v13845_v12, %v23106_v21  ;;  %v13702_v5 = vrot.slane %v13639_v38, %v23080_v17 }
 0x6b2   :  { %v13906_v58 = vrot.slane %v13850_v13, %v23106_v21  ;;  %v13709_v20 = vrot.slane %v13695_v63, %v23080_v17  ;;  %v13678_v4 = vcombine.high %v23120_v60, %v23120_v60  ;;  %v13685_v27 = vrot.slane %v23120_v60, %v23080_v17 }
 0x6b3   :  { %v13890_v47 = vrot.slane %v13846_v54, %v23106_v21  ;;  %v13940_v10 = vsel %vm13939_vm7, %v13882_v24, %v13878_v35  ;;  %v13710_v31 = vcombine.high %v13702_v5, %v13702_v5  ;;  %v16181_v37 = vrot.slane %v13702_v5, 9  ;;  %v23157_v36 = vpop.f32.mrb[14].mxu0 }
 0x6b4   :  { %v13942_v38 = vsel %vm13941_vm8, %v13886_v19, %v13940_v10  ;;  %v13711_v28 = vcombine.high %v13709_v20, %v13709_v20  ;;  %v16183_v2 = vrot.slane %v13709_v20, 9  ;;  %v13692_v46 = vrot.slane %v13678_v4, %v23080_v17  ;;  %v13475_v0 = vpop.f32.mrb[15].mxu0 }
 0x6b5   :  { %v13944_v49 = vsel %vm13943_vm9, %v13890_v47, %v13942_v38  ;;  %v16182_v30 = vrot.slane %v13710_v31, 9  ;;  %v13788_v33 = vmax.f32 %v13702_v5, %v16181_v37  ;;  %v13693_v60 = vcombine.high %v13685_v27, %v13685_v27 }
 0x6b6   :  { %v13946_v32 = vsel %vm13945_vm10, %v13894_v8, %v13944_v49  ;;  %v16184_v41 = vrot.slane %v13711_v28, 9  ;;  %v13790_v50 = vmax.f32 %v13709_v20, %v16183_v2  ;;  %v13694_v56 = vcombine.high %v13692_v46, %v13692_v46 }
 0x6b7   :  { %v13948_v16 = vsel %vm13947_vm11, %v13898_v7, %v13946_v32  ;;  %v13789_v34 = vmax.f32 %v13710_v31, %v16182_v30  ;;  %v13839_v61 = vadd.f32 %v23083_v11, %v13788_v33  ;;  %v16177_v59 = vrot.slane %v13685_v27, 9  ;;  %v18893_v12 = vpop.f32.mrb[16].mxu0 }
 0x6b8   :  { %v13950_v35 = vsel %vm13949_vm12, %v13902_v14, %v13948_v16  ;;  %v13791_v13 = vmax.f32 %v13711_v28, %v16184_v41  ;;  %v13841_v63 = vadd.f32 %v23092_v48, %v13790_v50  ;;  %v16178_v54 = vrot.slane %v13693_v60, 9  ;;  %v13485_v24 = vpop.f32.mrb[17].mxu0  ;;  %v23913_v50 = vld [vmem:[#allocation52_spill] sm:$0xff] }
 0x6b9   :  { %v13952_v19 = vsel %vm13951_vm13, %v13906_v58, %v13950_v35  ;;  %v13840_v8 = vadd.f32 %v23101_v43, %v13789_v34  ;;  %v13855_v5 = vmax.f32 %v13839_v61, 0.0  ;;  %v16179_v20 = vrot.slane %v13692_v46, 9  ;;  %v23914_v61 = vld [vmem:[#allocation81_spill] sm:$0xff] }
 0x6ba   :  { %13962 = vst [vmem:[%s23485_s5] sm:$0xff] %v13952_v19  ;;  %v13842_v7 = vadd.f32 %v23104_v15, %v13791_v13  ;;  %v13857_v4 = vmax.f32 %v13841_v63, 0.0  ;;  %v16180_v47 = vrot.slane %v13694_v56, 9  ;;  %v13784_v14 = vmax.f32 %v13685_v27, %v16177_v59  ;;  %v23915_v13 = vld [vmem:[#allocation82_spill] sm:$0xff] }
 0x6bb   :  { %v13856_v10 = vmax.f32 %v13840_v8, 0.0  ;;  %v13926_v31 = vrot.slane %v13855_v5, %v23106_v21  ;;  %v13785_v37 = vmax.f32 %v13693_v60, %v16178_v54  ;;  %v13786_v38 = vmax.f32 %v13692_v46, %v16179_v20  ;;  %v23174_v28 = vpop.f32.mrb[18].mxu0  ;;  %v23916_v54 = vld [vmem:[#allocation12_spill] sm:$0xff] }
 0x6bc   :  { %v13858_v58 = vmax.f32 %v13842_v7, 0.0  ;;  %v13934_v2 = vrot.slane %v13857_v4, %v23106_v21  ;;  %v13787_v49 = vmax.f32 %v13694_v56, %v16180_v47  ;;  %v13835_v30 = vadd.f32 %v23088_v53, %v13784_v14  ;;  %v23178_v33 = vpop.f32.mrb[19].mxu0  ;;  %v23917_v47 = vld [vmem:[#allocation53_spill] sm:$0xff] }
 0x6bd   :  { %v13930_v32 = vrot.slane %v13856_v10, %v23106_v21  ;;  %v13836_v41 = vadd.f32 %v23110_v62, %v13785_v37  ;;  %v13837_v27 = vadd.f32 %v23098_v18, %v13786_v38  ;;  %v19115_v60 = vadd.f32 %v23122_v55, %v23913_v50 }
 0x6be   :  { %v13938_v46 = vrot.slane %v13858_v58, %v23106_v21  ;;  %v13838_v16 = vadd.f32 %v23115_v29, %v13787_v49  ;;  %v13851_v34 = vmax.f32 %v13835_v30, 0.0  ;;  %v19116_v56 = vadd.f32 %v23124_v25, %v23914_v61  ;;  %v23918_v58 = vld [vmem:[#allocation13_spill] sm:$0xff]  ;;  %v23919_v49 = vld [vmem:[#allocation54_spill] sm:$0xff] }
 0x6bf   :  { %v13852_v59 = vmax.f32 %v13836_v41, 0.0  ;;  %v13853_v35 = vmax.f32 %v13837_v27, 0.0  ;;  %v19117_v63 = vadd.f32 %v23128_v44, %v23915_v13  ;;  %v19118_v19 = vadd.f32 %v23132_v23, %v23916_v54  ;;  %v23193_v8 = vpop.f32.mrb[20].mxu0 }
 0x6c0   :  { %v13854_v5 = vmax.f32 %v13838_v16, 0.0  ;;  %v13910_v55 = vrot.slane %v13851_v34, %v23106_v21  ;;  %v19119_v20 = vadd.f32 %v23140_v45, %v22807_v26  ;;  %v19120_v7 = vadd.f32 %v23144_v6, %v22810_v52  ;;  %v23200_v25 = vpop.f32.mrb[21].mxu0 }
 0x6c1   :  { %v13914_v4 = vrot.slane %v13852_v59, %v23106_v21  ;;  %v13918_v44 = vrot.slane %v13853_v35, %v23106_v21  ;;  %v19121_v23 = vadd.f32 %v23157_v36, %v22815_v57  ;;  %v19122_v14 = vadd.f32 %v13475_v0, %v23917_v47 }
 0x6c2   :  { %v13922_v10 = vrot.slane %v13854_v5, %v23106_v21  ;;  %v13973_v37 = vmax.f32 %v19115_v60, %v19119_v20  ;;  %v13972_v38 = vmax.f32 %v19116_v56, %v19120_v7  ;;  %v23209_v26 = vadd.f32 %v18893_v12, %v23918_v58 }
 0x6c3   :  { %v13953_v52 = vsel %vm13939_vm7, %v13914_v4, %v13910_v55  ;;  %v23212_v45 = vmax.f32 %v19117_v63, %v19121_v23  ;;  %v23214_v6 = vmax.f32 %v19118_v19, %v19122_v14  ;;  %v23217_v30 = vadd.f32 %v13485_v24, %v23919_v49  ;;  %v23219_v41 = vpop.f32.mrb[22].mxu0 }
 0x6c4   :  { %v13954_v57 = vsel %vm13941_vm8, %v13918_v44, %v13953_v52  ;;  %v13997_v36 = vcombine.high %v13973_v37, %v13973_v37  ;;  %v14004_v0 = vrot.slane %v13973_v37, %v23080_v17  ;;  %v13980_v27 = vcombine.high %v13972_v38, %v13972_v38  ;;  %v23223_v50 = vpop.f32.mrb[23].mxu0 }
 0x6c5   :  { %v13955_v12 = vsel %vm13943_vm9, %v13922_v10, %v13954_v57  ;;  %v13987_v60 = vrot.slane %v13972_v38, %v23080_v17  ;;  %v14031_v16 = vcombine.high %v23212_v45, %v23212_v45  ;;  %v23231_v24 = vrot.slane %v23212_v45, %v23080_v17 }
 0x6c6   :  { %v13956_v34 = vsel %vm13945_vm10, %v13926_v31, %v13955_v12  ;;  %v14011_v61 = vrot.slane %v13997_v36, %v23080_v17  ;;  %v14012_v56 = vcombine.high %v14004_v0, %v14004_v0  ;;  %v16190_v59 = vrot.slane %v14004_v0, 9 }
 0x6c7   :  { %v13957_v35 = vsel %vm13947_vm11, %v13930_v32, %v13956_v34  ;;  %v13994_v13 = vrot.slane %v13980_v27, %v23080_v17  ;;  %v13995_v63 = vcombine.high %v13987_v60, %v13987_v60  ;;  %v16186_v54 = vrot.slane %v13987_v60, 9  ;;  %v23237_v19 = vpop.f32.mrb[24].mxu0 }
 0x6c8   :  { %v13958_v5 = vsel %vm13949_vm12, %v13934_v2, %v13957_v35  ;;  %v14013_v55 = vcombine.high %v14011_v61, %v14011_v61  ;;  %v16191_v20 = vrot.slane %v14012_v56, 9  ;;  %v16192_v7 = vrot.slane %v14011_v61, 9  ;;  %v23240_v4 = vpop.f32.mrb[25].mxu0 }
 0x6c9   :  { %v13959_v31 = vsel %vm13951_vm13, %v13938_v46, %v13958_v5  ;;  %v14116_v44 = vmax.f32 %v14004_v0, %v16190_v59  ;;  %v13996_v23 = vcombine.high %v13994_v13, %v13994_v13  ;;  %v16187_v47 = vrot.slane %v13995_v63, 9 }
 0x6ca   :  { %13963 = vst [vmem:[%s23485_s5 + $0x8] sm:$0xff] %v13959_v31  ;;  %v16193_v32 = vrot.slane %v14013_v55, 9  ;;  %v14117_v14 = vmax.f32 %v14012_v56, %v16191_v20  ;;  %v14118_v10 = vmax.f32 %v14011_v61, %v16192_v7  ;;  %v16188_v37 = vrot.slane %v13994_v13, 9 }
 0x6cb   :  { %v14167_v2 = vadd.f32 %v14116_v44, %v23083_v11  ;;  %v16189_v38 = vrot.slane %v13996_v23, 9  ;;  %v14112_v58 = vmax.f32 %v13987_v60, %v16186_v54  ;;  %v14113_v52 = vmax.f32 %v13995_v63, %v16187_v47  ;;  %v23247_v45 = vpop.f32.mrb[26].mxu0 }
 0x6cc   :  { %v14119_v49 = vmax.f32 %v14013_v55, %v16193_v32  ;;  %v14168_v46 = vadd.f32 %v14117_v14, %v23101_v43  ;;  %v14169_v57 = vadd.f32 %v14118_v10, %v23092_v48  ;;  %v14114_v36 = vmax.f32 %v13994_v13, %v16188_v37  ;;  %v23251_v0 = vpop.f32.mrb[27].mxu0 }
 0x6cd   :  { %v14183_v27 = vmax.f32 %v14167_v2, 0.0  ;;  %v14115_v12 = vmax.f32 %v13996_v23, %v16189_v38  ;;  %v14163_v34 = vadd.f32 %v14112_v58, %v23088_v53  ;;  %v14164_v61 = vadd.f32 %v14113_v52, %v23110_v62 }
 0x6ce   :  { %v14170_v56 = vadd.f32 %v14119_v49, %v23104_v15  ;;  %v14184_v60 = vmax.f32 %v14168_v46, 0.0  ;;  %v14185_v59 = vmax.f32 %v14169_v57, 0.0  ;;  %v14165_v35 = vadd.f32 %v14114_v36, %v23098_v18 }
 0x6cf   :  { %v14230_v63 = vrot.slane %v14183_v27, %v23106_v21  ;;  %v14166_v54 = vadd.f32 %v14115_v12, %v23115_v29  ;;  %v14179_v5 = vmax.f32 %v14163_v34, 0.0  ;;  %v14180_v13 = vmax.f32 %v14164_v61, 0.0  ;;  %v23259_v55 = vpop.f32.mrb[28].mxu0 }
 0x6d0   :  { %v14186_v20 = vmax.f32 %v14170_v56, 0.0  ;;  %v14234_v7 = vrot.slane %v14184_v60, %v23106_v21  ;;  %v14238_v31 = vrot.slane %v14185_v59, %v23106_v21  ;;  %v14181_v44 = vmax.f32 %v14165_v35, 0.0  ;;  %v23263_v23 = vpop.f32.mrb[29].mxu0 }
 0x6d1   :  { %v14182_v47 = vmax.f32 %v14166_v54, 0.0  ;;  %v14214_v32 = vrot.slane %v14179_v5, %v23106_v21  ;;  %v14218_v14 = vrot.slane %v14180_v13, %v23106_v21  ;;  %v14045_v10 = vrot.slane %v14031_v16, %v23080_v17 }
 0x6d2   :  { %v14242_v37 = vrot.slane %v14186_v20, %v23106_v21  ;;  %v14222_v2 = vrot.slane %v14181_v44, %v23106_v21  ;;  %v14046_v38 = vcombine.high %v23231_v24, %v23231_v24  ;;  %v16198_v58 = vrot.slane %v23231_v24, 9 }
 0x6d3   :  { %v14226_v52 = vrot.slane %v14182_v47, %v23106_v21  ;;  %v14275_v49 = vsel %vm13939_vm7, %v14218_v14, %v14214_v32  ;;  %v14047_v46 = vcombine.high %v14045_v10, %v14045_v10  ;;  %v16200_v57 = vrot.slane %v14045_v10, 9  ;;  %v23275_v36 = vpop.f32.mrb[30].mxu0 }
 0x6d4   :  { %v14276_v27 = vsel %vm13941_vm8, %v14222_v2, %v14275_v49  ;;  %v16199_v16 = vrot.slane %v14046_v38, 9  ;;  %v14124_v12 = vmax.f32 %v23231_v24, %v16198_v58  ;;  %v14014_v34 = vcombine.high %v23214_v6, %v23214_v6  ;;  %v23281_v61 = vpop.f32.mrb[31].mxu0 }
 0x6d5   :  { %v14277_v56 = vsel %vm13943_vm9, %v14226_v52, %v14276_v27  ;;  %v16201_v60 = vrot.slane %v14047_v46, 9  ;;  %v14126_v59 = vmax.f32 %v14045_v10, %v16200_v57  ;;  %v14021_v35 = vrot.slane %v23214_v6, %v23080_v17 }
 0x6d6   :  { %v14278_v54 = vsel %vm13945_vm10, %v14230_v63, %v14277_v56  ;;  %v14125_v5 = vmax.f32 %v14046_v38, %v16199_v16  ;;  %v14175_v13 = vadd.f32 %v14124_v12, %v23083_v11  ;;  %v14028_v20 = vrot.slane %v14014_v34, %v23080_v17 }
 0x6d7   :  { %v14279_v24 = vsel %vm13947_vm11, %v14234_v7, %v14278_v54  ;;  %v14127_v44 = vmax.f32 %v14047_v46, %v16201_v60  ;;  %v14177_v47 = vadd.f32 %v14126_v59, %v23092_v48  ;;  %v14029_v32 = vcombine.high %v14021_v35, %v14021_v35 }
 0x6d8   :  { %v14280_v14 = vsel %vm13949_vm12, %v14238_v31, %v14279_v24  ;;  %v14176_v10 = vadd.f32 %v14125_v5, %v23101_v43  ;;  %v14191_v2 = vmax.f32 %v14175_v13, 0.0  ;;  %v14030_v58 = vcombine.high %v14028_v20, %v14028_v20 }
 0x6d9   :  { %v14281_v6 = vsel %vm13951_vm13, %v14242_v37, %v14280_v14  ;;  %v14178_v63 = vadd.f32 %v14127_v44, %v23104_v15  ;;  %v14193_v38 = vmax.f32 %v14177_v47, 0.0  ;;  %v16194_v52 = vrot.slane %v14021_v35, 9 }
 0x6da   :  { %14291 = vst [vmem:[%s23485_s5 + $0x10] sm:$0xff] %v14281_v6  ;;  %v14192_v7 = vmax.f32 %v14176_v10, 0.0  ;;  %v14262_v49 = vrot.slane %v14191_v2, %v23106_v21  ;;  %v16195_v46 = vrot.slane %v14029_v32, 9  ;;  %v16196_v57 = vrot.slane %v14028_v20, 9 }
 0x6db   :  { %v14194_v31 = vmax.f32 %v14178_v63, 0.0  ;;  %v14270_v27 = vrot.slane %v14193_v38, %v23106_v21  ;;  %v16197_v16 = vrot.slane %v14030_v58, 9  ;;  %v14120_v12 = vmax.f32 %v14021_v35, %v16194_v52 }
 0x6dc   :  { %v14266_v37 = vrot.slane %v14192_v7, %v23106_v21  ;;  %v14121_v34 = vmax.f32 %v14029_v32, %v16195_v46  ;;  %v14122_v56 = vmax.f32 %v14028_v20, %v16196_v57  ;;  %v19125_v60 = vadd.f32 %v23174_v28, %v22847_v42 }
 0x6dd   :  { %v14274_v59 = vrot.slane %v14194_v31, %v23106_v21  ;;  %v14123_v54 = vmax.f32 %v14030_v58, %v16197_v16  ;;  %v14171_v5 = vadd.f32 %v14120_v12, %v23088_v53  ;;  %v19126_v13 = vadd.f32 %v23178_v33, %v22850_v51 }
 0x6de   :  { %v14172_v24 = vadd.f32 %v14121_v34, %v23110_v62  ;;  %v14173_v44 = vadd.f32 %v14122_v56, %v23098_v18  ;;  %v19127_v35 = vadd.f32 %v23193_v8, %v22854_v22  ;;  %v19128_v20 = vadd.f32 %v23200_v25, %v22858_v1 }
 0x6df   :  { %v14174_v42 = vadd.f32 %v14123_v54, %v23115_v29  ;;  %v14187_v28 = vmax.f32 %v14171_v5, 0.0  ;;  %v19129_v47 = vadd.f32 %v23219_v41, %v22862_v40  ;;  %v19130_v32 = vadd.f32 %v23223_v50, %v22866_v39 }
 0x6e0   :  { %v14188_v51 = vmax.f32 %v14172_v24, 0.0  ;;  %v14189_v33 = vmax.f32 %v14173_v44, 0.0  ;;  %v14302_v14 = vmax.f32 %v23209_v26, %v19127_v35  ;;  %v14301_v10 = vmax.f32 %v23217_v30, %v19128_v20 }
 0x6e1   :  { %v14190_v2 = vmax.f32 %v14174_v42, 0.0  ;;  %v14246_v22 = vrot.slane %v14187_v28, %v23106_v21  ;;  %v14304_v8 = vmax.f32 %v19125_v60, %v19129_v47  ;;  %v23321_v1 = vmax.f32 %v19126_v13, %v19130_v32 }
 0x6e2   :  { %v14250_v25 = vrot.slane %v14188_v51, %v23106_v21  ;;  %v14254_v58 = vrot.slane %v14189_v33, %v23106_v21  ;;  %v14326_v40 = vcombine.high %v14302_v14, %v14302_v14  ;;  %v14333_v41 = vrot.slane %v14302_v14, %v23080_v17 }
 0x6e3   :  { %v14258_v39 = vrot.slane %v14190_v2, %v23106_v21  ;;  %v14309_v50 = vcombine.high %v14301_v10, %v14301_v10  ;;  %v14316_v26 = vrot.slane %v14301_v10, %v23080_v17  ;;  %v14360_v6 = vcombine.high %v14304_v8, %v14304_v8 }
 0x6e4   :  { %v14282_v30 = vsel %vm13939_vm7, %v14250_v25, %v14246_v22  ;;  %v14340_v63 = vrot.slane %v14326_v40, %v23080_v17  ;;  %v14341_v38 = vcombine.high %v14333_v41, %v14333_v41  ;;  %v16207_v52 = vrot.slane %v14333_v41, 9 }
 0x6e5   :  { %v14283_v7 = vsel %vm13941_vm8, %v14254_v58, %v14282_v30  ;;  %v14323_v46 = vrot.slane %v14309_v50, %v23080_v17  ;;  %v14324_v57 = vcombine.high %v14316_v26, %v14316_v26  ;;  %v16203_v31 = vrot.slane %v14316_v26, 9 }
 0x6e6   :  { %v14284_v16 = vsel %vm13943_vm9, %v14258_v39, %v14283_v7  ;;  %v14342_v12 = vcombine.high %v14340_v63, %v14340_v63  ;;  %v16208_v34 = vrot.slane %v14341_v38, 9  ;;  %v16209_v56 = vrot.slane %v14340_v63, 9 }
 0x6e7   :  { %v14285_v60 = vsel %vm13945_vm10, %v14262_v49, %v14284_v16  ;;  %v14445_v54 = vmax.f32 %v14333_v41, %v16207_v52  ;;  %v14325_v5 = vcombine.high %v14323_v46, %v14323_v46  ;;  %v16204_v13 = vrot.slane %v14324_v57, 9 }
 0x6e8   :  { %v14286_v24 = vsel %vm13947_vm11, %v14266_v37, %v14285_v60  ;;  %v16210_v44 = vrot.slane %v14342_v12, 9  ;;  %v14446_v35 = vmax.f32 %v14341_v38, %v16208_v34  ;;  %v14447_v20 = vmax.f32 %v14340_v63, %v16209_v56 }
 0x6e9   :  { %v14287_v42 = vsel %vm13949_vm12, %v14270_v27, %v14286_v24  ;;  %v14496_v28 = vadd.f32 %v14445_v54, %v23083_v11  ;;  %v16205_v47 = vrot.slane %v14323_v46, 9  ;;  %v16206_v32 = vrot.slane %v14325_v5, 9 }
 0x6ea   :  { %v14288_v51 = vsel %vm13951_vm13, %v14274_v59, %v14287_v42  ;;  %v14448_v33 = vmax.f32 %v14342_v12, %v16210_v44  ;;  %v14497_v14 = vadd.f32 %v14446_v35, %v23101_v43  ;;  %v14498_v49 = vadd.f32 %v14447_v20, %v23092_v48 }
 0x6eb   :  { %14292 = vst [vmem:[%s23485_s5 + $0x18] sm:$0xff] %v14288_v51  ;;  %v14512_v37 = vmax.f32 %v14496_v28, 0.0  ;;  %v14441_v10 = vmax.f32 %v14316_v26, %v16203_v31  ;;  %v14442_v2 = vmax.f32 %v14324_v57, %v16204_v13  ;;  %v14443_v22 = vmax.f32 %v14323_v46, %v16205_v47 }
 0x6ec   :  { %v14499_v27 = vadd.f32 %v14448_v33, %v23104_v15  ;;  %v14513_v25 = vmax.f32 %v14497_v14, 0.0  ;;  %v14514_v58 = vmax.f32 %v14498_v49, 0.0  ;;  %v14444_v40 = vmax.f32 %v14325_v5, %v16206_v32 }
 0x6ed   :  { %v14559_v59 = vrot.slane %v14512_v37, %v23106_v21  ;;  %v14492_v41 = vadd.f32 %v14441_v10, %v23088_v53  ;;  %v14493_v39 = vadd.f32 %v14442_v2, %v23110_v62  ;;  %v14494_v50 = vadd.f32 %v14443_v22, %v23098_v18 }
 0x6ee   :  { %v14515_v30 = vmax.f32 %v14499_v27, 0.0  ;;  %v14563_v63 = vrot.slane %v14513_v25, %v23106_v21  ;;  %v14567_v26 = vrot.slane %v14514_v58, %v23106_v21  ;;  %v14495_v38 = vadd.f32 %v14444_v40, %v23115_v29 }
 0x6ef   :  { %v14508_v52 = vmax.f32 %v14492_v41, 0.0  ;;  %v14509_v7 = vmax.f32 %v14493_v39, 0.0  ;;  %v14510_v46 = vmax.f32 %v14494_v50, 0.0  ;;  %v14367_v57 = vrot.slane %v14304_v8, %v23080_v17 }
 0x6f0   :  { %v14571_v31 = vrot.slane %v14515_v30, %v23106_v21  ;;  %v14511_v16 = vmax.f32 %v14495_v38, 0.0  ;;  %v14374_v12 = vrot.slane %v14360_v6, %v23080_v17  ;;  %v14343_v34 = vcombine.high %v23321_v1, %v23321_v1 }
 0x6f1   :  { %v14543_v56 = vrot.slane %v14508_v52, %v23106_v21  ;;  %v14547_v60 = vrot.slane %v14509_v7, %v23106_v21  ;;  %v14551_v54 = vrot.slane %v14510_v46, %v23106_v21  ;;  %v14375_v5 = vcombine.high %v14367_v57, %v14367_v57 }
 0x6f2   :  { %v14555_v13 = vrot.slane %v14511_v16, %v23106_v21  ;;  %v14376_v24 = vcombine.high %v14374_v12, %v14374_v12  ;;  %v16215_v44 = vrot.slane %v14367_v57, 9  ;;  %v16217_v8 = vrot.slane %v14374_v12, 9 }
 0x6f3   :  { %v14604_v35 = vsel %vm13939_vm7, %v14547_v60, %v14543_v56  ;;  %v16216_v20 = vrot.slane %v14375_v5, 9  ;;  %v14350_v6 = vrot.slane %v23321_v1, %v23080_v17  ;;  %v14357_v42 = vrot.slane %v14343_v34, %v23080_v17  ;;  %v23920_v56 = vld [vmem:[#allocation83_spill] sm:$0xff] }
 0x6f4   :  { %v14605_v28 = vsel %vm13941_vm8, %v14551_v54, %v14604_v35  ;;  %v16218_v47 = vrot.slane %v14376_v24, 9  ;;  %v14453_v32 = vmax.f32 %v14367_v57, %v16215_v44  ;;  %v14455_v51 = vmax.f32 %v14374_v12, %v16217_v8  ;;  %v23922_v35 = vld [vmem:[#allocation14_spill] sm:$0xff] }
 0x6f5   :  { %v14606_v33 = vsel %vm13943_vm9, %v14555_v13, %v14605_v28  ;;  %v14454_v14 = vmax.f32 %v14375_v5, %v16216_v20  ;;  %v14358_v49 = vcombine.high %v14350_v6, %v14350_v6  ;;  %v14359_v37 = vcombine.high %v14357_v42, %v14357_v42 }
 0x6f6   :  { %v14607_v10 = vsel %vm13945_vm10, %v14559_v59, %v14606_v33  ;;  %v14456_v2 = vmax.f32 %v14376_v24, %v16218_v47  ;;  %v14504_v22 = vadd.f32 %v14453_v32, %v23083_v11  ;;  %v14506_v27 = vadd.f32 %v14455_v51, %v23092_v48  ;;  %v23921_v24 = vld [vmem:[#allocation84_spill] sm:$0xff] }
 0x6f7   :  { %v14608_v1 = vsel %vm13947_vm11, %v14563_v63, %v14607_v10  ;;  %v14505_v25 = vadd.f32 %v14454_v14, %v23101_v43  ;;  %v16211_v58 = vrot.slane %v14350_v6, 9  ;;  %v16212_v40 = vrot.slane %v14358_v49, 9  ;;  %v23925_v14 = vld [vmem:[#allocation56_spill] sm:$0xff] }
 0x6f8   :  { %v14609_v41 = vsel %vm13949_vm12, %v14567_v26, %v14608_v1  ;;  %v14507_v39 = vadd.f32 %v14456_v2, %v23104_v15  ;;  %v14520_v50 = vmax.f32 %v14504_v22, 0.0  ;;  %v16213_v38 = vrot.slane %v14357_v42, 9 }
 0x6f9   :  { %v14610_v30 = vsel %vm13951_vm13, %v14571_v31, %v14609_v41  ;;  %v16214_v59 = vrot.slane %v14359_v37, 9  ;;  %v14521_v52 = vmax.f32 %v14505_v25, 0.0  ;;  %v14522_v7 = vmax.f32 %v14506_v27, 0.0 }
 0x6fa   :  { %14620 = vst [vmem:[%s23485_s5 + $0x20] sm:$0xff] %v14610_v30  ;;  %v14449_v63 = vmax.f32 %v14350_v6, %v16211_v58  ;;  %v14523_v46 = vmax.f32 %v14507_v39, 0.0  ;;  %v14450_v57 = vmax.f32 %v14358_v49, %v16212_v40  ;;  %v14451_v16 = vmax.f32 %v14357_v42, %v16213_v38  ;;  %v23923_v6 = vld [vmem:[#allocation55_spill] sm:$0xff] }
 0x6fb   :  { %v14452_v12 = vmax.f32 %v14359_v37, %v16214_v59  ;;  %v14591_v26 = vrot.slane %v14520_v50, %v23106_v21  ;;  %v19131_v31 = vadd.f32 %v23237_v19, %v22870_v9  ;;  %v19132_v60 = vadd.f32 %v23240_v4, %v23920_v56  ;;  %v23924_v9 = vld [vmem:[#allocation15_spill] sm:$0xff] }
 0x6fc   :  { %v14500_v34 = vadd.f32 %v14449_v63, %v23088_v53  ;;  %v14501_v54 = vadd.f32 %v14450_v57, %v23110_v62  ;;  %v14502_v5 = vadd.f32 %v14451_v16, %v23098_v18  ;;  %v19133_v44 = vadd.f32 %v23247_v45, %v23921_v24 }
 0x6fd   :  { %v14503_v13 = vadd.f32 %v14452_v12, %v23115_v29  ;;  %v19134_v20 = vadd.f32 %v23251_v0, %v23922_v35  ;;  %v19135_v42 = vadd.f32 %v23259_v55, %v23923_v6  ;;  %v19136_v19 = vadd.f32 %v23263_v23, %v23924_v9 }
 0x6fe   :  { %v14516_v8 = vmax.f32 %v14500_v34, 0.0  ;;  %v14517_v4 = vmax.f32 %v14501_v54, 0.0  ;;  %v14518_v28 = vmax.f32 %v14502_v5, 0.0  ;;  %v19137_v32 = vadd.f32 %v23275_v36, %v22897_v3 }
 0x6ff   :  { %v14519_v47 = vmax.f32 %v14503_v13, 0.0  ;;  %v14631_v33 = vmax.f32 %v19131_v31, %v19135_v42  ;;  %v14630_v45 = vmax.f32 %v19132_v60, %v19136_v19  ;;  %v19138_v49 = vadd.f32 %v23281_v61, %v23925_v14 }
 0x700   :  { %v14575_v51 = vrot.slane %v14516_v8, %v23106_v21  ;;  %v14579_v0 = vrot.slane %v14517_v4, %v23106_v21  ;;  %v14583_v55 = vrot.slane %v14518_v28, %v23106_v21  ;;  %v14633_v23 = vmax.f32 %v19133_v44, %v19137_v32 }
 0x701   :  { %v14587_v37 = vrot.slane %v14519_v47, %v23106_v21  ;;  %v14655_v10 = vcombine.high %v14631_v33, %v14631_v33  ;;  %v14662_v2 = vrot.slane %v14631_v33, %v23080_v17  ;;  %v14638_v22 = vcombine.high %v14630_v45, %v14630_v45 }
 0x702   :  { %v14645_v3 = vrot.slane %v14630_v45, %v23080_v17  ;;  %v14595_v36 = vrot.slane %v14521_v52, %v23106_v21  ;;  %v14599_v27 = vrot.slane %v14522_v7, %v23106_v21  ;;  %v14611_v1 = vsel %vm13939_vm7, %v14579_v0, %v14575_v51 }
 0x703   :  { %v23407_v61 = vmax.f32 %v19134_v20, %v19138_v49  ;;  %v14612_v25 = vsel %vm13941_vm8, %v14583_v55, %v14611_v1  ;;  %v14669_v58 = vrot.slane %v14655_v10, %v23080_v17  ;;  %v14670_v40 = vcombine.high %v14662_v2, %v14662_v2 }
 0x704   :  { %v16224_v41 = vrot.slane %v14662_v2, 9  ;;  %v14613_v39 = vsel %vm13943_vm9, %v14587_v37, %v14612_v25  ;;  %v14652_v50 = vrot.slane %v14638_v22, %v23080_v17  ;;  %v14653_v30 = vcombine.high %v14645_v3, %v14645_v3 }
 0x705   :  { %v16220_v38 = vrot.slane %v14645_v3, 9  ;;  %v14614_v59 = vsel %vm13945_vm10, %v14591_v26, %v14613_v39  ;;  %v14671_v52 = vcombine.high %v14669_v58, %v14669_v58  ;;  %v16225_v7 = vrot.slane %v14670_v40, 9 }
 0x706   :  { %v16226_v63 = vrot.slane %v14669_v58, 9  ;;  %v14603_v57 = vrot.slane %v14523_v46, %v23106_v21  ;;  %v14615_v16 = vsel %vm13947_vm11, %v14595_v36, %v14614_v59  ;;  %v14654_v12 = vcombine.high %v14652_v50, %v14652_v50 }
 0x707   :  { %v16221_v34 = vrot.slane %v14653_v30, 9  ;;  %v14616_v31 = vsel %vm13949_vm12, %v14599_v27, %v14615_v16  ;;  %v16227_v56 = vrot.slane %v14671_v52, 9  ;;  %v14774_v60 = vmax.f32 %v14662_v2, %v16224_v41 }
 0x708   :  { %v14775_v54 = vmax.f32 %v14670_v40, %v16225_v7  ;;  %v14617_v5 = vsel %vm13951_vm13, %v14603_v57, %v14616_v31  ;;  %v16222_v13 = vrot.slane %v14652_v50, 9  ;;  %v16223_v24 = vrot.slane %v14654_v12, 9 }
 0x709   :  { %14621 = vst [vmem:[%s23485_s5 + $0x28] sm:$0xff] %v14617_v5  ;;  %v14776_v26 = vmax.f32 %v14669_v58, %v16226_v63  ;;  %v14777_v44 = vmax.f32 %v14671_v52, %v16227_v56  ;;  %v14770_v46 = vmax.f32 %v14645_v3, %v16220_v38  ;;  %v14771_v8 = vmax.f32 %v14653_v30, %v16221_v34 }
 0x70a   :  { %v14772_v35 = vmax.f32 %v14652_v50, %v16222_v13  ;;  %v14773_v20 = vmax.f32 %v14654_v12, %v16223_v24  ;;  %v14689_v6 = vcombine.high %v14633_v23, %v14633_v23  ;;  %v14825_v42 = vadd.f32 %v14774_v60, %v23083_v11 }
 0x70b   :  { %v14826_v9 = vadd.f32 %v14775_v54, %v23101_v43  ;;  %v14821_v19 = vadd.f32 %v14770_v46, %v23088_v53  ;;  %v14822_v4 = vadd.f32 %v14771_v8, %v23110_v62  ;;  %v14696_v32 = vrot.slane %v14633_v23, %v23080_v17 }
 0x70c   :  { %v14823_v28 = vadd.f32 %v14772_v35, %v23098_v18  ;;  %v14824_v47 = vadd.f32 %v14773_v20, %v23115_v29  ;;  %v14827_v51 = vadd.f32 %v14776_v26, %v23092_v48  ;;  %v14828_v33 = vadd.f32 %v14777_v44, %v23104_v15 }
 0x70d   :  { %v14837_v45 = vmax.f32 %v14821_v19, 0.0  ;;  %v14838_v14 = vmax.f32 %v14822_v4, 0.0  ;;  %v14703_v55 = vrot.slane %v14689_v6, %v23080_v17  ;;  %v14841_v37 = vmax.f32 %v14825_v42, 0.0 }
 0x70e   :  { %v14839_v49 = vmax.f32 %v14823_v28, 0.0  ;;  %v14840_v0 = vmax.f32 %v14824_v47, 0.0  ;;  %v14842_v10 = vmax.f32 %v14826_v9, 0.0  ;;  %v14704_v36 = vcombine.high %v14696_v32, %v14696_v32 }
 0x70f   :  { %v14872_v2 = vrot.slane %v14837_v45, %v23106_v21  ;;  %v14876_v22 = vrot.slane %v14838_v14, %v23106_v21  ;;  %v14843_v27 = vmax.f32 %v14827_v51, 0.0  ;;  %v14844_v1 = vmax.f32 %v14828_v33, 0.0 }
 0x710   :  { %v14880_v3 = vrot.slane %v14839_v49, %v23106_v21  ;;  %v14884_v23 = vrot.slane %v14840_v0, %v23106_v21  ;;  %v14672_v25 = vcombine.high %v23407_v61, %v23407_v61  ;;  %v14705_v40 = vcombine.high %v14703_v55, %v14703_v55 }
 0x711   :  { %v14933_v58 = vsel %vm13939_vm7, %v14876_v22, %v14872_v2  ;;  %v14679_v41 = vrot.slane %v23407_v61, %v23080_v17  ;;  %v14888_v39 = vrot.slane %v14841_v37, %v23106_v21  ;;  %v14892_v50 = vrot.slane %v14842_v10, %v23106_v21 }
 0x712   :  { %v14934_v30 = vsel %vm13941_vm8, %v14880_v3, %v14933_v58  ;;  %v16232_v38 = vrot.slane %v14696_v32, 9  ;;  %v16233_v52 = vrot.slane %v14704_v36, 9  ;;  %v14686_v7 = vrot.slane %v14672_v25, %v23080_v17 }
 0x713   :  { %v14935_v59 = vsel %vm13943_vm9, %v14884_v23, %v14934_v30  ;;  %v14687_v63 = vcombine.high %v14679_v41, %v14679_v41  ;;  %v14896_v57 = vrot.slane %v14843_v27, %v23106_v21  ;;  %v14900_v16 = vrot.slane %v14844_v1, %v23106_v21 }
 0x714   :  { %v14936_v12 = vsel %vm13945_vm10, %v14888_v39, %v14935_v59  ;;  %v16234_v61 = vrot.slane %v14703_v55, 9  ;;  %v16235_v31 = vrot.slane %v14705_v40, 9  ;;  %v14688_v56 = vcombine.high %v14686_v7, %v14686_v7 }
 0x715   :  { %v14937_v34 = vsel %vm13947_vm11, %v14892_v50, %v14936_v12  ;;  %v16228_v60 = vrot.slane %v14679_v41, 9  ;;  %v14782_v5 = vmax.f32 %v14696_v32, %v16232_v38  ;;  %v14783_v24 = vmax.f32 %v14704_v36, %v16233_v52 }
 0x716   :  { %v14938_v54 = vsel %vm13949_vm12, %v14896_v57, %v14937_v34  ;;  %v16229_v17 = vrot.slane %v14687_v63, 9  ;;  %v16230_v26 = vrot.slane %v14686_v7, 9  ;;  %v14784_v44 = vmax.f32 %v14703_v55, %v16234_v61 }
 0x717   :  { %v14939_v13 = vsel %vm13951_vm13, %v14900_v16, %v14938_v54  ;;  %v16231_v46 = vrot.slane %v14688_v56, 9  ;;  %v14778_v8 = vmax.f32 %v14679_v41, %v16228_v60  ;;  %v14785_v35 = vmax.f32 %v14705_v40, %v16235_v31 }
 0x718   :  { %14949 = vst [vmem:[%s23485_s5 + $0x30] sm:$0xff] %v14939_v13  ;;  %v14779_v20 = vmax.f32 %v14687_v63, %v16229_v17  ;;  %v14780_v6 = vmax.f32 %v14686_v7, %v16230_v26  ;;  %v14833_v42 = vadd.f32 %v14782_v5, %v23083_v11  ;;  %v14834_v4 = vadd.f32 %v14783_v24, %v23101_v43 }
 0x719   :  { %v14781_v9 = vmax.f32 %v14688_v56, %v16231_v46  ;;  %v14829_v19 = vadd.f32 %v14778_v8, %v23088_v53  ;;  %v14835_v32 = vadd.f32 %v14784_v44, %v23092_v48  ;;  %v14836_v45 = vadd.f32 %v14785_v35, %v23104_v15 }
 0x71a   :  { %v14830_v28 = vadd.f32 %v14779_v20, %v23110_v62  ;;  %v14831_v47 = vadd.f32 %v14780_v6, %v23098_v18  ;;  %v14849_v0 = vmax.f32 %v14833_v42, 0.0  ;;  %v14850_v55 = vmax.f32 %v14834_v4, 0.0 }
 0x71b   :  { %v14832_v51 = vadd.f32 %v14781_v9, %v23115_v29  ;;  %v14845_v33 = vmax.f32 %v14829_v19, 0.0  ;;  %v14851_v37 = vmax.f32 %v14835_v32, 0.0  ;;  %v14852_v48 = vmax.f32 %v14836_v45, 0.0 }
 0x71c   :  { %v14846_v14 = vmax.f32 %v14830_v28, 0.0  ;;  %v14847_v49 = vmax.f32 %v14831_v47, 0.0  ;;  %v14920_v10 = vrot.slane %v14849_v0, %v23106_v21  ;;  %v14924_v2 = vrot.slane %v14850_v55, %v23106_v21 }
 0x71d   :  { %v14848_v11 = vmax.f32 %v14832_v51, 0.0  ;;  %v14904_v53 = vrot.slane %v14845_v33, %v23106_v21  ;;  %v14928_v3 = vrot.slane %v14851_v37, %v23106_v21  ;;  %v14932_v36 = vrot.slane %v14852_v48, %v23106_v21 }
 0x71e   :  { %v14908_v43 = vrot.slane %v14846_v14, %v23106_v21  ;;  %v14912_v62 = vrot.slane %v14847_v49, %v23106_v21 }
 0x71f   :  { %v14916_v18 = vrot.slane %v14848_v11, %v23106_v21 }
 0x720   :  { %v14940_v29 = vsel %vm13939_vm7, %v14908_v43, %v14904_v53 }
 0x721   :  { %v14941_v15 = vsel %vm13941_vm8, %v14912_v62, %v14940_v29 }
 0x722   :  { %v14942_v22 = vsel %vm13943_vm9, %v14916_v18, %v14941_v15 }
 0x723   :  { %v14943_v23 = vsel %vm13945_vm10, %v14920_v10, %v14942_v22 }
 0x724   :  { %v14944_v27 = vsel %vm13947_vm11, %v14924_v2, %v14943_v23 }
 0x725   :  { %v14945_v1 = vsel %vm13949_vm12, %v14928_v3, %v14944_v27 }
 0x726   :  { %v14946_v25 = vsel %vm13951_vm13, %v14932_v36, %v14945_v1 }
 0x727   :  { %14950 = vst [vmem:[%s23485_s5 + $0x38] sm:$0xff] %v14946_v25 }

</bundles_post_ra>
